<compile_context>
chip_gen: v5e
topology: v5e:2x2
jax: 0.10.0
libtpu: 0.0.40
codegen_flags: <defaults>
</compile_context>

<pallas_src>
import jax
import jax.numpy as jnp
from jax.experimental import pallas as pl
from jax.experimental.pallas import tpu as pltpu

FC_TK = 1024  # K tile for the big FC1 matmul (7744 zero-padded to 8192)


# ----------------------------------------------------------------------------
# Conv block kernel: im2col matmul (K = 9*Cin) + bias + ReLU + 2x2 maxpool.
# One grid step = one batch element; patches are pre-grouped by pool-window
# position so the pool is a max over 4 whole-image matmuls.
# ----------------------------------------------------------------------------
def conv_pool_kernel(p_ref, w_ref, b_ref, o_ref):
    # p_ref: (4, 9*Cin, M)  im2col patches, one slab per 2x2-pool position
    # w_ref: (Cout, 9*Cin)
    # b_ref: (Cout, 1)
    # o_ref: (Cout, M)      M = Ho*Wo (pooled spatial, lane-dense)
    w = w_ref[...]
    r = jnp.dot(w, p_ref[0], preferred_element_type=jnp.float32)
    for k in range(1, 4):
        r = jnp.maximum(r, jnp.dot(w, p_ref[k],
                                   preferred_element_type=jnp.float32))
    # max(relu(conv + b)) == relu(max(conv) + b): bias is constant per channel
    # and ReLU is monotone, so bias/ReLU are applied once after the pool max.
    o_ref[...] = jnp.maximum(r + b_ref[...], 0.0).astype(o_ref.dtype)


def conv_block(x, w_mat, b_col, out_dtype=jnp.float32):
    """x: (B, Cin, H, W); w_mat: (Cout, 9*Cin); b_col: (Cout, 1)
       -> (B, Cout, H//2, W//2)."""
    B, C, H, W = x.shape
    Cout = w_mat.shape[0]
    Ho, Wo = H // 2, W // 2
    M = Ho * Wo
    # im2col + pool-window grouping (cheap XLA slicing/transposes on tiny
    # tensors; all heavy compute stays in the Pallas kernel).
    xp = jnp.pad(x, ((0, 0), (0, 0), (1, 1), (1, 1)))           # SAME padding
    taps = jnp.stack([xp[:, :, dy:dy + H, dx:dx + W]
                      for dy in range(3) for dx in range(3)], axis=1)
    q = taps.reshape(B, 9 * C, Ho, 2, Wo, 2)
    q = q.transpose(0, 3, 5, 1, 2, 4).reshape(B, 4, 9 * C, M)
    out = pl.pallas_call(
        conv_pool_kernel,
        out_shape=jax.ShapeDtypeStruct((B, Cout, M), out_dtype),
        grid=(B,),
        in_specs=[
            pl.BlockSpec((None, 4, 9 * C, M), lambda b: (b, 0, 0, 0)),
            pl.BlockSpec((Cout, 9 * C), lambda b: (0, 0)),
            pl.BlockSpec((Cout, 1), lambda b: (0, 0)),
        ],
        out_specs=pl.BlockSpec((None, Cout, M), lambda b: (b, 0, 0)),
        compiler_params=pltpu.CompilerParams(
            dimension_semantics=("parallel",)),
    )(q, w_mat, b_col)
    return out.reshape(B, Cout, Ho, Wo)


# ----------------------------------------------------------------------------
# Fused FC stack: K-tiled FC1 (bf16 weight streaming, f32 accumulator) with the
# 1024->128->64->3 tail + softmax fused into the last K step.
# ----------------------------------------------------------------------------
def fc_fused_kernel(x_ref, w1_ref, b1_ref, w2_ref, b2_ref, w3_ref, b3_ref,
                    w4_ref, b4_ref, o_ref, acc_ref):
    k = pl.program_id(0)

    @pl.when(k == 0)
    def _():
        acc_ref[...] = jnp.zeros_like(acc_ref)

    # bf16 x bf16 -> f32 accumulate: fw1 (the only large weight, ~16 MB bf16)
    # is the dominant HBM stream of the whole net.
    acc_ref[...] += jnp.dot(x_ref[...], w1_ref[...],
                            preferred_element_type=jnp.float32)

    @pl.when(k == pl.num_programs(0) - 1)
    def _():
        h = jnp.maximum(acc_ref[...] + b1_ref[...], 0.0)
        h = jnp.maximum(jnp.dot(h, w2_ref[...],
                                preferred_element_type=jnp.float32)
                        + b2_ref[...], 0.0)
        h = jnp.maximum(jnp.dot(h, w3_ref[...],
                                preferred_element_type=jnp.float32)
                        + b3_ref[...], 0.0)
        logits = jnp.dot(h, w4_ref[...],
                         preferred_element_type=jnp.float32) + b4_ref[...]
        m = jnp.max(logits, axis=-1, keepdims=True)
        e = jnp.exp(logits - m)
        o_ref[...] = e / jnp.sum(e, axis=-1, keepdims=True)


def fc_stack(x_bf16, kp, tk=FC_TK):
    """x_bf16: (B, Kp) bfloat16, zero-padded to a multiple of tk."""
    B, Kp = x_bf16.shape
    N1 = kp['fw1'].shape[1]
    n2 = kp['fw2'].shape[1]
    n3 = kp['fw3'].shape[1]
    n4 = kp['fw4'].shape[1]
    # NOTE: an additional 'parallel' N-tile of fw1 would let v7x's two
    # TensorCores split the weight stream, but it would preclude fusing the
    # tail + softmax into the last K step; at B=2 the eliminated launch and
    # HBM round-trip of the (B,1024) activation win, so fusion is kept.
    return pl.pallas_call(
        fc_fused_kernel,
        out_shape=jax.ShapeDtypeStruct((B, n4), jnp.float32),
        grid=(Kp // tk,),
        in_specs=[
            pl.BlockSpec((B, tk), lambda k: (0, k)),
            pl.BlockSpec((tk, N1), lambda k: (k, 0)),
            pl.BlockSpec((1, N1), lambda k: (0, 0)),
            pl.BlockSpec((N1, n2), lambda k: (0, 0)),
            pl.BlockSpec((1, n2), lambda k: (0, 0)),
            pl.BlockSpec((n2, n3), lambda k: (0, 0)),
            pl.BlockSpec((1, n3), lambda k: (0, 0)),
            pl.BlockSpec((n3, n4), lambda k: (0, 0)),
            pl.BlockSpec((1, n4), lambda k: (0, 0)),
        ],
        out_specs=pl.BlockSpec((B, n4), lambda k: (0, 0)),
        scratch_shapes=[pltpu.VMEM((B, N1), jnp.float32)],
        compiler_params=pltpu.CompilerParams(
            dimension_semantics=("arbitrary",)),
    )(x_bf16, kp['fw1'], kp['fb1'], kp['fw2'], kp['fb2'],
      kp['fw3'], kp['fb3'], kp['fw4'], kp['fb4'])


# ----------------------------------------------------------------------------
# Parameters (deterministic, PyTorch-default-like uniform init)
# ----------------------------------------------------------------------------
def init_params(key, channel=1):
    ks = jax.random.split(key, 14)

    def u(k, shape, fan_in):
        bound = 1.0 / (fan_in ** 0.5)
        return jax.random.uniform(k, shape, jnp.float32, -bound, bound)

    p = {}
    p['w1'], p['b1'] = u(ks[0], (3, 3, channel, 6), channel * 9), u(ks[1], (6,), channel * 9)
    p['w2'], p['b2'] = u(ks[2], (3, 3, 6, 16), 6 * 9), u(ks[3], (16,), 6 * 9)
    p['w3'], p['b3'] = u(ks[4], (3, 3, 16, 64), 16 * 9), u(ks[5], (64,), 16 * 9)
    # fw1 rows are indexed in PyTorch's flatten order (C, H, W); loading a real
    # checkpoint would only need a transpose of each Linear weight (no row perm).
    p['fw1'], p['fb1'] = u(ks[6], (64 * 11 * 11, 1024), 64 * 11 * 11), u(ks[7], (1024,), 64 * 11 * 11)
    p['fw2'], p['fb2'] = u(ks[8], (1024, 128), 1024), u(ks[9], (128,), 1024)
    p['fw3'], p['fb3'] = u(ks[10], (128, 64), 128), u(ks[11], (64,), 128)
    p['fw4'], p['fb4'] = u(ks[12], (64, 3), 64), u(ks[13], (3,), 64)
    return p


def prepare_params(p):
    """One-time repack into kernel-friendly layouts (done outside the forward)."""
    kp = {}
    for i in (1, 2, 3):
        w = p[f'w{i}']                                     # (3, 3, Cin, Cout)
        cout = w.shape[-1]
        # (Cout, 9*Cin): row order (dy, dx, cin) matches the im2col channel order.
        kp[f'cw{i}'] = jnp.transpose(w, (3, 0, 1, 2)).reshape(cout, -1)
        kp[f'cb{i}'] = p[f'b{i}'].reshape(cout, 1)
    K = p['fw1'].shape[0]
    Kp = pl.cdiv(K, FC_TK) * FC_TK
    # Zero-pad K to a tile multiple and store the big weight in bf16.
    kp['fw1'] = jnp.pad(p['fw1'], ((0, Kp - K), (0, 0))).astype(jnp.bfloat16)
    kp['fb1'] = p['fb1'].reshape(1, -1)
    kp['fw2'], kp['fb2'] = p['fw2'], p['fb2'].reshape(1, -1)
    kp['fw3'], kp['fb3'] = p['fw3'], p['fb3'].reshape(1, -1)
    kp['fw4'], kp['fb4'] = p['fw4'], p['fb4'].reshape(1, -1)
    return kp


# ----------------------------------------------------------------------------
# Full forward pass (Net.forward, mode='bmp'), NCHW input like PyTorch.
# ----------------------------------------------------------------------------
def net_forward(x_nchw, kp):
    x = x_nchw.astype(jnp.float32)                          # (B, 1, 88, 88)
    x = conv_block(x, kp['cw1'], kp['cb1'])                 # (B, 6, 44, 44)
    x = conv_block(x, kp['cw2'], kp['cb2'])                 # (B, 16, 22, 22)
    x = conv_block(x, kp['cw3'], kp['cb3'],
                   out_dtype=jnp.bfloat16)                  # (B, 64, 11, 11) bf16
    B = x.shape[0]
    x = x.reshape(B, -1)                                    # (B, 7744), (C,H,W) order
    Kp = kp['fw1'].shape[0]
    x = jnp.pad(x, ((0, 0), (0, Kp - x.shape[1])))          # zero-pad K to 8192
    return fc_stack(x, kp)                                  # (B, 3) softmax probs


if __name__ == "__main__":
    key = jax.random.PRNGKey(0)
    pkey, xkey = jax.random.split(key)
    params = init_params(pkey, channel=1)
    kparams = prepare_params(params)
    # Input spatial size 88x88 is implied by the fc input 64*11*11 (three /2 pools).
    x = jax.random.normal(xkey, (2, 1, 88, 88), jnp.float32)

    out = jax.jit(net_forward)(x, kparams)
    out = jax.block_until_ready(out)

    assert out.shape == (2, 3)
    assert bool(jnp.all(jnp.isfinite(out)))
    assert bool(jnp.allclose(jnp.sum(out, axis=1), 1.0, atol=1e-4))
    print("KERNEL_OK")
</pallas_src>

<mosaic_0001>
module attributes {stable_mosaic.version = 11 : i64} {
  func.func @conv_pool_kernel(%arg0: i32, %arg1: memref<1x4x9x1936xf32, #tpu.memory_space<vmem>>, %arg2: memref<6x9xf32, #tpu.memory_space<vmem>>, %arg3: memref<6x1xf32, #tpu.memory_space<vmem>>, %arg4: memref<1x6x1936xf32, #tpu.memory_space<vmem>>) attributes {dimension_semantics = [#tpu.dimension_semantics<parallel>], iteration_bounds = array<i64: 2>, scalar_prefetch = 0 : i64, scratch_operands = 0 : i64, tpu.core_type = #tpu.core_type<tc>, window_params = [{transform_indices = @transform_0, window_bounds = array<i64: 1, 4, 9, 1936>}, {pipeline_mode = #tpu.pipeline_mode<synchronous>, transform_indices = @transform_1, window_bounds = array<i64: 6, 9>}, {pipeline_mode = #tpu.pipeline_mode<synchronous>, transform_indices = @transform_2, window_bounds = array<i64: 6, 1>}, {transform_indices = @transform_3, window_bounds = array<i64: 1, 6, 1936>}]} {
    %c0 = arith.constant 0 : index
    %c0_0 = arith.constant 0 : index
    %0 = vector.load %arg2[%c0, %c0_0] : memref<6x9xf32, #tpu.memory_space<vmem>>, vector<6x9xf32>
    %c0_1 = arith.constant 0 : index
    %c0_2 = arith.constant 0 : index
    %c0_3 = arith.constant 0 : index
    %c0_4 = arith.constant 0 : index
    %1 = vector.load %arg1[%c0_1, %c0_2, %c0_3, %c0_4] : memref<1x4x9x1936xf32, #tpu.memory_space<vmem>>, vector<1x1x9x1936xf32>
    %2 = vector.shape_cast %1 : vector<1x1x9x1936xf32> to vector<9x1936xf32>
    %cst = arith.constant dense<0.000000e+00> : vector<6x1936xf32>
    %3 = tpu.matmul %0, %2, %cst {dimension_numbers = #tpu.dot_dimension_numbers<[1], [0], [0], [1], [0, 0, 1, 1], [], []>} : vector<6x9xf32>, vector<9x1936xf32>, vector<6x1936xf32> -> vector<6x1936xf32>
    %c0_5 = arith.constant 0 : index
    %c1 = arith.constant 1 : index
    %c0_6 = arith.constant 0 : index
    %c0_7 = arith.constant 0 : index
    %4 = vector.load %arg1[%c0_5, %c1, %c0_6, %c0_7] : memref<1x4x9x1936xf32, #tpu.memory_space<vmem>>, vector<1x1x9x1936xf32>
    %5 = vector.shape_cast %4 : vector<1x1x9x1936xf32> to vector<9x1936xf32>
    %cst_8 = arith.constant dense<0.000000e+00> : vector<6x1936xf32>
    %6 = tpu.matmul %0, %5, %cst_8 {dimension_numbers = #tpu.dot_dimension_numbers<[1], [0], [0], [1], [0, 0, 1, 1], [], []>} : vector<6x9xf32>, vector<9x1936xf32>, vector<6x1936xf32> -> vector<6x1936xf32>
    %7 = arith.maximumf %3, %6 : vector<6x1936xf32>
    %c0_9 = arith.constant 0 : index
    %c2 = arith.constant 2 : index
    %c0_10 = arith.constant 0 : index
    %c0_11 = arith.constant 0 : index
    %8 = vector.load %arg1[%c0_9, %c2, %c0_10, %c0_11] : memref<1x4x9x1936xf32, #tpu.memory_space<vmem>>, vector<1x1x9x1936xf32>
    %9 = vector.shape_cast %8 : vector<1x1x9x1936xf32> to vector<9x1936xf32>
    %cst_12 = arith.constant dense<0.000000e+00> : vector<6x1936xf32>
    %10 = tpu.matmul %0, %9, %cst_12 {dimension_numbers = #tpu.dot_dimension_numbers<[1], [0], [0], [1], [0, 0, 1, 1], [], []>} : vector<6x9xf32>, vector<9x1936xf32>, vector<6x1936xf32> -> vector<6x1936xf32>
    %11 = arith.maximumf %7, %10 : vector<6x1936xf32>
    %c0_13 = arith.constant 0 : index
    %c3 = arith.constant 3 : index
    %c0_14 = arith.constant 0 : index
    %c0_15 = arith.constant 0 : index
    %12 = vector.load %arg1[%c0_13, %c3, %c0_14, %c0_15] : memref<1x4x9x1936xf32, #tpu.memory_space<vmem>>, vector<1x1x9x1936xf32>
    %13 = vector.shape_cast %12 : vector<1x1x9x1936xf32> to vector<9x1936xf32>
    %cst_16 = arith.constant dense<0.000000e+00> : vector<6x1936xf32>
    %14 = tpu.matmul %0, %13, %cst_16 {dimension_numbers = #tpu.dot_dimension_numbers<[1], [0], [0], [1], [0, 0, 1, 1], [], []>} : vector<6x9xf32>, vector<9x1936xf32>, vector<6x1936xf32> -> vector<6x1936xf32>
    %15 = arith.maximumf %11, %14 : vector<6x1936xf32>
    %c0_17 = arith.constant 0 : index
    %c0_18 = arith.constant 0 : index
    %16 = vector.load %arg3[%c0_17, %c0_18] : memref<6x1xf32, #tpu.memory_space<vmem>>, vector<6x1xf32>
    %17 = vector.broadcast %16 : vector<6x1xf32> to vector<6x1936xf32>
    %18 = arith.addf %15, %17 : vector<6x1936xf32>
    %cst_19 = arith.constant 0.000000e+00 : f32
    %19 = vector.broadcast %cst_19 : f32 to vector<6x1936xf32>
    %20 = arith.maximumf %18, %19 : vector<6x1936xf32>
    %c0_20 = arith.constant 0 : index
    %c0_21 = arith.constant 0 : index
    %c0_22 = arith.constant 0 : index
    %21 = vector.load %arg4[%c0_20, %c0_21, %c0_22] : memref<1x6x1936xf32, #tpu.memory_space<vmem>>, vector<1x6x1936xf32>
    %22 = vector.shape_cast %21 : vector<1x6x1936xf32> to vector<6x1936xf32>
    %23 = vector.shape_cast %20 : vector<6x1936xf32> to vector<1x6x1936xf32>
    tpu.vector_store %arg4[%c0_20, %c0_21, %c0_22], %23 {strides = array<i32>} : memref<1x6x1936xf32, #tpu.memory_space<vmem>>, vector<1x6x1936xf32>,
    return
  }
  func.func @transform_0(%arg0: i32) -> (i32, i32, i32, i32) {
    %c0_i32 = arith.constant 0 : i32
    %c0_i32_0 = arith.constant 0 : i32
    %c0_i32_1 = arith.constant 0 : i32
    %c0_i32_2 = arith.constant 0 : i32
    return %arg0, %c0_i32, %c0_i32_0, %c0_i32_1 : i32, i32, i32, i32
  }
  func.func @transform_1(%arg0: i32) -> (i32, i32) {
    %c0_i32 = arith.constant 0 : i32
    %c0_i32_0 = arith.constant 0 : i32
    %c0_i32_1 = arith.constant 0 : i32
    return %c0_i32, %c0_i32_0 : i32, i32
  }
  func.func @transform_2(%arg0: i32) -> (i32, i32) {
    %c0_i32 = arith.constant 0 : i32
    %c0_i32_0 = arith.constant 0 : i32
    %c0_i32_1 = arith.constant 0 : i32
    return %c0_i32, %c0_i32_0 : i32, i32
  }
  func.func @transform_3(%arg0: i32) -> (i32, i32, i32) {
    %c0_i32 = arith.constant 0 : i32
    %c0_i32_0 = arith.constant 0 : i32
    %c0_i32_1 = arith.constant 0 : i32
    return %arg0, %c0_i32, %c0_i32_0 : i32, i32, i32
  }
}

module attributes {stable_mosaic.version = 11 : i64} {
  func.func @conv_pool_kernel(%arg0: i32, %arg1: memref<1x4x54x484xf32, #tpu.memory_space<vmem>>, %arg2: memref<16x54xf32, #tpu.memory_space<vmem>>, %arg3: memref<16x1xf32, #tpu.memory_space<vmem>>, %arg4: memref<1x16x484xf32, #tpu.memory_space<vmem>>) attributes {dimension_semantics = [#tpu.dimension_semantics<parallel>], iteration_bounds = array<i64: 2>, scalar_prefetch = 0 : i64, scratch_operands = 0 : i64, tpu.core_type = #tpu.core_type<tc>, window_params = [{transform_indices = @transform_0, window_bounds = array<i64: 1, 4, 54, 484>}, {pipeline_mode = #tpu.pipeline_mode<synchronous>, transform_indices = @transform_1, window_bounds = array<i64: 16, 54>}, {pipeline_mode = #tpu.pipeline_mode<synchronous>, transform_indices = @transform_2, window_bounds = array<i64: 16, 1>}, {transform_indices = @transform_3, window_bounds = array<i64: 1, 16, 484>}]} {
    %c0 = arith.constant 0 : index
    %c0_0 = arith.constant 0 : index
    %0 = vector.load %arg2[%c0, %c0_0] : memref<16x54xf32, #tpu.memory_space<vmem>>, vector<16x54xf32>
    %c0_1 = arith.constant 0 : index
    %c0_2 = arith.constant 0 : index
    %c0_3 = arith.constant 0 : index
    %c0_4 = arith.constant 0 : index
    %1 = vector.load %arg1[%c0_1, %c0_2, %c0_3, %c0_4] : memref<1x4x54x484xf32, #tpu.memory_space<vmem>>, vector<1x1x54x484xf32>
    %2 = vector.shape_cast %1 : vector<1x1x54x484xf32> to vector<54x484xf32>
    %cst = arith.constant dense<0.000000e+00> : vector<16x484xf32>
    %3 = tpu.matmul %0, %2, %cst {dimension_numbers = #tpu.dot_dimension_numbers<[1], [0], [0], [1], [0, 0, 1, 1], [], []>} : vector<16x54xf32>, vector<54x484xf32>, vector<16x484xf32> -> vector<16x484xf32>
    %c0_5 = arith.constant 0 : index
    %c1 = arith.constant 1 : index
    %c0_6 = arith.constant 0 : index
    %c0_7 = arith.constant 0 : index
    %4 = vector.load %arg1[%c0_5, %c1, %c0_6, %c0_7] : memref<1x4x54x484xf32, #tpu.memory_space<vmem>>, vector<1x1x54x484xf32>
    %5 = vector.shape_cast %4 : vector<1x1x54x484xf32> to vector<54x484xf32>
    %cst_8 = arith.constant dense<0.000000e+00> : vector<16x484xf32>
    %6 = tpu.matmul %0, %5, %cst_8 {dimension_numbers = #tpu.dot_dimension_numbers<[1], [0], [0], [1], [0, 0, 1, 1], [], []>} : vector<16x54xf32>, vector<54x484xf32>, vector<16x484xf32> -> vector<16x484xf32>
    %7 = arith.maximumf %3, %6 : vector<16x484xf32>
    %c0_9 = arith.constant 0 : index
    %c2 = arith.constant 2 : index
    %c0_10 = arith.constant 0 : index
    %c0_11 = arith.constant 0 : index
    %8 = vector.load %arg1[%c0_9, %c2, %c0_10, %c0_11] : memref<1x4x54x484xf32, #tpu.memory_space<vmem>>, vector<1x1x54x484xf32>
    %9 = vector.shape_cast %8 : vector<1x1x54x484xf32> to vector<54x484xf32>
    %cst_12 = arith.constant dense<0.000000e+00> : vector<16x484xf32>
    %10 = tpu.matmul %0, %9, %cst_12 {dimension_numbers = #tpu.dot_dimension_numbers<[1], [0], [0], [1], [0, 0, 1, 1], [], []>} : vector<16x54xf32>, vector<54x484xf32>, vector<16x484xf32> -> vector<16x484xf32>
    %11 = arith.maximumf %7, %10 : vector<16x484xf32>
    %c0_13 = arith.constant 0 : index
    %c3 = arith.constant 3 : index
    %c0_14 = arith.constant 0 : index
    %c0_15 = arith.constant 0 : index
    %12 = vector.load %arg1[%c0_13, %c3, %c0_14, %c0_15] : memref<1x4x54x484xf32, #tpu.memory_space<vmem>>, vector<1x1x54x484xf32>
    %13 = vector.shape_cast %12 : vector<1x1x54x484xf32> to vector<54x484xf32>
    %cst_16 = arith.constant dense<0.000000e+00> : vector<16x484xf32>
    %14 = tpu.matmul %0, %13, %cst_16 {dimension_numbers = #tpu.dot_dimension_numbers<[1], [0], [0], [1], [0, 0, 1, 1], [], []>} : vector<16x54xf32>, vector<54x484xf32>, vector<16x484xf32> -> vector<16x484xf32>
    %15 = arith.maximumf %11, %14 : vector<16x484xf32>
    %c0_17 = arith.constant 0 : index
    %c0_18 = arith.constant 0 : index
    %16 = vector.load %arg3[%c0_17, %c0_18] : memref<16x1xf32, #tpu.memory_space<vmem>>, vector<16x1xf32>
    %17 = vector.broadcast %16 : vector<16x1xf32> to vector<16x484xf32>
    %18 = arith.addf %15, %17 : vector<16x484xf32>
    %cst_19 = arith.constant 0.000000e+00 : f32
    %19 = vector.broadcast %cst_19 : f32 to vector<16x484xf32>
    %20 = arith.maximumf %18, %19 : vector<16x484xf32>
    %c0_20 = arith.constant 0 : index
    %c0_21 = arith.constant 0 : index
    %c0_22 = arith.constant 0 : index
    %21 = vector.load %arg4[%c0_20, %c0_21, %c0_22] : memref<1x16x484xf32, #tpu.memory_space<vmem>>, vector<1x16x484xf32>
    %22 = vector.shape_cast %21 : vector<1x16x484xf32> to vector<16x484xf32>
    %23 = vector.shape_cast %20 : vector<16x484xf32> to vector<1x16x484xf32>
    tpu.vector_store %arg4[%c0_20, %c0_21, %c0_22], %23 {strides = array<i32>} : memref<1x16x484xf32, #tpu.memory_space<vmem>>, vector<1x16x484xf32>,
    return
  }
  func.func @transform_0(%arg0: i32) -> (i32, i32, i32, i32) {
    %c0_i32 = arith.constant 0 : i32
    %c0_i32_0 = arith.constant 0 : i32
    %c0_i32_1 = arith.constant 0 : i32
    %c0_i32_2 = arith.constant 0 : i32
    return %arg0, %c0_i32, %c0_i32_0, %c0_i32_1 : i32, i32, i32, i32
  }
  func.func @transform_1(%arg0: i32) -> (i32, i32) {
    %c0_i32 = arith.constant 0 : i32
    %c0_i32_0 = arith.constant 0 : i32
    %c0_i32_1 = arith.constant 0 : i32
    return %c0_i32, %c0_i32_0 : i32, i32
  }
  func.func @transform_2(%arg0: i32) -> (i32, i32) {
    %c0_i32 = arith.constant 0 : i32
    %c0_i32_0 = arith.constant 0 : i32
    %c0_i32_1 = arith.constant 0 : i32
    return %c0_i32, %c0_i32_0 : i32, i32
  }
  func.func @transform_3(%arg0: i32) -> (i32, i32, i32) {
    %c0_i32 = arith.constant 0 : i32
    %c0_i32_0 = arith.constant 0 : i32
    %c0_i32_1 = arith.constant 0 : i32
    return %arg0, %c0_i32, %c0_i32_0 : i32, i32, i32
  }
}

module attributes {stable_mosaic.version = 11 : i64} {
  func.func @conv_pool_kernel(%arg0: i32, %arg1: memref<1x4x144x121xf32, #tpu.memory_space<vmem>>, %arg2: memref<64x144xf32, #tpu.memory_space<vmem>>, %arg3: memref<64x1xf32, #tpu.memory_space<vmem>>, %arg4: memref<1x64x121xbf16, #tpu.memory_space<vmem>>) attributes {dimension_semantics = [#tpu.dimension_semantics<parallel>], iteration_bounds = array<i64: 2>, scalar_prefetch = 0 : i64, scratch_operands = 0 : i64, tpu.core_type = #tpu.core_type<tc>, window_params = [{transform_indices = @transform_0, window_bounds = array<i64: 1, 4, 144, 121>}, {pipeline_mode = #tpu.pipeline_mode<synchronous>, transform_indices = @transform_1, window_bounds = array<i64: 64, 144>}, {pipeline_mode = #tpu.pipeline_mode<synchronous>, transform_indices = @transform_2, window_bounds = array<i64: 64, 1>}, {transform_indices = @transform_3, window_bounds = array<i64: 1, 64, 121>}]} {
    %c0 = arith.constant 0 : index
    %c0_0 = arith.constant 0 : index
    %0 = vector.load %arg2[%c0, %c0_0] : memref<64x144xf32, #tpu.memory_space<vmem>>, vector<64x144xf32>
    %c0_1 = arith.constant 0 : index
    %c0_2 = arith.constant 0 : index
    %c0_3 = arith.constant 0 : index
    %c0_4 = arith.constant 0 : index
    %1 = vector.load %arg1[%c0_1, %c0_2, %c0_3, %c0_4] : memref<1x4x144x121xf32, #tpu.memory_space<vmem>>, vector<1x1x144x121xf32>
    %2 = vector.shape_cast %1 : vector<1x1x144x121xf32> to vector<144x121xf32>
    %cst = arith.constant dense<0.000000e+00> : vector<64x121xf32>
    %3 = tpu.matmul %0, %2, %cst {dimension_numbers = #tpu.dot_dimension_numbers<[1], [0], [0], [1], [0, 0, 1, 1], [], []>} : vector<64x144xf32>, vector<144x121xf32>, vector<64x121xf32> -> vector<64x121xf32>
    %c0_5 = arith.constant 0 : index
    %c1 = arith.constant 1 : index
    %c0_6 = arith.constant 0 : index
    %c0_7 = arith.constant 0 : index
    %4 = vector.load %arg1[%c0_5, %c1, %c0_6, %c0_7] : memref<1x4x144x121xf32, #tpu.memory_space<vmem>>, vector<1x1x144x121xf32>
    %5 = vector.shape_cast %4 : vector<1x1x144x121xf32> to vector<144x121xf32>
    %cst_8 = arith.constant dense<0.000000e+00> : vector<64x121xf32>
    %6 = tpu.matmul %0, %5, %cst_8 {dimension_numbers = #tpu.dot_dimension_numbers<[1], [0], [0], [1], [0, 0, 1, 1], [], []>} : vector<64x144xf32>, vector<144x121xf32>, vector<64x121xf32> -> vector<64x121xf32>
    %7 = arith.maximumf %3, %6 : vector<64x121xf32>
    %c0_9 = arith.constant 0 : index
    %c2 = arith.constant 2 : index
    %c0_10 = arith.constant 0 : index
    %c0_11 = arith.constant 0 : index
    %8 = vector.load %arg1[%c0_9, %c2, %c0_10, %c0_11] : memref<1x4x144x121xf32, #tpu.memory_space<vmem>>, vector<1x1x144x121xf32>
    %9 = vector.shape_cast %8 : vector<1x1x144x121xf32> to vector<144x121xf32>
    %cst_12 = arith.constant dense<0.000000e+00> : vector<64x121xf32>
    %10 = tpu.matmul %0, %9, %cst_12 {dimension_numbers = #tpu.dot_dimension_numbers<[1], [0], [0], [1], [0, 0, 1, 1], [], []>} : vector<64x144xf32>, vector<144x121xf32>, vector<64x121xf32> -> vector<64x121xf32>
    %11 = arith.maximumf %7, %10 : vector<64x121xf32>
    %c0_13 = arith.constant 0 : index
    %c3 = arith.constant 3 : index
    %c0_14 = arith.constant 0 : index
    %c0_15 = arith.constant 0 : index
    %12 = vector.load %arg1[%c0_13, %c3, %c0_14, %c0_15] : memref<1x4x144x121xf32, #tpu.memory_space<vmem>>, vector<1x1x144x121xf32>
    %13 = vector.shape_cast %12 : vector<1x1x144x121xf32> to vector<144x121xf32>
    %cst_16 = arith.constant dense<0.000000e+00> : vector<64x121xf32>
    %14 = tpu.matmul %0, %13, %cst_16 {dimension_numbers = #tpu.dot_dimension_numbers<[1], [0], [0], [1], [0, 0, 1, 1], [], []>} : vector<64x144xf32>, vector<144x121xf32>, vector<64x121xf32> -> vector<64x121xf32>
    %15 = arith.maximumf %11, %14 : vector<64x121xf32>
    %c0_17 = arith.constant 0 : index
    %c0_18 = arith.constant 0 : index
    %16 = vector.load %arg3[%c0_17, %c0_18] : memref<64x1xf32, #tpu.memory_space<vmem>>, vector<64x1xf32>
    %17 = vector.broadcast %16 : vector<64x1xf32> to vector<64x121xf32>
    %18 = arith.addf %15, %17 : vector<64x121xf32>
    %cst_19 = arith.constant 0.000000e+00 : f32
    %19 = vector.broadcast %cst_19 : f32 to vector<64x121xf32>
    %20 = arith.maximumf %18, %19 : vector<64x121xf32>
    %21 = arith.truncf %20 : vector<64x121xf32> to vector<64x121xbf16>
    %c0_20 = arith.constant 0 : index
    %c0_21 = arith.constant 0 : index
    %c0_22 = arith.constant 0 : index
    %22 = vector.load %arg4[%c0_20, %c0_21, %c0_22] : memref<1x64x121xbf16, #tpu.memory_space<vmem>>, vector<1x64x121xbf16>
    %23 = vector.shape_cast %22 : vector<1x64x121xbf16> to vector<64x121xbf16>
    %24 = vector.shape_cast %21 : vector<64x121xbf16> to vector<1x64x121xbf16>
    tpu.vector_store %arg4[%c0_20, %c0_21, %c0_22], %24 {strides = array<i32>} : memref<1x64x121xbf16, #tpu.memory_space<vmem>>, vector<1x64x121xbf16>,
    return
  }
  func.func @transform_0(%arg0: i32) -> (i32, i32, i32, i32) {
    %c0_i32 = arith.constant 0 : i32
    %c0_i32_0 = arith.constant 0 : i32
    %c0_i32_1 = arith.constant 0 : i32
    %c0_i32_2 = arith.constant 0 : i32
    return %arg0, %c0_i32, %c0_i32_0, %c0_i32_1 : i32, i32, i32, i32
  }
  func.func @transform_1(%arg0: i32) -> (i32, i32) {
    %c0_i32 = arith.constant 0 : i32
    %c0_i32_0 = arith.constant 0 : i32
    %c0_i32_1 = arith.constant 0 : i32
    return %c0_i32, %c0_i32_0 : i32, i32
  }
  func.func @transform_2(%arg0: i32) -> (i32, i32) {
    %c0_i32 = arith.constant 0 : i32
    %c0_i32_0 = arith.constant 0 : i32
    %c0_i32_1 = arith.constant 0 : i32
    return %c0_i32, %c0_i32_0 : i32, i32
  }
  func.func @transform_3(%arg0: i32) -> (i32, i32, i32) {
    %c0_i32 = arith.constant 0 : i32
    %c0_i32_0 = arith.constant 0 : i32
    %c0_i32_1 = arith.constant 0 : i32
    return %arg0, %c0_i32, %c0_i32_0 : i32, i32, i32
  }
}

module attributes {stable_mosaic.version = 11 : i64} {
  func.func @fc_fused_kernel(%arg0: i32, %arg1: memref<2x1024xbf16, #tpu.memory_space<vmem>>, %arg2: memref<1024x1024xbf16, #tpu.memory_space<vmem>>, %arg3: memref<1x1024xf32, #tpu.memory_space<vmem>>, %arg4: memref<1024x128xf32, #tpu.memory_space<vmem>>, %arg5: memref<1x128xf32, #tpu.memory_space<vmem>>, %arg6: memref<128x64xf32, #tpu.memory_space<vmem>>, %arg7: memref<1x64xf32, #tpu.memory_space<vmem>>, %arg8: memref<64x3xf32, #tpu.memory_space<vmem>>, %arg9: memref<1x3xf32, #tpu.memory_space<vmem>>, %arg10: memref<2x3xf32, #tpu.memory_space<vmem>>, %arg11: memref<2x1024xf32, #tpu.memory_space<vmem>>) attributes {dimension_semantics = [#tpu.dimension_semantics<arbitrary>], iteration_bounds = array<i64: 8>, scalar_prefetch = 0 : i64, scratch_operands = 1 : i64, tpu.core_type = #tpu.core_type<tc>, window_params = [{transform_indices = @transform_0, window_bounds = array<i64: 2, 1024>}, {transform_indices = @transform_1, window_bounds = array<i64: 1024, 1024>}, {pipeline_mode = #tpu.pipeline_mode<synchronous>, transform_indices = @transform_2, window_bounds = array<i64: 1, 1024>}, {pipeline_mode = #tpu.pipeline_mode<synchronous>, transform_indices = @transform_3, window_bounds = array<i64: 1024, 128>}, {pipeline_mode = #tpu.pipeline_mode<synchronous>, transform_indices = @transform_4, window_bounds = array<i64: 1, 128>}, {pipeline_mode = #tpu.pipeline_mode<synchronous>, transform_indices = @transform_5, window_bounds = array<i64: 128, 64>}, {pipeline_mode = #tpu.pipeline_mode<synchronous>, transform_indices = @transform_6, window_bounds = array<i64: 1, 64>}, {pipeline_mode = #tpu.pipeline_mode<synchronous>, transform_indices = @transform_7, window_bounds = array<i64: 64, 3>}, {pipeline_mode = #tpu.pipeline_mode<synchronous>, transform_indices = @transform_8, window_bounds = array<i64: 1, 3>}, {pipeline_mode = #tpu.pipeline_mode<synchronous>, transform_indices = @transform_9, window_bounds = array<i64: 2, 3>}]} {
    %c0_i32 = arith.constant 0 : i32
    %0 = arith.cmpi eq, %arg0, %c0_i32 : i32
    %1 = arith.extui %0 : i1 to i32
    %c0_i32_0 = arith.constant 0 : i32
    %2 = arith.cmpi ne, %1, %c0_i32_0 : i32
    scf.if %2 {
      %cst_9 = arith.constant 0.000000e+00 : f32
      %12 = vector.broadcast %cst_9 : f32 to vector<2x1024xf32>
      %c0_10 = arith.constant 0 : index
      %c0_11 = arith.constant 0 : index
      %13 = vector.load %arg11[%c0_10, %c0_11] : memref<2x1024xf32, #tpu.memory_space<vmem>>, vector<2x1024xf32>
      tpu.vector_store %arg11[%c0_10, %c0_11], %12 {strides = array<i32>} : memref<2x1024xf32, #tpu.memory_space<vmem>>, vector<2x1024xf32>,
    } else {
    }
    %c0 = arith.constant 0 : index
    %c0_1 = arith.constant 0 : index
    %3 = vector.load %arg11[%c0, %c0_1] : memref<2x1024xf32, #tpu.memory_space<vmem>>, vector<2x1024xf32>
    %c0_2 = arith.constant 0 : index
    %c0_3 = arith.constant 0 : index
    %4 = vector.load %arg1[%c0_2, %c0_3] : memref<2x1024xbf16, #tpu.memory_space<vmem>>, vector<2x1024xbf16>
    %c0_4 = arith.constant 0 : index
    %c0_5 = arith.constant 0 : index
    %5 = vector.load %arg2[%c0_4, %c0_5] : memref<1024x1024xbf16, #tpu.memory_space<vmem>>, vector<1024x1024xbf16>
    %cst = arith.constant dense<0.000000e+00> : vector<2x1024xf32>
    %6 = tpu.matmul %4, %5, %cst {dimension_numbers = #tpu.dot_dimension_numbers<[1], [0], [0], [1], [0, 0, 1, 1], [], []>} : vector<2x1024xbf16>, vector<1024x1024xbf16>, vector<2x1024xf32> -> vector<2x1024xf32>
    %7 = arith.addf %3, %6 : vector<2x1024xf32>
    %c0_6 = arith.constant 0 : index
    %c0_7 = arith.constant 0 : index
    %8 = vector.load %arg11[%c0_6, %c0_7] : memref<2x1024xf32, #tpu.memory_space<vmem>>, vector<2x1024xf32>
    tpu.vector_store %arg11[%c0_6, %c0_7], %7 {strides = array<i32>} : memref<2x1024xf32, #tpu.memory_space<vmem>>, vector<2x1024xf32>,
    %c7_i32 = arith.constant 7 : i32
    %9 = arith.cmpi eq, %arg0, %c7_i32 : i32
    %10 = arith.extui %9 : i1 to i32
    %c0_i32_8 = arith.constant 0 : i32
    %11 = arith.cmpi ne, %10, %c0_i32_8 : i32
    scf.if %11 {
      %c0_9 = arith.constant 0 : index
      %c0_10 = arith.constant 0 : index
      %12 = vector.load %arg11[%c0_9, %c0_10] : memref<2x1024xf32, #tpu.memory_space<vmem>>, vector<2x1024xf32>
      %c0_11 = arith.constant 0 : index
      %c0_12 = arith.constant 0 : index
      %13 = vector.load %arg3[%c0_11, %c0_12] : memref<1x1024xf32, #tpu.memory_space<vmem>>, vector<1x1024xf32>
      %14 = vector.broadcast %13 : vector<1x1024xf32> to vector<2x1024xf32>
      %15 = arith.addf %12, %14 : vector<2x1024xf32>
      %cst_13 = arith.constant 0.000000e+00 : f32
      %16 = vector.broadcast %cst_13 : f32 to vector<2x1024xf32>
      %17 = arith.maximumf %15, %16 : vector<2x1024xf32>
      %c0_14 = arith.constant 0 : index
      %c0_15 = arith.constant 0 : index
      %18 = vector.load %arg4[%c0_14, %c0_15] : memref<1024x128xf32, #tpu.memory_space<vmem>>, vector<1024x128xf32>
      %cst_16 = arith.constant dense<0.000000e+00> : vector<2x128xf32>
      %19 = tpu.matmul %17, %18, %cst_16 {dimension_numbers = #tpu.dot_dimension_numbers<[1], [0], [0], [1], [0, 0, 1, 1], [], []>} : vector<2x1024xf32>, vector<1024x128xf32>, vector<2x128xf32> -> vector<2x128xf32>
      %c0_17 = arith.constant 0 : index
      %c0_18 = arith.constant 0 : index
      %20 = vector.load %arg5[%c0_17, %c0_18] : memref<1x128xf32, #tpu.memory_space<vmem>>, vector<1x128xf32>
      %21 = vector.broadcast %20 : vector<1x128xf32> to vector<2x128xf32>
      %22 = arith.addf %19, %21 : vector<2x128xf32>
      %cst_19 = arith.constant 0.000000e+00 : f32
      %23 = vector.broadcast %cst_19 : f32 to vector<2x128xf32>
      %24 = arith.maximumf %22, %23 : vector<2x128xf32>
      %c0_20 = arith.constant 0 : index
      %c0_21 = arith.constant 0 : index
      %25 = vector.load %arg6[%c0_20, %c0_21] : memref<128x64xf32, #tpu.memory_space<vmem>>, vector<128x64xf32>
      %cst_22 = arith.constant dense<0.000000e+00> : vector<2x64xf32>
      %26 = tpu.matmul %24, %25, %cst_22 {dimension_numbers = #tpu.dot_dimension_numbers<[1], [0], [0], [1], [0, 0, 1, 1], [], []>} : vector<2x128xf32>, vector<128x64xf32>, vector<2x64xf32> -> vector<2x64xf32>
      %c0_23 = arith.constant 0 : index
      %c0_24 = arith.constant 0 : index
      %27 = vector.load %arg7[%c0_23, %c0_24] : memref<1x64xf32, #tpu.memory_space<vmem>>, vector<1x64xf32>
      %28 = vector.broadcast %27 : vector<1x64xf32> to vector<2x64xf32>
      %29 = arith.addf %26, %28 : vector<2x64xf32>
      %cst_25 = arith.constant 0.000000e+00 : f32
      %30 = vector.broadcast %cst_25 : f32 to vector<2x64xf32>
      %31 = arith.maximumf %29, %30 : vector<2x64xf32>
      %c0_26 = arith.constant 0 : index
      %c0_27 = arith.constant 0 : index
      %32 = vector.load %arg8[%c0_26, %c0_27] : memref<64x3xf32, #tpu.memory_space<vmem>>, vector<64x3xf32>
      %cst_28 = arith.constant dense<0.000000e+00> : vector<2x3xf32>
      %33 = tpu.matmul %31, %32, %cst_28 {dimension_numbers = #tpu.dot_dimension_numbers<[1], [0], [0], [1], [0, 0, 1, 1], [], []>} : vector<2x64xf32>, vector<64x3xf32>, vector<2x3xf32> -> vector<2x3xf32>
      %c0_29 = arith.constant 0 : index
      %c0_30 = arith.constant 0 : index
      %34 = vector.load %arg9[%c0_29, %c0_30] : memref<1x3xf32, #tpu.memory_space<vmem>>, vector<1x3xf32>
      %35 = vector.broadcast %34 : vector<1x3xf32> to vector<2x3xf32>
      %36 = arith.addf %33, %35 : vector<2x3xf32>
      %cst_31 = arith.constant dense<0xFF800000> : vector<2xf32>
      %37 = vector.multi_reduction <maximumf>, %36, %cst_31 [1] : vector<2x3xf32> to vector<2xf32>
      %38 = vector.shape_cast %37 : vector<2xf32> to vector<2x1xf32>
      %39 = vector.broadcast %38 : vector<2x1xf32> to vector<2x3xf32>
      %40 = arith.subf %36, %39 : vector<2x3xf32>
      %41 = math.exp %40 : vector<2x3xf32>
      %cst_32 = arith.constant dense<0.000000e+00> : vector<2xf32>
      %42 = vector.multi_reduction <add>, %41, %cst_32 [1] : vector<2x3xf32> to vector<2xf32>
      %43 = vector.shape_cast %42 : vector<2xf32> to vector<2x1xf32>
      %44 = vector.broadcast %43 : vector<2x1xf32> to vector<2x3xf32>
      %45 = arith.divf %41, %44 : vector<2x3xf32>
      %c0_33 = arith.constant 0 : index
      %c0_34 = arith.constant 0 : index
      %46 = vector.load %arg10[%c0_33, %c0_34] : memref<2x3xf32, #tpu.memory_space<vmem>>, vector<2x3xf32>
      tpu.vector_store %arg10[%c0_33, %c0_34], %45 {strides = array<i32>} : memref<2x3xf32, #tpu.memory_space<vmem>>, vector<2x3xf32>,
    } else {
    }
    return
  }
  func.func @transform_0(%arg0: i32) -> (i32, i32) {
    %c0_i32 = arith.constant 0 : i32
    %c0_i32_0 = arith.constant 0 : i32
    return %c0_i32, %arg0 : i32, i32
  }
  func.func @transform_1(%arg0: i32) -> (i32, i32) {
    %c0_i32 = arith.constant 0 : i32
    %c0_i32_0 = arith.constant 0 : i32
    return %arg0, %c0_i32 : i32, i32
  }
  func.func @transform_2(%arg0: i32) -> (i32, i32) {
    %c0_i32 = arith.constant 0 : i32
    %c0_i32_0 = arith.constant 0 : i32
    %c0_i32_1 = arith.constant 0 : i32
    return %c0_i32, %c0_i32_0 : i32, i32
  }
  func.func @transform_3(%arg0: i32) -> (i32, i32) {
    %c0_i32 = arith.constant 0 : i32
    %c0_i32_0 = arith.constant 0 : i32
    %c0_i32_1 = arith.constant 0 : i32
    return %c0_i32, %c0_i32_0 : i32, i32
  }
  func.func @transform_4(%arg0: i32) -> (i32, i32) {
    %c0_i32 = arith.constant 0 : i32
    %c0_i32_0 = arith.constant 0 : i32
    %c0_i32_1 = arith.constant 0 : i32
    return %c0_i32, %c0_i32_0 : i32, i32
  }
  func.func @transform_5(%arg0: i32) -> (i32, i32) {
    %c0_i32 = arith.constant 0 : i32
    %c0_i32_0 = arith.constant 0 : i32
    %c0_i32_1 = arith.constant 0 : i32
    return %c0_i32, %c0_i32_0 : i32, i32
  }
  func.func @transform_6(%arg0: i32) -> (i32, i32) {
    %c0_i32 = arith.constant 0 : i32
    %c0_i32_0 = arith.constant 0 : i32
    %c0_i32_1 = arith.constant 0 : i32
    return %c0_i32, %c0_i32_0 : i32, i32
  }
  func.func @transform_7(%arg0: i32) -> (i32, i32) {
    %c0_i32 = arith.constant 0 : i32
    %c0_i32_0 = arith.constant 0 : i32
    %c0_i32_1 = arith.constant 0 : i32
    return %c0_i32, %c0_i32_0 : i32, i32
  }
  func.func @transform_8(%arg0: i32) -> (i32, i32) {
    %c0_i32 = arith.constant 0 : i32
    %c0_i32_0 = arith.constant 0 : i32
    %c0_i32_1 = arith.constant 0 : i32
    return %c0_i32, %c0_i32_0 : i32, i32
  }
  func.func @transform_9(%arg0: i32) -> (i32, i32) {
    %c0_i32 = arith.constant 0 : i32
    %c0_i32_0 = arith.constant 0 : i32
    %c0_i32_1 = arith.constant 0 : i32
    return %c0_i32, %c0_i32_0 : i32, i32
  }
}

</mosaic_0001>

<bundles_post_ra>
// kernel: net_forward.4
= control target key start
LH: loop header
LB: loop body
LE: loop exit
PB: predicated region body
PF: predicated region fallthrough
CT: control target
= control target key end

     0   :  { %s2214_s12 = smov 0   ;;  %s2691_s0 = inlined_call_operand.vmem [shape: f32[2,4,9,1936], index: 0, kind: input, shape index: {}]   ;;  %s2692_s1 = inlined_call_operand.vmem [shape: f32[6,9], index: 1, kind: input, shape index: {}]   ;;  %s2693_s2 = inlined_call_operand.vmem [shape: f32[6,1], index: 2, kind: input, shape index: {}]   ;;  %s2694_s3 = inlined_call_operand.vmem [shape: f32[2,6,1936], index: 3, kind: output, shape index: {}]  }
   0x1 LB: > { %s1938_s13 = sadd.s32 4294967295, %s2191_s12   ;;  %p1942_p0 = scmp.ge.s32.totalorder %s2191_s12, 1  ;;  %s2191_s12 = sphi %s2214_s12, %s13_s12  }
   0x2   : > { %p137_p1 = scmp.lt.s32.totalorder %s2191_s12, 3 }
   0x4   : > { %p138_p2 = pnand %p1942_p0, %p137_p1 }
   0x5   : > { %p161_p3 = scmp.lt.s32.totalorder (!%p138_p2), %s1938_s13, 1 }
   0x6   : > { %141 = sbr.rel (%p138_p2) target bundleno = 280 (0x118), region = 32 }
   0xb   : > { %s2696_s13 = smov (!%p161_p3, %s1938_s13), 1  ;;  %vm208_vm0 = vcmask 1040384   ;;  %v2245_v8 = vld [vmem:[%s2692_s1] sm:$0x3f]  ;;  %vm204_vm1 = vcmask 72704   ;;  %vm1881_vm2 = vcmask 128000  }
   0xc   : > { %s2173_s14 = sshll.u32 %s2696_s13, 10  ;;  %s2174_s22 = sshll.u32 %s2696_s13, 7 }
   0xd   : > { %s2228_s17 = scalar_lea.vmem %s2691_s0, %s2173_s14  ;;  %s2628_s25 = scalar_lea.vmem %s2694_s3, %s2174_s22 }
   0xe   : > { %v188_v0 = vld [vmem:[%s2228_s17 + $0x80] sm:$0x1]  ;;  %v189_v1 = vld [vmem:[%s2228_s17 + $0x88] sm:$0x1]  ;;  %v190_v2 = vld [vmem:[%s2228_s17 + $0x90] sm:$0x1] }
   0xf   : > { %1947 = vmatpush.msk.msra.mxu0 %vm208_vm0, %v188_v0  ;;  %1949 = vmatpush.msk.msra.mxu1 %vm208_vm0, %v189_v1  ;;  %v191_v3 = vld [vmem:[%s2228_s17 + $0x98] sm:$0x1]  ;;  %v172_v4 = vld [vmem:[%s2228_s17] sm:$0xff]  ;;  %v173_v5 = vld [vmem:[%s2228_s17 + $0x8] sm:$0xff] }
  0x10   : > { %1951 = vmatpush.msk.msra.mxu2 %vm208_vm0, %v190_v2  ;;  %1953 = vmatpush.msk.msra.mxu3 %vm208_vm0, %v191_v3  ;;  %v174_v6 = vld [vmem:[%s2228_s17 + $0x10] sm:$0xff]  ;;  %v175_v7 = vld [vmem:[%s2228_s17 + $0x18] sm:$0xff]  ;;  %v192_v11 = vld [vmem:[%s2228_s17 + $0xa0] sm:$0x1] }
  0x11   : > { %272 = vmatpush.msra.mxu0 %v172_v4  ;;  %292 = vmatpush.msra.mxu1 %v173_v5  ;;  %v194_v9 = vld [vmem:[%s2228_s17 + $0xb0] sm:$0x1]  ;;  %v195_v10 = vld [vmem:[%s2228_s17 + $0xb8] sm:$0x1]  ;;  %v193_v12 = vld [vmem:[%s2228_s17 + $0xa8] sm:$0x1] }
  0x12   : > { %312 = vmatpush.msra.mxu2 %v174_v6  ;;  %332 = vmatpush.msra.mxu3 %v175_v7  ;;  %v178_v13 = vld [vmem:[%s2228_s17 + $0x30] sm:$0xff]  ;;  %v179_v14 = vld [vmem:[%s2228_s17 + $0x38] sm:$0xff]  ;;  %v176_v15 = vld [vmem:[%s2228_s17 + $0x20] sm:$0xff] }
  0x13   : > { %1948 = vmatmul.msk.f32.vlgmr.msra.gmra.mxu0 %vm204_vm1, %v2245_v8  ;;  %1950 = vmatmul.msk.f32.vlgmr.msra.gmra.mxu1 %vm204_vm1, %v2245_v8  ;;  %v177_v16 = vld [vmem:[%s2228_s17 + $0x28] sm:$0xff]  ;;  %v198_v17 = vld [vmem:[%s2228_s17 + $0xd0] sm:$0x1]  ;;  %v199_v18 = vld [vmem:[%s2228_s17 + $0xd8] sm:$0x1] }
  0x14   : > { %1952 = vmatmul.msk.f32.vlgmr.msra.gmra.mxu2 %vm204_vm1, %v2245_v8  ;;  %1954 = vmatmul.msk.f32.vlgmr.msra.gmra.mxu3 %vm204_vm1, %v2245_v8  ;;  %v196_v19 = vld [vmem:[%s2228_s17 + $0xc0] sm:$0x1]  ;;  %v197_v20 = vld [vmem:[%s2228_s17 + $0xc8] sm:$0x1]  ;;  %v182_v21 = vld [vmem:[%s2228_s17 + $0x50] sm:$0xff] }
  0x15   : > { %1959 = vmatpush.msk.msrb.mxu2 %vm208_vm0, %v194_v9  ;;  %1961 = vmatpush.msk.msrb.mxu3 %vm208_vm0, %v195_v10  ;;  %v183_v22 = vld [vmem:[%s2228_s17 + $0x58] sm:$0xff]  ;;  %v180_v23 = vld [vmem:[%s2228_s17 + $0x40] sm:$0xff]  ;;  %v181_v24 = vld [vmem:[%s2228_s17 + $0x48] sm:$0xff] }
  0x16   : > { %1955 = vmatpush.msk.msrb.mxu0 %vm208_vm0, %v192_v11  ;;  %1957 = vmatpush.msk.msrb.mxu1 %vm208_vm0, %v193_v12  ;;  %v202_v25 = vld [vmem:[%s2228_s17 + $0xf0] sm:$0x1]  ;;  %v203_v26 = vld [vmem:[%s2228_s17 + $0xf8] sm:$0x1]  ;;  %v200_v27 = vld [vmem:[%s2228_s17 + $0xe0] sm:$0x1] }
  0x17   : > { %392 = vmatpush.msrb.mxu2 %v178_v13  ;;  %412 = vmatpush.msrb.mxu3 %v179_v14  ;;  %v201_v28 = vld [vmem:[%s2228_s17 + $0xe8] sm:$0x1]  ;;  %v186_v29 = vld [vmem:[%s2228_s17 + $0x70] sm:$0xff]  ;;  %v187_v30 = vld [vmem:[%s2228_s17 + $0x78] sm:$0xff] }
  0x18   : > { %352 = vmatpush.msrb.mxu0 %v176_v15  ;;  %372 = vmatpush.msrb.mxu1 %v177_v16  ;;  %v184_v31 = vld [vmem:[%s2228_s17 + $0x60] sm:$0xff]  ;;  %v185_v32 = vld [vmem:[%s2228_s17 + $0x68] sm:$0xff]  ;;  %v1997_v33 = vld [vmem:[%s2228_s17 + $0x190] sm:$0x1] }
  0x19   : > { %1967 = vmatpush.msk.msra.mxu2 %vm208_vm0, %v198_v17  ;;  %1969 = vmatpush.msk.msra.mxu3 %vm208_vm0, %v199_v18  ;;  %v1998_v34 = vld [vmem:[%s2228_s17 + $0x198] sm:$0x1]  ;;  %v1995_v35 = vld [vmem:[%s2228_s17 + $0x180] sm:$0x1]  ;;  %v1996_v36 = vld [vmem:[%s2228_s17 + $0x188] sm:$0x1] }
  0x1a   : > { %1963 = vmatpush.msk.msra.mxu0 %vm208_vm0, %v196_v19  ;;  %1965 = vmatpush.msk.msra.mxu1 %vm208_vm0, %v197_v20  ;;  %v1981_v37 = vld [vmem:[%s2228_s17 + $0x110] sm:$0xff]  ;;  %v1982_v38 = vld [vmem:[%s2228_s17 + $0x118] sm:$0xff]  ;;  %v1979_v39 = vld [vmem:[%s2228_s17 + $0x100] sm:$0xff] }
  0x1b   : > { %1956 = vmatmul.msk.f32.vlgmr.msrb.gmra.mxu0 %vm204_vm1, %v2245_v8  ;;  %1958 = vmatmul.msk.f32.vlgmr.msrb.gmra.mxu1 %vm204_vm1, %v2245_v8  ;;  %v1980_v40 = vld [vmem:[%s2228_s17 + $0x108] sm:$0xff]  ;;  %v2001_v41 = vld [vmem:[%s2228_s17 + $0x1b0] sm:$0x1]  ;;  %v2002_v42 = vld [vmem:[%s2228_s17 + $0x1b8] sm:$0x1] }
  0x1c   : > { %1960 = vmatmul.msk.f32.vlgmr.msrb.gmra.mxu2 %vm204_vm1, %v2245_v8  ;;  %1962 = vmatmul.msk.f32.vlgmr.msrb.gmra.mxu3 %vm204_vm1, %v2245_v8  ;;  %v1999_v43 = vld [vmem:[%s2228_s17 + $0x1a0] sm:$0x1]  ;;  %v2000_v44 = vld [vmem:[%s2228_s17 + $0x1a8] sm:$0x1]  ;;  %v1985_v45 = vld [vmem:[%s2228_s17 + $0x130] sm:$0xff] }
  0x1d   : > { %472 = vmatpush.msra.mxu2 %v182_v21  ;;  %492 = vmatpush.msra.mxu3 %v183_v22  ;;  %v1986_v46 = vld [vmem:[%s2228_s17 + $0x138] sm:$0xff]  ;;  %v1983_v47 = vld [vmem:[%s2228_s17 + $0x120] sm:$0xff]  ;;  %v1984_v48 = vld [vmem:[%s2228_s17 + $0x128] sm:$0xff] }
  0x1e   : > { %432 = vmatpush.msra.mxu0 %v180_v23  ;;  %452 = vmatpush.msra.mxu1 %v181_v24  ;;  %v2005_v49 = vld [vmem:[%s2228_s17 + $0x1d0] sm:$0x1]  ;;  %v2006_v50 = vld [vmem:[%s2228_s17 + $0x1d8] sm:$0x1]  ;;  %v2003_v51 = vld [vmem:[%s2228_s17 + $0x1c0] sm:$0x1] }
  0x1f   : > { %1975 = vmatpush.msk.msrb.mxu2 %vm208_vm0, %v202_v25  ;;  %1977 = vmatpush.msk.msrb.mxu3 %vm208_vm0, %v203_v26  ;;  %v2004_v52 = vld [vmem:[%s2228_s17 + $0x1c8] sm:$0x1]  ;;  %v1989_v53 = vld [vmem:[%s2228_s17 + $0x150] sm:$0xff]  ;;  %v1990_v54 = vld [vmem:[%s2228_s17 + $0x158] sm:$0xff] }
  0x20   : > { %1971 = vmatpush.msk.msrb.mxu0 %vm208_vm0, %v200_v27  ;;  %1973 = vmatpush.msk.msrb.mxu1 %vm208_vm0, %v201_v28  ;;  %v1987_v55 = vld [vmem:[%s2228_s17 + $0x140] sm:$0xff]  ;;  %v1988_v56 = vld [vmem:[%s2228_s17 + $0x148] sm:$0xff]  ;;  %v2009_v57 = vld [vmem:[%s2228_s17 + $0x1f0] sm:$0x1] }
  0x21   : > { %552 = vmatpush.msrb.mxu2 %v186_v29  ;;  %572 = vmatpush.msrb.mxu3 %v187_v30  ;;  %v2010_v58 = vld [vmem:[%s2228_s17 + $0x1f8] sm:$0x1]  ;;  %v2007_v59 = vld [vmem:[%s2228_s17 + $0x1e0] sm:$0x1]  ;;  %v2008_v60 = vld [vmem:[%s2228_s17 + $0x1e8] sm:$0x1] }
  0x22   : > { %512 = vmatpush.msrb.mxu0 %v184_v31  ;;  %532 = vmatpush.msrb.mxu1 %v185_v32  ;;  %v1993_v61 = vld [vmem:[%s2228_s17 + $0x170] sm:$0xff]  ;;  %v1994_v62 = vld [vmem:[%s2228_s17 + $0x178] sm:$0xff]  ;;  %v1991_v63 = vld [vmem:[%s2228_s17 + $0x160] sm:$0xff] }
  0x23   : > { %1964 = vmatmul.msk.f32.vlgmr.msra.gmra.mxu0 %vm204_vm1, %v2245_v8  ;;  %1966 = vmatmul.msk.f32.vlgmr.msra.gmra.mxu1 %vm204_vm1, %v2245_v8  ;;  %v1992_v0 = vld [vmem:[%s2228_s17 + $0x168] sm:$0xff]  ;;  %v2061_v1 = vld [vmem:[%s2228_s17 + $0x290] sm:$0x1]  ;;  %v2062_v2 = vld [vmem:[%s2228_s17 + $0x298] sm:$0x1] }
  0x24   : > { %1968 = vmatmul.msk.f32.vlgmr.msra.gmra.mxu2 %vm204_vm1, %v2245_v8  ;;  %1970 = vmatmul.msk.f32.vlgmr.msra.gmra.mxu3 %vm204_vm1, %v2245_v8  ;;  %v2059_v3 = vld [vmem:[%s2228_s17 + $0x280] sm:$0x1]  ;;  %v2060_v4 = vld [vmem:[%s2228_s17 + $0x288] sm:$0x1]  ;;  %v2045_v5 = vld [vmem:[%s2228_s17 + $0x210] sm:$0xff] }
  0x25   : > { %2015 = vmatpush.msk.msra.mxu2 %vm208_vm0, %v1997_v33  ;;  %2017 = vmatpush.msk.msra.mxu3 %vm208_vm0, %v1998_v34  ;;  %v2046_v6 = vld [vmem:[%s2228_s17 + $0x218] sm:$0xff]  ;;  %v2043_v7 = vld [vmem:[%s2228_s17 + $0x200] sm:$0xff]  ;;  %v2044_v9 = vld [vmem:[%s2228_s17 + $0x208] sm:$0xff] }
  0x26   : > { %2011 = vmatpush.msk.msra.mxu0 %vm208_vm0, %v1995_v35  ;;  %2013 = vmatpush.msk.msra.mxu1 %vm208_vm0, %v1996_v36  ;;  %v2065_v10 = vld [vmem:[%s2228_s17 + $0x2b0] sm:$0x1]  ;;  %v2066_v11 = vld [vmem:[%s2228_s17 + $0x2b8] sm:$0x1]  ;;  %v2063_v12 = vld [vmem:[%s2228_s17 + $0x2a0] sm:$0x1] }
  0x27   : > { %713 = vmatpush.msra.mxu2 %v1981_v37  ;;  %733 = vmatpush.msra.mxu3 %v1982_v38  ;;  %v2064_v13 = vld [vmem:[%s2228_s17 + $0x2a8] sm:$0x1]  ;;  %v2049_v14 = vld [vmem:[%s2228_s17 + $0x230] sm:$0xff]  ;;  %v2050_v15 = vld [vmem:[%s2228_s17 + $0x238] sm:$0xff]  ;;  %v2193_v35 = vmov 0  }
  0x28   : > { %673 = vmatpush.msra.mxu0 %v1979_v39  ;;  %693 = vmatpush.msra.mxu1 %v1980_v40  ;;  %v2047_v16 = vld [vmem:[%s2228_s17 + $0x220] sm:$0xff]  ;;  %v2048_v17 = vld [vmem:[%s2228_s17 + $0x228] sm:$0xff]  ;;  %v2069_v18 = vld [vmem:[%s2228_s17 + $0x2d0] sm:$0x1] }
  0x29   : > { %v2070_v19 = vld [vmem:[%s2228_s17 + $0x2d8] sm:$0x1]  ;;  %v2067_v20 = vld [vmem:[%s2228_s17 + $0x2c0] sm:$0x1]  ;;  %v2068_v21 = vld [vmem:[%s2228_s17 + $0x2c8] sm:$0x1]  ;;  %2184 = vset.pattern.permute.xlu0 %v2193_v35 }
  0x2a   : > { %v2053_v22 = vld [vmem:[%s2228_s17 + $0x250] sm:$0xff]  ;;  %v2054_v23 = vld [vmem:[%s2228_s17 + $0x258] sm:$0xff]  ;;  %v2051_v24 = vld [vmem:[%s2228_s17 + $0x240] sm:$0xff] }
  0x2b   : > { %1972 = vmatmul.msk.f32.vlgmr.msrb.gmra.mxu0 %vm204_vm1, %v2245_v8  ;;  %1974 = vmatmul.msk.f32.vlgmr.msrb.gmra.mxu1 %vm204_vm1, %v2245_v8  ;;  %v2052_v25 = vld [vmem:[%s2228_s17 + $0x248] sm:$0xff]  ;;  %v2073_v26 = vld [vmem:[%s2228_s17 + $0x2f0] sm:$0x1]  ;;  %v2074_v27 = vld [vmem:[%s2228_s17 + $0x2f8] sm:$0x1] }
  0x2c   : > { %1976 = vmatmul.msk.f32.vlgmr.msrb.gmra.mxu2 %vm204_vm1, %v2245_v8  ;;  %1978 = vmatmul.msk.f32.vlgmr.msrb.gmra.mxu3 %vm204_vm1, %v2245_v8  ;;  %v2071_v28 = vld [vmem:[%s2228_s17 + $0x2e0] sm:$0x1]  ;;  %v2072_v29 = vld [vmem:[%s2228_s17 + $0x2e8] sm:$0x1]  ;;  %v2057_v30 = vld [vmem:[%s2228_s17 + $0x270] sm:$0xff] }
  0x2d   : > { %2023 = vmatpush.msk.msrb.mxu2 %vm208_vm0, %v2001_v41  ;;  %2025 = vmatpush.msk.msrb.mxu3 %vm208_vm0, %v2002_v42  ;;  %v2058_v31 = vld [vmem:[%s2228_s17 + $0x278] sm:$0xff]  ;;  %v2055_v32 = vld [vmem:[%s2228_s17 + $0x260] sm:$0xff]  ;;  %v2056_v33 = vld [vmem:[%s2228_s17 + $0x268] sm:$0xff] }
  0x2e   : > { %2019 = vmatpush.msk.msrb.mxu0 %vm208_vm0, %v1999_v43  ;;  %2021 = vmatpush.msk.msrb.mxu1 %vm208_vm0, %v2000_v44  ;;  %v1828_v34 = vld [vmem:[%s2693_s2] sm:$0x3f]  ;;  %v2125_v36 = vld [vmem:[%s2228_s17 + $0x390] sm:$0x1]  ;;  %v2126_v37 = vld [vmem:[%s2228_s17 + $0x398] sm:$0x1] }
  0x2f   : > { %793 = vmatpush.msrb.mxu2 %v1985_v45  ;;  %813 = vmatpush.msrb.mxu3 %v1986_v46  ;;  %v2123_v38 = vld [vmem:[%s2228_s17 + $0x380] sm:$0x1]  ;;  %v2124_v39 = vld [vmem:[%s2228_s17 + $0x388] sm:$0x1]  ;;  %v2109_v40 = vld [vmem:[%s2228_s17 + $0x310] sm:$0xff] }
  0x30   : > { %753 = vmatpush.msrb.mxu0 %v1983_v47  ;;  %773 = vmatpush.msrb.mxu1 %v1984_v48  ;;  %v2110_v41 = vld [vmem:[%s2228_s17 + $0x318] sm:$0xff]  ;;  %v2107_v42 = vld [vmem:[%s2228_s17 + $0x300] sm:$0xff]  ;;  %v2108_v43 = vld [vmem:[%s2228_s17 + $0x308] sm:$0xff] }
  0x31   : > { %1831 = vperm.xlu0 %2184, %v1828_v34   ;;  %v2129_v44 = vld [vmem:[%s2228_s17 + $0x3b0] sm:$0x1]  ;;  %v2130_v45 = vld [vmem:[%s2228_s17 + $0x3b8] sm:$0x1]  ;;  %v2127_v46 = vld [vmem:[%s2228_s17 + $0x3a0] sm:$0x1] }
  0x32   : > { %v2128_v47 = vld [vmem:[%s2228_s17 + $0x3a8] sm:$0x1]  ;;  %v2113_v48 = vld [vmem:[%s2228_s17 + $0x330] sm:$0xff] }
  0x33   : > { %2012 = vmatmul.msk.f32.vlgmr.msra.gmra.mxu0 %vm204_vm1, %v2245_v8  ;;  %2014 = vmatmul.msk.f32.vlgmr.msra.gmra.mxu1 %vm204_vm1, %v2245_v8 }
  0x34   : > { %2016 = vmatmul.msk.f32.vlgmr.msra.gmra.mxu2 %vm204_vm1, %v2245_v8  ;;  %2018 = vmatmul.msk.f32.vlgmr.msra.gmra.mxu3 %vm204_vm1, %v2245_v8 }
  0x35   : > { %2031 = vmatpush.msk.msra.mxu2 %vm208_vm0, %v2005_v49  ;;  %2033 = vmatpush.msk.msra.mxu3 %vm208_vm0, %v2006_v50  ;;  %v2114_v49 = vld [vmem:[%s2228_s17 + $0x338] sm:$0xff]  ;;  %v2111_v50 = vld [vmem:[%s2228_s17 + $0x320] sm:$0xff] }
  0x36   : > { %2027 = vmatpush.msk.msra.mxu0 %vm208_vm0, %v2003_v51  ;;  %2029 = vmatpush.msk.msra.mxu1 %vm208_vm0, %v2004_v52  ;;  %v2112_v51 = vld [vmem:[%s2228_s17 + $0x328] sm:$0xff]  ;;  %v2133_v52 = vld [vmem:[%s2228_s17 + $0x3d0] sm:$0x1] }
  0x37   : > { %873 = vmatpush.msra.mxu2 %v1989_v53  ;;  %893 = vmatpush.msra.mxu3 %v1990_v54  ;;  %v2134_v53 = vld [vmem:[%s2228_s17 + $0x3d8] sm:$0x1]  ;;  %v2131_v54 = vld [vmem:[%s2228_s17 + $0x3c0] sm:$0x1] }
  0x38   : > { %833 = vmatpush.msra.mxu0 %v1987_v55  ;;  %853 = vmatpush.msra.mxu1 %v1988_v56  ;;  %v2132_v55 = vld [vmem:[%s2228_s17 + $0x3c8] sm:$0x1]  ;;  %v2117_v56 = vld [vmem:[%s2228_s17 + $0x350] sm:$0xff] }
  0x3b   : > { %2020 = vmatmul.msk.f32.vlgmr.msrb.gmra.mxu0 %vm204_vm1, %v2245_v8  ;;  %2022 = vmatmul.msk.f32.vlgmr.msrb.gmra.mxu1 %vm204_vm1, %v2245_v8 }
  0x3c   : > { %2024 = vmatmul.msk.f32.vlgmr.msrb.gmra.mxu2 %vm204_vm1, %v2245_v8  ;;  %2026 = vmatmul.msk.f32.vlgmr.msrb.gmra.mxu3 %vm204_vm1, %v2245_v8 }
  0x3d   : > { %2039 = vmatpush.msk.msrb.mxu2 %vm208_vm0, %v2009_v57  ;;  %2041 = vmatpush.msk.msrb.mxu3 %vm208_vm0, %v2010_v58  ;;  %v2118_v57 = vld [vmem:[%s2228_s17 + $0x358] sm:$0xff]  ;;  %v2115_v58 = vld [vmem:[%s2228_s17 + $0x340] sm:$0xff] }
  0x3e   : > { %2035 = vmatpush.msk.msrb.mxu0 %vm208_vm0, %v2007_v59  ;;  %2037 = vmatpush.msk.msrb.mxu1 %vm208_vm0, %v2008_v60  ;;  %v2116_v59 = vld [vmem:[%s2228_s17 + $0x348] sm:$0xff]  ;;  %v2137_v60 = vld [vmem:[%s2228_s17 + $0x3f0] sm:$0x1] }
  0x3f   : > { %953 = vmatpush.msrb.mxu2 %v1993_v61  ;;  %973 = vmatpush.msrb.mxu3 %v1994_v62  ;;  %v2138_v61 = vld [vmem:[%s2228_s17 + $0x3f8] sm:$0x1]  ;;  %v2135_v62 = vld [vmem:[%s2228_s17 + $0x3e0] sm:$0x1] }
  0x40   : > { %913 = vmatpush.msrb.mxu0 %v1991_v63  ;;  %933 = vmatpush.msrb.mxu1 %v1992_v0  ;;  %v2136_v63 = vld [vmem:[%s2228_s17 + $0x3e8] sm:$0x1]  ;;  %v2121_v0 = vld [vmem:[%s2228_s17 + $0x370] sm:$0xff] }
  0x43   : > { %2028 = vmatmul.msk.f32.vlgmr.msra.gmra.mxu0 %vm204_vm1, %v2245_v8  ;;  %2030 = vmatmul.msk.f32.vlgmr.msra.gmra.mxu1 %vm204_vm1, %v2245_v8 }
  0x44   : > { %2032 = vmatmul.msk.f32.vlgmr.msra.gmra.mxu2 %vm204_vm1, %v2245_v8  ;;  %2034 = vmatmul.msk.f32.vlgmr.msra.gmra.mxu3 %vm204_vm1, %v2245_v8 }
  0x45   : > { %2079 = vmatpush.msk.msra.mxu2 %vm208_vm0, %v2061_v1  ;;  %2081 = vmatpush.msk.msra.mxu3 %vm208_vm0, %v2062_v2  ;;  %v2122_v1 = vld [vmem:[%s2228_s17 + $0x378] sm:$0xff]  ;;  %v2119_v2 = vld [vmem:[%s2228_s17 + $0x360] sm:$0xff] }
  0x46   : > { %2075 = vmatpush.msk.msra.mxu0 %vm208_vm0, %v2059_v3  ;;  %2077 = vmatpush.msk.msra.mxu1 %vm208_vm0, %v2060_v4  ;;  %v2120_v3 = vld [vmem:[%s2228_s17 + $0x368] sm:$0xff] }
  0x47   : > { %1130 = vmatpush.msra.mxu2 %v2045_v5  ;;  %1150 = vmatpush.msra.mxu3 %v2046_v6 }
  0x48   : > { %1090 = vmatpush.msra.mxu0 %v2043_v7  ;;  %1110 = vmatpush.msra.mxu1 %v2044_v9 }
  0x4b   : > { %2036 = vmatmul.msk.f32.vlgmr.msrb.gmra.mxu0 %vm204_vm1, %v2245_v8  ;;  %2038 = vmatmul.msk.f32.vlgmr.msrb.gmra.mxu1 %vm204_vm1, %v2245_v8 }
  0x4c   : > { %2040 = vmatmul.msk.f32.vlgmr.msrb.gmra.mxu2 %vm204_vm1, %v2245_v8  ;;  %2042 = vmatmul.msk.f32.vlgmr.msrb.gmra.mxu3 %vm204_vm1, %v2245_v8 }
  0x4d   : > { %2087 = vmatpush.msk.msrb.mxu2 %vm208_vm0, %v2065_v10  ;;  %2089 = vmatpush.msk.msrb.mxu3 %vm208_vm0, %v2066_v11 }
  0x4e   : > { %2083 = vmatpush.msk.msrb.mxu0 %vm208_vm0, %v2063_v12  ;;  %2085 = vmatpush.msk.msrb.mxu1 %vm208_vm0, %v2064_v13 }
  0x4f   : > { %1210 = vmatpush.msrb.mxu2 %v2049_v14  ;;  %1230 = vmatpush.msrb.mxu3 %v2050_v15 }
  0x50   : > { %1170 = vmatpush.msrb.mxu0 %v2047_v16  ;;  %1190 = vmatpush.msrb.mxu1 %v2048_v17 }
  0x53   : > { %2076 = vmatmul.msk.f32.vlgmr.msra.gmra.mxu0 %vm204_vm1, %v2245_v8  ;;  %2078 = vmatmul.msk.f32.vlgmr.msra.gmra.mxu1 %vm204_vm1, %v2245_v8 }
  0x54   : > { %2080 = vmatmul.msk.f32.vlgmr.msra.gmra.mxu2 %vm204_vm1, %v2245_v8  ;;  %2082 = vmatmul.msk.f32.vlgmr.msra.gmra.mxu3 %vm204_vm1, %v2245_v8 }
  0x55   : > { %2095 = vmatpush.msk.msra.mxu2 %vm208_vm0, %v2069_v18  ;;  %2097 = vmatpush.msk.msra.mxu3 %vm208_vm0, %v2070_v19 }
  0x56   : > { %2091 = vmatpush.msk.msra.mxu0 %vm208_vm0, %v2067_v20  ;;  %2093 = vmatpush.msk.msra.mxu1 %vm208_vm0, %v2068_v21 }
  0x57   : > { %1290 = vmatpush.msra.mxu2 %v2053_v22  ;;  %1310 = vmatpush.msra.mxu3 %v2054_v23 }
  0x58   : > { %1250 = vmatpush.msra.mxu0 %v2051_v24  ;;  %1270 = vmatpush.msra.mxu1 %v2052_v25 }
  0x5b   : > { %2084 = vmatmul.msk.f32.vlgmr.msrb.gmra.mxu0 %vm204_vm1, %v2245_v8  ;;  %2086 = vmatmul.msk.f32.vlgmr.msrb.gmra.mxu1 %vm204_vm1, %v2245_v8 }
  0x5c   : > { %2088 = vmatmul.msk.f32.vlgmr.msrb.gmra.mxu2 %vm204_vm1, %v2245_v8  ;;  %2090 = vmatmul.msk.f32.vlgmr.msrb.gmra.mxu3 %vm204_vm1, %v2245_v8 }
  0x5d   : > { %2103 = vmatpush.msk.msrb.mxu2 %vm208_vm0, %v2073_v26  ;;  %2105 = vmatpush.msk.msrb.mxu3 %vm208_vm0, %v2074_v27 }
  0x5e   : > { %2099 = vmatpush.msk.msrb.mxu0 %vm208_vm0, %v2071_v28  ;;  %2101 = vmatpush.msk.msrb.mxu1 %vm208_vm0, %v2072_v29 }
  0x5f   : > { %1370 = vmatpush.msrb.mxu2 %v2057_v30  ;;  %1390 = vmatpush.msrb.mxu3 %v2058_v31 }
  0x60   : > { %1330 = vmatpush.msrb.mxu0 %v2055_v32  ;;  %1350 = vmatpush.msrb.mxu1 %v2056_v33 }
  0x63   : > { %2092 = vmatmul.msk.f32.vlgmr.msra.gmra.mxu0 %vm204_vm1, %v2245_v8  ;;  %2094 = vmatmul.msk.f32.vlgmr.msra.gmra.mxu1 %vm204_vm1, %v2245_v8 }
  0x64   : > { %2096 = vmatmul.msk.f32.vlgmr.msra.gmra.mxu2 %vm204_vm1, %v2245_v8  ;;  %2098 = vmatmul.msk.f32.vlgmr.msra.gmra.mxu3 %vm204_vm1, %v2245_v8 }
  0x65   : > { %2143 = vmatpush.msk.msra.mxu2 %vm208_vm0, %v2125_v36  ;;  %2145 = vmatpush.msk.msra.mxu3 %vm208_vm0, %v2126_v37 }
  0x66   : > { %2139 = vmatpush.msk.msra.mxu0 %vm208_vm0, %v2123_v38  ;;  %2141 = vmatpush.msk.msra.mxu1 %vm208_vm0, %v2124_v39 }
  0x67   : > { %1547 = vmatpush.msra.mxu2 %v2109_v40  ;;  %1567 = vmatpush.msra.mxu3 %v2110_v41 }
  0x68   : > { %1507 = vmatpush.msra.mxu0 %v2107_v42  ;;  %1527 = vmatpush.msra.mxu1 %v2108_v43 }
  0x6b   : > { %2100 = vmatmul.msk.f32.vlgmr.msrb.gmra.mxu0 %vm204_vm1, %v2245_v8  ;;  %2102 = vmatmul.msk.f32.vlgmr.msrb.gmra.mxu1 %vm204_vm1, %v2245_v8 }
  0x6c   : > { %2104 = vmatmul.msk.f32.vlgmr.msrb.gmra.mxu2 %vm204_vm1, %v2245_v8  ;;  %2106 = vmatmul.msk.f32.vlgmr.msrb.gmra.mxu3 %vm204_vm1, %v2245_v8 }
  0x6d   : > { %2151 = vmatpush.msk.msrb.mxu2 %vm208_vm0, %v2129_v44  ;;  %2153 = vmatpush.msk.msrb.mxu3 %vm208_vm0, %v2130_v45 }
  0x6e   : > { %2147 = vmatpush.msk.msrb.mxu0 %vm208_vm0, %v2127_v46  ;;  %2149 = vmatpush.msk.msrb.mxu1 %vm208_vm0, %v2128_v47 }
  0x6f   : > { %1627 = vmatpush.msrb.mxu2 %v2113_v48  ;;  %1647 = vmatpush.msrb.mxu3 %v2114_v49 }
  0x70   : > { %1587 = vmatpush.msrb.mxu0 %v2111_v50  ;;  %1607 = vmatpush.msrb.mxu1 %v2112_v51 }
  0x73   : > { %2140 = vmatmul.msk.f32.vlgmr.msra.gmra.mxu0 %vm204_vm1, %v2245_v8  ;;  %2142 = vmatmul.msk.f32.vlgmr.msra.gmra.mxu1 %vm204_vm1, %v2245_v8 }
  0x74   : > { %2144 = vmatmul.msk.f32.vlgmr.msra.gmra.mxu2 %vm204_vm1, %v2245_v8  ;;  %2146 = vmatmul.msk.f32.vlgmr.msra.gmra.mxu3 %vm204_vm1, %v2245_v8 }
  0x75   : > { %2159 = vmatpush.msk.msra.mxu2 %vm208_vm0, %v2133_v52  ;;  %2161 = vmatpush.msk.msra.mxu3 %vm208_vm0, %v2134_v53 }
  0x76   : > { %2155 = vmatpush.msk.msra.mxu0 %vm208_vm0, %v2131_v54  ;;  %2157 = vmatpush.msk.msra.mxu1 %vm208_vm0, %v2132_v55 }
  0x77   : > { %1707 = vmatpush.msra.mxu2 %v2117_v56  ;;  %1727 = vmatpush.msra.mxu3 %v2118_v57 }
  0x78   : > { %1667 = vmatpush.msra.mxu0 %v2115_v58  ;;  %1687 = vmatpush.msra.mxu1 %v2116_v59 }
  0x7b   : > { %2148 = vmatmul.msk.f32.vlgmr.msrb.gmra.mxu0 %vm204_vm1, %v2245_v8  ;;  %2150 = vmatmul.msk.f32.vlgmr.msrb.gmra.mxu1 %vm204_vm1, %v2245_v8 }
  0x7c   : > { %2152 = vmatmul.msk.f32.vlgmr.msrb.gmra.mxu2 %vm204_vm1, %v2245_v8  ;;  %2154 = vmatmul.msk.f32.vlgmr.msrb.gmra.mxu3 %vm204_vm1, %v2245_v8 }
  0x7d   : > { %2167 = vmatpush.msk.msrb.mxu2 %vm208_vm0, %v2137_v60  ;;  %2169 = vmatpush.msk.msrb.mxu3 %vm208_vm0, %v2138_v61 }
  0x7e   : > { %2163 = vmatpush.msk.msrb.mxu0 %vm208_vm0, %v2135_v62  ;;  %2165 = vmatpush.msk.msrb.mxu1 %vm208_vm0, %v2136_v63 }
  0x7f   : > { %1787 = vmatpush.msrb.mxu2 %v2121_v0  ;;  %1807 = vmatpush.msrb.mxu3 %v2122_v1 }
  0x80   : > { %1747 = vmatpush.msrb.mxu0 %v2119_v2  ;;  %1767 = vmatpush.msrb.mxu1 %v2120_v3 }
  0x83   : > { %2156 = vmatmul.msk.f32.vlgmr.msra.gmra.mxu0 %vm204_vm1, %v2245_v8  ;;  %2158 = vmatmul.msk.f32.vlgmr.msra.gmra.mxu1 %vm204_vm1, %v2245_v8 }
  0x84   : > { %2160 = vmatmul.msk.f32.vlgmr.msra.gmra.mxu2 %vm204_vm1, %v2245_v8  ;;  %2162 = vmatmul.msk.f32.vlgmr.msra.gmra.mxu3 %vm204_vm1, %v2245_v8 }
  0x8b   : > { %2164 = vmatmul.msk.f32.vlgmr.msrb.gmra.mxu0 %vm204_vm1, %v2245_v8  ;;  %2166 = vmatmul.msk.f32.vlgmr.msrb.gmra.mxu1 %vm204_vm1, %v2245_v8 }
  0x8c   : > { %2168 = vmatmul.msk.f32.vlgmr.msrb.gmra.mxu2 %vm204_vm1, %v2245_v8  ;;  %2170 = vmatmul.msk.f32.vlgmr.msrb.gmra.mxu3 %vm204_vm1, %v2245_v8 }
  0x90   : > { %v274_v4 = vpop.f32.mrf.mxu0  ;;  %v294_v5 = vpop.f32.mrf.mxu1 }
  0x97   : > { %v2558_v6 = vpop.f32.mrf.mxu2  ;;  %v2560_v7 = vpop.f32.mrf.mxu3 }
  0x98   : > { %v2562_v9 = vpop.f32.mrf.mxu0  ;;  %v2564_v10 = vpop.f32.mrf.mxu1 }
  0x9f   : > { %v2566_v11 = vpop.f32.mrf.mxu2  ;;  %v2568_v12 = vpop.f32.mrf.mxu3 }
  0xa0   : > { %v2570_v13 = vpop.f32.mrf.mxu0  ;;  %v2572_v14 = vpop.f32.mrf.mxu1 }
  0xa3   : > { %v2614_v52 = vpop.permute.xlu0 %1831 }
  0xa7   : > { %v2574_v15 = vpop.f32.mrf.mxu2  ;;  %v2576_v8 = vpop.f32.mrf.mxu3 }
  0xa8   : > { %v2578_v16 = vpop.f32.mrf.mxu0  ;;  %v2580_v17 = vpop.f32.mrf.mxu1 }
  0xaf   : > { %v2582_v18 = vpop.f32.mrf.mxu2  ;;  %v2584_v19 = vpop.f32.mrf.mxu3 }
  0xb0   : > { %v675_v20 = vpop.f32.mrf.mxu0  ;;  %v695_v21 = vpop.f32.mrf.mxu1 }
  0xb1   : > { %v978_v50 = vmax.f32 %v274_v4, %v675_v20  ;;  %v979_v51 = vmax.f32 %v294_v5, %v695_v21 }
  0xb7   : > { %v715_v22 = vpop.f32.mrf.mxu2  ;;  %v735_v23 = vpop.f32.mrf.mxu3 }
  0xb8   : > { %v755_v24 = vpop.f32.mrf.mxu0  ;;  %v775_v25 = vpop.f32.mrf.mxu1  ;;  %v980_v63 = vmax.f32 %v2558_v6, %v715_v22  ;;  %v981_v0 = vmax.f32 %v2560_v7, %v735_v23 }
  0xb9   : > { %v982_v1 = vmax.f32 %v2562_v9, %v755_v24  ;;  %v983_v2 = vmax.f32 %v2564_v10, %v775_v25 }
  0xbf   : > { %v2586_v26 = vpop.f32.mrf.mxu2  ;;  %v2588_v27 = vpop.f32.mrf.mxu3 }
  0xc0   : > { %v2590_v28 = vpop.f32.mrf.mxu0  ;;  %v2592_v29 = vpop.f32.mrf.mxu1 }
  0xc7   : > { %v2594_v30 = vpop.f32.mrf.mxu2  ;;  %v2596_v31 = vpop.f32.mrf.mxu3 }
  0xc8   : > { %v2598_v32 = vpop.f32.mrf.mxu0  ;;  %v2600_v33 = vpop.f32.mrf.mxu1 }
  0xcf   : > { %v2602_v34 = vpop.f32.mrf.mxu2  ;;  %v2604_v35 = vpop.f32.mrf.mxu3 }
  0xd0   : > { %v1092_v36 = vpop.f32.mrf.mxu0  ;;  %v1112_v37 = vpop.f32.mrf.mxu1 }
  0xd1   : > { %v1395_v53 = vmax.f32 %v978_v50, %v1092_v36  ;;  %v1396_v54 = vmax.f32 %v979_v51, %v1112_v37 }
  0xd7   : > { %v1132_v38 = vpop.f32.mrf.mxu2  ;;  %v1152_v39 = vpop.f32.mrf.mxu3 }
  0xd8   : > { %v1172_v40 = vpop.f32.mrf.mxu0  ;;  %v1192_v41 = vpop.f32.mrf.mxu1  ;;  %v1397_v5 = vmax.f32 %v980_v63, %v1132_v38  ;;  %v1398_v20 = vmax.f32 %v981_v0, %v1152_v39  ;;  %v984_v38 = vmax.f32 %v2566_v11, %v2586_v26  ;;  %v985_v39 = vmax.f32 %v2568_v12, %v2588_v27 }
  0xd9   : > { %v1399_v21 = vmax.f32 %v982_v1, %v1172_v40  ;;  %v1400_v36 = vmax.f32 %v983_v2, %v1192_v41 }
  0xdf   : > { %v1212_v42 = vpop.f32.mrf.mxu2  ;;  %v1232_v43 = vpop.f32.mrf.mxu3 }
  0xe0   : > { %v1252_v44 = vpop.f32.mrf.mxu0  ;;  %v1272_v45 = vpop.f32.mrf.mxu1 }
  0xe7   : > { %v2606_v46 = vpop.f32.mrf.mxu2  ;;  %v2608_v47 = vpop.f32.mrf.mxu3 }
  0xe8   : > { %v2610_v48 = vpop.f32.mrf.mxu0  ;;  %v2612_v49 = vpop.f32.mrf.mxu1 }
  0xef   : > { %v2616_v55 = vpop.f32.mrf.mxu2  ;;  %v2618_v56 = vpop.f32.mrf.mxu3 }
  0xf0   : > { %v1509_v57 = vpop.f32.mrf.mxu0  ;;  %v1529_v58 = vpop.f32.mrf.mxu1 }
  0xf1   : > { %v1812_v59 = vmax.f32 %v1395_v53, %v1509_v57  ;;  %v1813_v60 = vmax.f32 %v1396_v54, %v1529_v58  ;;  %v986_v54 = vmax.f32 %v2570_v13, %v2590_v28  ;;  %v987_v57 = vmax.f32 %v2572_v14, %v2592_v29 }
  0xf3   : > { %v1834_v61 = vadd.f32 %v2614_v52, %v1812_v59  ;;  %v1835_v62 = vadd.f32 %v2614_v52, %v1813_v60  ;;  %v1401_v60 = vmax.f32 %v984_v38, %v1212_v42  ;;  %v1404_v11 = vmax.f32 %v987_v57, %v1272_v45 }
  0xf4   : > { %v989_v45 = vmax.f32 %v2576_v8, %v2596_v31 }
  0xf5   : > { %v1850_v3 = vmax.f32 %v1834_v61, 0.0  ;;  %v1851_v4 = vmax.f32 %v1835_v62, 0.0  ;;  %v1402_v61 = vmax.f32 %v985_v39, %v1232_v43  ;;  %v1403_v62 = vmax.f32 %v986_v54, %v1252_v44 }
  0xf6   : > { %v988_v44 = vmax.f32 %v2574_v15, %v2594_v30 }
  0xf7   : > { %1866 = vst [vmem:[%s2628_s25] sm:$0x3f] %v1850_v3  ;;  %v1549_v6 = vpop.f32.mrf.mxu2  ;;  %v1569_v7 = vpop.f32.mrf.mxu3 }
  0xf8   : > { %1867 = vst [vmem:[%s2628_s25 + $0x8] sm:$0x3f] %v1851_v4  ;;  %v1814_v22 = vmax.f32 %v1397_v5, %v1549_v6  ;;  %v1815_v23 = vmax.f32 %v1398_v20, %v1569_v7  ;;  %v1589_v37 = vpop.f32.mrf.mxu0  ;;  %v1609_v50 = vpop.f32.mrf.mxu1  ;;  %v990_v4 = vmax.f32 %v2578_v16, %v2598_v32  ;;  %v991_v5 = vmax.f32 %v2580_v17, %v2600_v33 }
  0xf9   : > { %v1816_v51 = vmax.f32 %v1399_v21, %v1589_v37  ;;  %v1817_v53 = vmax.f32 %v1400_v36, %v1609_v50  ;;  %v1405_v36 = vmax.f32 %v988_v44, %v2606_v46  ;;  %v1406_v6 = vmax.f32 %v989_v45, %v2608_v47 }
  0xfa   : > { %v1836_v9 = vadd.f32 %v2614_v52, %v1814_v22  ;;  %v1837_v10 = vadd.f32 %v2614_v52, %v1815_v23  ;;  %v1407_v15 = vmax.f32 %v990_v4, %v2610_v48  ;;  %v1408_v8 = vmax.f32 %v991_v5, %v2612_v49 }
  0xfb   : > { %v1838_v24 = vadd.f32 %v2614_v52, %v1816_v51  ;;  %v1839_v25 = vadd.f32 %v2614_v52, %v1817_v53  ;;  %v992_v23 = vmax.f32 %v2582_v18, %v2602_v34  ;;  %v993_v37 = vmax.f32 %v2584_v19, %v2604_v35 }
  0xfc   : > { %v1852_v40 = vmax.f32 %v1836_v9, 0.0  ;;  %v1853_v41 = vmax.f32 %v1837_v10, 0.0 }
  0xfd   : > { %v1854_v58 = vmax.f32 %v1838_v24, 0.0  ;;  %v1855_v59 = vmax.f32 %v1839_v25, 0.0  ;;  %v1409_v10 = vmax.f32 %v992_v23, %v2616_v55  ;;  %v1410_v24 = vmax.f32 %v993_v37, %v2618_v56 }
  0xfe   : > { %1868 = vst [vmem:[%s2628_s25 + $0x10] sm:$0x3f] %v1852_v40 }
  0xff   : > { %1869 = vst [vmem:[%s2628_s25 + $0x18] sm:$0x3f] %v1853_v41  ;;  %v1629_v26 = vpop.f32.mrf.mxu2  ;;  %v1649_v63 = vpop.f32.mrf.mxu3 }
 0x100   : > { %1870 = vst [vmem:[%s2628_s25 + $0x20] sm:$0x3f] %v1854_v58  ;;  %v1818_v12 = vmax.f32 %v1401_v60, %v1629_v26  ;;  %v1819_v27 = vmax.f32 %v1402_v61, %v1649_v63  ;;  %v1669_v0 = vpop.f32.mrf.mxu0  ;;  %v1689_v1 = vpop.f32.mrf.mxu1 }
 0x101   : > { %1871 = vst [vmem:[%s2628_s25 + $0x28] sm:$0x3f] %v1855_v59  ;;  %v1820_v13 = vmax.f32 %v1403_v62, %v1669_v0  ;;  %v1821_v14 = vmax.f32 %v1404_v11, %v1689_v1 }
 0x102   : > { %v1840_v28 = vadd.f32 %v2614_v52, %v1818_v12  ;;  %v1841_v29 = vadd.f32 %v2614_v52, %v1819_v27 }
 0x103   : > { %v1842_v42 = vadd.f32 %v2614_v52, %v1820_v13  ;;  %v1843_v43 = vadd.f32 %v2614_v52, %v1821_v14 }
 0x104   : > { %v1856_v2 = vmax.f32 %v1840_v28, 0.0  ;;  %v1857_v3 = vmax.f32 %v1841_v29, 0.0 }
 0x105   : > { %v1858_v20 = vmax.f32 %v1842_v42, 0.0  ;;  %v1859_v21 = vmax.f32 %v1843_v43, 0.0 }
 0x106   : > { %1872 = vst [vmem:[%s2628_s25 + $0x30] sm:$0x3f] %v1856_v2 }
 0x107   : > { %1873 = vst [vmem:[%s2628_s25 + $0x38] sm:$0x3f] %v1857_v3  ;;  %v1709_v30 = vpop.f32.mrf.mxu2  ;;  %v1729_v31 = vpop.f32.mrf.mxu3 }
 0x108   : > { %1874 = vst [vmem:[%s2628_s25 + $0x40] sm:$0x3f] %v1858_v20  ;;  %v1822_v16 = vmax.f32 %v1405_v36, %v1709_v30  ;;  %v1823_v32 = vmax.f32 %v1406_v6, %v1729_v31  ;;  %v1749_v7 = vpop.f32.mrf.mxu0  ;;  %v1769_v17 = vpop.f32.mrf.mxu1 }
 0x109   : > { %1875 = vst [vmem:[%s2628_s25 + $0x48] sm:$0x3f] %v1859_v21  ;;  %v1824_v33 = vmax.f32 %v1407_v15, %v1749_v7  ;;  %v1825_v46 = vmax.f32 %v1408_v8, %v1769_v17 }
 0x10a   : > { %v1844_v47 = vadd.f32 %v2614_v52, %v1822_v16  ;;  %v1845_v48 = vadd.f32 %v2614_v52, %v1823_v32 }
 0x10b   : > { %v1846_v49 = vadd.f32 %v2614_v52, %v1824_v33  ;;  %v1847_v22 = vadd.f32 %v2614_v52, %v1825_v46 }
 0x10c   : > { %v1860_v50 = vmax.f32 %v1844_v47, 0.0  ;;  %v1861_v51 = vmax.f32 %v1845_v48, 0.0 }
 0x10d   : > { %v1862_v53 = vmax.f32 %v1846_v49, 0.0  ;;  %v1863_v9 = vmax.f32 %v1847_v22, 0.0 }
 0x10e   : > { %1876 = vst [vmem:[%s2628_s25 + $0x50] sm:$0x3f] %v1860_v50 }
 0x10f   : > { %1877 = vst [vmem:[%s2628_s25 + $0x58] sm:$0x3f] %v1861_v51  ;;  %v1789_v25 = vpop.f32.mrf.mxu2  ;;  %v1809_v38 = vpop.f32.mrf.mxu3 }
 0x110   : > { %1878 = vst [vmem:[%s2628_s25 + $0x60] sm:$0x3f] %v1862_v53  ;;  %v1826_v39 = vmax.f32 %v1409_v10, %v1789_v25  ;;  %v1827_v18 = vmax.f32 %v1410_v24, %v1809_v38 }
 0x111   : > { %1879 = vst [vmem:[%s2628_s25 + $0x68] sm:$0x3f] %v1863_v9 }
 0x112   : > { %v1848_v19 = vadd.f32 %v2614_v52, %v1826_v39  ;;  %v1849_v34 = vadd.f32 %v2614_v52, %v1827_v18 }
 0x114   : > { %v1864_v35 = vmax.f32 %v1848_v19, 0.0  ;;  %v1865_v40 = vmax.f32 %v1849_v34, 0.0 }
 0x116   : > { %1880 = vst [vmem:[%s2628_s25 + $0x70] sm:$0x3f] %v1864_v35 }
 0x117   : > { %1882 = vst.msk [vmem:[%s2628_s25 + $0x78] sm:$0x3f] %vm1881_vm2, %v1865_v40 }
 0x118 PF: > { %s13_s12 = sadd.s32 1, %s2191_s12  }
 0x119   : > { %p10_p4 = scmp.ge.s32.totalorder %s13_s12, 4  }
 0x11b   :  { %12 = sbr.rel (!%p10_p4) target bundleno = 1 (0x1), region = 65 }

// kernel: net_forward.5
= control target key start
LH: loop header
LB: loop body
LE: loop exit
PB: predicated region body
PF: predicated region fallthrough
CT: control target
= control target key end

     0   :  { %s1011_s12 = smov 0   ;;  %s1260_s0 = inlined_call_operand.vmem [shape: f32[2,4,54,484], index: 0, kind: input, shape index: {}]   ;;  %s1261_s1 = inlined_call_operand.vmem [shape: f32[16,54], index: 1, kind: input, shape index: {}]   ;;  %s1262_s2 = inlined_call_operand.vmem [shape: f32[16,1], index: 2, kind: input, shape index: {}]   ;;  %s1263_s3 = inlined_call_operand.vmem [shape: f32[2,16,484], index: 3, kind: output, shape index: {}]  }
   0x1 LB: > { %s828_s13 = sadd.s32 4294967295, %s988_s12   ;;  %p832_p0 = scmp.ge.s32.totalorder %s988_s12, 1  ;;  %s988_s12 = sphi %s1011_s12, %s13_s12  }
   0x2   : > { %p137_p1 = scmp.lt.s32.totalorder %s988_s12, 3 }
   0x4   : > { %p138_p2 = pnand %p832_p0, %p137_p1 }
   0x5   : > { %p161_p3 = scmp.lt.s32.totalorder (!%p138_p2), %s828_s13, 1 }
   0x6   : > { %141 = sbr.rel (%p138_p2) target bundleno = 233 (0xe9), region = 32 }
   0xb   : > { %s1265_s13 = smov (!%p161_p3, %s828_s13), 1  ;;  %vm208_vm0 = vcmask 1045504   ;;  %v1062_v28 = vld [vmem:[%s1261_s1] sm:$0xff]  ;;  %vm201_vm1 = vcmask 441344   ;;  %v1093_v43 = vld [vmem:[%s1261_s1 + $0x8] sm:$0xff]  ;;  %vm767_vm2 = vcmask 818176  }
   0xc   : > { %s971_s14 = smul.u32 896, %s1265_s13  ;;  %s970_s26 = sshll.u32 %s1265_s13, 6 }
   0xd   : > { %s1243_s29 = scalar_lea.vmem %s1263_s3, %s970_s26 }
   0xe   : > { %s1025_s17 = scalar_lea.vmem %s1260_s0, %s971_s14 }
   0xf   : > { %v197_v0 = vld [vmem:[%s1025_s17 + $0xc0] sm:$0x3f]  ;;  %v198_v1 = vld [vmem:[%s1025_s17 + $0xc8] sm:$0x3f]  ;;  %v199_v2 = vld [vmem:[%s1025_s17 + $0xd0] sm:$0x3f] }
  0x10   : > { %836 = vmatpush.msk.msra.mxu0 %vm208_vm0, %v197_v0  ;;  %839 = vmatpush.msk.msra.mxu1 %vm208_vm0, %v198_v1  ;;  %v200_v3 = vld [vmem:[%s1025_s17 + $0xd8] sm:$0x3f]  ;;  %v193_v4 = vld [vmem:[%s1025_s17 + $0xa0] sm:$0xff]  ;;  %v194_v5 = vld [vmem:[%s1025_s17 + $0xa8] sm:$0xff] }
  0x11   : > { %842 = vmatpush.msk.msra.mxu2 %vm208_vm0, %v199_v2  ;;  %845 = vmatpush.msk.msra.mxu3 %vm208_vm0, %v200_v3  ;;  %v195_v6 = vld [vmem:[%s1025_s17 + $0xb0] sm:$0xff]  ;;  %v196_v7 = vld [vmem:[%s1025_s17 + $0xb8] sm:$0xff]  ;;  %v189_v8 = vld [vmem:[%s1025_s17 + $0x80] sm:$0xff] }
  0x12   : > { %231 = vmatpush.msra.mxu0 %v193_v4  ;;  %254 = vmatpush.msra.mxu1 %v194_v5  ;;  %v190_v9 = vld [vmem:[%s1025_s17 + $0x88] sm:$0xff]  ;;  %v191_v10 = vld [vmem:[%s1025_s17 + $0x90] sm:$0xff]  ;;  %v192_v11 = vld [vmem:[%s1025_s17 + $0x98] sm:$0xff] }
  0x13   : > { %277 = vmatpush.msra.mxu2 %v195_v6  ;;  %300 = vmatpush.msra.mxu3 %v196_v7  ;;  %v185_v12 = vld [vmem:[%s1025_s17 + $0x60] sm:$0xff]  ;;  %v186_v13 = vld [vmem:[%s1025_s17 + $0x68] sm:$0xff]  ;;  %v187_v14 = vld [vmem:[%s1025_s17 + $0x70] sm:$0xff] }
  0x14   : > { %232 = vmatpush.msra.mxu0 %v189_v8  ;;  %255 = vmatpush.msra.mxu1 %v190_v9  ;;  %v188_v15 = vld [vmem:[%s1025_s17 + $0x78] sm:$0xff]  ;;  %v181_v16 = vld [vmem:[%s1025_s17 + $0x40] sm:$0xff]  ;;  %v182_v17 = vld [vmem:[%s1025_s17 + $0x48] sm:$0xff] }
  0x15   : > { %278 = vmatpush.msra.mxu2 %v191_v10  ;;  %301 = vmatpush.msra.mxu3 %v192_v11  ;;  %v183_v18 = vld [vmem:[%s1025_s17 + $0x50] sm:$0xff]  ;;  %v184_v19 = vld [vmem:[%s1025_s17 + $0x58] sm:$0xff]  ;;  %v177_v20 = vld [vmem:[%s1025_s17 + $0x20] sm:$0xff] }
  0x16   : > { %233 = vmatpush.msra.mxu0 %v185_v12  ;;  %256 = vmatpush.msra.mxu1 %v186_v13  ;;  %v178_v21 = vld [vmem:[%s1025_s17 + $0x28] sm:$0xff]  ;;  %v179_v22 = vld [vmem:[%s1025_s17 + $0x30] sm:$0xff]  ;;  %v180_v23 = vld [vmem:[%s1025_s17 + $0x38] sm:$0xff] }
  0x17   : > { %279 = vmatpush.msra.mxu2 %v187_v14  ;;  %302 = vmatpush.msra.mxu3 %v188_v15  ;;  %v173_v24 = vld [vmem:[%s1025_s17] sm:$0xff]  ;;  %v174_v25 = vld [vmem:[%s1025_s17 + $0x8] sm:$0xff]  ;;  %v175_v26 = vld [vmem:[%s1025_s17 + $0x10] sm:$0xff] }
  0x18   : > { %234 = vmatpush.msra.mxu0 %v181_v16  ;;  %257 = vmatpush.msra.mxu1 %v182_v17  ;;  %v176_v27 = vld [vmem:[%s1025_s17 + $0x18] sm:$0xff]  ;;  %v874_v29 = vld [vmem:[%s1025_s17 + $0x1b0] sm:$0x3f]  ;;  %v872_v31 = vld [vmem:[%s1025_s17 + $0x1a0] sm:$0x3f] }
  0x19   : > { %280 = vmatpush.msra.mxu2 %v183_v18  ;;  %303 = vmatpush.msra.mxu3 %v184_v19  ;;  %v875_v30 = vld [vmem:[%s1025_s17 + $0x1b8] sm:$0x3f]  ;;  %v873_v32 = vld [vmem:[%s1025_s17 + $0x1a8] sm:$0x3f]  ;;  %v870_v33 = vld [vmem:[%s1025_s17 + $0x190] sm:$0xff] }
  0x1a   : > { %235 = vmatpush.msra.mxu0 %v177_v20  ;;  %258 = vmatpush.msra.mxu1 %v178_v21  ;;  %v871_v34 = vld [vmem:[%s1025_s17 + $0x198] sm:$0xff]  ;;  %v868_v35 = vld [vmem:[%s1025_s17 + $0x180] sm:$0xff]  ;;  %v869_v36 = vld [vmem:[%s1025_s17 + $0x188] sm:$0xff] }
  0x1b   : > { %281 = vmatpush.msra.mxu2 %v179_v22  ;;  %304 = vmatpush.msra.mxu3 %v180_v23  ;;  %v866_v37 = vld [vmem:[%s1025_s17 + $0x170] sm:$0xff]  ;;  %v867_v38 = vld [vmem:[%s1025_s17 + $0x178] sm:$0xff]  ;;  %v864_v39 = vld [vmem:[%s1025_s17 + $0x160] sm:$0xff] }
  0x1c   : > { %236 = vmatpush.msra.mxu0 %v173_v24  ;;  %259 = vmatpush.msra.mxu1 %v174_v25  ;;  %v865_v40 = vld [vmem:[%s1025_s17 + $0x168] sm:$0xff]  ;;  %v862_v41 = vld [vmem:[%s1025_s17 + $0x150] sm:$0xff]  ;;  %v863_v42 = vld [vmem:[%s1025_s17 + $0x158] sm:$0xff] }
  0x1d   : > { %282 = vmatpush.msra.mxu2 %v175_v26  ;;  %305 = vmatpush.msra.mxu3 %v176_v27  ;;  %v860_v44 = vld [vmem:[%s1025_s17 + $0x140] sm:$0xff]  ;;  %v861_v45 = vld [vmem:[%s1025_s17 + $0x148] sm:$0xff]  ;;  %v858_v46 = vld [vmem:[%s1025_s17 + $0x130] sm:$0xff] }
  0x1e   : > { %837 = vmatmul.msk.f32.vlgmr.msra.gmra.mxu0 %vm201_vm1, %v1062_v28  ;;  %840 = vmatmul.msk.f32.vlgmr.msra.gmra.mxu1 %vm201_vm1, %v1062_v28  ;;  %v859_v47 = vld [vmem:[%s1025_s17 + $0x138] sm:$0xff]  ;;  %v856_v48 = vld [vmem:[%s1025_s17 + $0x120] sm:$0xff]  ;;  %v857_v49 = vld [vmem:[%s1025_s17 + $0x128] sm:$0xff] }
  0x1f   : > { %843 = vmatmul.msk.f32.vlgmr.msra.gmra.mxu2 %vm201_vm1, %v1062_v28  ;;  %846 = vmatmul.msk.f32.vlgmr.msra.gmra.mxu3 %vm201_vm1, %v1062_v28  ;;  %v854_v50 = vld [vmem:[%s1025_s17 + $0x110] sm:$0xff]  ;;  %v855_v51 = vld [vmem:[%s1025_s17 + $0x118] sm:$0xff]  ;;  %v852_v52 = vld [vmem:[%s1025_s17 + $0x100] sm:$0xff] }
  0x20   : > { %882 = vmatpush.msk.msrb.mxu2 %vm208_vm0, %v874_v29  ;;  %885 = vmatpush.msk.msrb.mxu3 %vm208_vm0, %v875_v30  ;;  %v853_v53 = vld [vmem:[%s1025_s17 + $0x108] sm:$0xff]  ;;  %v850_v54 = vld [vmem:[%s1025_s17 + $0xf0] sm:$0xff]  ;;  %v851_v55 = vld [vmem:[%s1025_s17 + $0xf8] sm:$0xff] }
  0x21   : > { %876 = vmatpush.msk.msrb.mxu0 %vm208_vm0, %v872_v31  ;;  %879 = vmatpush.msk.msrb.mxu1 %vm208_vm0, %v873_v32  ;;  %v848_v56 = vld [vmem:[%s1025_s17 + $0xe0] sm:$0xff]  ;;  %v849_v57 = vld [vmem:[%s1025_s17 + $0xe8] sm:$0xff]  ;;  %v914_v58 = vld [vmem:[%s1025_s17 + $0x290] sm:$0x3f] }
  0x22   : > { %410 = vmatpush.msrb.mxu2 %v870_v33  ;;  %433 = vmatpush.msrb.mxu3 %v871_v34  ;;  %v915_v59 = vld [vmem:[%s1025_s17 + $0x298] sm:$0x3f]  ;;  %v912_v60 = vld [vmem:[%s1025_s17 + $0x280] sm:$0x3f]  ;;  %v913_v61 = vld [vmem:[%s1025_s17 + $0x288] sm:$0x3f] }
  0x23   : > { %364 = vmatpush.msrb.mxu0 %v868_v35  ;;  %387 = vmatpush.msrb.mxu1 %v869_v36  ;;  %v910_v62 = vld [vmem:[%s1025_s17 + $0x270] sm:$0xff]  ;;  %v911_v63 = vld [vmem:[%s1025_s17 + $0x278] sm:$0xff]  ;;  %v908_v0 = vld [vmem:[%s1025_s17 + $0x260] sm:$0xff] }
  0x24   : > { %411 = vmatpush.msrb.mxu2 %v866_v37  ;;  %434 = vmatpush.msrb.mxu3 %v867_v38  ;;  %v909_v1 = vld [vmem:[%s1025_s17 + $0x268] sm:$0xff]  ;;  %v906_v2 = vld [vmem:[%s1025_s17 + $0x250] sm:$0xff]  ;;  %v907_v3 = vld [vmem:[%s1025_s17 + $0x258] sm:$0xff] }
  0x25   : > { %365 = vmatpush.msrb.mxu0 %v864_v39  ;;  %388 = vmatpush.msrb.mxu1 %v865_v40  ;;  %v904_v4 = vld [vmem:[%s1025_s17 + $0x240] sm:$0xff]  ;;  %v905_v5 = vld [vmem:[%s1025_s17 + $0x248] sm:$0xff]  ;;  %v902_v6 = vld [vmem:[%s1025_s17 + $0x230] sm:$0xff] }
  0x26   : > { %412 = vmatpush.msrb.mxu2 %v862_v41  ;;  %435 = vmatpush.msrb.mxu3 %v863_v42  ;;  %v903_v7 = vld [vmem:[%s1025_s17 + $0x238] sm:$0xff]  ;;  %v900_v8 = vld [vmem:[%s1025_s17 + $0x220] sm:$0xff]  ;;  %v901_v9 = vld [vmem:[%s1025_s17 + $0x228] sm:$0xff] }
  0x27   : > { %838 = vmatmul.msk.f32.gmra.mxu0 %vm201_vm1, %v1093_v43  ;;  %841 = vmatmul.msk.f32.gmra.mxu1 %vm201_vm1, %v1093_v43  ;;  %v898_v10 = vld [vmem:[%s1025_s17 + $0x210] sm:$0xff]  ;;  %v899_v11 = vld [vmem:[%s1025_s17 + $0x218] sm:$0xff]  ;;  %v896_v12 = vld [vmem:[%s1025_s17 + $0x200] sm:$0xff] }
  0x28   : > { %844 = vmatmul.msk.f32.gmra.mxu2 %vm201_vm1, %v1093_v43  ;;  %847 = vmatmul.msk.f32.gmra.mxu3 %vm201_vm1, %v1093_v43  ;;  %v897_v13 = vld [vmem:[%s1025_s17 + $0x208] sm:$0xff]  ;;  %v894_v14 = vld [vmem:[%s1025_s17 + $0x1f0] sm:$0xff]  ;;  %v895_v15 = vld [vmem:[%s1025_s17 + $0x1f8] sm:$0xff] }
  0x29   : > { %366 = vmatpush.msrb.mxu0 %v860_v44  ;;  %389 = vmatpush.msrb.mxu1 %v861_v45  ;;  %v892_v16 = vld [vmem:[%s1025_s17 + $0x1e0] sm:$0xff]  ;;  %v893_v17 = vld [vmem:[%s1025_s17 + $0x1e8] sm:$0xff]  ;;  %v890_v18 = vld [vmem:[%s1025_s17 + $0x1d0] sm:$0xff] }
  0x2a   : > { %413 = vmatpush.msrb.mxu2 %v858_v46  ;;  %436 = vmatpush.msrb.mxu3 %v859_v47  ;;  %v891_v19 = vld [vmem:[%s1025_s17 + $0x1d8] sm:$0xff]  ;;  %v888_v20 = vld [vmem:[%s1025_s17 + $0x1c0] sm:$0xff]  ;;  %v889_v21 = vld [vmem:[%s1025_s17 + $0x1c8] sm:$0xff] }
  0x2b   : > { %367 = vmatpush.msrb.mxu0 %v856_v48  ;;  %390 = vmatpush.msrb.mxu1 %v857_v49  ;;  %v954_v22 = vld [vmem:[%s1025_s17 + $0x370] sm:$0x3f]  ;;  %v955_v23 = vld [vmem:[%s1025_s17 + $0x378] sm:$0x3f]  ;;  %v952_v24 = vld [vmem:[%s1025_s17 + $0x360] sm:$0x3f] }
  0x2c   : > { %414 = vmatpush.msrb.mxu2 %v854_v50  ;;  %437 = vmatpush.msrb.mxu3 %v855_v51  ;;  %v953_v25 = vld [vmem:[%s1025_s17 + $0x368] sm:$0x3f]  ;;  %v950_v26 = vld [vmem:[%s1025_s17 + $0x350] sm:$0xff]  ;;  %v951_v27 = vld [vmem:[%s1025_s17 + $0x358] sm:$0xff] }
  0x2d   : > { %368 = vmatpush.msrb.mxu0 %v852_v52  ;;  %391 = vmatpush.msrb.mxu1 %v853_v53  ;;  %v948_v29 = vld [vmem:[%s1025_s17 + $0x340] sm:$0xff]  ;;  %v949_v30 = vld [vmem:[%s1025_s17 + $0x348] sm:$0xff]  ;;  %v946_v31 = vld [vmem:[%s1025_s17 + $0x330] sm:$0xff]  ;;  %v990_v53 = vmov 0  }
  0x2e   : > { %415 = vmatpush.msrb.mxu2 %v850_v54  ;;  %438 = vmatpush.msrb.mxu3 %v851_v55  ;;  %v947_v32 = vld [vmem:[%s1025_s17 + $0x338] sm:$0xff]  ;;  %v944_v33 = vld [vmem:[%s1025_s17 + $0x320] sm:$0xff]  ;;  %v945_v34 = vld [vmem:[%s1025_s17 + $0x328] sm:$0xff] }
  0x2f   : > { %369 = vmatpush.msrb.mxu0 %v848_v56  ;;  %392 = vmatpush.msrb.mxu1 %v849_v57  ;;  %v942_v35 = vld [vmem:[%s1025_s17 + $0x310] sm:$0xff]  ;;  %v943_v36 = vld [vmem:[%s1025_s17 + $0x318] sm:$0xff]  ;;  %v940_v37 = vld [vmem:[%s1025_s17 + $0x300] sm:$0xff] }
  0x30   : > { %877 = vmatmul.msk.f32.vlgmr.msrb.gmra.mxu0 %vm201_vm1, %v1062_v28  ;;  %880 = vmatmul.msk.f32.vlgmr.msrb.gmra.mxu1 %vm201_vm1, %v1062_v28  ;;  %v941_v38 = vld [vmem:[%s1025_s17 + $0x308] sm:$0xff]  ;;  %v938_v39 = vld [vmem:[%s1025_s17 + $0x2f0] sm:$0xff]  ;;  %v939_v40 = vld [vmem:[%s1025_s17 + $0x2f8] sm:$0xff] }
  0x31   : > { %883 = vmatmul.msk.f32.vlgmr.msrb.gmra.mxu2 %vm201_vm1, %v1062_v28  ;;  %886 = vmatmul.msk.f32.vlgmr.msrb.gmra.mxu3 %vm201_vm1, %v1062_v28  ;;  %v936_v41 = vld [vmem:[%s1025_s17 + $0x2e0] sm:$0xff]  ;;  %v937_v42 = vld [vmem:[%s1025_s17 + $0x2e8] sm:$0xff]  ;;  %v934_v44 = vld [vmem:[%s1025_s17 + $0x2d0] sm:$0xff] }
  0x32   : > { %922 = vmatpush.msk.msra.mxu2 %vm208_vm0, %v914_v58  ;;  %925 = vmatpush.msk.msra.mxu3 %vm208_vm0, %v915_v59  ;;  %v935_v45 = vld [vmem:[%s1025_s17 + $0x2d8] sm:$0xff]  ;;  %v932_v46 = vld [vmem:[%s1025_s17 + $0x2c0] sm:$0xff]  ;;  %v933_v47 = vld [vmem:[%s1025_s17 + $0x2c8] sm:$0xff] }
  0x33   : > { %916 = vmatpush.msk.msra.mxu0 %vm208_vm0, %v912_v60  ;;  %919 = vmatpush.msk.msra.mxu1 %vm208_vm0, %v913_v61  ;;  %v930_v48 = vld [vmem:[%s1025_s17 + $0x2b0] sm:$0xff]  ;;  %v931_v49 = vld [vmem:[%s1025_s17 + $0x2b8] sm:$0xff]  ;;  %v928_v50 = vld [vmem:[%s1025_s17 + $0x2a0] sm:$0xff] }
  0x34   : > { %551 = vmatpush.msra.mxu2 %v910_v62  ;;  %574 = vmatpush.msra.mxu3 %v911_v63  ;;  %v929_v51 = vld [vmem:[%s1025_s17 + $0x2a8] sm:$0xff]  ;;  %v736_v52 = vld [vmem:[%s1262_s2] sm:$0xff] }
  0x35   : > { %505 = vmatpush.msra.mxu0 %v908_v0  ;;  %528 = vmatpush.msra.mxu1 %v909_v1  ;;  %v737_v54 = vld [vmem:[%s1262_s2 + $0x8] sm:$0xff] }
  0x36   : > { %552 = vmatpush.msra.mxu2 %v906_v2  ;;  %575 = vmatpush.msra.mxu3 %v907_v3 }
  0x37   : > { %506 = vmatpush.msra.mxu0 %v904_v4  ;;  %529 = vmatpush.msra.mxu1 %v905_v5 }
  0x38   : > { %553 = vmatpush.msra.mxu2 %v902_v6  ;;  %576 = vmatpush.msra.mxu3 %v903_v7 }
  0x39   : > { %878 = vmatmul.msk.f32.gmra.mxu0 %vm201_vm1, %v1093_v43  ;;  %881 = vmatmul.msk.f32.gmra.mxu1 %vm201_vm1, %v1093_v43 }
  0x3a   : > { %884 = vmatmul.msk.f32.gmra.mxu2 %vm201_vm1, %v1093_v43  ;;  %887 = vmatmul.msk.f32.gmra.mxu3 %vm201_vm1, %v1093_v43 }
  0x3b   : > { %507 = vmatpush.msra.mxu0 %v900_v8  ;;  %530 = vmatpush.msra.mxu1 %v901_v9 }
  0x3c   : > { %554 = vmatpush.msra.mxu2 %v898_v10  ;;  %577 = vmatpush.msra.mxu3 %v899_v11 }
  0x3d   : > { %508 = vmatpush.msra.mxu0 %v896_v12  ;;  %531 = vmatpush.msra.mxu1 %v897_v13 }
  0x3e   : > { %555 = vmatpush.msra.mxu2 %v894_v14  ;;  %578 = vmatpush.msra.mxu3 %v895_v15 }
  0x3f   : > { %509 = vmatpush.msra.mxu0 %v892_v16  ;;  %532 = vmatpush.msra.mxu1 %v893_v17 }
  0x40   : > { %556 = vmatpush.msra.mxu2 %v890_v18  ;;  %579 = vmatpush.msra.mxu3 %v891_v19 }
  0x41   : > { %510 = vmatpush.msra.mxu0 %v888_v20  ;;  %533 = vmatpush.msra.mxu1 %v889_v21 }
  0x42   : > { %917 = vmatmul.msk.f32.vlgmr.msra.gmra.mxu0 %vm201_vm1, %v1062_v28  ;;  %920 = vmatmul.msk.f32.vlgmr.msra.gmra.mxu1 %vm201_vm1, %v1062_v28 }
  0x43   : > { %923 = vmatmul.msk.f32.vlgmr.msra.gmra.mxu2 %vm201_vm1, %v1062_v28  ;;  %926 = vmatmul.msk.f32.vlgmr.msra.gmra.mxu3 %vm201_vm1, %v1062_v28 }
  0x44   : > { %962 = vmatpush.msk.msrb.mxu2 %vm208_vm0, %v954_v22  ;;  %965 = vmatpush.msk.msrb.mxu3 %vm208_vm0, %v955_v23 }
  0x45   : > { %956 = vmatpush.msk.msrb.mxu0 %vm208_vm0, %v952_v24  ;;  %959 = vmatpush.msk.msrb.mxu1 %vm208_vm0, %v953_v25 }
  0x46   : > { %692 = vmatpush.msrb.mxu2 %v950_v26  ;;  %715 = vmatpush.msrb.mxu3 %v951_v27 }
  0x47   : > { %646 = vmatpush.msrb.mxu0 %v948_v29  ;;  %669 = vmatpush.msrb.mxu1 %v949_v30 }
  0x48   : > { %693 = vmatpush.msrb.mxu2 %v946_v31  ;;  %716 = vmatpush.msrb.mxu3 %v947_v32 }
  0x49   : > { %647 = vmatpush.msrb.mxu0 %v944_v33  ;;  %670 = vmatpush.msrb.mxu1 %v945_v34 }
  0x4a   : > { %694 = vmatpush.msrb.mxu2 %v942_v35  ;;  %717 = vmatpush.msrb.mxu3 %v943_v36 }
  0x4b   : > { %918 = vmatmul.msk.f32.gmra.mxu0 %vm201_vm1, %v1093_v43  ;;  %921 = vmatmul.msk.f32.gmra.mxu1 %vm201_vm1, %v1093_v43 }
  0x4c   : > { %924 = vmatmul.msk.f32.gmra.mxu2 %vm201_vm1, %v1093_v43  ;;  %927 = vmatmul.msk.f32.gmra.mxu3 %vm201_vm1, %v1093_v43 }
  0x4d   : > { %648 = vmatpush.msrb.mxu0 %v940_v37  ;;  %671 = vmatpush.msrb.mxu1 %v941_v38 }
  0x4e   : > { %695 = vmatpush.msrb.mxu2 %v938_v39  ;;  %718 = vmatpush.msrb.mxu3 %v939_v40 }
  0x4f   : > { %649 = vmatpush.msrb.mxu0 %v936_v41  ;;  %672 = vmatpush.msrb.mxu1 %v937_v42 }
  0x50   : > { %696 = vmatpush.msrb.mxu2 %v934_v44  ;;  %719 = vmatpush.msrb.mxu3 %v935_v45 }
  0x51   : > { %650 = vmatpush.msrb.mxu0 %v932_v46  ;;  %673 = vmatpush.msrb.mxu1 %v933_v47 }
  0x52   : > { %697 = vmatpush.msrb.mxu2 %v930_v48  ;;  %720 = vmatpush.msrb.mxu3 %v931_v49 }
  0x53   : > { %651 = vmatpush.msrb.mxu0 %v928_v50  ;;  %674 = vmatpush.msrb.mxu1 %v929_v51 }
  0x54   : > { %957 = vmatmul.msk.f32.vlgmr.msrb.gmra.mxu0 %vm201_vm1, %v1062_v28  ;;  %960 = vmatmul.msk.f32.vlgmr.msrb.gmra.mxu1 %vm201_vm1, %v1062_v28 }
  0x55   : > { %963 = vmatmul.msk.f32.vlgmr.msrb.gmra.mxu2 %vm201_vm1, %v1062_v28  ;;  %966 = vmatmul.msk.f32.vlgmr.msrb.gmra.mxu3 %vm201_vm1, %v1062_v28 }
  0x56   : > { %981 = vset.pattern.permute.xlu0 %v990_v53 }
  0x57   : > { %740 = vperm.xlu0 %981, %v736_v52  }
  0x5c   : > { %958 = vmatmul.msk.f32.gmra.mxu0 %vm201_vm1, %v1093_v43  ;;  %961 = vmatmul.msk.f32.gmra.mxu1 %vm201_vm1, %v1093_v43 }
  0x5d   : > { %964 = vmatmul.msk.f32.gmra.mxu2 %vm201_vm1, %v1093_v43  ;;  %967 = vmatmul.msk.f32.gmra.mxu3 %vm201_vm1, %v1093_v43 }
  0x5f   : > { %745 = vperm.xlu0 %981, %v737_v54  }
  0x9b   : > { %v238_v28 = vpop.f32.mrf.mxu0  ;;  %v261_v55 = vpop.f32.mrf.mxu1 }
  0xa2   : > { %v284_v56 = vpop.f32.mrf.mxu2  ;;  %v307_v57 = vpop.f32.mrf.mxu3 }
  0xa4   : > { %v241_v58 = vpop.f32.mrf.mxu0  ;;  %v264_v59 = vpop.f32.mrf.mxu1 }
  0xab   : > { %v1235_v60 = vpop.f32.mrf.mxu2  ;;  %v1237_v61 = vpop.f32.mrf.mxu3 }
  0xad   : > { %v371_v62 = vpop.f32.mrf.mxu0  ;;  %v394_v63 = vpop.f32.mrf.mxu1 }
  0xae   : > { %v446_v11 = vmax.f32 %v238_v28, %v371_v62  ;;  %v447_v12 = vmax.f32 %v261_v55, %v394_v63 }
  0xb4   : > { %v417_v0 = vpop.f32.mrf.mxu2  ;;  %v440_v1 = vpop.f32.mrf.mxu3 }
  0xb5   : > { %v448_v24 = vmax.f32 %v284_v56, %v417_v0  ;;  %v449_v25 = vmax.f32 %v307_v57, %v440_v1 }
  0xb6   : > { %v374_v2 = vpop.f32.mrf.mxu0  ;;  %v397_v3 = vpop.f32.mrf.mxu1 }
  0xb7   : > { %v450_v26 = vmax.f32 %v241_v58, %v374_v2  ;;  %v451_v27 = vmax.f32 %v264_v59, %v397_v3 }
  0xbd   : > { %v420_v4 = vpop.f32.mrf.mxu2  ;;  %v443_v5 = vpop.f32.mrf.mxu3 }
  0xbe   : > { %v452_v47 = vmax.f32 %v1235_v60, %v420_v4  ;;  %v453_v50 = vmax.f32 %v1237_v61, %v443_v5 }
  0xbf   : > { %v512_v43 = vpop.f32.mrf.mxu0  ;;  %v535_v6 = vpop.f32.mrf.mxu1 }
  0xc0   : > { %v587_v15 = vmax.f32 %v446_v11, %v512_v43  ;;  %v588_v16 = vmax.f32 %v447_v12, %v535_v6 }
  0xc6   : > { %v558_v7 = vpop.f32.mrf.mxu2  ;;  %v581_v8 = vpop.f32.mrf.mxu3 }
  0xc7   : > { %v589_v31 = vmax.f32 %v448_v24, %v558_v7  ;;  %v590_v32 = vmax.f32 %v449_v25, %v581_v8 }
  0xc8   : > { %v515_v9 = vpop.f32.mrf.mxu0  ;;  %v538_v10 = vpop.f32.mrf.mxu1 }
  0xc9   : > { %v741_v17 = vpop.permute.xlu0 %740  ;;  %v591_v33 = vmax.f32 %v450_v26, %v515_v9  ;;  %v592_v34 = vmax.f32 %v451_v27, %v538_v10 }
  0xcf   : > { %v561_v13 = vpop.f32.mrf.mxu2  ;;  %v584_v14 = vpop.f32.mrf.mxu3 }
  0xd0   : > { %v593_v28 = vmax.f32 %v452_v47, %v561_v13  ;;  %v594_v55 = vmax.f32 %v453_v50, %v584_v14 }
  0xd1   : > { %v653_v18 = vpop.f32.mrf.mxu0  ;;  %v676_v19 = vpop.f32.mrf.mxu1 }
  0xd2   : > { %v728_v20 = vmax.f32 %v587_v15, %v653_v18  ;;  %v729_v21 = vmax.f32 %v588_v16, %v676_v19  ;;  %v746_v46 = vpop.permute.xlu0 %745 }
  0xd4   : > { %v748_v22 = vadd.f32 %v741_v17, %v728_v20  ;;  %v749_v23 = vadd.f32 %v741_v17, %v729_v21 }
  0xd6   : > { %v756_v29 = vmax.f32 %v748_v22, 0.0  ;;  %v757_v30 = vmax.f32 %v749_v23, 0.0 }
  0xd8   : > { %764 = vst [vmem:[%s1243_s29] sm:$0xff] %v756_v29  ;;  %v699_v35 = vpop.f32.mrf.mxu2  ;;  %v722_v36 = vpop.f32.mrf.mxu3 }
  0xd9   : > { %765 = vst [vmem:[%s1243_s29 + $0x8] sm:$0xff] %v757_v30  ;;  %v730_v37 = vmax.f32 %v589_v31, %v699_v35  ;;  %v731_v38 = vmax.f32 %v590_v32, %v722_v36  ;;  %v656_v39 = vpop.f32.mrf.mxu0  ;;  %v679_v40 = vpop.f32.mrf.mxu1 }
  0xda   : > { %v732_v41 = vmax.f32 %v591_v33, %v656_v39  ;;  %v733_v42 = vmax.f32 %v592_v34, %v679_v40 }
  0xdb   : > { %v750_v44 = vadd.f32 %v741_v17, %v730_v37  ;;  %v751_v45 = vadd.f32 %v741_v17, %v731_v38 }
  0xdc   : > { %v752_v48 = vadd.f32 %v746_v46, %v732_v41  ;;  %v753_v49 = vadd.f32 %v746_v46, %v733_v42 }
  0xdd   : > { %v758_v51 = vmax.f32 %v750_v44, 0.0  ;;  %v759_v52 = vmax.f32 %v751_v45, 0.0 }
  0xde   : > { %v760_v53 = vmax.f32 %v752_v48, 0.0  ;;  %v761_v54 = vmax.f32 %v753_v49, 0.0 }
  0xdf   : > { %766 = vst [vmem:[%s1243_s29 + $0x10] sm:$0xff] %v758_v51 }
  0xe0   : > { %768 = vst.msk [vmem:[%s1243_s29 + $0x18] sm:$0xff] %vm767_vm2, %v759_v52  ;;  %v702_v56 = vpop.f32.mrf.mxu2  ;;  %v725_v57 = vpop.f32.mrf.mxu3 }
  0xe1   : > { %769 = vst [vmem:[%s1243_s29 + $0x20] sm:$0xff] %v760_v53  ;;  %v734_v58 = vmax.f32 %v593_v28, %v702_v56  ;;  %v735_v59 = vmax.f32 %v594_v55, %v725_v57 }
  0xe2   : > { %770 = vst [vmem:[%s1243_s29 + $0x28] sm:$0xff] %v761_v54 }
  0xe3   : > { %v754_v60 = vadd.f32 %v746_v46, %v734_v58  ;;  %v755_v61 = vadd.f32 %v746_v46, %v735_v59 }
  0xe5   : > { %v762_v62 = vmax.f32 %v754_v60, 0.0  ;;  %v763_v63 = vmax.f32 %v755_v61, 0.0 }
  0xe7   : > { %771 = vst [vmem:[%s1243_s29 + $0x30] sm:$0xff] %v762_v62 }
  0xe8   : > { %772 = vst.msk [vmem:[%s1243_s29 + $0x38] sm:$0xff] %vm767_vm2, %v763_v63 }
  0xe9 PF: > { %s13_s12 = sadd.s32 1, %s988_s12  }
  0xea   : > { %p10_p4 = scmp.ge.s32.totalorder %s13_s12, 4  }
  0xec   :  { %12 = sbr.rel (!%p10_p4) target bundleno = 1 (0x1), region = 65 }

// kernel: net_forward.6
= control target key start
LH: loop header
LB: loop body
LE: loop exit
PB: predicated region body
PF: predicated region fallthrough
CT: control target
= control target key end

     0   :  { %s932_s12 = smov 0   ;;  %s1287_s0 = inlined_call_operand.vmem [shape: f32[2,4,144,121], index: 0, kind: input, shape index: {}]   ;;  %s1288_s1 = inlined_call_operand.vmem [shape: f32[64,144], index: 1, kind: input, shape index: {}]   ;;  %s1289_s2 = inlined_call_operand.vmem [shape: f32[64,1], index: 2, kind: input, shape index: {}]   ;;  %s1290_s3 = inlined_call_operand.vmem [shape: bf16[2,64,121], index: 3, kind: output, shape index: {}]  }
   0x1 LB: > { %s775_s13 = sadd.s32 4294967295, %s909_s12   ;;  %p779_p0 = scmp.ge.s32.totalorder %s909_s12, 1  ;;  %s909_s12 = sphi %s932_s12, %s13_s12  }
   0x2   : > { %p137_p1 = scmp.lt.s32.totalorder %s909_s12, 3 }
   0x4   : > { %p138_p2 = pnand %p779_p0, %p137_p1 }
   0x5   : > { %p161_p3 = scmp.lt.s32.totalorder (!%p138_p2), %s775_s13, 1 }
   0x6   : > { %141 = sbr.rel (%p138_p2) target bundleno = 303 (0x12f), region = 32 }
   0xb   : > { %s1292_s13 = smov (!%p161_p3, %s775_s13), 1  ;;  %v957_v6 = vld [vmem:[%s1288_s1 + $0x8] sm:$0xff]  ;;  %vm205_vm0 = vcmask 130048   ;;  %v978_v19 = vld [vmem:[%s1288_s1 + $0x18] sm:$0xff]  ;;  %v1034_v53 = vld [vmem:[%s1288_s1] sm:$0xff]  ;;  %vm711_vm1 = vcmask 986112  }
   0xc   : > { %s890_s14 = smul.u32 576, %s1292_s13  ;;  %v1001_v34 = vld [vmem:[%s1288_s1 + $0x28] sm:$0xff]  ;;  %v1023_v48 = vld [vmem:[%s1288_s1 + $0x38] sm:$0xff]  ;;  %v1058_v63 = vld [vmem:[%s1288_s1 + $0x10] sm:$0xff]  ;;  %s871_s16 = sshll.u32 %s1292_s13, 5 }
   0xd   : > { %v1048_v59 = vld [vmem:[%s1288_s1 + $0x48] sm:$0xff]  ;;  %s1248_s20 = scalar_lea.vmem %s1290_s3, %s871_s16 }
   0xe   : > { %s946_s17 = scalar_lea.vmem %s1287_s0, %s890_s14 }
   0xf   : > { %v202_v0 = vld [vmem:[%s946_s17 + $0x78] sm:$0xff]  ;;  %v806_v1 = vld [vmem:[%s946_s17 + $0x108] sm:$0xff]  ;;  %v201_v3 = vld [vmem:[%s946_s17 + $0x70] sm:$0xff] }
  0x10   : > { %v808_v2 = vld [vmem:[%s946_s17 + $0x118] sm:$0xff]  ;;  %230 = vmatpush.msra.mxu0 %v202_v0  ;;  %331 = vmatpush.msra.mxu2 %v806_v1  ;;  %v805_v4 = vld [vmem:[%s946_s17 + $0x100] sm:$0xff]  ;;  %v807_v5 = vld [vmem:[%s946_s17 + $0x110] sm:$0xff] }
  0x11   : > { %386 = vmatpush.msra.mxu3 %v808_v2  ;;  %v200_v7 = vld [vmem:[%s946_s17 + $0x68] sm:$0xff]  ;;  %v804_v8 = vld [vmem:[%s946_s17 + $0xf8] sm:$0xff]  ;;  %v199_v10 = vld [vmem:[%s946_s17 + $0x60] sm:$0xff] }
  0x12   : > { %231 = vmatpush.msra.mxu0 %v201_v3  ;;  %332 = vmatpush.msra.mxu2 %v805_v4  ;;  %v204_v9 = vld [vmem:[%s946_s17 + $0x88] sm:$0xff]  ;;  %v203_v11 = vld [vmem:[%s946_s17 + $0x80] sm:$0xff]  ;;  %v803_v12 = vld [vmem:[%s946_s17 + $0xf0] sm:$0xff] }
  0x13   : > { %387 = vmatpush.msra.mxu3 %v807_v5  ;;  %285 = vmatpush.msra.mxu1 %v204_v9  ;;  %v198_v13 = vld [vmem:[%s946_s17 + $0x58] sm:$0xff]  ;;  %v834_v14 = vld [vmem:[%s946_s17 + $0x1a8] sm:$0xff]  ;;  %v197_v16 = vld [vmem:[%s946_s17 + $0x50] sm:$0xff] }
  0x14   : > { %809 = vmatmul.msk.f32.vlgmr.msra.gmra.mxu3 %vm205_vm0, %v957_v6  ;;  %232 = vmatpush.msra.mxu0 %v200_v7  ;;  %v802_v15 = vld [vmem:[%s946_s17 + $0xe8] sm:$0xff]  ;;  %v801_v17 = vld [vmem:[%s946_s17 + $0xe0] sm:$0xff]  ;;  %v832_v18 = vld [vmem:[%s946_s17 + $0x198] sm:$0xff] }
  0x15   : > { %333 = vmatpush.msra.mxu2 %v804_v8  ;;  %286 = vmatpush.msra.mxu1 %v203_v11  ;;  %v196_v20 = vld [vmem:[%s946_s17 + $0x48] sm:$0xff]  ;;  %v831_v21 = vld [vmem:[%s946_s17 + $0x190] sm:$0xff]  ;;  %v800_v22 = vld [vmem:[%s946_s17 + $0xd8] sm:$0xff] }
  0x16   : > { %233 = vmatpush.msra.mxu0 %v199_v10  ;;  %783 = vmatmul.msk.f32.vlgmr.msra.gmra.mxu1 %vm205_vm0, %v957_v6  ;;  %v195_v23 = vld [vmem:[%s946_s17 + $0x40] sm:$0xff]  ;;  %v830_v24 = vld [vmem:[%s946_s17 + $0x188] sm:$0xff]  ;;  %v799_v25 = vld [vmem:[%s946_s17 + $0xd0] sm:$0xff] }
  0x17   : > { %334 = vmatpush.msra.mxu2 %v803_v12  ;;  %495 = vmatpush.msrb.mxu3 %v834_v14  ;;  %v194_v26 = vld [vmem:[%s946_s17 + $0x38] sm:$0xff]  ;;  %v829_v27 = vld [vmem:[%s946_s17 + $0x180] sm:$0xff]  ;;  %v798_v28 = vld [vmem:[%s946_s17 + $0xc8] sm:$0xff] }
  0x18   : > { %234 = vmatpush.msra.mxu0 %v198_v13  ;;  %440 = vmatpush.msrb.mxu1 %v832_v18  ;;  %v828_v29 = vld [vmem:[%s946_s17 + $0x178] sm:$0xff]  ;;  %v193_v30 = vld [vmem:[%s946_s17 + $0x30] sm:$0xff]  ;;  %v797_v31 = vld [vmem:[%s946_s17 + $0xc0] sm:$0xff] }
  0x19   : > { %335 = vmatpush.msra.mxu2 %v802_v15  ;;  %v827_v32 = vld [vmem:[%s946_s17 + $0x170] sm:$0xff]  ;;  %v833_v33 = vld [vmem:[%s946_s17 + $0x1a0] sm:$0xff]  ;;  %v192_v35 = vld [vmem:[%s946_s17 + $0x28] sm:$0xff] }
  0x1a   : > { %235 = vmatpush.msra.mxu0 %v197_v16  ;;  %441 = vmatpush.msrb.mxu1 %v831_v21  ;;  %v796_v36 = vld [vmem:[%s946_s17 + $0xb8] sm:$0xff]  ;;  %v826_v37 = vld [vmem:[%s946_s17 + $0x168] sm:$0xff]  ;;  %v191_v38 = vld [vmem:[%s946_s17 + $0x20] sm:$0xff] }
  0x1b   : > { %336 = vmatpush.msra.mxu2 %v801_v17  ;;  %496 = vmatpush.msrb.mxu3 %v833_v33  ;;  %v795_v39 = vld [vmem:[%s946_s17 + $0xb0] sm:$0xff]  ;;  %v825_v40 = vld [vmem:[%s946_s17 + $0x160] sm:$0xff]  ;;  %v190_v41 = vld [vmem:[%s946_s17 + $0x18] sm:$0xff] }
  0x1c   : > { %810 = vmatmul.msk.f32.gmra.mxu3 %vm205_vm0, %v978_v19  ;;  %236 = vmatpush.msra.mxu0 %v196_v20  ;;  %v794_v42 = vld [vmem:[%s946_s17 + $0xa8] sm:$0xff]  ;;  %v824_v43 = vld [vmem:[%s946_s17 + $0x158] sm:$0xff]  ;;  %v189_v44 = vld [vmem:[%s946_s17 + $0x10] sm:$0xff] }
  0x1d   : > { %337 = vmatpush.msra.mxu2 %v800_v22  ;;  %442 = vmatpush.msrb.mxu1 %v830_v24  ;;  %v860_v45 = vld [vmem:[%s946_s17 + $0x238] sm:$0xff]  ;;  %v793_v46 = vld [vmem:[%s946_s17 + $0xa0] sm:$0xff]  ;;  %v823_v47 = vld [vmem:[%s946_s17 + $0x150] sm:$0xff] }
  0x1e   : > { %237 = vmatpush.msra.mxu0 %v195_v23  ;;  %784 = vmatmul.msk.f32.gmra.mxu1 %vm205_vm0, %v978_v19  ;;  %v188_v49 = vld [vmem:[%s946_s17 + $0x8] sm:$0xff]  ;;  %v792_v50 = vld [vmem:[%s946_s17 + $0x98] sm:$0xff]  ;;  %v187_v51 = vld [vmem:[%s946_s17] sm:$0xff] }
  0x1f   : > { %338 = vmatpush.msra.mxu2 %v799_v25  ;;  %443 = vmatpush.msrb.mxu1 %v829_v27  ;;  %v791_v52 = vld [vmem:[%s946_s17 + $0x90] sm:$0xff]  ;;  %v822_v54 = vld [vmem:[%s946_s17 + $0x148] sm:$0xff]  ;;  %v857_v56 = vld [vmem:[%s946_s17 + $0x220] sm:$0xff]  ;;  %v911_v25 = vmov 0  }
  0x20   : > { %238 = vmatpush.msra.mxu0 %v194_v26  ;;  %888 = vmatpush.msra.mxu3 %v860_v45  ;;  %v858_v55 = vld [vmem:[%s946_s17 + $0x228] sm:$0xff]  ;;  %v859_v57 = vld [vmem:[%s946_s17 + $0x230] sm:$0xff]  ;;  %v821_v58 = vld [vmem:[%s946_s17 + $0x140] sm:$0xff] }
  0x21   : > { %339 = vmatpush.msra.mxu2 %v798_v28  ;;  %444 = vmatpush.msrb.mxu1 %v828_v29  ;;  %v856_v60 = vld [vmem:[%s946_s17 + $0x218] sm:$0xff]  ;;  %v855_v62 = vld [vmem:[%s946_s17 + $0x210] sm:$0xff]  ;;  %v818_v1 = vld [vmem:[%s946_s17 + $0x128] sm:$0xff] }
  0x22   : > { %239 = vmatpush.msra.mxu0 %v193_v30  ;;  %v820_v61 = vld [vmem:[%s946_s17 + $0x138] sm:$0xff]  ;;  %889 = vmatpush.msra.mxu3 %v859_v57  ;;  %v819_v0 = vld [vmem:[%s946_s17 + $0x130] sm:$0xff]  ;;  %v854_v2 = vld [vmem:[%s946_s17 + $0x208] sm:$0xff] }
  0x23   : > { %340 = vmatpush.msra.mxu2 %v797_v31  ;;  %445 = vmatpush.msrb.mxu1 %v827_v32  ;;  %v853_v3 = vld [vmem:[%s946_s17 + $0x200] sm:$0xff]  ;;  %v1072_v5 = vld [vmem:[%s1288_s1 + $0x58] sm:$0xff]  ;;  %v851_v8 = vld [vmem:[%s946_s17 + $0x1f0] sm:$0xff] }
  0x24   : > { %811 = vmatmul.msk.f32.gmra.mxu3 %vm205_vm0, %v1001_v34  ;;  %240 = vmatpush.msra.mxu0 %v192_v35  ;;  %v817_v4 = vld [vmem:[%s946_s17 + $0x120] sm:$0xff]  ;;  %v852_v7 = vld [vmem:[%s946_s17 + $0x1f8] sm:$0xff]  ;;  %v850_v10 = vld [vmem:[%s946_s17 + $0x1e8] sm:$0xff] }
  0x25   : > { %341 = vmatpush.msra.mxu2 %v796_v36  ;;  %446 = vmatpush.msrb.mxu1 %v826_v37  ;;  %v1081_v9 = vld [vmem:[%s1288_s1 + $0x20] sm:$0xff]  ;;  %v1092_v12 = vld [vmem:[%s1288_s1 + $0x68] sm:$0xff]  ;;  %v848_v13 = vld [vmem:[%s946_s17 + $0x1d8] sm:$0xff] }
  0x26   : > { %241 = vmatpush.msra.mxu0 %v191_v38  ;;  %785 = vmatmul.msk.f32.gmra.mxu1 %vm205_vm0, %v1001_v34  ;;  %v849_v11 = vld [vmem:[%s946_s17 + $0x1e0] sm:$0xff]  ;;  %v847_v14 = vld [vmem:[%s946_s17 + $0x1d0] sm:$0xff]  ;;  %v846_v16 = vld [vmem:[%s946_s17 + $0x1c8] sm:$0xff] }
  0x27   : > { %342 = vmatpush.msra.mxu2 %v795_v39  ;;  %447 = vmatpush.msrb.mxu1 %v825_v40  ;;  %v1101_v15 = vld [vmem:[%s1288_s1 + $0x30] sm:$0xff]  ;;  %v845_v17 = vld [vmem:[%s946_s17 + $0x1c0] sm:$0xff]  ;;  %v1112_v18 = vld [vmem:[%s1288_s1 + $0x78] sm:$0xff] }
  0x28   : > { %242 = vmatpush.msra.mxu0 %v190_v41  ;;  %v1119_v20 = vld [vmem:[%s1288_s1 + $0x40] sm:$0xff]  ;;  %v844_v21 = vld [vmem:[%s946_s17 + $0x1b8] sm:$0xff]  ;;  %v843_v22 = vld [vmem:[%s946_s17 + $0x1b0] sm:$0xff]  ;;  %900 = vset.pattern.permute.xlu0 %v911_v25 }
  0x29   : > { %343 = vmatpush.msra.mxu2 %v794_v42  ;;  %448 = vmatpush.msrb.mxu1 %v824_v43  ;;  %v181_v23 = vld [vmem:[%s1288_s1 + $0x50] sm:$0xff]  ;;  %v183_v24 = vld [vmem:[%s1288_s1 + $0x60] sm:$0xff]  ;;  %v640_v28 = vld [vmem:[%s1289_s2 + $0x8] sm:$0xff] }
  0x2a   : > { %243 = vmatpush.msra.mxu0 %v189_v44  ;;  %901 = vset.pattern.permute.xlu1 %v911_v25  ;;  %v185_v26 = vld [vmem:[%s1288_s1 + $0x70] sm:$0xff]  ;;  %v639_v27 = vld [vmem:[%s1289_s2] sm:$0xff]  ;;  %v642_v30 = vld [vmem:[%s1289_s2 + $0x18] sm:$0xff] }
  0x2b   : > { %344 = vmatpush.msra.mxu2 %v793_v46  ;;  %449 = vmatpush.msrb.mxu1 %v823_v47  ;;  %v641_v29 = vld [vmem:[%s1289_s2 + $0x10] sm:$0xff]  ;;  %v644_v37 = vld [vmem:[%s1289_s2 + $0x28] sm:$0xff] }
  0x2c   : > { %812 = vmatmul.msk.f32.gmra.mxu3 %vm205_vm0, %v1023_v48  ;;  %244 = vmatpush.msra.mxu0 %v188_v49 }
  0x2d   : > { %345 = vmatpush.msra.mxu2 %v792_v50  ;;  %450 = vmatpush.msrb.mxu1 %v822_v54 }
  0x2e   : > { %245 = vmatpush.msra.mxu0 %v187_v51  ;;  %786 = vmatmul.msk.f32.gmra.mxu1 %vm205_vm0, %v1023_v48 }
  0x2f   : > { %346 = vmatpush.msra.mxu2 %v791_v52  ;;  %246 = vmatmul.f32.vlgmr.msra.gmra.mxu0 %v1034_v53 }
  0x30   : > { %347 = vmatmul.f32.vlgmr.msra.gmra.mxu2 %v1034_v53  ;;  %549 = vmatpush.msrb.mxu0 %v858_v55 }
  0x31   : > { %604 = vmatpush.msrb.mxu2 %v860_v45  ;;  %451 = vmatpush.msrb.mxu1 %v821_v58 }
  0x32   : > { %550 = vmatpush.msrb.mxu0 %v857_v56  ;;  %902 = vset.pattern.permute.xlu2 %v911_v25 }
  0x33   : > { %605 = vmatpush.msrb.mxu2 %v859_v57  ;;  %452 = vmatpush.msrb.mxu1 %v820_v61 }
  0x34   : > { %813 = vmatmul.msk.f32.gmra.mxu3 %vm205_vm0, %v1048_v59  ;;  %551 = vmatpush.msrb.mxu0 %v856_v60 }
  0x35   : > { %453 = vmatpush.msrb.mxu1 %v819_v0  ;;  %649 = vperm.xlu0 %900, %v639_v27  }
  0x36   : > { %787 = vmatmul.msk.f32.gmra.mxu1 %vm205_vm0, %v1048_v59  ;;  %552 = vmatpush.msrb.mxu0 %v855_v62 }
  0x37   : > { %249 = vmatmul.f32.gmra.mxu0 %v1058_v63  ;;  %454 = vmatpush.msrb.mxu1 %v818_v1 }
  0x38   : > { %350 = vmatmul.f32.gmra.mxu2 %v1058_v63  ;;  %553 = vmatpush.msrb.mxu0 %v854_v2 }
  0x39   : > { %455 = vmatpush.msrb.mxu1 %v817_v4  ;;  %659 = vperm.xlu1 %901, %v641_v29  }
  0x3a   : > { %554 = vmatpush.msrb.mxu0 %v853_v3 }
  0x3b   : > { %872 = vmatpush.msra.mxu1 %v858_v55 }
  0x3c   : > { %814 = vmatmul.msk.f32.gmra.mxu3 %vm205_vm0, %v1072_v5  ;;  %555 = vmatpush.msrb.mxu0 %v852_v7 }
  0x3d   : > { %873 = vmatpush.msra.mxu1 %v857_v56  ;;  %654 = vperm.xlu0 %900, %v640_v28  }
  0x3e   : > { %788 = vmatmul.msk.f32.gmra.mxu1 %vm205_vm0, %v1072_v5  ;;  %556 = vmatpush.msrb.mxu0 %v851_v8 }
  0x3f   : > { %252 = vmatmul.f32.gmra.mxu0 %v1081_v9  ;;  %874 = vmatpush.msra.mxu1 %v856_v60 }
  0x40   : > { %353 = vmatmul.f32.gmra.mxu2 %v1081_v9  ;;  %557 = vmatpush.msrb.mxu0 %v850_v10 }
  0x41   : > { %875 = vmatpush.msra.mxu1 %v855_v62  ;;  %664 = vperm.xlu1 %901, %v642_v30  }
  0x42   : > { %558 = vmatpush.msrb.mxu0 %v849_v11 }
  0x43   : > { %876 = vmatpush.msra.mxu1 %v854_v2 }
  0x44   : > { %815 = vmatmul.msk.f32.gmra.mxu3 %vm205_vm0, %v1092_v12  ;;  %559 = vmatpush.msrb.mxu0 %v848_v13 }
  0x45   : > { %877 = vmatpush.msra.mxu1 %v853_v3 }
  0x46   : > { %789 = vmatmul.msk.f32.gmra.mxu1 %vm205_vm0, %v1092_v12  ;;  %560 = vmatpush.msrb.mxu0 %v847_v14 }
  0x47   : > { %255 = vmatmul.f32.gmra.mxu0 %v1101_v15  ;;  %878 = vmatpush.msra.mxu1 %v852_v7 }
  0x48   : > { %356 = vmatmul.f32.gmra.mxu2 %v1101_v15  ;;  %561 = vmatpush.msrb.mxu0 %v846_v16 }
  0x49   : > { %879 = vmatpush.msra.mxu1 %v851_v8 }
  0x4a   : > { %562 = vmatpush.msrb.mxu0 %v845_v17 }
  0x4b   : > { %880 = vmatpush.msra.mxu1 %v850_v10 }
  0x4c   : > { %816 = vmatmul.msk.f32.gmra.mxu3 %vm205_vm0, %v1112_v18  ;;  %563 = vmatpush.msrb.mxu0 %v844_v21 }
  0x4d   : > { %881 = vmatpush.msra.mxu1 %v849_v11 }
  0x4e   : > { %790 = vmatmul.msk.f32.gmra.mxu1 %vm205_vm0, %v1112_v18  ;;  %564 = vmatpush.msrb.mxu0 %v843_v22 }
  0x4f   : > { %258 = vmatmul.f32.gmra.mxu0 %v1119_v20  ;;  %882 = vmatpush.msra.mxu1 %v848_v13 }
  0x50   : > { %359 = vmatmul.f32.gmra.mxu2 %v1119_v20 }
  0x51   : > { %883 = vmatpush.msra.mxu1 %v847_v14 }
  0x53   : > { %884 = vmatpush.msra.mxu1 %v846_v16 }
  0x54   : > { %835 = vmatmul.msk.f32.vlgmr.msrb.gmra.mxu3 %vm205_vm0, %v957_v6 }
  0x55   : > { %885 = vmatpush.msra.mxu1 %v845_v17 }
  0x56   : > { %456 = vmatmul.f32.vlgmr.msrb.gmra.mxu1 %v1034_v53 }
  0x57   : > { %261 = vmatmul.f32.gmra.mxu0 %v181_v23  ;;  %886 = vmatpush.msra.mxu1 %v844_v21 }
  0x58   : > { %362 = vmatmul.f32.gmra.mxu2 %v181_v23 }
  0x59   : > { %887 = vmatpush.msra.mxu1 %v843_v22 }
  0x5c   : > { %836 = vmatmul.msk.f32.gmra.mxu3 %vm205_vm0, %v978_v19 }
  0x5e   : > { %459 = vmatmul.f32.gmra.mxu1 %v1058_v63 }
  0x5f   : > { %264 = vmatmul.f32.gmra.mxu0 %v183_v24 }
  0x60   : > { %365 = vmatmul.f32.gmra.mxu2 %v183_v24 }
  0x64   : > { %837 = vmatmul.msk.f32.gmra.mxu3 %vm205_vm0, %v1001_v34 }
  0x66   : > { %462 = vmatmul.f32.gmra.mxu1 %v1081_v9 }
  0x67   : > { %267 = vmatmul.f32.gmra.mxu0 %v185_v26 }
  0x68   : > { %368 = vmatmul.f32.gmra.mxu2 %v185_v26 }
  0x6c   : > { %838 = vmatmul.msk.f32.gmra.mxu3 %vm205_vm0, %v1023_v48 }
  0x6e   : > { %465 = vmatmul.f32.gmra.mxu1 %v1101_v15 }
  0x6f   : > { %565 = vmatmul.f32.vlgmr.msrb.gmra.mxu0 %v1034_v53 }
  0x70   : > { %861 = vmatmul.msk.f32.vlgmr.msrb.gmra.mxu2 %vm205_vm0, %v957_v6  ;;  %v645_v6 = vld [vmem:[%s1289_s2 + $0x30] sm:$0xff] }
  0x71   : > { %679 = vperm.xlu0 %900, %v645_v6  }
  0x74   : > { %839 = vmatmul.msk.f32.gmra.mxu3 %vm205_vm0, %v1048_v59 }
  0x76   : > { %468 = vmatmul.f32.gmra.mxu1 %v1119_v20 }
  0x77   : > { %568 = vmatmul.f32.gmra.mxu0 %v1058_v63 }
  0x78   : > { %862 = vmatmul.msk.f32.gmra.mxu2 %vm205_vm0, %v978_v19  ;;  %v646_v19 = vld [vmem:[%s1289_s2 + $0x38] sm:$0xff] }
  0x79   : > { %684 = vperm.xlu1 %901, %v646_v19  }
  0x7c   : > { %840 = vmatmul.msk.f32.gmra.mxu3 %vm205_vm0, %v1072_v5 }
  0x7e   : > { %471 = vmatmul.f32.gmra.mxu1 %v181_v23 }
  0x7f   : > { %571 = vmatmul.f32.gmra.mxu0 %v1081_v9 }
  0x80   : > { %863 = vmatmul.msk.f32.gmra.mxu2 %vm205_vm0, %v1001_v34  ;;  %v643_v34 = vld [vmem:[%s1289_s2 + $0x20] sm:$0xff] }
  0x81   : > { %669 = vperm.xlu2 %902, %v643_v34  }
  0x84   : > { %841 = vmatmul.msk.f32.gmra.mxu3 %vm205_vm0, %v1092_v12 }
  0x86   : > { %474 = vmatmul.f32.gmra.mxu1 %v183_v24 }
  0x87   : > { %574 = vmatmul.f32.gmra.mxu0 %v1101_v15 }
  0x88   : > { %864 = vmatmul.msk.f32.gmra.mxu2 %vm205_vm0, %v1023_v48 }
  0x89   : > { %674 = vperm.xlu2 %902, %v644_v37  }
  0x8c   : > { %842 = vmatmul.msk.f32.gmra.mxu3 %vm205_vm0, %v1112_v18 }
  0x8e   : > { %477 = vmatmul.f32.gmra.mxu1 %v185_v26 }
  0x8f   : > { %577 = vmatmul.f32.gmra.mxu0 %v1119_v20 }
  0x90   : > { %865 = vmatmul.msk.f32.gmra.mxu2 %vm205_vm0, %v1048_v59 }
  0x93   : > { %v288_v31 = vpop.f32.mrf.mxu1 }
  0x94   : > { %868 = vmatmul.msk.f32.vlgmr.msra.gmra.mxu3 %vm205_vm0, %v1112_v18 }
  0x96   : > { %586 = vmatmul.f32.vlgmr.msra.gmra.mxu1 %v185_v26 }
  0x97   : > { %v389_v32 = vpop.f32.mrf.mxu3  ;;  %580 = vmatmul.f32.gmra.mxu0 %v181_v23 }
  0x98   : > { %866 = vmatmul.msk.f32.gmra.mxu2 %vm205_vm0, %v1072_v5 }
  0x9b   : > { %v291_v33 = vpop.f32.mrf.mxu1 }
  0x9f   : > { %v392_v35 = vpop.f32.mrf.mxu3  ;;  %583 = vmatmul.f32.gmra.mxu0 %v183_v24 }
  0xa0   : > { %867 = vmatmul.msk.f32.gmra.mxu2 %vm205_vm0, %v1092_v12 }
  0xa3   : > { %v294_v36 = vpop.f32.mrf.mxu1 }
  0xa7   : > { %v395_v38 = vpop.f32.mrf.mxu3 }
  0xab   : > { %v297_v39 = vpop.f32.mrf.mxu1 }
  0xac   : > { %v247_v40 = vpop.f32.mrf.mxu0 }
  0xad   : > { %v289_v44 = vadd.f32 %v288_v31, %v247_v40 }
  0xaf   : > { %v398_v41 = vpop.f32.mrf.mxu3 }
  0xb3   : > { %v348_v42 = vpop.f32.mrf.mxu2  ;;  %v300_v43 = vpop.f32.mrf.mxu1 }
  0xb4   : > { %v390_v45 = vadd.f32 %v389_v32, %v348_v42  ;;  %v250_v46 = vpop.f32.mrf.mxu0 }
  0xb5   : > { %v1202_v51 = vadd.f32 %v291_v33, %v250_v46 }
  0xb6   : > { %v413_v47 = vmax.f32 %v289_v44, %v390_v45 }
  0xb7   : > { %v401_v48 = vpop.f32.mrf.mxu3 }
  0xbb   : > { %v351_v49 = vpop.f32.mrf.mxu2  ;;  %v303_v50 = vpop.f32.mrf.mxu1 }
  0xbc   : > { %v1204_v52 = vadd.f32 %v392_v35, %v351_v49  ;;  %v253_v53 = vpop.f32.mrf.mxu0  ;;  %v650_v35 = vpop.permute.xlu0 %649 }
  0xbd   : > { %v1208_v58 = vadd.f32 %v294_v36, %v253_v53 }
  0xbe   : > { %v414_v54 = vmax.f32 %v1202_v51, %v1204_v52 }
  0xbf   : > { %v404_v55 = vpop.f32.mrf.mxu3 }
  0xc3   : > { %v354_v56 = vpop.f32.mrf.mxu2  ;;  %v306_v57 = vpop.f32.mrf.mxu1 }
  0xc4   : > { %v1210_v59 = vadd.f32 %v395_v38, %v354_v56  ;;  %v256_v60 = vpop.f32.mrf.mxu0  ;;  %v655_v52 = vpop.permute.xlu0 %654 }
  0xc5   : > { %v1214_v1 = vadd.f32 %v297_v39, %v256_v60 }
  0xc6   : > { %v415_v61 = vmax.f32 %v1208_v58, %v1210_v59 }
  0xc7   : > { %v407_v62 = vpop.f32.mrf.mxu3 }
  0xcb   : > { %v357_v63 = vpop.f32.mrf.mxu2  ;;  %v309_v0 = vpop.f32.mrf.mxu1 }
  0xcc   : > { %v1216_v2 = vadd.f32 %v398_v41, %v357_v63  ;;  %v259_v3 = vpop.f32.mrf.mxu0 }
  0xcd   : > { %v1220_v9 = vadd.f32 %v300_v43, %v259_v3 }
  0xce   : > { %v416_v4 = vmax.f32 %v1214_v1, %v1216_v2 }
  0xcf   : > { %v410_v5 = vpop.f32.mrf.mxu3 }
  0xd3   : > { %v360_v7 = vpop.f32.mrf.mxu2  ;;  %v457_v8 = vpop.f32.mrf.mxu1 }
  0xd4   : > { %v1222_v10 = vadd.f32 %v401_v48, %v360_v7  ;;  %v262_v11 = vpop.f32.mrf.mxu0 }
  0xd5   : > { %v1226_v16 = vadd.f32 %v303_v50, %v262_v11 }
  0xd6   : > { %v417_v12 = vmax.f32 %v1220_v9, %v1222_v10 }
  0xd7   : > { %v498_v13 = vpop.f32.mrf.mxu3 }
  0xd8   : > { %v499_v34 = vadd.f32 %v498_v13, %v457_v8 }
  0xda   : > { %v522_v38 = vmax.f32 %v413_v47, %v499_v34 }
  0xdb   : > { %v363_v14 = vpop.f32.mrf.mxu2  ;;  %v460_v15 = vpop.f32.mrf.mxu1 }
  0xdc   : > { %v1228_v17 = vadd.f32 %v404_v55, %v363_v14  ;;  %v265_v18 = vpop.f32.mrf.mxu0  ;;  %v670_v34 = vpop.permute.xlu2 %669 }
  0xdd   : > { %v1232_v24 = vadd.f32 %v306_v57, %v265_v18 }
  0xde   : > { %v418_v20 = vmax.f32 %v1226_v16, %v1228_v17 }
  0xdf   : > { %v501_v21 = vpop.f32.mrf.mxu3 }
  0xe0   : > { %v502_v43 = vadd.f32 %v501_v21, %v460_v15 }
  0xe2   : > { %v523_v49 = vmax.f32 %v414_v54, %v502_v43 }
  0xe3   : > { %v366_v22 = vpop.f32.mrf.mxu2  ;;  %v463_v23 = vpop.f32.mrf.mxu1 }
  0xe4   : > { %v1234_v25 = vadd.f32 %v407_v62, %v366_v22  ;;  %v268_v26 = vpop.f32.mrf.mxu0  ;;  %v660_v62 = vpop.permute.xlu1 %659 }
  0xe5   : > { %v1238_v6 = vadd.f32 %v309_v0, %v268_v26 }
  0xe6   : > { %v419_v27 = vmax.f32 %v1232_v24, %v1234_v25 }
  0xe7   : > { %v504_v28 = vpop.f32.mrf.mxu3 }
  0xe8   : > { %v505_v56 = vadd.f32 %v504_v28, %v463_v23 }
  0xea   : > { %v524_v3 = vmax.f32 %v415_v61, %v505_v56 }
  0xeb   : > { %v369_v29 = vpop.f32.mrf.mxu2  ;;  %v466_v30 = vpop.f32.mrf.mxu1 }
  0xec   : > { %v1240_v19 = vadd.f32 %v410_v5, %v369_v29  ;;  %v566_v31 = vpop.f32.mrf.mxu0  ;;  %v665_v59 = vpop.permute.xlu1 %664 }
  0xee   : > { %v420_v32 = vmax.f32 %v1238_v6, %v1240_v19 }
  0xef   : > { %v507_v33 = vpop.f32.mrf.mxu3 }
  0xf0   : > { %v508_v13 = vadd.f32 %v507_v33, %v466_v30 }
  0xf2   : > { %v525_v22 = vmax.f32 %v416_v4, %v508_v13 }
  0xf3   : > { %v607_v36 = vpop.f32.mrf.mxu2  ;;  %v469_v37 = vpop.f32.mrf.mxu1 }
  0xf4   : > { %v608_v39 = vadd.f32 %v607_v36, %v566_v31  ;;  %v569_v40 = vpop.f32.mrf.mxu0  ;;  %v685_v10 = vpop.permute.xlu1 %684 }
  0xf6   : > { %v631_v41 = vmax.f32 %v522_v38, %v608_v39 }
  0xf7   : > { %v510_v42 = vpop.f32.mrf.mxu3 }
  0xf8   : > { %v687_v44 = vadd.f32 %v650_v35, %v631_v41  ;;  %v511_v29 = vadd.f32 %v510_v42, %v469_v37 }
  0xfa   : > { %v695_v45 = vmax.f32 %v687_v44, 0.0  ;;  %v526_v35 = vmax.f32 %v417_v12, %v511_v29 }
  0xfb   : > { %v610_v46 = vpop.f32.mrf.mxu2  ;;  %v472_v48 = vpop.f32.mrf.mxu1 }
  0xfc   : > { %v703_v50 = vpack.c.bf16 %v695_v45, %v695_v45  ;;  %v611_v47 = vadd.f32 %v610_v46, %v569_v40  ;;  %v572_v51 = vpop.f32.mrf.mxu0 }
  0xfe   : > { %712 = vst.msk [vmem:[%s1248_s20] sm:$0xf] %vm711_vm1, %v703_v50  ;;  %v632_v53 = vmax.f32 %v523_v49, %v611_v47 }
  0xff   : > { %v513_v55 = vpop.f32.mrf.mxu3 }
 0x100   : > { %v688_v57 = vadd.f32 %v655_v52, %v632_v53  ;;  %v514_v41 = vadd.f32 %v513_v55, %v472_v48  ;;  %v675_v48 = vpop.permute.xlu2 %674 }
 0x102   : > { %v696_v60 = vmax.f32 %v688_v57, 0.0  ;;  %v527_v45 = vmax.f32 %v418_v20, %v514_v41  ;;  %v680_v57 = vpop.permute.xlu0 %679 }
 0x103   : > { %v613_v63 = vpop.f32.mrf.mxu2  ;;  %v475_v0 = vpop.f32.mrf.mxu1 }
 0x104   : > { %v704_v54 = vpack.c.bf16 %v696_v60, %v696_v60  ;;  %v614_v5 = vadd.f32 %v613_v63, %v572_v51  ;;  %v575_v7 = vpop.f32.mrf.mxu0 }
 0x106   : > { %713 = vst.msk [vmem:[%s1248_s20 + $0x4] sm:$0xf] %vm711_vm1, %v704_v54  ;;  %v633_v8 = vmax.f32 %v524_v3, %v614_v5 }
 0x107   : > { %v516_v11 = vpop.f32.mrf.mxu3 }
 0x108   : > { %v689_v14 = vadd.f32 %v660_v62, %v633_v8 }
 0x10a   : > { %v697_v15 = vmax.f32 %v689_v14, 0.0 }
 0x10b   : > { %v616_v18 = vpop.f32.mrf.mxu2  ;;  %v478_v21 = vpop.f32.mrf.mxu1 }
 0x10c   : > { %v705_v23 = vpack.c.bf16 %v697_v15, %v697_v15  ;;  %v617_v58 = vadd.f32 %v616_v18, %v575_v7  ;;  %v578_v61 = vpop.f32.mrf.mxu0 }
 0x10e   : > { %714 = vst.msk [vmem:[%s1248_s20 + $0x8] sm:$0xf] %vm711_vm1, %v705_v23  ;;  %v634_v26 = vmax.f32 %v525_v22, %v617_v58 }
 0x10f   : > { %v519_v28 = vpop.f32.mrf.mxu3 }
 0x110   : > { %v690_v31 = vadd.f32 %v665_v59, %v634_v26  ;;  %v520_v2 = vadd.f32 %v519_v28, %v478_v21 }
 0x112   : > { %v698_v30 = vmax.f32 %v690_v31, 0.0  ;;  %v529_v37 = vmax.f32 %v420_v32, %v520_v2  ;;  %v517_v32 = vadd.f32 %v516_v11, %v475_v0 }
 0x113   : > { %v619_v33 = vpop.f32.mrf.mxu2  ;;  %v587_v36 = vpop.f32.mrf.mxu1 }
 0x114   : > { %v706_v1 = vpack.c.bf16 %v698_v30, %v698_v30  ;;  %v620_v4 = vadd.f32 %v619_v33, %v578_v61  ;;  %v581_v40 = vpop.f32.mrf.mxu0  ;;  %v528_v16 = vmax.f32 %v419_v27, %v517_v32 }
 0x116   : > { %715 = vst.msk [vmem:[%s1248_s20 + $0xc] sm:$0xf] %vm711_vm1, %v706_v1  ;;  %v635_v38 = vmax.f32 %v526_v35, %v620_v4 }
 0x117   : > { %v628_v39 = vpop.f32.mrf.mxu3 }
 0x118   : > { %v691_v42 = vadd.f32 %v670_v34, %v635_v38  ;;  %v629_v43 = vadd.f32 %v628_v39, %v587_v36 }
 0x11a   : > { %v699_v44 = vmax.f32 %v691_v42, 0.0  ;;  %v638_v9 = vmax.f32 %v529_v37, %v629_v43 }
 0x11b   : > { %v622_v12 = vpop.f32.mrf.mxu2 }
 0x11c   : > { %v707_v46 = vpack.c.bf16 %v699_v44, %v699_v44  ;;  %v694_v49 = vadd.f32 %v685_v10, %v638_v9  ;;  %v623_v50 = vadd.f32 %v622_v12, %v581_v40  ;;  %v584_v52 = vpop.f32.mrf.mxu0 }
 0x11e   : > { %716 = vst.msk [vmem:[%s1248_s20 + $0x10] sm:$0xf] %vm711_vm1, %v707_v46  ;;  %v702_v6 = vmax.f32 %v694_v49, 0.0  ;;  %v636_v19 = vmax.f32 %v527_v45, %v623_v50 }
 0x120   : > { %v710_v47 = vpack.c.bf16 %v702_v6, %v702_v6  ;;  %v692_v51 = vadd.f32 %v675_v48, %v636_v19 }
 0x122   : > { %719 = vst.msk [vmem:[%s1248_s20 + $0x1c] sm:$0xf] %vm711_vm1, %v710_v47  ;;  %v700_v53 = vmax.f32 %v692_v51, 0.0 }
 0x123   : > { %v625_v55 = vpop.f32.mrf.mxu2 }
 0x124   : > { %v708_v17 = vpack.c.bf16 %v700_v53, %v700_v53  ;;  %v626_v20 = vadd.f32 %v625_v55, %v584_v52 }
 0x126   : > { %717 = vst.msk [vmem:[%s1248_s20 + $0x14] sm:$0xf] %vm711_vm1, %v708_v17  ;;  %v637_v56 = vmax.f32 %v528_v16, %v626_v20 }
 0x128   : > { %v693_v60 = vadd.f32 %v680_v57, %v637_v56 }
 0x12a   : > { %v701_v62 = vmax.f32 %v693_v60, 0.0 }
 0x12c   : > { %v709_v63 = vpack.c.bf16 %v701_v62, %v701_v62 }
 0x12e   : > { %718 = vst.msk [vmem:[%s1248_s20 + $0x18] sm:$0xf] %vm711_vm1, %v709_v63 }
 0x12f PF: > { %s13_s12 = sadd.s32 1, %s909_s12  }
 0x130   : > { %p10_p4 = scmp.ge.s32.totalorder %s13_s12, 4  }
 0x132   :  { %12 = sbr.rel (!%p10_p4) target bundleno = 1 (0x1), region = 65 }

// kernel: net_forward.7
= control target key start
LH: loop header
LB: loop body
LE: loop exit
PB: predicated region body
PF: predicated region fallthrough
CT: control target
= control target key end

     0   :  { %14 = vsyncpa [#allocation4], 0  ;;  %s7526_s30 = smov 0   ;;  %s9231_s0 = inlined_call_operand.vmem [shape: bf16[2,8192], index: 0, kind: input, shape index: {}]   ;;  %s9232_s1 = inlined_call_operand.vmem [shape: bf16[8192,1024], index: 1, kind: input, shape index: {}]   ;;  %s9233_s2 = inlined_call_operand.vmem [shape: f32[1,1024], index: 2, kind: input, shape index: {}]   ;;  %s9234_s3 = inlined_call_operand.vmem [shape: f32[1024,128], index: 3, kind: input, shape index: {}]   ;;  %s9235_s4 = inlined_call_operand.vmem [shape: f32[1,128], index: 4, kind: input, shape index: {}]   ;;  %s9236_s5 = inlined_call_operand.vmem [shape: f32[128,64], index: 5, kind: input, shape index: {}]   ;;  %s9237_s6 = inlined_call_operand.vmem [shape: f32[1,64], index: 6, kind: input, shape index: {}]   ;;  %s9238_s7 = inlined_call_operand.vmem [shape: f32[64,3], index: 7, kind: input, shape index: {}]   ;;  %s9239_s8 = inlined_call_operand.vmem [shape: f32[1,3], index: 8, kind: input, shape index: {}]   ;;  %s9240_s9 = inlined_call_operand.hbm [shape: f32[2,3], index: 9, kind: output, shape index: {}]  }
   0x1 LB: > { %s7532_s10 = sadd.s32 4294967295, %s7472_s30   ;;  %p4814_p0 = scmp.ge.s32.totalorder %s7472_s30, 1  ;;  %s7472_s30 = sphi %s7526_s30, %s20_s30  }
   0x2   : > { %p295_p1 = scmp.lt.s32.totalorder %s7472_s30, 9 }
   0x4   : > { %p296_p2 = pnand %p4814_p0, %p295_p1 }
   0x5   : > { %s4815_s11 = sshll.u32 (!%p296_p2), %s7532_s10, 3  ;;  %s4816_s12 = sshll.u32 (!%p296_p2), %s7532_s10, 7 }
   0x6   : > { %299 = sbr.rel (%p296_p2) target bundleno = 1673 (0x689), region = 56  ;;  %p332_p3 = scmp.lt.s32.totalorder (!%p296_p2), %s4815_s11, 63 }
   0x7   : > { %p337_p4 = scmp.lt.s32.totalorder (!%p296_p2), %s4816_s12, 1023  ;;  %p4819_p5 = scmp.ne.s32.totalorder (!%p296_p2), %s7532_s10, 0 }
   0xb   : > { %s9242_s11 = smov (!%p332_p3, %s4815_s11), 63  ;;  %s9244_s12 = smov (!%p337_p4, %s4816_s12), 1023 }
   0xc   : > { %s334_s15 = scalar_lea.vmem %s9231_s0, %s9242_s11  ;;  %s6874_s16 = sshll.u32 %s9244_s12, 5 }
   0xd   : > { %s7547_s19 = scalar_lea.vmem %s9232_s1, %s6874_s16  ;;  %346 = sbr.rel (%p4819_p5) target bundleno = 21 (0x15), region = 60 }
  0x12   : > { %v7474_v0 = vmov 0.0  }
  0x13   : > { %347 = vst [vmem:[#allocation2] sm:$0xff] %v7474_v0 }
  0x14   : > { %348 = vst [vmem:[#allocation2 + $0x8] sm:$0xff] %v7474_v0 }
  0x15 PF: > { %v5046_v1 = vld [vmem:[%s7547_s19 + $0x1c0] sm:$0xf]  ;;  %vm4288_vm0 = vcmask 1041408   ;;  %vm4290_vm1 = vcmask 1045508   ;;  %vm4292_vm2 = vcmask 1043456   ;;  %p6868_p6 = scmp.ne.s32.totalorder %s7532_s10, 7 }
  0x16   : > { %v6935_v2 = vld [vmem:[%s7547_s19 + $0x1dc] sm:$0xf0] }
  0x17   : > { %v5302_v3 = vld [vmem:[%s7547_s19 + $0x3c0] sm:$0xf]  ;;  %v5047_v4 = vor.u32 %v6935_v2, %v5046_v1 }
  0x18   : > { %v6999_v5 = vld [vmem:[%s7547_s19 + $0x3dc] sm:$0xf0] }
  0x19   : > { %v5558_v6 = vld [vmem:[%s7547_s19 + $0x5c0] sm:$0xf]  ;;  %v5303_v8 = vor.u32 %v6999_v5, %v5302_v3  ;;  %3442 = vmatpush.bf16.msra.mxu0 %v5047_v4 }
  0x1a   : > { %v7063_v7 = vld [vmem:[%s7547_s19 + $0x5dc] sm:$0xf0] }
  0x1b   : > { %v5559_v9 = vor.u32 %v7063_v7, %v5558_v6  ;;  %v5814_v10 = vld [vmem:[%s7547_s19 + $0x7c0] sm:$0xf]  ;;  %3455 = vmatpush.bf16.msra.mxu1 %v5303_v8 }
  0x1c   : > { %v7127_v11 = vld [vmem:[%s7547_s19 + $0x7dc] sm:$0xf0] }
  0x1d   : > { %v5014_v12 = vld [vmem:[%s7547_s19 + $0x180] sm:$0xf]  ;;  %v5815_v13 = vor.u32 %v7127_v11, %v5814_v10  ;;  %3468 = vmatpush.bf16.msra.mxu2 %v5559_v9 }
  0x1e   : > { %v6927_v14 = vld [vmem:[%s7547_s19 + $0x19c] sm:$0xf0] }
  0x1f   : > { %v5270_v15 = vld [vmem:[%s7547_s19 + $0x380] sm:$0xf]  ;;  %v5015_v17 = vor.u32 %v6927_v14, %v5014_v12  ;;  %3481 = vmatpush.bf16.msra.mxu3 %v5815_v13 }
  0x20   : > { %v6991_v16 = vld [vmem:[%s7547_s19 + $0x39c] sm:$0xf0] }
  0x21   : > { %v5271_v18 = vor.u32 %v6991_v16, %v5270_v15  ;;  %v5526_v19 = vld [vmem:[%s7547_s19 + $0x580] sm:$0xf]  ;;  %3443 = vmatpush.bf16.msra.mxu0 %v5015_v17 }
  0x22   : > { %v7055_v20 = vld [vmem:[%s7547_s19 + $0x59c] sm:$0xf0] }
  0x23   : > { %v5782_v21 = vld [vmem:[%s7547_s19 + $0x780] sm:$0xf]  ;;  %v5527_v22 = vor.u32 %v7055_v20, %v5526_v19  ;;  %3456 = vmatpush.bf16.msra.mxu1 %v5271_v18 }
  0x24   : > { %v7119_v23 = vld [vmem:[%s7547_s19 + $0x79c] sm:$0xf0] }
  0x25   : > { %v4982_v24 = vld [vmem:[%s7547_s19 + $0x140] sm:$0xf]  ;;  %v5783_v26 = vor.u32 %v7119_v23, %v5782_v21  ;;  %3469 = vmatpush.bf16.msra.mxu2 %v5527_v22 }
  0x26   : > { %v6919_v25 = vld [vmem:[%s7547_s19 + $0x15c] sm:$0xf0] }
  0x27   : > { %v5238_v27 = vld [vmem:[%s7547_s19 + $0x340] sm:$0xf]  ;;  %v4983_v30 = vor.u32 %v6919_v25, %v4982_v24  ;;  %3482 = vmatpush.bf16.msra.mxu3 %v5783_v26 }
  0x28   : > { %v6983_v28 = vld [vmem:[%s7547_s19 + $0x35c] sm:$0xf0] }
  0x29   : > { %v5494_v29 = vld [vmem:[%s7547_s19 + $0x540] sm:$0xf]  ;;  %v5239_v34 = vor.u32 %v6983_v28, %v5238_v27  ;;  %3444 = vmatpush.bf16.msra.mxu0 %v4983_v30 }
  0x2a   : > { %v7047_v31 = vld [vmem:[%s7547_s19 + $0x55c] sm:$0xf0] }
  0x2b   : > { %v5750_v32 = vld [vmem:[%s7547_s19 + $0x740] sm:$0xf]  ;;  %v5495_v35 = vor.u32 %v7047_v31, %v5494_v29  ;;  %3457 = vmatpush.bf16.msra.mxu1 %v5239_v34 }
  0x2c   : > { %v7111_v33 = vld [vmem:[%s7547_s19 + $0x75c] sm:$0xf0] }
  0x2d   : > { %v4950_v36 = vld [vmem:[%s7547_s19 + $0x100] sm:$0xf]  ;;  %v5751_v39 = vor.u32 %v7111_v33, %v5750_v32  ;;  %3470 = vmatpush.bf16.msra.mxu2 %v5495_v35 }
  0x2e   : > { %v6911_v37 = vld [vmem:[%s7547_s19 + $0x11c] sm:$0xf0] }
  0x2f   : > { %v5206_v38 = vld [vmem:[%s7547_s19 + $0x300] sm:$0xf]  ;;  %v4951_v45 = vor.u32 %v6911_v37, %v4950_v36  ;;  %3483 = vmatpush.bf16.msra.mxu3 %v5751_v39 }
  0x30   : > { %v6975_v40 = vld [vmem:[%s7547_s19 + $0x31c] sm:$0xf0] }
  0x31   : > { %v5462_v41 = vld [vmem:[%s7547_s19 + $0x500] sm:$0xf]  ;;  %v5207_v46 = vor.u32 %v6975_v40, %v5206_v38  ;;  %3445 = vmatpush.bf16.msra.mxu0 %v4951_v45 }
  0x32   : > { %v7039_v42 = vld [vmem:[%s7547_s19 + $0x51c] sm:$0xf0] }
  0x33   : > { %v5718_v43 = vld [vmem:[%s7547_s19 + $0x700] sm:$0xf]  ;;  %v5463_v47 = vor.u32 %v7039_v42, %v5462_v41  ;;  %3458 = vmatpush.bf16.msra.mxu1 %v5207_v46 }
  0x34   : > { %v7103_v44 = vld [vmem:[%s7547_s19 + $0x71c] sm:$0xf0] }
  0x35   : > { %v4918_v48 = vld [vmem:[%s7547_s19 + $0xc0] sm:$0xf]  ;;  %v5719_v51 = vor.u32 %v7103_v44, %v5718_v43  ;;  %3471 = vmatpush.bf16.msra.mxu2 %v5463_v47 }
  0x36   : > { %v6903_v49 = vld [vmem:[%s7547_s19 + $0xdc] sm:$0xf0] }
  0x37   : > { %v5174_v50 = vld [vmem:[%s7547_s19 + $0x2c0] sm:$0xf]  ;;  %v4919_v57 = vor.u32 %v6903_v49, %v4918_v48  ;;  %3484 = vmatpush.bf16.msra.mxu3 %v5719_v51 }
  0x38   : > { %v6967_v52 = vld [vmem:[%s7547_s19 + $0x2dc] sm:$0xf0] }
  0x39   : > { %v5430_v53 = vld [vmem:[%s7547_s19 + $0x4c0] sm:$0xf]  ;;  %v5175_v58 = vor.u32 %v6967_v52, %v5174_v50  ;;  %3446 = vmatpush.bf16.msra.mxu0 %v4919_v57 }
  0x3a   : > { %v7031_v54 = vld [vmem:[%s7547_s19 + $0x4dc] sm:$0xf0] }
  0x3b   : > { %v5686_v55 = vld [vmem:[%s7547_s19 + $0x6c0] sm:$0xf]  ;;  %v5431_v59 = vor.u32 %v7031_v54, %v5430_v53  ;;  %3459 = vmatpush.bf16.msra.mxu1 %v5175_v58 }
  0x3c   : > { %v7095_v56 = vld [vmem:[%s7547_s19 + $0x6dc] sm:$0xf0] }
  0x3d   : > { %v4886_v60 = vld [vmem:[%s7547_s19 + $0x80] sm:$0xf]  ;;  %v5687_v63 = vor.u32 %v7095_v56, %v5686_v55  ;;  %3472 = vmatpush.bf16.msra.mxu2 %v5431_v59 }
  0x3e   : > { %v6895_v61 = vld [vmem:[%s7547_s19 + $0x9c] sm:$0xf0] }
  0x3f   : > { %v5142_v62 = vld [vmem:[%s7547_s19 + $0x280] sm:$0xf]  ;;  %v4887_v5 = vor.u32 %v6895_v61, %v4886_v60  ;;  %3485 = vmatpush.bf16.msra.mxu3 %v5687_v63 }
  0x40   : > { %v6959_v0 = vld [vmem:[%s7547_s19 + $0x29c] sm:$0xf0] }
  0x41   : > { %v5398_v1 = vld [vmem:[%s7547_s19 + $0x480] sm:$0xf]  ;;  %v5143_v6 = vor.u32 %v6959_v0, %v5142_v62  ;;  %3447 = vmatpush.bf16.msra.mxu0 %v4887_v5 }
  0x42   : > { %v7023_v2 = vld [vmem:[%s7547_s19 + $0x49c] sm:$0xf0] }
  0x43   : > { %v5654_v3 = vld [vmem:[%s7547_s19 + $0x680] sm:$0xf]  ;;  %v5399_v7 = vor.u32 %v7023_v2, %v5398_v1  ;;  %3460 = vmatpush.bf16.msra.mxu1 %v5143_v6 }
  0x44   : > { %v7087_v4 = vld [vmem:[%s7547_s19 + $0x69c] sm:$0xf0] }
  0x45   : > { %v4854_v8 = vld [vmem:[%s7547_s19 + $0x40] sm:$0xf]  ;;  %v5655_v11 = vor.u32 %v7087_v4, %v5654_v3  ;;  %3473 = vmatpush.bf16.msra.mxu2 %v5399_v7 }
  0x46   : > { %v6887_v9 = vld [vmem:[%s7547_s19 + $0x5c] sm:$0xf0] }
  0x47   : > { %v5110_v10 = vld [vmem:[%s7547_s19 + $0x240] sm:$0xf]  ;;  %v4855_v17 = vor.u32 %v6887_v9, %v4854_v8  ;;  %3486 = vmatpush.bf16.msra.mxu3 %v5655_v11 }
  0x48   : > { %v6951_v12 = vld [vmem:[%s7547_s19 + $0x25c] sm:$0xf0] }
  0x49   : > { %v5366_v13 = vld [vmem:[%s7547_s19 + $0x440] sm:$0xf]  ;;  %v5111_v20 = vor.u32 %v6951_v12, %v5110_v10  ;;  %3448 = vmatpush.bf16.msra.mxu0 %v4855_v17 }
  0x4a   : > { %v7015_v14 = vld [vmem:[%s7547_s19 + $0x45c] sm:$0xf0] }
  0x4b   : > { %v5622_v15 = vld [vmem:[%s7547_s19 + $0x640] sm:$0xf]  ;;  %v5367_v21 = vor.u32 %v7015_v14, %v5366_v13  ;;  %3461 = vmatpush.bf16.msra.mxu1 %v5111_v20 }
  0x4c   : > { %v7079_v16 = vld [vmem:[%s7547_s19 + $0x65c] sm:$0xf0] }
  0x4d   : > { %v4822_v18 = vld [vmem:[%s7547_s19] sm:$0xf]  ;;  %v5623_v25 = vor.u32 %v7079_v16, %v5622_v15  ;;  %3474 = vmatpush.bf16.msra.mxu2 %v5367_v21 }
  0x4e   : > { %v6879_v19 = vld [vmem:[%s7547_s19 + $0x1c] sm:$0xf0] }
  0x4f   : > { %v5078_v22 = vld [vmem:[%s7547_s19 + $0x200] sm:$0xf]  ;;  %v4823_v32 = vor.u32 %v6879_v19, %v4822_v18  ;;  %3487 = vmatpush.bf16.msra.mxu3 %v5623_v25 }
  0x50   : > { %v6943_v23 = vld [vmem:[%s7547_s19 + $0x21c] sm:$0xf0] }
  0x51   : > { %v5334_v24 = vld [vmem:[%s7547_s19 + $0x400] sm:$0xf]  ;;  %v5079_v36 = vor.u32 %v6943_v23, %v5078_v22  ;;  %3449 = vmatpush.bf16.msra.mxu0 %v4823_v32 }
  0x52   : > { %v7007_v26 = vld [vmem:[%s7547_s19 + $0x41c] sm:$0xf0] }
  0x53   : > { %v5590_v27 = vld [vmem:[%s7547_s19 + $0x600] sm:$0xf]  ;;  %v5335_v37 = vor.u32 %v7007_v26, %v5334_v24  ;;  %3462 = vmatpush.bf16.msra.mxu1 %v5079_v36 }
  0x54   : > { %v7071_v28 = vld [vmem:[%s7547_s19 + $0x61c] sm:$0xf0] }
  0x55   : > { %v6070_v29 = vld [vmem:[%s7547_s19 + $0x9c0] sm:$0xf]  ;;  %v5591_v40 = vor.u32 %v7071_v28, %v5590_v27  ;;  %3475 = vmatpush.bf16.msra.mxu2 %v5335_v37 }
  0x56   : > { %v7191_v30 = vld [vmem:[%s7547_s19 + $0x9dc] sm:$0xf0] }
  0x57   : > { %v6326_v31 = vld [vmem:[%s7547_s19 + $0xbc0] sm:$0xf]  ;;  %v6071_v41 = vor.u32 %v7191_v30, %v6070_v29  ;;  %3488 = vmatpush.bf16.msra.mxu3 %v5591_v40 }
  0x58   : > { %v7255_v33 = vld [vmem:[%s7547_s19 + $0xbdc] sm:$0xf0] }
  0x59   : > { %v6582_v34 = vld [vmem:[%s7547_s19 + $0xdc0] sm:$0xf]  ;;  %v6327_v42 = vor.u32 %v7255_v33, %v6326_v31  ;;  %3494 = vmatpush.bf16.msrb.mxu0 %v6071_v41 }
  0x5a   : > { %v7319_v35 = vld [vmem:[%s7547_s19 + $0xddc] sm:$0xf0] }
  0x5b   : > { %v6838_v38 = vld [vmem:[%s7547_s19 + $0xfc0] sm:$0xf]  ;;  %v6583_v43 = vor.u32 %v7319_v35, %v6582_v34  ;;  %3507 = vmatpush.bf16.msrb.mxu1 %v6327_v42 }
  0x5c   : > { %v7383_v39 = vld [vmem:[%s7547_s19 + $0xfdc] sm:$0xf0] }
  0x5d   : > { %v6038_v44 = vld [vmem:[%s7547_s19 + $0x980] sm:$0xf]  ;;  %v6839_v47 = vor.u32 %v7383_v39, %v6838_v38  ;;  %3520 = vmatpush.bf16.msrb.mxu2 %v6583_v43 }
  0x5e   : > { %v7183_v45 = vld [vmem:[%s7547_s19 + $0x99c] sm:$0xf0] }
  0x5f   : > { %v6294_v46 = vld [vmem:[%s7547_s19 + $0xb80] sm:$0xf]  ;;  %v6039_v53 = vor.u32 %v7183_v45, %v6038_v44  ;;  %3533 = vmatpush.bf16.msrb.mxu3 %v6839_v47 }
  0x60   : > { %v7247_v48 = vld [vmem:[%s7547_s19 + $0xb9c] sm:$0xf0] }
  0x61   : > { %v6550_v49 = vld [vmem:[%s7547_s19 + $0xd80] sm:$0xf]  ;;  %v6295_v56 = vor.u32 %v7247_v48, %v6294_v46  ;;  %3495 = vmatpush.bf16.msrb.mxu0 %v6039_v53 }
  0x62   : > { %v7311_v50 = vld [vmem:[%s7547_s19 + $0xd9c] sm:$0xf0] }
  0x63   : > { %v6806_v51 = vld [vmem:[%s7547_s19 + $0xf80] sm:$0xf]  ;;  %v6551_v57 = vor.u32 %v7311_v50, %v6550_v49  ;;  %3508 = vmatpush.bf16.msrb.mxu1 %v6295_v56 }
  0x64   : > { %v7375_v52 = vld [vmem:[%s7547_s19 + $0xf9c] sm:$0xf0] }
  0x65   : > { %v6006_v54 = vld [vmem:[%s7547_s19 + $0x940] sm:$0xf]  ;;  %v6807_v61 = vor.u32 %v7375_v52, %v6806_v51  ;;  %3521 = vmatpush.bf16.msrb.mxu2 %v6551_v57 }
  0x66   : > { %v7175_v55 = vld [vmem:[%s7547_s19 + $0x95c] sm:$0xf0] }
  0x67   : > { %v6262_v58 = vld [vmem:[%s7547_s19 + $0xb40] sm:$0xf]  ;;  %v6007_v2 = vor.u32 %v7175_v55, %v6006_v54  ;;  %3534 = vmatpush.bf16.msrb.mxu3 %v6807_v61 }
  0x68   : > { %v7239_v59 = vld [vmem:[%s7547_s19 + $0xb5c] sm:$0xf0] }
  0x69   : > { %v351_v60 = vld [vmem:[%s334_s15] sm:$0xff]  ;;  %v6263_v3 = vor.u32 %v7239_v59, %v6262_v58  ;;  %3496 = vmatpush.bf16.msrb.mxu0 %v6007_v2 }
  0x6a   : > { %v6518_v62 = vld [vmem:[%s7547_s19 + $0xd40] sm:$0xf]  ;;  %865 = vst [vmem:[#allocation1] ss:$9 sm:$0xff] %v351_v60  ;;  %v6931_v2 = vld [vmem:[%s7547_s19 + $0x1c4] sm:$0xf] }
  0x6b   : > { %v7303_v63 = vld [vmem:[%s7547_s19 + $0xd5c] sm:$0xf0]  ;;  %3509 = vmatpush.bf16.msrb.mxu1 %v6263_v3  ;;  %v5048_v3 = vld [vmem:[%s7547_s19 + $0x1e0] sm:$0xf0] }
  0x6c   : > { %v6774_v0 = vld [vmem:[%s7547_s19 + $0xf40] sm:$0xf]  ;;  %v6519_v4 = vor.u32 %v7303_v63, %v6518_v62 }
  0x6d   : > { %v7367_v1 = vld [vmem:[%s7547_s19 + $0xf5c] sm:$0xf0] }
  0x6e   : > { %v5974_v5 = vld [vmem:[%s7547_s19 + $0x900] sm:$0xf]  ;;  %v6775_v8 = vor.u32 %v7367_v1, %v6774_v0  ;;  %3522 = vmatpush.bf16.msrb.mxu2 %v6519_v4  ;;  %v6995_v4 = vld [vmem:[%s7547_s19 + $0x3c4] sm:$0xf] }
  0x6f   : > { %v7167_v6 = vld [vmem:[%s7547_s19 + $0x91c] sm:$0xf0] }
  0x70   : > { %v6230_v7 = vld [vmem:[%s7547_s19 + $0xb00] sm:$0xf]  ;;  %v5975_v15 = vor.u32 %v7167_v6, %v5974_v5  ;;  %3535 = vmatpush.bf16.msrb.mxu3 %v6775_v8  ;;  %v5304_v6 = vld [vmem:[%s7547_s19 + $0x3e0] sm:$0xf0] }
  0x71   : > { %v7231_v9 = vld [vmem:[%s7547_s19 + $0xb1c] sm:$0xf0]  ;;  %v7655_v21 = vld [vmem:[#allocation1 + $0x12] sm:$0xff]  ;;  %v7664_v27 = vld [vmem:[#allocation1 + $0x9] sm:$0xff] }
  0x72   : > { %v6486_v10 = vld [vmem:[%s7547_s19 + $0xd00] sm:$0xf]  ;;  %v6231_v19 = vor.u32 %v7231_v9, %v6230_v7  ;;  %3476 = vmatmul.bf16.vlgmr.msra.gmra.mxu2 %v7655_v21  ;;  %3497 = vmatpush.bf16.msrb.mxu0 %v5975_v15  ;;  %v7059_v7 = vld [vmem:[%s7547_s19 + $0x5c4] sm:$0xf]  ;;  %v5307_v15 = vor.u32 %v6995_v4, %v5304_v6 }
  0x73   : > { %v7295_v11 = vld [vmem:[%s7547_s19 + $0xd1c] sm:$0xf0]  ;;  %3463 = vmatmul.bf16.vlgmr.msra.gmra.mxu1 %v7664_v27  ;;  %v5560_v8 = vld [vmem:[%s7547_s19 + $0x5e0] sm:$0xf0] }
  0x74   : > { %v6742_v12 = vld [vmem:[%s7547_s19 + $0xf00] sm:$0xf]  ;;  %v6487_v20 = vor.u32 %v7295_v11, %v6486_v10  ;;  %3510 = vmatpush.bf16.msrb.mxu1 %v6231_v19  ;;  %v7123_v11 = vld [vmem:[%s7547_s19 + $0x7c4] sm:$0xf] }
  0x75   : > { %v7359_v13 = vld [vmem:[%s7547_s19 + $0xf1c] sm:$0xf0]  ;;  %v6987_v19 = vld [vmem:[%s7547_s19 + $0x384] sm:$0xf] }
  0x76   : > { %v5942_v14 = vld [vmem:[%s7547_s19 + $0x8c0] sm:$0xf]  ;;  %v6743_v24 = vor.u32 %v7359_v13, %v6742_v12  ;;  %3523 = vmatpush.bf16.msrb.mxu2 %v6487_v20  ;;  %v5816_v12 = vld [vmem:[%s7547_s19 + $0x7e0] sm:$0xf0] }
  0x77   : > { %v7159_v16 = vld [vmem:[%s7547_s19 + $0x8dc] sm:$0xf0]  ;;  %v5819_v20 = vor.u32 %v7123_v11, %v5816_v12  ;;  %v7091_v4 = vld [vmem:[%s7547_s19 + $0x6c4] sm:$0xf] }
  0x78   : > { %v6198_v17 = vld [vmem:[%s7547_s19 + $0xac0] sm:$0xf]  ;;  %v5943_v30 = vor.u32 %v7159_v16, %v5942_v14  ;;  %3536 = vmatpush.bf16.msrb.mxu3 %v6743_v24  ;;  %v5051_v14 = vor.u32 %v6931_v2, %v5048_v3  ;;  %v5563_v16 = vor.u32 %v7059_v7, %v5560_v8  ;;  %v5272_v24 = vld [vmem:[%s7547_s19 + $0x3a0] sm:$0xf0] }
  0x79   : > { %v7223_v18 = vld [vmem:[%s7547_s19 + $0xadc] sm:$0xf0]  ;;  %v7027_v2 = vld [vmem:[%s7547_s19 + $0x4c4] sm:$0xf] }
  0x7a   : > { %v7657_v22 = vld [vmem:[#allocation1] sm:$0xff]  ;;  %v6199_v31 = vor.u32 %v7223_v18, %v6198_v17  ;;  %3498 = vmatpush.bf16.msrb.mxu0 %v5943_v30  ;;  %v7711_v30 = vld [vmem:[#allocation1 + $0x36] sm:$0xff] }
  0x7b   : > { %v7659_v23 = vld [vmem:[#allocation1 + $0x1b] sm:$0xff]  ;;  %3450 = vmatmul.bf16.vlgmr.msra.gmra.mxu0 %v7657_v22  ;;  %v6923_v17 = vld [vmem:[%s7547_s19 + $0x184] sm:$0xf] }
  0x7c   : > { %v6454_v25 = vld [vmem:[%s7547_s19 + $0xcc0] sm:$0xf]  ;;  %3489 = vmatmul.bf16.vlgmr.msra.gmra.mxu3 %v7659_v23  ;;  %3511 = vmatpush.bf16.msrb.mxu1 %v6199_v31  ;;  %v5016_v18 = vld [vmem:[%s7547_s19 + $0x1a0] sm:$0xf0] }
  0x7d   : > { %v7287_v26 = vld [vmem:[%s7547_s19 + $0xcdc] sm:$0xf0]  ;;  %v5019_v31 = vor.u32 %v6923_v17, %v5016_v18  ;;  %v5432_v3 = vld [vmem:[%s7547_s19 + $0x4e0] sm:$0xf0] }
  0x7e   : > { %v6710_v28 = vld [vmem:[%s7547_s19 + $0xec0] sm:$0xf]  ;;  %v6455_v32 = vor.u32 %v7287_v26, %v6454_v25  ;;  %v7051_v25 = vld [vmem:[%s7547_s19 + $0x584] sm:$0xf]  ;;  %v5435_v8 = vor.u32 %v7027_v2, %v5432_v3 }
  0x7f   : > { %v7351_v29 = vld [vmem:[%s7547_s19 + $0xedc] sm:$0xf0]  ;;  %v5528_v26 = vld [vmem:[%s7547_s19 + $0x5a0] sm:$0xf0] }
  0x80   : > { %v5910_v33 = vld [vmem:[%s7547_s19 + $0x880] sm:$0xf]  ;;  %v6711_v36 = vor.u32 %v7351_v29, %v6710_v28  ;;  %3524 = vmatpush.bf16.msrb.mxu2 %v6455_v32  ;;  %v7115_v28 = vld [vmem:[%s7547_s19 + $0x784] sm:$0xf] }
  0x81   : > { %v7151_v34 = vld [vmem:[%s7547_s19 + $0x89c] sm:$0xf0]  ;;  %v5784_v29 = vld [vmem:[%s7547_s19 + $0x7a0] sm:$0xf0] }
  0x82   : > { %v6166_v35 = vld [vmem:[%s7547_s19 + $0xa80] sm:$0xf]  ;;  %v5911_v42 = vor.u32 %v7151_v34, %v5910_v33  ;;  %3537 = vmatpush.bf16.msrb.mxu3 %v6711_v36  ;;  %v7713_v32 = vld [vmem:[#allocation1 + $0x24] sm:$0xff]  ;;  %v5531_v36 = vor.u32 %v7051_v25, %v5528_v26 }
  0x83   : > { %v7215_v37 = vld [vmem:[%s7547_s19 + $0xa9c] sm:$0xf0]  ;;  %v6915_v34 = vld [vmem:[%s7547_s19 + $0x144] sm:$0xf] }
  0x84   : > { %v6422_v38 = vld [vmem:[%s7547_s19 + $0xc80] sm:$0xf]  ;;  %v6167_v43 = vor.u32 %v7215_v37, %v6166_v35  ;;  %3499 = vmatpush.bf16.msrb.mxu0 %v5911_v42  ;;  %v5275_v35 = vor.u32 %v6987_v19, %v5272_v24  ;;  %v4984_v37 = vld [vmem:[%s7547_s19 + $0x160] sm:$0xf0] }
  0x85   : > { %v7279_v39 = vld [vmem:[%s7547_s19 + $0xc9c] sm:$0xf0]  ;;  %v7043_v42 = vld [vmem:[%s7547_s19 + $0x544] sm:$0xf] }
  0x86   : > { %v6678_v40 = vld [vmem:[%s7547_s19 + $0xe80] sm:$0xf]  ;;  %v6423_v44 = vor.u32 %v7279_v39, %v6422_v38  ;;  %3512 = vmatpush.bf16.msrb.mxu1 %v6167_v43  ;;  %v6979_v38 = vld [vmem:[%s7547_s19 + $0x344] sm:$0xf]  ;;  %v7720_v39 = vld [vmem:[#allocation1 + $0x2d] sm:$0xff] }
  0x87   : > { %v7343_v41 = vld [vmem:[%s7547_s19 + $0xe9c] sm:$0xf0]  ;;  %v5496_v43 = vld [vmem:[%s7547_s19 + $0x560] sm:$0xf0] }
  0x88   : > { %v5878_v45 = vld [vmem:[%s7547_s19 + $0x840] sm:$0xf]  ;;  %v6679_v48 = vor.u32 %v7343_v41, %v6678_v40  ;;  %3525 = vmatpush.bf16.msrb.mxu2 %v6423_v44  ;;  %v5787_v40 = vor.u32 %v7115_v28, %v5784_v29  ;;  %v5240_v41 = vld [vmem:[%s7547_s19 + $0x360] sm:$0xf0] }
  0x89   : > { %v7143_v46 = vld [vmem:[%s7547_s19 + $0x85c] sm:$0xf0]  ;;  %v7107_v44 = vld [vmem:[%s7547_s19 + $0x744] sm:$0xf] }
  0x8a   : > { %v6134_v47 = vld [vmem:[%s7547_s19 + $0xa40] sm:$0xf]  ;;  %v5879_v54 = vor.u32 %v7143_v46, %v5878_v45  ;;  %3538 = vmatpush.bf16.msrb.mxu3 %v6679_v48  ;;  %v5752_v45 = vld [vmem:[%s7547_s19 + $0x760] sm:$0xf0]  ;;  %v4987_v46 = vor.u32 %v6915_v34, %v4984_v37  ;;  %v5499_v48 = vor.u32 %v7043_v42, %v5496_v43 }
  0x8b   : > { %v7207_v49 = vld [vmem:[%s7547_s19 + $0xa5c] sm:$0xf0]  ;;  %v6955_v11 = vld [vmem:[%s7547_s19 + $0x284] sm:$0xf] }
  0x8c   : > { %v6390_v50 = vld [vmem:[%s7547_s19 + $0xc40] sm:$0xf]  ;;  %v6135_v57 = vor.u32 %v7207_v49, %v6134_v47  ;;  %3500 = vmatpush.bf16.msrb.mxu0 %v5879_v54  ;;  %v5243_v47 = vor.u32 %v6979_v38, %v5240_v41  ;;  %v6907_v49 = vld [vmem:[%s7547_s19 + $0x104] sm:$0xf] }
  0x8d   : > { %v7271_v51 = vld [vmem:[%s7547_s19 + $0xc5c] sm:$0xf0]  ;;  %v7035_v54 = vld [vmem:[%s7547_s19 + $0x504] sm:$0xf] }
  0x8e   : > { %v6646_v52 = vld [vmem:[%s7547_s19 + $0xe40] sm:$0xf]  ;;  %v6391_v58 = vor.u32 %v7271_v51, %v6390_v50  ;;  %3513 = vmatpush.bf16.msrb.mxu1 %v6135_v57  ;;  %v4952_v50 = vld [vmem:[%s7547_s19 + $0x120] sm:$0xf0] }
  0x8f   : > { %v7335_v53 = vld [vmem:[%s7547_s19 + $0xe5c] sm:$0xf0]  ;;  %v6971_v51 = vld [vmem:[%s7547_s19 + $0x304] sm:$0xf] }
  0x90   : > { %v5846_v55 = vld [vmem:[%s7547_s19 + $0x800] sm:$0xf]  ;;  %v6647_v62 = vor.u32 %v7335_v53, %v6646_v52  ;;  %3526 = vmatpush.bf16.msrb.mxu2 %v6391_v58  ;;  %v5755_v52 = vor.u32 %v7107_v44, %v5752_v45  ;;  %v5208_v53 = vld [vmem:[%s7547_s19 + $0x320] sm:$0xf0]  ;;  %v4955_v58 = vor.u32 %v6907_v49, %v4952_v50 }
  0x91   : > { %v7135_v56 = vld [vmem:[%s7547_s19 + $0x81c] sm:$0xf0]  ;;  %v5720_v57 = vld [vmem:[%s7547_s19 + $0x720] sm:$0xf0] }
  0x92   : > { %v6102_v59 = vld [vmem:[%s7547_s19 + $0xa00] sm:$0xf]  ;;  %v5847_v5 = vor.u32 %v7135_v56, %v5846_v55  ;;  %3539 = vmatpush.bf16.msrb.mxu3 %v6647_v62  ;;  %v5464_v55 = vld [vmem:[%s7547_s19 + $0x520] sm:$0xf0] }
  0x93   : > { %v7199_v60 = vld [vmem:[%s7547_s19 + $0xa1c] sm:$0xf0]  ;;  %v7099_v56 = vld [vmem:[%s7547_s19 + $0x704] sm:$0xf] }
  0x94   : > { %v6358_v61 = vld [vmem:[%s7547_s19 + $0xc00] sm:$0xf]  ;;  %v6103_v9 = vor.u32 %v7199_v60, %v6102_v59  ;;  %3501 = vmatpush.bf16.msrb.mxu0 %v5847_v5  ;;  %v5211_v59 = vor.u32 %v6971_v51, %v5208_v53  ;;  %v5467_v60 = vor.u32 %v7035_v54, %v5464_v55  ;;  %v4920_v62 = vld [vmem:[%s7547_s19 + $0xe0] sm:$0xf0] }
  0x95   : > { %v7263_v63 = vld [vmem:[%s7547_s19 + $0xc1c] sm:$0xf0]  ;;  %v5688_v5 = vld [vmem:[%s7547_s19 + $0x6e0] sm:$0xf0] }
  0x96   : > { %v6614_v0 = vld [vmem:[%s7547_s19 + $0xe00] sm:$0xf]  ;;  %v6359_v10 = vor.u32 %v7263_v63, %v6358_v61  ;;  %3514 = vmatpush.bf16.msrb.mxu1 %v6103_v9  ;;  %v6899_v61 = vld [vmem:[%s7547_s19 + $0xc4] sm:$0xf]  ;;  %v5691_v12 = vor.u32 %v7091_v4, %v5688_v5 }
  0x97   : > { %v7327_v1 = vld [vmem:[%s7547_s19 + $0xe1c] sm:$0xf0]  ;;  %3502 = vmatmul.bf16.vlgmr.msrb.gmra.mxu0 %v7713_v32  ;;  %v6963_v63 = vld [vmem:[%s7547_s19 + $0x2c4] sm:$0xf]  ;;  %v4923_v6 = vor.u32 %v6899_v61, %v4920_v62 }
  0x98   : > { %v6615_v13 = vor.u32 %v7327_v1, %v6614_v0  ;;  %3527 = vmatpush.bf16.msrb.mxu2 %v6359_v10  ;;  %3546 = vmatpush.bf16.msra.mxu0 %v5051_v14  ;;  %v7715_v33 = vld [vmem:[#allocation1 + $0x3f] sm:$0xff]  ;;  %v5723_v0 = vor.u32 %v7099_v56, %v5720_v57 }
  0x99   : > { %3515 = vmatmul.bf16.vlgmr.msrb.gmra.mxu1 %v7720_v39  ;;  %v5176_v1 = vld [vmem:[%s7547_s19 + $0x2e0] sm:$0xf0] }
  0x9a   : > { %3540 = vmatpush.bf16.msrb.mxu3 %v6615_v13  ;;  %3559 = vmatpush.bf16.msra.mxu1 %v5307_v15  ;;  %v5179_v7 = vor.u32 %v6963_v63, %v5176_v1  ;;  %v6891_v9 = vld [vmem:[%s7547_s19 + $0x84] sm:$0xf] }
  0x9b   : > { %3528 = vmatmul.bf16.vlgmr.msrb.gmra.mxu2 %v7711_v30  ;;  %v4888_v10 = vld [vmem:[%s7547_s19 + $0xa0] sm:$0xf0] }
  0x9c   : > { %3572 = vmatpush.bf16.msra.mxu2 %v5563_v16  ;;  %3547 = vmatpush.bf16.msra.mxu0 %v5019_v31  ;;  %v5144_v13 = vld [vmem:[%s7547_s19 + $0x2a0] sm:$0xf0]  ;;  %v4891_v18 = vor.u32 %v6891_v9, %v4888_v10 }
  0x9d   : > { %3541 = vmatmul.bf16.vlgmr.msrb.gmra.mxu3 %v7715_v33  ;;  %v7019_v14 = vld [vmem:[%s7547_s19 + $0x484] sm:$0xf]  ;;  %v5147_v19 = vor.u32 %v6955_v11, %v5144_v13 }
  0x9e   : > { %3585 = vmatpush.bf16.msra.mxu3 %v5819_v20  ;;  %3560 = vmatpush.bf16.msra.mxu1 %v5275_v35  ;;  %v5400_v15 = vld [vmem:[%s7547_s19 + $0x4a0] sm:$0xf0] }
  0x9f   : > { %v7083_v16 = vld [vmem:[%s7547_s19 + $0x684] sm:$0xf]  ;;  %v5403_v20 = vor.u32 %v7019_v14, %v5400_v15 }
  0xa0   : > { %3573 = vmatpush.bf16.msra.mxu2 %v5531_v36  ;;  %3548 = vmatpush.bf16.msra.mxu0 %v4987_v46  ;;  %v5656_v17 = vld [vmem:[%s7547_s19 + $0x6a0] sm:$0xf0] }
  0xa1   : > { %v6883_v24 = vld [vmem:[%s7547_s19 + $0x44] sm:$0xf]  ;;  %v5659_v28 = vor.u32 %v7083_v16, %v5656_v17 }
  0xa2   : > { %3586 = vmatpush.bf16.msra.mxu3 %v5787_v40  ;;  %3561 = vmatpush.bf16.msra.mxu1 %v5243_v47  ;;  %v4856_v25 = vld [vmem:[%s7547_s19 + $0x60] sm:$0xf0] }
  0xa3   : > { %v6947_v26 = vld [vmem:[%s7547_s19 + $0x244] sm:$0xf]  ;;  %v4859_v37 = vor.u32 %v6883_v24, %v4856_v25 }
  0xa4   : > { %3574 = vmatpush.bf16.msra.mxu2 %v5499_v48  ;;  %3549 = vmatpush.bf16.msra.mxu0 %v4955_v58  ;;  %v5112_v29 = vld [vmem:[%s7547_s19 + $0x260] sm:$0xf0] }
  0xa5   : > { %v7011_v31 = vld [vmem:[%s7547_s19 + $0x444] sm:$0xf]  ;;  %v5115_v41 = vor.u32 %v6947_v26, %v5112_v29 }
  0xa6   : > { %3587 = vmatpush.bf16.msra.mxu3 %v5755_v52  ;;  %3562 = vmatpush.bf16.msra.mxu1 %v5211_v59  ;;  %v5368_v34 = vld [vmem:[%s7547_s19 + $0x460] sm:$0xf0] }
  0xa7   : > { %v7075_v35 = vld [vmem:[%s7547_s19 + $0x644] sm:$0xf]  ;;  %v5371_v42 = vor.u32 %v7011_v31, %v5368_v34 }
  0xa8   : > { %3575 = vmatpush.bf16.msra.mxu2 %v5467_v60  ;;  %3550 = vmatpush.bf16.msra.mxu0 %v4923_v6  ;;  %v5624_v36 = vld [vmem:[%s7547_s19 + $0x660] sm:$0xf0] }
  0xa9   : > { %v6875_v38 = vld [vmem:[%s7547_s19 + $0x4] sm:$0xf]  ;;  %v5627_v46 = vor.u32 %v7075_v35, %v5624_v36 }
  0xaa   : > { %3588 = vmatpush.bf16.msra.mxu3 %v5723_v0  ;;  %3563 = vmatpush.bf16.msra.mxu1 %v5179_v7  ;;  %v4824_v40 = vld [vmem:[%s7547_s19 + $0x20] sm:$0xf0] }
  0xab   : > { %v6939_v43 = vld [vmem:[%s7547_s19 + $0x204] sm:$0xf]  ;;  %v4827_v53 = vor.u32 %v6875_v38, %v4824_v40 }
  0xac   : > { %3576 = vmatpush.bf16.msra.mxu2 %v5435_v8  ;;  %3551 = vmatpush.bf16.msra.mxu0 %v4891_v18  ;;  %v5080_v44 = vld [vmem:[%s7547_s19 + $0x220] sm:$0xf0] }
  0xad   : > { %v7003_v45 = vld [vmem:[%s7547_s19 + $0x404] sm:$0xf]  ;;  %v5083_v57 = vor.u32 %v6939_v43, %v5080_v44 }
  0xae   : > { %3589 = vmatpush.bf16.msra.mxu3 %v5691_v12  ;;  %3564 = vmatpush.bf16.msra.mxu1 %v5147_v19  ;;  %v5336_v47 = vld [vmem:[%s7547_s19 + $0x420] sm:$0xf0] }
  0xaf   : > { %v7067_v48 = vld [vmem:[%s7547_s19 + $0x604] sm:$0xf]  ;;  %v5339_v58 = vor.u32 %v7003_v45, %v5336_v47 }
  0xb0   : > { %3577 = vmatpush.bf16.msra.mxu2 %v5403_v20  ;;  %v5592_v49 = vld [vmem:[%s7547_s19 + $0x620] sm:$0xf0]  ;;  %3552 = vmatpush.bf16.msra.mxu0 %v4859_v37 }
  0xb1   : > { %v7187_v50 = vld [vmem:[%s7547_s19 + $0x9c4] sm:$0xf]  ;;  %v5595_v61 = vor.u32 %v7067_v48, %v5592_v49 }
  0xb2   : > { %3590 = vmatpush.bf16.msra.mxu3 %v5659_v28  ;;  %v6072_v51 = vld [vmem:[%s7547_s19 + $0x9e0] sm:$0xf0]  ;;  %3565 = vmatpush.bf16.msra.mxu1 %v5115_v41 }
  0xb3   : > { %v7251_v52 = vld [vmem:[%s7547_s19 + $0xbc4] sm:$0xf]  ;;  %v6075_v62 = vor.u32 %v7187_v50, %v6072_v51 }
  0xb4   : > { %v6328_v54 = vld [vmem:[%s7547_s19 + $0xbe0] sm:$0xf0]  ;;  %3578 = vmatpush.bf16.msra.mxu2 %v5371_v42  ;;  %3553 = vmatpush.bf16.msra.mxu0 %v4827_v53 }
  0xb5   : > { %v7315_v55 = vld [vmem:[%s7547_s19 + $0xdc4] sm:$0xf]  ;;  %v6331_v63 = vor.u32 %v7251_v52, %v6328_v54 }
  0xb6   : > { %v6584_v56 = vld [vmem:[%s7547_s19 + $0xde0] sm:$0xf0]  ;;  %3591 = vmatpush.bf16.msra.mxu3 %v5627_v46  ;;  %3566 = vmatpush.bf16.msra.mxu1 %v5083_v57 }
  0xb7   : > { %v7379_v59 = vld [vmem:[%s7547_s19 + $0xfc4] sm:$0xf]  ;;  %v6587_v0 = vor.u32 %v7315_v55, %v6584_v56  ;;  %3554 = vmatmul.bf16.vlgmr.msra.gmra.mxu0 %v7657_v22 }
  0xb8   : > { %v6840_v60 = vld [vmem:[%s7547_s19 + $0xfe0] sm:$0xf0]  ;;  %3579 = vmatpush.bf16.msra.mxu2 %v5339_v58  ;;  %3598 = vmatpush.bf16.msrb.mxu0 %v6075_v62 }
  0xb9   : > { %v7179_v1 = vld [vmem:[%s7547_s19 + $0x984] sm:$0xf]  ;;  %v6843_v4 = vor.u32 %v7379_v59, %v6840_v60  ;;  %3567 = vmatmul.bf16.vlgmr.msra.gmra.mxu1 %v7664_v27 }
  0xba   : > { %v6040_v2 = vld [vmem:[%s7547_s19 + $0x9a0] sm:$0xf0]  ;;  %3592 = vmatpush.bf16.msra.mxu3 %v5595_v61  ;;  %3611 = vmatpush.bf16.msrb.mxu1 %v6331_v63 }
  0xbb   : > { %v7243_v3 = vld [vmem:[%s7547_s19 + $0xb84] sm:$0xf]  ;;  %v6043_v10 = vor.u32 %v7179_v1, %v6040_v2  ;;  %3580 = vmatmul.bf16.vlgmr.msra.gmra.mxu2 %v7655_v21 }
  0xbc   : > { %v6296_v5 = vld [vmem:[%s7547_s19 + $0xba0] sm:$0xf0]  ;;  %3624 = vmatpush.bf16.msrb.mxu2 %v6587_v0 }
  0xbd   : > { %v7307_v6 = vld [vmem:[%s7547_s19 + $0xd84] sm:$0xf]  ;;  %v6299_v11 = vor.u32 %v7243_v3, %v6296_v5  ;;  %3593 = vmatmul.bf16.vlgmr.msra.gmra.mxu3 %v7659_v23  ;;  %3599 = vmatpush.bf16.msrb.mxu0 %v6043_v10 }
  0xbe   : > { %v6552_v7 = vld [vmem:[%s7547_s19 + $0xda0] sm:$0xf0]  ;;  %3637 = vmatpush.bf16.msrb.mxu3 %v6843_v4 }
  0xbf   : > { %v7371_v8 = vld [vmem:[%s7547_s19 + $0xf84] sm:$0xf]  ;;  %v6555_v12 = vor.u32 %v7307_v6, %v6552_v7  ;;  %3612 = vmatpush.bf16.msrb.mxu1 %v6299_v11 }
  0xc0   : > { %v6808_v9 = vld [vmem:[%s7547_s19 + $0xfa0] sm:$0xf0] }
  0xc1   : > { %v7171_v13 = vld [vmem:[%s7547_s19 + $0x944] sm:$0xf]  ;;  %v6811_v16 = vor.u32 %v7371_v8, %v6808_v9  ;;  %3625 = vmatpush.bf16.msrb.mxu2 %v6555_v12 }
  0xc2   : > { %v6008_v14 = vld [vmem:[%s7547_s19 + $0x960] sm:$0xf0] }
  0xc3   : > { %v7235_v15 = vld [vmem:[%s7547_s19 + $0xb44] sm:$0xf]  ;;  %v6011_v25 = vor.u32 %v7171_v13, %v6008_v14  ;;  %3638 = vmatpush.bf16.msrb.mxu3 %v6811_v16 }
  0xc4   : > { %v6264_v17 = vld [vmem:[%s7547_s19 + $0xb60] sm:$0xf0] }
  0xc5   : > { %v7299_v18 = vld [vmem:[%s7547_s19 + $0xd44] sm:$0xf]  ;;  %v6267_v26 = vor.u32 %v7235_v15, %v6264_v17  ;;  %3600 = vmatpush.bf16.msrb.mxu0 %v6011_v25 }
  0xc6   : > { %v6520_v19 = vld [vmem:[%s7547_s19 + $0xd60] sm:$0xf0] }
  0xc7   : > { %v7363_v20 = vld [vmem:[%s7547_s19 + $0xf44] sm:$0xf]  ;;  %v6523_v28 = vor.u32 %v7299_v18, %v6520_v19  ;;  %3613 = vmatpush.bf16.msrb.mxu1 %v6267_v26 }
  0xc8   : > { %v6776_v24 = vld [vmem:[%s7547_s19 + $0xf60] sm:$0xf0] }
  0xc9   : > { %v7163_v29 = vld [vmem:[%s7547_s19 + $0x904] sm:$0xf]  ;;  %v6779_v35 = vor.u32 %v7363_v20, %v6776_v24  ;;  %3626 = vmatpush.bf16.msrb.mxu2 %v6523_v28 }
  0xca   : > { %v5976_v31 = vld [vmem:[%s7547_s19 + $0x920] sm:$0xf0] }
  0xcb   : > { %v7227_v34 = vld [vmem:[%s7547_s19 + $0xb04] sm:$0xf]  ;;  %v5979_v42 = vor.u32 %v7163_v29, %v5976_v31  ;;  %3639 = vmatpush.bf16.msrb.mxu3 %v6779_v35  ;;  %v5054_v31 = vld [vmem:[%s7547_s19 + $0x1c8] sm:$0xf] }
  0xcc   : > { %v6232_v36 = vld [vmem:[%s7547_s19 + $0xb20] sm:$0xf0]  ;;  %v5310_v35 = vld [vmem:[%s7547_s19 + $0x3c8] sm:$0xf] }
  0xcd   : > { %v7291_v37 = vld [vmem:[%s7547_s19 + $0xd04] sm:$0xf]  ;;  %v6235_v43 = vor.u32 %v7227_v34, %v6232_v36  ;;  %3601 = vmatpush.bf16.msrb.mxu0 %v5979_v42  ;;  %v6936_v34 = vld [vmem:[%s7547_s19 + $0x1e4] sm:$0xf0] }
  0xce   : > { %v6488_v38 = vld [vmem:[%s7547_s19 + $0xd20] sm:$0xf0] }
  0xcf   : > { %v7355_v40 = vld [vmem:[%s7547_s19 + $0xf04] sm:$0xf]  ;;  %v6491_v44 = vor.u32 %v7291_v37, %v6488_v38  ;;  %3614 = vmatpush.bf16.msrb.mxu1 %v6235_v43  ;;  %v7000_v37 = vld [vmem:[%s7547_s19 + $0x3e4] sm:$0xf0] }
  0xd0   : > { %v6744_v41 = vld [vmem:[%s7547_s19 + $0xf20] sm:$0xf0]  ;;  %v5566_v38 = vld [vmem:[%s7547_s19 + $0x5c8] sm:$0xf] }
  0xd1   : > { %v7155_v45 = vld [vmem:[%s7547_s19 + $0x8c4] sm:$0xf]  ;;  %v6747_v48 = vor.u32 %v7355_v40, %v6744_v41  ;;  %3627 = vmatpush.bf16.msrb.mxu2 %v6491_v44  ;;  %v7064_v40 = vld [vmem:[%s7547_s19 + $0x5e4] sm:$0xf0] }
  0xd2   : > { %v5944_v46 = vld [vmem:[%s7547_s19 + $0x8e0] sm:$0xf0]  ;;  %v5822_v43 = vld [vmem:[%s7547_s19 + $0x7c8] sm:$0xf] }
  0xd3   : > { %v7219_v47 = vld [vmem:[%s7547_s19 + $0xac4] sm:$0xf]  ;;  %v5947_v54 = vor.u32 %v7155_v45, %v5944_v46  ;;  %3640 = vmatpush.bf16.msrb.mxu3 %v6747_v48  ;;  %v7128_v44 = vld [vmem:[%s7547_s19 + $0x7e4] sm:$0xf0]  ;;  %v5055_v46 = vor.u32 %v6936_v34, %v5054_v31  ;;  %v5567_v48 = vor.u32 %v7064_v40, %v5566_v38 }
  0xd4   : > { %v6200_v49 = vld [vmem:[%s7547_s19 + $0xae0] sm:$0xf0]  ;;  %v5150_v38 = vld [vmem:[%s7547_s19 + $0x288] sm:$0xf] }
  0xd5   : > { %v7283_v50 = vld [vmem:[%s7547_s19 + $0xcc4] sm:$0xf]  ;;  %v6203_v55 = vor.u32 %v7219_v47, %v6200_v49  ;;  %3602 = vmatpush.bf16.msrb.mxu0 %v5947_v54  ;;  %v5311_v47 = vor.u32 %v7000_v37, %v5310_v35  ;;  %v5022_v49 = vld [vmem:[%s7547_s19 + $0x188] sm:$0xf] }
  0xd6   : > { %v6456_v51 = vld [vmem:[%s7547_s19 + $0xce0] sm:$0xf0]  ;;  %v5534_v54 = vld [vmem:[%s7547_s19 + $0x588] sm:$0xf] }
  0xd7   : > { %v7347_v52 = vld [vmem:[%s7547_s19 + $0xec4] sm:$0xf]  ;;  %v6459_v56 = vor.u32 %v7283_v50, %v6456_v51  ;;  %3615 = vmatpush.bf16.msrb.mxu1 %v6203_v55  ;;  %v6928_v50 = vld [vmem:[%s7547_s19 + $0x1a4] sm:$0xf0] }
  0xd8   : > { %v6712_v53 = vld [vmem:[%s7547_s19 + $0xee0] sm:$0xf0]  ;;  %v5278_v51 = vld [vmem:[%s7547_s19 + $0x388] sm:$0xf] }
  0xd9   : > { %v7147_v57 = vld [vmem:[%s7547_s19 + $0x884] sm:$0xf]  ;;  %v6715_v60 = vor.u32 %v7347_v52, %v6712_v53  ;;  %3628 = vmatpush.bf16.msrb.mxu2 %v6459_v56  ;;  %v5823_v52 = vor.u32 %v7128_v44, %v5822_v43  ;;  %v6992_v53 = vld [vmem:[%s7547_s19 + $0x3a4] sm:$0xf0] }
  0xda   : > { %v5912_v58 = vld [vmem:[%s7547_s19 + $0x8a0] sm:$0xf0]  ;;  %v7056_v55 = vld [vmem:[%s7547_s19 + $0x5a4] sm:$0xf0] }
  0xdb   : > { %v7211_v59 = vld [vmem:[%s7547_s19 + $0xa84] sm:$0xf]  ;;  %v5915_v2 = vor.u32 %v7147_v57, %v5912_v58  ;;  %3641 = vmatpush.bf16.msrb.mxu3 %v6715_v60  ;;  %v5790_v56 = vld [vmem:[%s7547_s19 + $0x788] sm:$0xf]  ;;  %v5023_v58 = vor.u32 %v6928_v50, %v5022_v49  ;;  %v5535_v60 = vor.u32 %v7056_v55, %v5534_v54 }
  0xdc   : > { %v6168_v61 = vld [vmem:[%s7547_s19 + $0xaa0] sm:$0xf0]  ;;  %v7120_v57 = vld [vmem:[%s7547_s19 + $0x7a4] sm:$0xf0] }
  0xdd   : > { %v7275_v62 = vld [vmem:[%s7547_s19 + $0xc84] sm:$0xf]  ;;  %v6171_v3 = vor.u32 %v7211_v59, %v6168_v61  ;;  %3603 = vmatpush.bf16.msrb.mxu0 %v5915_v2  ;;  %v5279_v59 = vor.u32 %v6992_v53, %v5278_v51  ;;  %v4990_v61 = vld [vmem:[%s7547_s19 + $0x148] sm:$0xf] }
  0xde   : > { %v6424_v63 = vld [vmem:[%s7547_s19 + $0xca0] sm:$0xf0]  ;;  %v5502_v2 = vld [vmem:[%s7547_s19 + $0x548] sm:$0xf] }
  0xdf   : > { %v7339_v0 = vld [vmem:[%s7547_s19 + $0xe84] sm:$0xf]  ;;  %v6427_v4 = vor.u32 %v7275_v62, %v6424_v63  ;;  %3616 = vmatpush.bf16.msrb.mxu1 %v6171_v3  ;;  %v6920_v62 = vld [vmem:[%s7547_s19 + $0x164] sm:$0xf0] }
  0xe0   : > { %v6680_v1 = vld [vmem:[%s7547_s19 + $0xea0] sm:$0xf0]  ;;  %v5246_v63 = vld [vmem:[%s7547_s19 + $0x348] sm:$0xf] }
  0xe1   : > { %v7139_v5 = vld [vmem:[%s7547_s19 + $0x844] sm:$0xf]  ;;  %v6683_v8 = vor.u32 %v7339_v0, %v6680_v1  ;;  %3629 = vmatpush.bf16.msrb.mxu2 %v6427_v4  ;;  %v5791_v0 = vor.u32 %v7120_v57, %v5790_v56  ;;  %v6984_v1 = vld [vmem:[%s7547_s19 + $0x364] sm:$0xf0] }
  0xe2   : > { %v5880_v6 = vld [vmem:[%s7547_s19 + $0x860] sm:$0xf0]  ;;  %v7048_v3 = vld [vmem:[%s7547_s19 + $0x564] sm:$0xf0] }
  0xe3   : > { %v7203_v7 = vld [vmem:[%s7547_s19 + $0xa44] sm:$0xf]  ;;  %v5883_v14 = vor.u32 %v7139_v5, %v5880_v6  ;;  %3642 = vmatpush.bf16.msrb.mxu3 %v6683_v8  ;;  %v5758_v4 = vld [vmem:[%s7547_s19 + $0x748] sm:$0xf]  ;;  %v5247_v6 = vor.u32 %v6984_v1, %v5246_v63 }
  0xe4   : > { %v6136_v9 = vld [vmem:[%s7547_s19 + $0xa60] sm:$0xf0]  ;;  %v7112_v5 = vld [vmem:[%s7547_s19 + $0x764] sm:$0xf0] }
  0xe5   : > { %v7267_v10 = vld [vmem:[%s7547_s19 + $0xc44] sm:$0xf]  ;;  %v6139_v17 = vor.u32 %v7203_v7, %v6136_v9  ;;  %3604 = vmatpush.bf16.msrb.mxu0 %v5883_v14  ;;  %v5503_v7 = vor.u32 %v7048_v3, %v5502_v2  ;;  %v4958_v8 = vld [vmem:[%s7547_s19 + $0x108] sm:$0xf] }
  0xe6   : > { %v6392_v11 = vld [vmem:[%s7547_s19 + $0xc60] sm:$0xf0]  ;;  %v5214_v9 = vld [vmem:[%s7547_s19 + $0x308] sm:$0xf] }
  0xe7   : > { %v7331_v12 = vld [vmem:[%s7547_s19 + $0xe44] sm:$0xf]  ;;  %v6395_v18 = vor.u32 %v7267_v10, %v6392_v11  ;;  %3617 = vmatpush.bf16.msrb.mxu1 %v6139_v17  ;;  %v6976_v10 = vld [vmem:[%s7547_s19 + $0x324] sm:$0xf0] }
  0xe8   : > { %v6648_v13 = vld [vmem:[%s7547_s19 + $0xe60] sm:$0xf0]  ;;  %v5470_v11 = vld [vmem:[%s7547_s19 + $0x508] sm:$0xf] }
  0xe9   : > { %v7131_v15 = vld [vmem:[%s7547_s19 + $0x804] sm:$0xf]  ;;  %v6651_v25 = vor.u32 %v7331_v12, %v6648_v13  ;;  %3630 = vmatpush.bf16.msrb.mxu2 %v6395_v18  ;;  %v7040_v12 = vld [vmem:[%s7547_s19 + $0x524] sm:$0xf0] }
  0xea   : > { %v5848_v16 = vld [vmem:[%s7547_s19 + $0x820] sm:$0xf0]  ;;  %v7104_v13 = vld [vmem:[%s7547_s19 + $0x724] sm:$0xf0] }
  0xeb   : > { %v7195_v19 = vld [vmem:[%s7547_s19 + $0xa04] sm:$0xf]  ;;  %v5851_v36 = vor.u32 %v7131_v15, %v5848_v16  ;;  %3643 = vmatpush.bf16.msrb.mxu3 %v6651_v25  ;;  %v5215_v15 = vor.u32 %v6976_v10, %v5214_v9  ;;  %v5471_v16 = vor.u32 %v7040_v12, %v5470_v11  ;;  %v4926_v17 = vld [vmem:[%s7547_s19 + $0xc8] sm:$0xf] }
  0xec   : > { %v6104_v20 = vld [vmem:[%s7547_s19 + $0xa20] sm:$0xf0]  ;;  %v6904_v18 = vld [vmem:[%s7547_s19 + $0xe4] sm:$0xf0] }
  0xed   : > { %v7259_v24 = vld [vmem:[%s7547_s19 + $0xc04] sm:$0xf]  ;;  %v6107_v41 = vor.u32 %v7195_v19, %v6104_v20  ;;  %3605 = vmatpush.bf16.msrb.mxu0 %v5851_v36  ;;  %v5182_v19 = vld [vmem:[%s7547_s19 + $0x2c8] sm:$0xf]  ;;  %v4927_v31 = vor.u32 %v6904_v18, %v4926_v17 }
  0xee   : > { %v6360_v26 = vld [vmem:[%s7547_s19 + $0xc20] sm:$0xf0]  ;;  %v5438_v25 = vld [vmem:[%s7547_s19 + $0x4c8] sm:$0xf] }
  0xef   : > { %v7323_v28 = vld [vmem:[%s7547_s19 + $0xe04] sm:$0xf]  ;;  %v6363_v42 = vor.u32 %v7259_v24, %v6360_v26  ;;  %3618 = vmatpush.bf16.msrb.mxu1 %v6107_v41  ;;  %v6968_v24 = vld [vmem:[%s7547_s19 + $0x2e4] sm:$0xf0] }
  0xf0   : > { %v6616_v29 = vld [vmem:[%s7547_s19 + $0xe20] sm:$0xf0]  ;;  %3606 = vmatmul.bf16.vlgmr.msrb.gmra.mxu0 %v7713_v32  ;;  %v6912_v32 = vld [vmem:[%s7547_s19 + $0x124] sm:$0xf0]  ;;  %v5183_v34 = vor.u32 %v6968_v24, %v5182_v19 }
  0xf1   : > { %v6619_v45 = vor.u32 %v7323_v28, %v6616_v29  ;;  %3631 = vmatpush.bf16.msrb.mxu2 %v6363_v42  ;;  %3650 = vmatpush.bf16.msra.mxu0 %v5055_v46  ;;  %v4959_v14 = vor.u32 %v6912_v32, %v4958_v8  ;;  %v7032_v26 = vld [vmem:[%s7547_s19 + $0x4e4] sm:$0xf0] }
  0xf2   : > { %3619 = vmatmul.bf16.vlgmr.msrb.gmra.mxu1 %v7720_v39  ;;  %v5726_v39 = vld [vmem:[%s7547_s19 + $0x708] sm:$0xf]  ;;  %v5439_v35 = vor.u32 %v7032_v26, %v5438_v25 }
  0xf3   : > { %3644 = vmatpush.bf16.msrb.mxu3 %v6619_v45  ;;  %3663 = vmatpush.bf16.msra.mxu1 %v5311_v47  ;;  %v5727_v20 = vor.u32 %v7104_v13, %v5726_v39  ;;  %v5694_v28 = vld [vmem:[%s7547_s19 + $0x6c8] sm:$0xf] }
  0xf4   : > { %3632 = vmatmul.bf16.vlgmr.msrb.gmra.mxu2 %v7711_v30  ;;  %v4991_v30 = vor.u32 %v6920_v62, %v4990_v61  ;;  %v7096_v29 = vld [vmem:[%s7547_s19 + $0x6e4] sm:$0xf0] }
  0xf5   : > { %3676 = vmatpush.bf16.msra.mxu2 %v5567_v48  ;;  %3651 = vmatpush.bf16.msra.mxu0 %v5023_v58  ;;  %v4894_v36 = vld [vmem:[%s7547_s19 + $0x88] sm:$0xf]  ;;  %v5695_v40 = vor.u32 %v7096_v29, %v5694_v28 }
  0xf6   : > { %3645 = vmatmul.bf16.vlgmr.msrb.gmra.mxu3 %v7715_v33  ;;  %v5759_v33 = vor.u32 %v7112_v5, %v5758_v4  ;;  %v6896_v37 = vld [vmem:[%s7547_s19 + $0xa4] sm:$0xf0] }
  0xf7   : > { %3689 = vmatpush.bf16.msra.mxu3 %v5823_v52  ;;  %3664 = vmatpush.bf16.msra.mxu1 %v5279_v59  ;;  %v6960_v41 = vld [vmem:[%s7547_s19 + $0x2a4] sm:$0xf0]  ;;  %v4895_v46 = vor.u32 %v6896_v37, %v4894_v36 }
  0xf8   : > { %v5406_v42 = vld [vmem:[%s7547_s19 + $0x488] sm:$0xf]  ;;  %v5151_v47 = vor.u32 %v6960_v41, %v5150_v38 }
  0xf9   : > { %3677 = vmatpush.bf16.msra.mxu2 %v5535_v60  ;;  %3652 = vmatpush.bf16.msra.mxu0 %v4991_v30  ;;  %v7024_v43 = vld [vmem:[%s7547_s19 + $0x4a4] sm:$0xf0] }
  0xfa   : > { %v5662_v44 = vld [vmem:[%s7547_s19 + $0x688] sm:$0xf]  ;;  %v5407_v48 = vor.u32 %v7024_v43, %v5406_v42 }
  0xfb   : > { %3690 = vmatpush.bf16.msra.mxu3 %v5791_v0  ;;  %3665 = vmatpush.bf16.msra.mxu1 %v5247_v6  ;;  %v7088_v45 = vld [vmem:[%s7547_s19 + $0x6a4] sm:$0xf0] }
  0xfc   : > { %v4862_v49 = vld [vmem:[%s7547_s19 + $0x48] sm:$0xf]  ;;  %v5663_v52 = vor.u32 %v7088_v45, %v5662_v44 }
  0xfd   : > { %3678 = vmatpush.bf16.msra.mxu2 %v5503_v7  ;;  %3653 = vmatpush.bf16.msra.mxu0 %v4959_v14  ;;  %v6888_v50 = vld [vmem:[%s7547_s19 + $0x64] sm:$0xf0] }
  0xfe   : > { %v5118_v51 = vld [vmem:[%s7547_s19 + $0x248] sm:$0xf]  ;;  %v4863_v58 = vor.u32 %v6888_v50, %v4862_v49 }
  0xff   : > { %3691 = vmatpush.bf16.msra.mxu3 %v5759_v33  ;;  %3666 = vmatpush.bf16.msra.mxu1 %v5215_v15  ;;  %v6952_v53 = vld [vmem:[%s7547_s19 + $0x264] sm:$0xf0] }
 0x100   : > { %v5374_v54 = vld [vmem:[%s7547_s19 + $0x448] sm:$0xf]  ;;  %v5119_v61 = vor.u32 %v6952_v53, %v5118_v51 }
 0x101   : > { %3679 = vmatpush.bf16.msra.mxu2 %v5471_v16  ;;  %3654 = vmatpush.bf16.msra.mxu0 %v4927_v31  ;;  %v7016_v55 = vld [vmem:[%s7547_s19 + $0x464] sm:$0xf0] }
 0x102   : > { %v5630_v56 = vld [vmem:[%s7547_s19 + $0x648] sm:$0xf]  ;;  %v5375_v62 = vor.u32 %v7016_v55, %v5374_v54 }
 0x103   : > { %3692 = vmatpush.bf16.msra.mxu3 %v5727_v20  ;;  %3667 = vmatpush.bf16.msra.mxu1 %v5183_v34  ;;  %v7080_v57 = vld [vmem:[%s7547_s19 + $0x664] sm:$0xf0] }
 0x104   : > { %v4830_v59 = vld [vmem:[%s7547_s19 + $0x8] sm:$0xf]  ;;  %v5631_v2 = vor.u32 %v7080_v57, %v5630_v56 }
 0x105   : > { %3680 = vmatpush.bf16.msra.mxu2 %v5439_v35  ;;  %3655 = vmatpush.bf16.msra.mxu0 %v4895_v46  ;;  %v6880_v60 = vld [vmem:[%s7547_s19 + $0x24] sm:$0xf0] }
 0x106   : > { %v5086_v63 = vld [vmem:[%s7547_s19 + $0x208] sm:$0xf]  ;;  %v4831_v8 = vor.u32 %v6880_v60, %v4830_v59 }
 0x107   : > { %3693 = vmatpush.bf16.msra.mxu3 %v5695_v40  ;;  %3668 = vmatpush.bf16.msra.mxu1 %v5151_v47  ;;  %v6944_v0 = vld [vmem:[%s7547_s19 + $0x224] sm:$0xf0] }
 0x108   : > { %v5342_v1 = vld [vmem:[%s7547_s19 + $0x408] sm:$0xf]  ;;  %v5087_v10 = vor.u32 %v6944_v0, %v5086_v63 }
 0x109   : > { %3681 = vmatpush.bf16.msra.mxu2 %v5407_v48  ;;  %v7008_v3 = vld [vmem:[%s7547_s19 + $0x424] sm:$0xf0]  ;;  %3656 = vmatpush.bf16.msra.mxu0 %v4863_v58 }
 0x10a   : > { %v5598_v4 = vld [vmem:[%s7547_s19 + $0x608] sm:$0xf]  ;;  %v5343_v11 = vor.u32 %v7008_v3, %v5342_v1 }
 0x10b   : > { %3694 = vmatpush.bf16.msra.mxu3 %v5663_v52  ;;  %v7072_v5 = vld [vmem:[%s7547_s19 + $0x624] sm:$0xf0]  ;;  %3669 = vmatpush.bf16.msra.mxu1 %v5119_v61 }
 0x10c   : > { %v6078_v30 = vld [vmem:[%s7547_s19 + $0x9c8] sm:$0xf]  ;;  %v5599_v13 = vor.u32 %v7072_v5, %v5598_v4 }
 0x10d   : > { %v7192_v6 = vld [vmem:[%s7547_s19 + $0x9e4] sm:$0xf0]  ;;  %3682 = vmatpush.bf16.msra.mxu2 %v5375_v62  ;;  %3657 = vmatpush.bf16.msra.mxu0 %v4831_v8 }
 0x10e   : > { %v6334_v7 = vld [vmem:[%s7547_s19 + $0xbc8] sm:$0xf]  ;;  %v6079_v14 = vor.u32 %v7192_v6, %v6078_v30 }
 0x10f   : > { %v7256_v32 = vld [vmem:[%s7547_s19 + $0xbe4] sm:$0xf0]  ;;  %3695 = vmatpush.bf16.msra.mxu3 %v5631_v2  ;;  %3670 = vmatpush.bf16.msra.mxu1 %v5087_v10 }
 0x110   : > { %v6590_v9 = vld [vmem:[%s7547_s19 + $0xdc8] sm:$0xf]  ;;  %v6335_v15 = vor.u32 %v7256_v32, %v6334_v7  ;;  %3658 = vmatmul.bf16.vlgmr.msra.gmra.mxu0 %v7657_v22 }
 0x111   : > { %v7320_v33 = vld [vmem:[%s7547_s19 + $0xde4] sm:$0xf0]  ;;  %3683 = vmatpush.bf16.msra.mxu2 %v5343_v11  ;;  %3702 = vmatpush.bf16.msrb.mxu0 %v6079_v14 }
 0x112   : > { %v6846_v12 = vld [vmem:[%s7547_s19 + $0xfc8] sm:$0xf]  ;;  %v6591_v16 = vor.u32 %v7320_v33, %v6590_v9  ;;  %3671 = vmatmul.bf16.vlgmr.msra.gmra.mxu1 %v7664_v27 }
 0x113   : > { %v7384_v39 = vld [vmem:[%s7547_s19 + $0xfe4] sm:$0xf0]  ;;  %3696 = vmatpush.bf16.msra.mxu3 %v5599_v13  ;;  %3715 = vmatpush.bf16.msrb.mxu1 %v6335_v15 }
 0x114   : > { %v6046_v17 = vld [vmem:[%s7547_s19 + $0x988] sm:$0xf]  ;;  %v6847_v20 = vor.u32 %v7384_v39, %v6846_v12  ;;  %3684 = vmatmul.bf16.vlgmr.msra.gmra.mxu2 %v7655_v21  ;;  %v3451_v12 = vpop.f32.mrf.mxu0 }
 0x115   : > { %v7184_v18 = vld [vmem:[%s7547_s19 + $0x9a4] sm:$0xf0]  ;;  %3728 = vmatpush.bf16.msrb.mxu2 %v6591_v16 }
 0x116   : > { %v6302_v19 = vld [vmem:[%s7547_s19 + $0xb88] sm:$0xf]  ;;  %v6047_v31 = vor.u32 %v7184_v18, %v6046_v17  ;;  %3697 = vmatmul.bf16.vlgmr.msra.gmra.mxu3 %v7659_v23  ;;  %v3464_v17 = vpop.f32.mrf.mxu1 }
 0x117   : > { %v7248_v24 = vld [vmem:[%s7547_s19 + $0xba4] sm:$0xf0]  ;;  %3741 = vmatpush.bf16.msrb.mxu3 %v6847_v20 }
 0x118   : > { %v6558_v25 = vld [vmem:[%s7547_s19 + $0xd88] sm:$0xf]  ;;  %v6303_v34 = vor.u32 %v7248_v24, %v6302_v19  ;;  %3703 = vmatpush.bf16.msrb.mxu0 %v6047_v31 }
 0x119   : > { %v7312_v26 = vld [vmem:[%s7547_s19 + $0xda4] sm:$0xf0] }
 0x11a   : > { %v6814_v28 = vld [vmem:[%s7547_s19 + $0xf88] sm:$0xf]  ;;  %v6559_v35 = vor.u32 %v7312_v26, %v6558_v25  ;;  %3716 = vmatpush.bf16.msrb.mxu1 %v6303_v34  ;;  %v3465_v25 = vadd.f32 %v3464_v17, %v3451_v12  ;;  %v8005_v17 = vld [vmem:[#allocation1 + $0x3f] sm:$0xff] }
 0x11b   : > { %v7376_v29 = vld [vmem:[%s7547_s19 + $0xfa4] sm:$0xf0] }
 0x11c   : > { %v6014_v36 = vld [vmem:[%s7547_s19 + $0x948] sm:$0xf]  ;;  %v6815_v40 = vor.u32 %v7376_v29, %v6814_v28  ;;  %3729 = vmatpush.bf16.msrb.mxu2 %v6559_v35 }
 0x11d   : > { %v7176_v37 = vld [vmem:[%s7547_s19 + $0x964] sm:$0xf0] }
 0x11e   : > { %v6270_v38 = vld [vmem:[%s7547_s19 + $0xb48] sm:$0xf]  ;;  %v6015_v46 = vor.u32 %v7176_v37, %v6014_v36  ;;  %3742 = vmatpush.bf16.msrb.mxu3 %v6815_v40 }
 0x11f   : > { %v7240_v41 = vld [vmem:[%s7547_s19 + $0xb64] sm:$0xf0] }
 0x120   : > { %v6526_v42 = vld [vmem:[%s7547_s19 + $0xd48] sm:$0xf]  ;;  %v6271_v47 = vor.u32 %v7240_v41, %v6270_v38  ;;  %3704 = vmatpush.bf16.msrb.mxu0 %v6015_v46  ;;  %v3477_v41 = vpop.f32.mrf.mxu2 }
 0x121   : > { %v7304_v43 = vld [vmem:[%s7547_s19 + $0xd64] sm:$0xf0]  ;;  %v3478_v46 = vadd.f32 %v3477_v41, %v3465_v25 }
 0x122   : > { %v6782_v44 = vld [vmem:[%s7547_s19 + $0xf48] sm:$0xf]  ;;  %v6527_v48 = vor.u32 %v7304_v43, %v6526_v42  ;;  %3717 = vmatpush.bf16.msrb.mxu1 %v6271_v47  ;;  %v3490_v47 = vpop.f32.mrf.mxu3 }
 0x123   : > { %v7368_v45 = vld [vmem:[%s7547_s19 + $0xf64] sm:$0xf0] }
 0x124   : > { %v5982_v21 = vld [vmem:[%s7547_s19 + $0x908] sm:$0xf]  ;;  %v6783_v22 = vor.u32 %v7368_v45, %v6782_v44  ;;  %3730 = vmatpush.bf16.msrb.mxu2 %v6527_v48  ;;  %v6932_v48 = vld [vmem:[%s7547_s19 + $0x1cc] sm:$0xf] }
 0x125   : > { %v7168_v49 = vld [vmem:[%s7547_s19 + $0x924] sm:$0xf0] }
 0x126   : > { %v6238_v50 = vld [vmem:[%s7547_s19 + $0xb08] sm:$0xf]  ;;  %v5983_v54 = vor.u32 %v7168_v49, %v5982_v21  ;;  %3743 = vmatpush.bf16.msrb.mxu3 %v6783_v22  ;;  %v5056_v21 = vld [vmem:[%s7547_s19 + $0x1e8] sm:$0xf0] }
 0x127   : > { %v7232_v51 = vld [vmem:[%s7547_s19 + $0xb24] sm:$0xf0]  ;;  %v6996_v49 = vld [vmem:[%s7547_s19 + $0x3cc] sm:$0xf] }
 0x128   : > { %v6494_v23 = vld [vmem:[%s7547_s19 + $0xd08] sm:$0xf]  ;;  %v6239_v55 = vor.u32 %v7232_v51, %v6238_v50  ;;  %3705 = vmatpush.bf16.msrb.mxu0 %v5983_v54  ;;  %v5312_v22 = vld [vmem:[%s7547_s19 + $0x3e8] sm:$0xf0] }
 0x129   : > { %v7296_v52 = vld [vmem:[%s7547_s19 + $0xd24] sm:$0xf0]  ;;  %v7060_v51 = vld [vmem:[%s7547_s19 + $0x5cc] sm:$0xf] }
 0x12a   : > { %v6750_v53 = vld [vmem:[%s7547_s19 + $0xf08] sm:$0xf]  ;;  %v6495_v56 = vor.u32 %v7296_v52, %v6494_v23  ;;  %3718 = vmatpush.bf16.msrb.mxu1 %v6239_v55  ;;  %v5568_v23 = vld [vmem:[%s7547_s19 + $0x5e8] sm:$0xf0]  ;;  %v7981_v52 = vadd.f32 %v3490_v47, %v3478_v46 }
 0x12b   : > { %v7360_v27 = vld [vmem:[%s7547_s19 + $0xf24] sm:$0xf0]  ;;  %v7124_v55 = vld [vmem:[%s7547_s19 + $0x7cc] sm:$0xf] }
 0x12c   : > { %v5950_v57 = vld [vmem:[%s7547_s19 + $0x8c8] sm:$0xf]  ;;  %v6751_v60 = vor.u32 %v7360_v27, %v6750_v53  ;;  %3731 = vmatpush.bf16.msrb.mxu2 %v6495_v56  ;;  %v3453_v53 = vpop.f32.mrf.mxu0  ;;  %v5824_v56 = vld [vmem:[%s7547_s19 + $0x7e8] sm:$0xf0] }
 0x12d   : > { %v7160_v58 = vld [vmem:[%s7547_s19 + $0x8e4] sm:$0xf0]  ;;  %v4928_v46 = vld [vmem:[%s7547_s19 + $0xe8] sm:$0xf0] }
 0x12e   : > { %v6206_v59 = vld [vmem:[%s7547_s19 + $0xac8] sm:$0xf]  ;;  %v5951_v2 = vor.u32 %v7160_v58, %v5950_v57  ;;  %3744 = vmatpush.bf16.msrb.mxu3 %v6751_v60  ;;  %v3466_v57 = vpop.f32.mrf.mxu1  ;;  %v5315_v60 = vor.u32 %v6996_v49, %v5312_v22  ;;  %v6964_v47 = vld [vmem:[%s7547_s19 + $0x2cc] sm:$0xf] }
 0x12f   : > { %v7224_v61 = vld [vmem:[%s7547_s19 + $0xae4] sm:$0xf0]  ;;  %v7028_v22 = vld [vmem:[%s7547_s19 + $0x4cc] sm:$0xf] }
 0x130   : > { %v6462_v62 = vld [vmem:[%s7547_s19 + $0xcc8] sm:$0xf]  ;;  %v6207_v3 = vor.u32 %v7224_v61, %v6206_v59  ;;  %3706 = vmatpush.bf16.msrb.mxu0 %v5951_v2  ;;  %v5059_v59 = vor.u32 %v6932_v48, %v5056_v21  ;;  %v5571_v61 = vor.u32 %v7060_v51, %v5568_v23  ;;  %v5280_v2 = vld [vmem:[%s7547_s19 + $0x3a8] sm:$0xf0] }
 0x131   : > { %v7288_v63 = vld [vmem:[%s7547_s19 + $0xce4] sm:$0xf0]  ;;  %v5440_v51 = vld [vmem:[%s7547_s19 + $0x4e8] sm:$0xf0] }
 0x132   : > { %v6718_v0 = vld [vmem:[%s7547_s19 + $0xec8] sm:$0xf]  ;;  %v6463_v4 = vor.u32 %v7288_v63, %v6462_v62  ;;  %3719 = vmatpush.bf16.msrb.mxu1 %v6207_v3  ;;  %v6924_v62 = vld [vmem:[%s7547_s19 + $0x18c] sm:$0xf] }
 0x133   : > { %v7352_v1 = vld [vmem:[%s7547_s19 + $0xee4] sm:$0xf0]  ;;  %v5024_v63 = vld [vmem:[%s7547_s19 + $0x1a8] sm:$0xf0] }
 0x134   : > { %v5918_v5 = vld [vmem:[%s7547_s19 + $0x888] sm:$0xf]  ;;  %v6719_v7 = vor.u32 %v7352_v1, %v6718_v0  ;;  %3732 = vmatpush.bf16.msrb.mxu2 %v6463_v4  ;;  %v6988_v0 = vld [vmem:[%s7547_s19 + $0x38c] sm:$0xf]  ;;  %v5827_v1 = vor.u32 %v7124_v55, %v5824_v56  ;;  %v5443_v55 = vor.u32 %v7028_v22, %v5440_v51 }
 0x135   : > { %v7152_v30 = vld [vmem:[%s7547_s19 + $0x8a4] sm:$0xf0]  ;;  %v7052_v3 = vld [vmem:[%s7547_s19 + $0x58c] sm:$0xf] }
 0x136   : > { %v6174_v6 = vld [vmem:[%s7547_s19 + $0xa88] sm:$0xf]  ;;  %v5919_v11 = vor.u32 %v7152_v30, %v5918_v5  ;;  %3745 = vmatpush.bf16.msrb.mxu3 %v6719_v7  ;;  %v5536_v4 = vld [vmem:[%s7547_s19 + $0x5a8] sm:$0xf0]  ;;  %v5027_v7 = vor.u32 %v6924_v62, %v5024_v63  ;;  %v3516_v21 = vpop.f32.mrf.mxu1 }
 0x137   : > { %v7216_v8 = vld [vmem:[%s7547_s19 + $0xaa4] sm:$0xf0]  ;;  %v7116_v5 = vld [vmem:[%s7547_s19 + $0x78c] sm:$0xf] }
 0x138   : > { %v6430_v32 = vld [vmem:[%s7547_s19 + $0xc88] sm:$0xf]  ;;  %v6175_v39 = vor.u32 %v7216_v8, %v6174_v6  ;;  %3707 = vmatpush.bf16.msrb.mxu0 %v5919_v11  ;;  %v5792_v30 = vld [vmem:[%s7547_s19 + $0x7a8] sm:$0xf0]  ;;  %v3479_v6 = vpop.f32.mrf.mxu2  ;;  %v3492_v8 = vpop.f32.mrf.mxu3 }
 0x139   : > { %v7280_v9 = vld [vmem:[%s7547_s19 + $0xca4] sm:$0xf0]  ;;  %v6980_v11 = vld [vmem:[%s7547_s19 + $0x34c] sm:$0xf]  ;;  %v5795_v12 = vor.u32 %v7116_v5, %v5792_v30 }
 0x13a   : > { %v6686_v33 = vld [vmem:[%s7547_s19 + $0xe88] sm:$0xf]  ;;  %v6431_v13 = vor.u32 %v7280_v9, %v6430_v32  ;;  %3720 = vmatpush.bf16.msrb.mxu1 %v6175_v39  ;;  %v5283_v32 = vor.u32 %v6988_v0, %v5280_v2  ;;  %v5539_v9 = vor.u32 %v7052_v3, %v5536_v4  ;;  %v7996_v39 = vld [vmem:[#allocation1 + $0x36] sm:$0xff]  ;;  %v7092_v23 = vld [vmem:[%s7547_s19 + $0x6cc] sm:$0xf] }
 0x13b   : > { %v7344_v10 = vld [vmem:[%s7547_s19 + $0xea4] sm:$0xf0]  ;;  %v5696_v53 = vld [vmem:[%s7547_s19 + $0x6e8] sm:$0xf0] }
 0x13c   : > { %v5886_v14 = vld [vmem:[%s7547_s19 + $0x848] sm:$0xf]  ;;  %v6687_v18 = vor.u32 %v7344_v10, %v6686_v33  ;;  %3733 = vmatpush.bf16.msrb.mxu2 %v6431_v13  ;;  %v6916_v33 = vld [vmem:[%s7547_s19 + $0x14c] sm:$0xf] }
 0x13d   : > { %v7144_v15 = vld [vmem:[%s7547_s19 + $0x864] sm:$0xf0]  ;;  %v4992_v10 = vld [vmem:[%s7547_s19 + $0x168] sm:$0xf0] }
 0x13e   : > { %v6142_v16 = vld [vmem:[%s7547_s19 + $0xa48] sm:$0xf]  ;;  %v5887_v29 = vor.u32 %v7144_v15, %v5886_v14  ;;  %3746 = vmatpush.bf16.msrb.mxu3 %v6687_v18  ;;  %v5248_v13 = vld [vmem:[%s7547_s19 + $0x368] sm:$0xf0] }
 0x13f   : > { %v7208_v19 = vld [vmem:[%s7547_s19 + $0xa64] sm:$0xf0]  ;;  %v7044_v14 = vld [vmem:[%s7547_s19 + $0x54c] sm:$0xf]  ;;  %v5251_v25 = vor.u32 %v6980_v11, %v5248_v13 }
 0x140   : > { %v6398_v20 = vld [vmem:[%s7547_s19 + $0xc48] sm:$0xf]  ;;  %v6143_v35 = vor.u32 %v7208_v19, %v6142_v16  ;;  %3708 = vmatpush.bf16.msrb.mxu0 %v5887_v29  ;;  %v5504_v15 = vld [vmem:[%s7547_s19 + $0x568] sm:$0xf0] }
 0x141   : > { %v7272_v24 = vld [vmem:[%s7547_s19 + $0xc64] sm:$0xf0]  ;;  %v7108_v18 = vld [vmem:[%s7547_s19 + $0x74c] sm:$0xf] }
 0x142   : > { %v6654_v26 = vld [vmem:[%s7547_s19 + $0xe48] sm:$0xf]  ;;  %v6399_v36 = vor.u32 %v7272_v24, %v6398_v20  ;;  %3721 = vmatpush.bf16.msrb.mxu1 %v6143_v35  ;;  %v5760_v19 = vld [vmem:[%s7547_s19 + $0x768] sm:$0xf0]  ;;  %v4995_v20 = vor.u32 %v6916_v33, %v4992_v10  ;;  %v3518_v33 = vpop.f32.mrf.mxu1 }
 0x143   : > { %v7336_v28 = vld [vmem:[%s7547_s19 + $0xe64] sm:$0xf0]  ;;  %v8010_v24 = vld [vmem:[#allocation1 + $0x2d] sm:$0xff]  ;;  %v8086_v33 = vld [vmem:[#allocation1 + $0x1b] sm:$0xff] }
 0x144   : > { %v5854_v31 = vld [vmem:[%s7547_s19 + $0x808] sm:$0xf]  ;;  %v6655_v42 = vor.u32 %v7336_v28, %v6654_v26  ;;  %3734 = vmatpush.bf16.msrb.mxu2 %v6399_v36  ;;  %v5507_v26 = vor.u32 %v7044_v14, %v5504_v15  ;;  %v6908_v28 = vld [vmem:[%s7547_s19 + $0x10c] sm:$0xf] }
 0x145   : > { %v7136_v34 = vld [vmem:[%s7547_s19 + $0x824] sm:$0xf0]  ;;  %v4960_v29 = vld [vmem:[%s7547_s19 + $0x128] sm:$0xf0] }
 0x146   : > { %v6110_v37 = vld [vmem:[%s7547_s19 + $0xa08] sm:$0xf]  ;;  %v5855_v50 = vor.u32 %v7136_v34, %v5854_v31  ;;  %3747 = vmatpush.bf16.msrb.mxu3 %v6655_v42  ;;  %v6972_v31 = vld [vmem:[%s7547_s19 + $0x30c] sm:$0xf]  ;;  %v5763_v34 = vor.u32 %v7108_v18, %v5760_v19  ;;  %v4963_v41 = vor.u32 %v6908_v28, %v4960_v29  ;;  %v3503_v42 = vpop.f32.mrf.mxu0 }
 0x147   : > { %v7200_v38 = vld [vmem:[%s7547_s19 + $0xa24] sm:$0xf0]  ;;  %v5216_v35 = vld [vmem:[%s7547_s19 + $0x328] sm:$0xf0]  ;;  %v3504_v48 = vadd.f32 %v3503_v42, %v7981_v52 }
 0x148   : > { %v6366_v40 = vld [vmem:[%s7547_s19 + $0xc08] sm:$0xf]  ;;  %v6111_v27 = vor.u32 %v7200_v38, %v6110_v37  ;;  %3709 = vmatpush.bf16.msrb.mxu0 %v5855_v50  ;;  %v7036_v36 = vld [vmem:[%s7547_s19 + $0x50c] sm:$0xf] }
 0x149   : > { %v7264_v43 = vld [vmem:[%s7547_s19 + $0xc24] sm:$0xf0]  ;;  %v5472_v37 = vld [vmem:[%s7547_s19 + $0x528] sm:$0xf0] }
 0x14a   : > { %v6622_v44 = vld [vmem:[%s7547_s19 + $0xe08] sm:$0xf]  ;;  %v6367_v54 = vor.u32 %v7264_v43, %v6366_v40  ;;  %3722 = vmatpush.bf16.msrb.mxu1 %v6111_v27  ;;  %v7100_v38 = vld [vmem:[%s7547_s19 + $0x70c] sm:$0xf]  ;;  %v5219_v43 = vor.u32 %v6972_v31, %v5216_v35  ;;  %v3517_v27 = vadd.f32 %v3516_v21, %v3504_v48 }
 0x14b   : > { %v7328_v45 = vld [vmem:[%s7547_s19 + $0xe24] sm:$0xf0]  ;;  %v5728_v40 = vld [vmem:[%s7547_s19 + $0x728] sm:$0xf0] }
 0x14c   : > { %v6623_v58 = vor.u32 %v7328_v45, %v6622_v44  ;;  %3735 = vmatpush.bf16.msrb.mxu2 %v6367_v54  ;;  %3754 = vmatpush.bf16.msra.mxu0 %v5059_v59  ;;  %v8002_v16 = vld [vmem:[#allocation1 + $0x24] sm:$0xff]  ;;  %v5475_v44 = vor.u32 %v7036_v36, %v5472_v37  ;;  %v6900_v45 = vld [vmem:[%s7547_s19 + $0xcc] sm:$0xf]  ;;  %v5731_v49 = vor.u32 %v7100_v38, %v5728_v40  ;;  %v3529_v59 = vpop.f32.mrf.mxu2 }
 0x14d   : > { %3710 = vmatmul.bf16.vlgmr.msrb.gmra.mxu0 %v8002_v16  ;;  %3723 = vmatmul.bf16.vlgmr.msrb.gmra.mxu1 %v8010_v24  ;;  %v5184_v50 = vld [vmem:[%s7547_s19 + $0x2e8] sm:$0xf0]  ;;  %v4931_v54 = vor.u32 %v6900_v45, %v4928_v46  ;;  %v3530_v0 = vadd.f32 %v3529_v59, %v3517_v27 }
 0x14e   : > { %3748 = vmatpush.bf16.msrb.mxu3 %v6623_v58  ;;  %3767 = vmatpush.bf16.msra.mxu1 %v5315_v60  ;;  %v5187_v52 = vor.u32 %v6964_v47, %v5184_v50  ;;  %v6892_v56 = vld [vmem:[%s7547_s19 + $0x8c] sm:$0xf]  ;;  %v5699_v60 = vor.u32 %v7092_v23, %v5696_v53  ;;  %v3505_v30 = vpop.f32.mrf.mxu0 }
 0x14f   : > { %3736 = vmatmul.bf16.vlgmr.msrb.gmra.mxu2 %v7996_v39  ;;  %v4896_v57 = vld [vmem:[%s7547_s19 + $0xa8] sm:$0xf0] }
 0x150   : > { %3780 = vmatpush.bf16.msra.mxu2 %v5571_v61  ;;  %3755 = vmatpush.bf16.msra.mxu0 %v5027_v7  ;;  %v6956_v58 = vld [vmem:[%s7547_s19 + $0x28c] sm:$0xf]  ;;  %v4899_v4 = vor.u32 %v6892_v56, %v4896_v57 }
 0x151   : > { %3749 = vmatmul.bf16.vlgmr.msrb.gmra.mxu3 %v8005_v17  ;;  %v5152_v61 = vld [vmem:[%s7547_s19 + $0x2a8] sm:$0xf0] }
 0x152   : > { %3793 = vmatpush.bf16.msra.mxu3 %v5827_v1  ;;  %3768 = vmatpush.bf16.msra.mxu1 %v5283_v32  ;;  %v7020_v62 = vld [vmem:[%s7547_s19 + $0x48c] sm:$0xf]  ;;  %v3542_v1 = vpop.f32.mrf.mxu3  ;;  %v5155_v6 = vor.u32 %v6956_v58, %v5152_v61 }
 0x153   : > { %v5408_v63 = vld [vmem:[%s7547_s19 + $0x4a8] sm:$0xf0]  ;;  %v8038_v5 = vadd.f32 %v3542_v1, %v3530_v0 }
 0x154   : > { %3781 = vmatpush.bf16.msra.mxu2 %v5539_v9  ;;  %3756 = vmatpush.bf16.msra.mxu0 %v4995_v20  ;;  %v7084_v2 = vld [vmem:[%s7547_s19 + $0x68c] sm:$0xf]  ;;  %v5411_v7 = vor.u32 %v7020_v62, %v5408_v63 }
 0x155   : > { %v5664_v3 = vld [vmem:[%s7547_s19 + $0x6a8] sm:$0xf0] }
 0x156   : > { %3794 = vmatpush.bf16.msra.mxu3 %v5795_v12  ;;  %3769 = vmatpush.bf16.msra.mxu1 %v5251_v25  ;;  %v6884_v8 = vld [vmem:[%s7547_s19 + $0x4c] sm:$0xf]  ;;  %v5667_v10 = vor.u32 %v7084_v2, %v5664_v3 }
 0x157   : > { %v4864_v32 = vld [vmem:[%s7547_s19 + $0x68] sm:$0xf0] }
 0x158   : > { %3782 = vmatpush.bf16.msra.mxu2 %v5507_v26  ;;  %3757 = vmatpush.bf16.msra.mxu0 %v4963_v41  ;;  %v6948_v9 = vld [vmem:[%s7547_s19 + $0x24c] sm:$0xf]  ;;  %v4867_v18 = vor.u32 %v6884_v8, %v4864_v32 }
 0x159   : > { %v5120_v11 = vld [vmem:[%s7547_s19 + $0x268] sm:$0xf0] }
 0x15a   : > { %3795 = vmatpush.bf16.msra.mxu3 %v5763_v34  ;;  %3770 = vmatpush.bf16.msra.mxu1 %v5219_v43  ;;  %v7012_v12 = vld [vmem:[%s7547_s19 + $0x44c] sm:$0xf]  ;;  %v5123_v25 = vor.u32 %v6948_v9, %v5120_v11  ;;  %v3531_v34 = vpop.f32.mrf.mxu2  ;;  %v3544_v40 = vpop.f32.mrf.mxu3  ;;  %v8083_v9 = vld [vmem:[#allocation1] sm:$0xff] }
 0x15b   : > { %v5376_v13 = vld [vmem:[%s7547_s19 + $0x468] sm:$0xf0]  ;;  %v3555_v34 = vpop.f32.mrf.mxu0 }
 0x15c   : > { %3783 = vmatpush.bf16.msra.mxu2 %v5475_v44  ;;  %3758 = vmatpush.bf16.msra.mxu0 %v4931_v54  ;;  %v7076_v14 = vld [vmem:[%s7547_s19 + $0x64c] sm:$0xf]  ;;  %v5379_v26 = vor.u32 %v7012_v12, %v5376_v13 }
 0x15d   : > { %v5632_v15 = vld [vmem:[%s7547_s19 + $0x668] sm:$0xf0] }
 0x15e   : > { %3796 = vmatpush.bf16.msra.mxu3 %v5731_v49  ;;  %3771 = vmatpush.bf16.msra.mxu1 %v5187_v52  ;;  %v6876_v19 = vld [vmem:[%s7547_s19 + $0xc] sm:$0xf]  ;;  %v5635_v35 = vor.u32 %v7076_v14, %v5632_v15 }
 0x15f   : > { %v4832_v20 = vld [vmem:[%s7547_s19 + $0x28] sm:$0xf0] }
 0x160   : > { %3784 = vmatpush.bf16.msra.mxu2 %v5443_v55  ;;  %3759 = vmatpush.bf16.msra.mxu0 %v4899_v4  ;;  %v6940_v28 = vld [vmem:[%s7547_s19 + $0x20c] sm:$0xf]  ;;  %v4835_v44 = vor.u32 %v6876_v19, %v4832_v20 }
 0x161   : > { %v5088_v29 = vld [vmem:[%s7547_s19 + $0x228] sm:$0xf0] }
 0x162   : > { %3797 = vmatpush.bf16.msra.mxu3 %v5699_v60  ;;  %3772 = vmatpush.bf16.msra.mxu1 %v5155_v6  ;;  %v7004_v31 = vld [vmem:[%s7547_s19 + $0x40c] sm:$0xf]  ;;  %v5091_v48 = vor.u32 %v6940_v28, %v5088_v29 }
 0x163   : > { %v5344_v36 = vld [vmem:[%s7547_s19 + $0x428] sm:$0xf0] }
 0x164   : > { %3785 = vmatpush.bf16.msra.mxu2 %v5411_v7  ;;  %v7068_v37 = vld [vmem:[%s7547_s19 + $0x60c] sm:$0xf]  ;;  %3760 = vmatpush.bf16.msra.mxu0 %v4867_v18  ;;  %v5347_v21 = vor.u32 %v7004_v31, %v5344_v36  ;;  %v8078_v7 = vld [vmem:[#allocation1 + $0x12] sm:$0xff] }
 0x165   : > { %v5600_v38 = vld [vmem:[%s7547_s19 + $0x628] sm:$0xf0] }
 0x166   : > { %3798 = vmatpush.bf16.msra.mxu3 %v5667_v10  ;;  %v7188_v41 = vld [vmem:[%s7547_s19 + $0x9cc] sm:$0xf]  ;;  %3773 = vmatpush.bf16.msra.mxu1 %v5123_v25  ;;  %v5603_v22 = vor.u32 %v7068_v37, %v5600_v38 }
 0x167   : > { %v6080_v42 = vld [vmem:[%s7547_s19 + $0x9e8] sm:$0xf0] }
 0x168   : > { %v7252_v43 = vld [vmem:[%s7547_s19 + $0xbcc] sm:$0xf]  ;;  %3786 = vmatpush.bf16.msra.mxu2 %v5379_v26  ;;  %v6083_v51 = vor.u32 %v7188_v41, %v6080_v42  ;;  %3761 = vmatpush.bf16.msra.mxu0 %v4835_v44  ;;  %v3568_v41 = vpop.f32.mrf.mxu1 }
 0x169   : > { %v6336_v45 = vld [vmem:[%s7547_s19 + $0xbe8] sm:$0xf0] }
 0x16a   : > { %v7316_v46 = vld [vmem:[%s7547_s19 + $0xdcc] sm:$0xf]  ;;  %3799 = vmatpush.bf16.msra.mxu3 %v5635_v35  ;;  %v6339_v23 = vor.u32 %v7252_v43, %v6336_v45  ;;  %3774 = vmatpush.bf16.msra.mxu1 %v5091_v48 }
 0x16b   : > { %v6592_v47 = vld [vmem:[%s7547_s19 + $0xde8] sm:$0xf0]  ;;  %3762 = vmatmul.bf16.vlgmr.msra.gmra.mxu0 %v8083_v9 }
 0x16c   : > { %v7380_v49 = vld [vmem:[%s7547_s19 + $0xfcc] sm:$0xf]  ;;  %v6595_v53 = vor.u32 %v7316_v46, %v6592_v47  ;;  %3787 = vmatpush.bf16.msra.mxu2 %v5347_v21  ;;  %3806 = vmatpush.bf16.msrb.mxu0 %v6083_v51  ;;  %v3569_v46 = vadd.f32 %v3568_v41, %v3555_v34 }
 0x16d   : > { %v6848_v50 = vld [vmem:[%s7547_s19 + $0xfe8] sm:$0xf0] }
 0x16e   : > { %v7180_v27 = vld [vmem:[%s7547_s19 + $0x98c] sm:$0xf]  ;;  %v6851_v55 = vor.u32 %v7380_v49, %v6848_v50  ;;  %3800 = vmatpush.bf16.msra.mxu3 %v5603_v22  ;;  %3819 = vmatpush.bf16.msrb.mxu1 %v6339_v23 }
 0x16f   : > { %v6048_v54 = vld [vmem:[%s7547_s19 + $0x9a8] sm:$0xf0]  ;;  %3788 = vmatmul.bf16.vlgmr.msra.gmra.mxu2 %v8078_v7 }
 0x170   : > { %v7244_v52 = vld [vmem:[%s7547_s19 + $0xb8c] sm:$0xf]  ;;  %v6051_v61 = vor.u32 %v7180_v27, %v6048_v54  ;;  %3832 = vmatpush.bf16.msrb.mxu2 %v6595_v53  ;;  %v3581_v53 = vpop.f32.mrf.mxu2 }
 0x171   : > { %v6304_v56 = vld [vmem:[%s7547_s19 + $0xba8] sm:$0xf0]  ;;  %3801 = vmatmul.bf16.vlgmr.msra.gmra.mxu3 %v8086_v33 }
 0x172   : > { %v7308_v57 = vld [vmem:[%s7547_s19 + $0xd8c] sm:$0xf]  ;;  %v6307_v62 = vor.u32 %v7244_v52, %v6304_v56  ;;  %3845 = vmatpush.bf16.msrb.mxu3 %v6851_v55  ;;  %3807 = vmatpush.bf16.msrb.mxu0 %v6051_v61  ;;  %v3582_v56 = vadd.f32 %v3581_v53, %v3569_v46  ;;  %v5286_v53 = vld [vmem:[%s7547_s19 + $0x390] sm:$0xf] }
 0x173   : > { %v6560_v58 = vld [vmem:[%s7547_s19 + $0xda8] sm:$0xf0] }
 0x174   : > { %v7372_v59 = vld [vmem:[%s7547_s19 + $0xf8c] sm:$0xf]  ;;  %v6563_v63 = vor.u32 %v7308_v57, %v6560_v58  ;;  %3820 = vmatpush.bf16.msrb.mxu1 %v6307_v62  ;;  %v3594_v57 = vpop.f32.mrf.mxu3  ;;  %v3557_v62 = vpop.f32.mrf.mxu0 }
 0x175   : > { %v6816_v60 = vld [vmem:[%s7547_s19 + $0xfa8] sm:$0xf0]  ;;  %v8116_v61 = vadd.f32 %v3594_v57, %v3582_v56  ;;  %v5798_v56 = vld [vmem:[%s7547_s19 + $0x790] sm:$0xf] }
 0x176   : > { %v7172_v0 = vld [vmem:[%s7547_s19 + $0x94c] sm:$0xf]  ;;  %v6819_v3 = vor.u32 %v7372_v59, %v6816_v60  ;;  %3833 = vmatpush.bf16.msrb.mxu2 %v6563_v63  ;;  %v7121_v57 = vld [vmem:[%s7547_s19 + $0x7ac] sm:$0xf0] }
 0x177   : > { %v6016_v1 = vld [vmem:[%s7547_s19 + $0x968] sm:$0xf0]  ;;  %v4998_v62 = vld [vmem:[%s7547_s19 + $0x150] sm:$0xf] }
 0x178   : > { %v7236_v2 = vld [vmem:[%s7547_s19 + $0xb4c] sm:$0xf]  ;;  %v6019_v10 = vor.u32 %v7172_v0, %v6016_v1  ;;  %3846 = vmatpush.bf16.msrb.mxu3 %v6819_v3 }
 0x179   : > { %v6272_v4 = vld [vmem:[%s7547_s19 + $0xb68] sm:$0xf0] }
 0x17a   : > { %v7300_v30 = vld [vmem:[%s7547_s19 + $0xd4c] sm:$0xf]  ;;  %v6275_v12 = vor.u32 %v7236_v2, %v6272_v4  ;;  %3808 = vmatpush.bf16.msrb.mxu0 %v6019_v10  ;;  %v3570_v4 = vpop.f32.mrf.mxu1 }
 0x17b   : > { %v6528_v6 = vld [vmem:[%s7547_s19 + $0xd68] sm:$0xf0]  ;;  %v7049_v4 = vld [vmem:[%s7547_s19 + $0x56c] sm:$0xf0] }
 0x17c   : > { %v7364_v8 = vld [vmem:[%s7547_s19 + $0xf4c] sm:$0xf]  ;;  %v6531_v13 = vor.u32 %v7300_v30, %v6528_v6  ;;  %3821 = vmatpush.bf16.msrb.mxu1 %v6275_v12 }
 0x17d   : > { %v6784_v32 = vld [vmem:[%s7547_s19 + $0xf68] sm:$0xf0] }
 0x17e   : > { %v8089_v11 = vld [vmem:[#allocation1 + $0x9] sm:$0xff]  ;;  %v6787_v19 = vor.u32 %v7364_v8, %v6784_v32  ;;  %3834 = vmatpush.bf16.msrb.mxu2 %v6531_v13 }
 0x17f   : > { %3775 = vmatmul.bf16.vlgmr.msra.gmra.mxu1 %v8089_v11  ;;  %v7164_v14 = vld [vmem:[%s7547_s19 + $0x90c] sm:$0xf] }
 0x180   : > { %v5984_v15 = vld [vmem:[%s7547_s19 + $0x928] sm:$0xf0]  ;;  %3847 = vmatpush.bf16.msrb.mxu3 %v6787_v19 }
 0x181   : > { %v7228_v18 = vld [vmem:[%s7547_s19 + $0xb0c] sm:$0xf]  ;;  %v5987_v31 = vor.u32 %v7164_v14, %v5984_v15 }
 0x182   : > { %v6240_v20 = vld [vmem:[%s7547_s19 + $0xb28] sm:$0xf0] }
 0x183   : > { %v7292_v25 = vld [vmem:[%s7547_s19 + $0xd0c] sm:$0xf]  ;;  %v6243_v35 = vor.u32 %v7228_v18, %v6240_v20  ;;  %3809 = vmatpush.bf16.msrb.mxu0 %v5987_v31 }
 0x184   : > { %v6496_v26 = vld [vmem:[%s7547_s19 + $0xd28] sm:$0xf0] }
 0x185   : > { %v7356_v28 = vld [vmem:[%s7547_s19 + $0xf0c] sm:$0xf]  ;;  %v6499_v36 = vor.u32 %v7292_v25, %v6496_v26  ;;  %3822 = vmatpush.bf16.msrb.mxu1 %v6243_v35 }
 0x186   : > { %v6752_v29 = vld [vmem:[%s7547_s19 + $0xf28] sm:$0xf0] }
 0x187   : > { %v7156_v37 = vld [vmem:[%s7547_s19 + $0x8cc] sm:$0xf]  ;;  %v6755_v42 = vor.u32 %v7356_v28, %v6752_v29  ;;  %3835 = vmatpush.bf16.msrb.mxu2 %v6499_v36  ;;  %v3583_v28 = vpop.f32.mrf.mxu2  ;;  %v3596_v36 = vpop.f32.mrf.mxu3 }
 0x188   : > { %v5952_v38 = vld [vmem:[%s7547_s19 + $0x8e8] sm:$0xf0] }
 0x189   : > { %v7220_v40 = vld [vmem:[%s7547_s19 + $0xacc] sm:$0xf]  ;;  %v5955_v21 = vor.u32 %v7156_v37, %v5952_v38  ;;  %3848 = vmatpush.bf16.msrb.mxu3 %v6755_v42  ;;  %v5062_v37 = vld [vmem:[%s7547_s19 + $0x1d0] sm:$0xf] }
 0x18a   : > { %v6208_v43 = vld [vmem:[%s7547_s19 + $0xae8] sm:$0xf0]  ;;  %v6937_v38 = vld [vmem:[%s7547_s19 + $0x1ec] sm:$0xf0] }
 0x18b   : > { %v7284_v44 = vld [vmem:[%s7547_s19 + $0xccc] sm:$0xf]  ;;  %v6211_v49 = vor.u32 %v7220_v40, %v6208_v43  ;;  %3810 = vmatpush.bf16.msrb.mxu0 %v5955_v21  ;;  %v5318_v40 = vld [vmem:[%s7547_s19 + $0x3d0] sm:$0xf] }
 0x18c   : > { %v6464_v45 = vld [vmem:[%s7547_s19 + $0xce8] sm:$0xf0]  ;;  %v7001_v42 = vld [vmem:[%s7547_s19 + $0x3ec] sm:$0xf0] }
 0x18d   : > { %v7348_v47 = vld [vmem:[%s7547_s19 + $0xecc] sm:$0xf]  ;;  %v6467_v50 = vor.u32 %v7284_v44, %v6464_v45  ;;  %3823 = vmatpush.bf16.msrb.mxu1 %v6211_v49  ;;  %v5574_v43 = vld [vmem:[%s7547_s19 + $0x5d0] sm:$0xf]  ;;  %v5063_v49 = vor.u32 %v6937_v38, %v5062_v37 }
 0x18e   : > { %v6720_v48 = vld [vmem:[%s7547_s19 + $0xee8] sm:$0xf0]  ;;  %v7065_v44 = vld [vmem:[%s7547_s19 + $0x5ec] sm:$0xf0] }
 0x18f   : > { %v7148_v22 = vld [vmem:[%s7547_s19 + $0x88c] sm:$0xf]  ;;  %v6723_v27 = vor.u32 %v7348_v47, %v6720_v48  ;;  %3836 = vmatpush.bf16.msrb.mxu2 %v6467_v50  ;;  %v5830_v47 = vld [vmem:[%s7547_s19 + $0x7d0] sm:$0xf]  ;;  %v5319_v50 = vor.u32 %v7001_v42, %v5318_v40 }
 0x190   : > { %v5920_v51 = vld [vmem:[%s7547_s19 + $0x8a8] sm:$0xf0]  ;;  %v7129_v48 = vld [vmem:[%s7547_s19 + $0x7ec] sm:$0xf0] }
 0x191   : > { %v7212_v23 = vld [vmem:[%s7547_s19 + $0xa8c] sm:$0xf]  ;;  %v5923_v60 = vor.u32 %v7148_v22, %v5920_v51  ;;  %3849 = vmatpush.bf16.msrb.mxu3 %v6723_v27  ;;  %v5575_v22 = vor.u32 %v7065_v44, %v5574_v43  ;;  %v5030_v51 = vld [vmem:[%s7547_s19 + $0x190] sm:$0xf]  ;;  %v5831_v27 = vor.u32 %v7129_v48, %v5830_v47 }
 0x192   : > { %v6176_v54 = vld [vmem:[%s7547_s19 + $0xaa8] sm:$0xf0]  ;;  %v6969_v37 = vld [vmem:[%s7547_s19 + $0x2ec] sm:$0xf0] }
 0x193   : > { %v7276_v52 = vld [vmem:[%s7547_s19 + $0xc8c] sm:$0xf]  ;;  %v6179_v63 = vor.u32 %v7212_v23, %v6176_v54  ;;  %3811 = vmatpush.bf16.msrb.mxu0 %v5923_v60  ;;  %v6929_v23 = vld [vmem:[%s7547_s19 + $0x1ac] sm:$0xf0] }
 0x194   : > { %v6432_v55 = vld [vmem:[%s7547_s19 + $0xca8] sm:$0xf0]  ;;  %v6993_v54 = vld [vmem:[%s7547_s19 + $0x3ac] sm:$0xf0] }
 0x195   : > { %v7340_v58 = vld [vmem:[%s7547_s19 + $0xe8c] sm:$0xf]  ;;  %v6435_v0 = vor.u32 %v7276_v52, %v6432_v55  ;;  %3824 = vmatpush.bf16.msrb.mxu1 %v6179_v63  ;;  %v5542_v52 = vld [vmem:[%s7547_s19 + $0x590] sm:$0xf] }
 0x196   : > { %v6688_v59 = vld [vmem:[%s7547_s19 + $0xea8] sm:$0xf0]  ;;  %v7057_v55 = vld [vmem:[%s7547_s19 + $0x5ac] sm:$0xf0] }
 0x197   : > { %v7140_v1 = vld [vmem:[%s7547_s19 + $0x84c] sm:$0xf]  ;;  %v6691_v30 = vor.u32 %v7340_v58, %v6688_v59  ;;  %3837 = vmatpush.bf16.msrb.mxu2 %v6435_v0  ;;  %v5031_v58 = vor.u32 %v6929_v23, %v5030_v51  ;;  %v5287_v59 = vor.u32 %v6993_v54, %v5286_v53  ;;  %v5543_v60 = vor.u32 %v7057_v55, %v5542_v52  ;;  %v6921_v63 = vld [vmem:[%s7547_s19 + $0x16c] sm:$0xf0] }
 0x198   : > { %v5888_v2 = vld [vmem:[%s7547_s19 + $0x868] sm:$0xf0]  ;;  %v5254_v0 = vld [vmem:[%s7547_s19 + $0x350] sm:$0xf] }
 0x199   : > { %v7204_v3 = vld [vmem:[%s7547_s19 + $0xa4c] sm:$0xf]  ;;  %v5891_v13 = vor.u32 %v7140_v1, %v5888_v2  ;;  %3850 = vmatpush.bf16.msrb.mxu3 %v6691_v30  ;;  %v5799_v1 = vor.u32 %v7121_v57, %v5798_v56  ;;  %v6985_v2 = vld [vmem:[%s7547_s19 + $0x36c] sm:$0xf0] }
 0x19a   : > { %v6144_v6 = vld [vmem:[%s7547_s19 + $0xa68] sm:$0xf0]  ;;  %v5766_v30 = vld [vmem:[%s7547_s19 + $0x750] sm:$0xf] }
 0x19b   : > { %v7268_v8 = vld [vmem:[%s7547_s19 + $0xc4c] sm:$0xf]  ;;  %v6147_v18 = vor.u32 %v7204_v3, %v6144_v6  ;;  %3812 = vmatpush.bf16.msrb.mxu0 %v5891_v13  ;;  %v5510_v3 = vld [vmem:[%s7547_s19 + $0x550] sm:$0xf] }
 0x19c   : > { %v6400_v32 = vld [vmem:[%s7547_s19 + $0xc68] sm:$0xf0]  ;;  %v7113_v6 = vld [vmem:[%s7547_s19 + $0x76c] sm:$0xf0] }
 0x19d   : > { %v7332_v10 = vld [vmem:[%s7547_s19 + $0xe4c] sm:$0xf]  ;;  %v6403_v19 = vor.u32 %v7268_v8, %v6400_v32  ;;  %3825 = vmatpush.bf16.msrb.mxu1 %v6147_v18  ;;  %v5255_v8 = vor.u32 %v6985_v2, %v5254_v0  ;;  %v5511_v32 = vor.u32 %v7049_v4, %v5510_v3  ;;  %v6977_v13 = vld [vmem:[%s7547_s19 + $0x32c] sm:$0xf0] }
 0x19e   : > { %v6656_v12 = vld [vmem:[%s7547_s19 + $0xe68] sm:$0xf0]  ;;  %v5734_v18 = vld [vmem:[%s7547_s19 + $0x710] sm:$0xf] }
 0x19f   : > { %v7132_v14 = vld [vmem:[%s7547_s19 + $0x80c] sm:$0xf]  ;;  %v6659_v29 = vor.u32 %v7332_v10, %v6656_v12  ;;  %3838 = vmatpush.bf16.msrb.mxu2 %v6403_v19  ;;  %v4966_v10 = vld [vmem:[%s7547_s19 + $0x110] sm:$0xf] }
 0x1a0   : > { %v5856_v15 = vld [vmem:[%s7547_s19 + $0x828] sm:$0xf0]  ;;  %v6913_v12 = vld [vmem:[%s7547_s19 + $0x12c] sm:$0xf0] }
 0x1a1   : > { %v7196_v20 = vld [vmem:[%s7547_s19 + $0xa0c] sm:$0xf]  ;;  %v5859_v41 = vor.u32 %v7132_v14, %v5856_v15  ;;  %3851 = vmatpush.bf16.msrb.mxu3 %v6659_v29  ;;  %v5478_v14 = vld [vmem:[%s7547_s19 + $0x510] sm:$0xf]  ;;  %v3620_v29 = vpop.f32.mrf.mxu1 }
 0x1a2   : > { %v6112_v25 = vld [vmem:[%s7547_s19 + $0xa28] sm:$0xf0]  ;;  %v7041_v15 = vld [vmem:[%s7547_s19 + $0x52c] sm:$0xf0] }
 0x1a3   : > { %v7260_v26 = vld [vmem:[%s7547_s19 + $0xc0c] sm:$0xf]  ;;  %v6115_v45 = vor.u32 %v7196_v20, %v6112_v25  ;;  %3813 = vmatpush.bf16.msrb.mxu0 %v5859_v41  ;;  %v7105_v19 = vld [vmem:[%s7547_s19 + $0x72c] sm:$0xf0]  ;;  %v3607_v20 = vpop.f32.mrf.mxu0 }
 0x1a4   : > { %v6368_v31 = vld [vmem:[%s7547_s19 + $0xc28] sm:$0xf0]  ;;  %v3608_v28 = vadd.f32 %v3607_v20, %v8116_v61  ;;  %v5735_v36 = vor.u32 %v7105_v19, %v5734_v18  ;;  %v5446_v38 = vld [vmem:[%s7547_s19 + $0x4d0] sm:$0xf] }
 0x1a5   : > { %v7324_v34 = vld [vmem:[%s7547_s19 + $0xe0c] sm:$0xf]  ;;  %v6371_v46 = vor.u32 %v7260_v26, %v6368_v31  ;;  %3826 = vmatpush.bf16.msrb.mxu1 %v6115_v45  ;;  %v5479_v26 = vor.u32 %v7041_v15, %v5478_v14  ;;  %v4934_v31 = vld [vmem:[%s7547_s19 + $0xd0] sm:$0xf] }
 0x1a6   : > { %v6624_v35 = vld [vmem:[%s7547_s19 + $0xe28] sm:$0xf0]  ;;  %3814 = vmatmul.bf16.vlgmr.msrb.gmra.mxu0 %v8002_v16  ;;  %v5222_v16 = vld [vmem:[%s7547_s19 + $0x310] sm:$0xf]  ;;  %v3621_v41 = vadd.f32 %v3620_v29, %v3608_v28 }
 0x1a7   : > { %v6627_v21 = vor.u32 %v7324_v34, %v6624_v35  ;;  %3839 = vmatpush.bf16.msrb.mxu2 %v6371_v46  ;;  %3858 = vmatpush.bf16.msra.mxu0 %v5063_v49  ;;  %v5223_v25 = vor.u32 %v6977_v13, %v5222_v16  ;;  %v6905_v34 = vld [vmem:[%s7547_s19 + $0xec] sm:$0xf0]  ;;  %v3633_v46 = vpop.f32.mrf.mxu2 }
 0x1a8   : > { %3827 = vmatmul.bf16.vlgmr.msrb.gmra.mxu1 %v8010_v24  ;;  %v4967_v24 = vor.u32 %v6913_v12, %v4966_v10  ;;  %v5190_v35 = vld [vmem:[%s7547_s19 + $0x2d0] sm:$0xf]  ;;  %v4935_v61 = vor.u32 %v6905_v34, %v4934_v31 }
 0x1a9   : > { %3852 = vmatpush.bf16.msrb.mxu3 %v6627_v21  ;;  %3871 = vmatpush.bf16.msra.mxu1 %v5319_v50  ;;  %v7033_v40 = vld [vmem:[%s7547_s19 + $0x4ec] sm:$0xf0]  ;;  %v5191_v44 = vor.u32 %v6969_v37, %v5190_v35  ;;  %v3634_v50 = vadd.f32 %v3633_v46, %v3621_v41  ;;  %v3622_v0 = vpop.f32.mrf.mxu1 }
 0x1aa   : > { %3840 = vmatmul.bf16.vlgmr.msrb.gmra.mxu2 %v7996_v39  ;;  %v4999_v39 = vor.u32 %v6921_v63, %v4998_v62  ;;  %v5702_v42 = vld [vmem:[%s7547_s19 + $0x6d0] sm:$0xf]  ;;  %v5447_v45 = vor.u32 %v7033_v40, %v5446_v38 }
 0x1ab   : > { %3884 = vmatpush.bf16.msra.mxu2 %v5575_v22  ;;  %3859 = vmatpush.bf16.msra.mxu0 %v5031_v58  ;;  %v7097_v43 = vld [vmem:[%s7547_s19 + $0x6ec] sm:$0xf0]  ;;  %v3646_v22 = vpop.f32.mrf.mxu3  ;;  %v3609_v57 = vpop.f32.mrf.mxu0 }
 0x1ac   : > { %3853 = vmatmul.bf16.vlgmr.msrb.gmra.mxu3 %v8005_v17  ;;  %v5767_v17 = vor.u32 %v7113_v6, %v5766_v30  ;;  %v4902_v47 = vld [vmem:[%s7547_s19 + $0x90] sm:$0xf]  ;;  %v5703_v49 = vor.u32 %v7097_v43, %v5702_v42  ;;  %v3647_v52 = vadd.f32 %v3646_v22, %v3634_v50 }
 0x1ad   : > { %3897 = vmatpush.bf16.msra.mxu3 %v5831_v27  ;;  %3872 = vmatpush.bf16.msra.mxu1 %v5287_v59  ;;  %v6897_v48 = vld [vmem:[%s7547_s19 + $0xac] sm:$0xf0] }
 0x1ae   : > { %v5158_v21 = vld [vmem:[%s7547_s19 + $0x290] sm:$0xf]  ;;  %v4903_v55 = vor.u32 %v6897_v48, %v4902_v47 }
 0x1af   : > { %3885 = vmatpush.bf16.msra.mxu2 %v5543_v60  ;;  %3860 = vmatpush.bf16.msra.mxu0 %v4999_v39  ;;  %v6961_v51 = vld [vmem:[%s7547_s19 + $0x2ac] sm:$0xf0]  ;;  %v3635_v14 = vpop.f32.mrf.mxu2 }
 0x1b0   : > { %v5414_v23 = vld [vmem:[%s7547_s19 + $0x490] sm:$0xf]  ;;  %v5159_v58 = vor.u32 %v6961_v51, %v5158_v21 }
 0x1b1   : > { %3898 = vmatpush.bf16.msra.mxu3 %v5799_v1  ;;  %3873 = vmatpush.bf16.msra.mxu1 %v5255_v8  ;;  %v7025_v53 = vld [vmem:[%s7547_s19 + $0x4ac] sm:$0xf0]  ;;  %v4282_v1 = vrot.slane %v3647_v52, 6 }
 0x1b2   : > { %v5670_v27 = vld [vmem:[%s7547_s19 + $0x690] sm:$0xf]  ;;  %v5415_v59 = vor.u32 %v7025_v53, %v5414_v23 }
 0x1b3   : > { %3886 = vmatpush.bf16.msra.mxu2 %v5511_v32  ;;  %3861 = vmatpush.bf16.msra.mxu0 %v4967_v24  ;;  %v7089_v54 = vld [vmem:[%s7547_s19 + $0x6ac] sm:$0xf0]  ;;  %v8197_v39 = vsel %vm4288_vm0, %v8038_v5, %v4282_v1  ;;  %v3648_v20 = vpop.f32.mrf.mxu3 }
 0x1b4   : > { %v4870_v56 = vld [vmem:[%s7547_s19 + $0x50] sm:$0xf]  ;;  %v5671_v2 = vor.u32 %v7089_v54, %v5670_v27 }
 0x1b5   : > { %3899 = vmatpush.bf16.msra.mxu3 %v5767_v17  ;;  %3874 = vmatpush.bf16.msra.mxu1 %v5223_v25  ;;  %v6889_v60 = vld [vmem:[%s7547_s19 + $0x6c] sm:$0xf0] }
 0x1b6   : > { %v5126_v62 = vld [vmem:[%s7547_s19 + $0x250] sm:$0xf]  ;;  %v4871_v8 = vor.u32 %v6889_v60, %v4870_v56 }
 0x1b7   : > { %3887 = vmatpush.bf16.msra.mxu2 %v5479_v26  ;;  %3862 = vmatpush.bf16.msra.mxu0 %v4935_v61  ;;  %v6953_v63 = vld [vmem:[%s7547_s19 + $0x26c] sm:$0xf0] }
 0x1b8   : > { %v5382_v3 = vld [vmem:[%s7547_s19 + $0x450] sm:$0xf]  ;;  %v5127_v12 = vor.u32 %v6953_v63, %v5126_v62 }
 0x1b9   : > { %3900 = vmatpush.bf16.msra.mxu3 %v5735_v36  ;;  %3875 = vmatpush.bf16.msra.mxu1 %v5191_v44  ;;  %v7017_v4 = vld [vmem:[%s7547_s19 + $0x46c] sm:$0xf0] }
 0x1ba   : > { %v5638_v30 = vld [vmem:[%s7547_s19 + $0x650] sm:$0xf]  ;;  %v5383_v16 = vor.u32 %v7017_v4, %v5382_v3 }
 0x1bb   : > { %3888 = vmatpush.bf16.msra.mxu2 %v5447_v45  ;;  %v7081_v6 = vld [vmem:[%s7547_s19 + $0x66c] sm:$0xf0]  ;;  %3863 = vmatpush.bf16.msra.mxu0 %v4903_v55 }
 0x1bc   : > { %v4838_v32 = vld [vmem:[%s7547_s19 + $0x10] sm:$0xf]  ;;  %v5639_v15 = vor.u32 %v7081_v6, %v5638_v30 }
 0x1bd   : > { %3901 = vmatpush.bf16.msra.mxu3 %v5703_v49  ;;  %v6881_v10 = vld [vmem:[%s7547_s19 + $0x2c] sm:$0xf0]  ;;  %3876 = vmatpush.bf16.msra.mxu1 %v5159_v58 }
 0x1be   : > { %v5094_v17 = vld [vmem:[%s7547_s19 + $0x210] sm:$0xf]  ;;  %v4839_v29 = vor.u32 %v6881_v10, %v4838_v32 }
 0x1bf   : > { %3889 = vmatpush.bf16.msra.mxu2 %v5415_v59  ;;  %v6945_v13 = vld [vmem:[%s7547_s19 + $0x22c] sm:$0xf0]  ;;  %3864 = vmatpush.bf16.msra.mxu0 %v4871_v8  ;;  %v3659_v8 = vpop.f32.mrf.mxu0 }
 0x1c0   : > { %v5350_v5 = vld [vmem:[%s7547_s19 + $0x410] sm:$0xf]  ;;  %v5095_v36 = vor.u32 %v6945_v13, %v5094_v17  ;;  %v3672_v13 = vpop.f32.mrf.mxu1 }
 0x1c1   : > { %3902 = vmatpush.bf16.msra.mxu3 %v5671_v2  ;;  %v7009_v18 = vld [vmem:[%s7547_s19 + $0x42c] sm:$0xf0]  ;;  %3877 = vmatpush.bf16.msra.mxu1 %v5127_v12 }
 0x1c2   : > { %v5606_v19 = vld [vmem:[%s7547_s19 + $0x610] sm:$0xf]  ;;  %v5351_v37 = vor.u32 %v7009_v18, %v5350_v5 }
 0x1c3   : > { %v7073_v24 = vld [vmem:[%s7547_s19 + $0x62c] sm:$0xf0]  ;;  %3890 = vmatpush.bf16.msra.mxu2 %v5383_v16  ;;  %3865 = vmatpush.bf16.msra.mxu0 %v4839_v29 }
 0x1c4   : > { %v6086_v25 = vld [vmem:[%s7547_s19 + $0x9d0] sm:$0xf]  ;;  %v5607_v41 = vor.u32 %v7073_v24, %v5606_v19  ;;  %v3673_v19 = vadd.f32 %v3672_v13, %v3659_v8  ;;  %v7061_v8 = vld [vmem:[%s7547_s19 + $0x5d4] sm:$0xf] }
 0x1c5   : > { %v7193_v26 = vld [vmem:[%s7547_s19 + $0x9ec] sm:$0xf0]  ;;  %3903 = vmatpush.bf16.msra.mxu3 %v5639_v15  ;;  %3878 = vmatpush.bf16.msra.mxu1 %v5095_v36 }
 0x1c6   : > { %v6342_v28 = vld [vmem:[%s7547_s19 + $0xbd0] sm:$0xf]  ;;  %v6087_v42 = vor.u32 %v7193_v26, %v6086_v25  ;;  %3866 = vmatmul.bf16.vlgmr.msra.gmra.mxu0 %v8083_v9 }
 0x1c7   : > { %v7257_v31 = vld [vmem:[%s7547_s19 + $0xbec] sm:$0xf0]  ;;  %3891 = vmatpush.bf16.msra.mxu2 %v5351_v37 }
 0x1c8   : > { %v6598_v34 = vld [vmem:[%s7547_s19 + $0xdd0] sm:$0xf]  ;;  %v6343_v43 = vor.u32 %v7257_v31, %v6342_v28  ;;  %3910 = vmatpush.bf16.msrb.mxu0 %v6087_v42  ;;  %3879 = vmatmul.bf16.vlgmr.msra.gmra.mxu1 %v8089_v11  ;;  %v3698_v42 = vpop.f32.mrf.mxu3 }
 0x1c9   : > { %v7321_v35 = vld [vmem:[%s7547_s19 + $0xdec] sm:$0xf0]  ;;  %3904 = vmatpush.bf16.msra.mxu3 %v5607_v41 }
 0x1ca   : > { %v6854_v38 = vld [vmem:[%s7547_s19 + $0xfd0] sm:$0xf]  ;;  %v6599_v61 = vor.u32 %v7321_v35, %v6598_v34  ;;  %3923 = vmatpush.bf16.msrb.mxu1 %v6343_v43  ;;  %3892 = vmatmul.bf16.vlgmr.msra.gmra.mxu2 %v8078_v7  ;;  %v3685_v35 = vpop.f32.mrf.mxu2 }
 0x1cb   : > { %v7385_v40 = vld [vmem:[%s7547_s19 + $0xfec] sm:$0xf0]  ;;  %v3686_v41 = vadd.f32 %v3685_v35, %v3673_v19  ;;  %v5032_v19 = vld [vmem:[%s7547_s19 + $0x1b0] sm:$0xf0] }
 0x1cc   : > { %v6054_v44 = vld [vmem:[%s7547_s19 + $0x990] sm:$0xf]  ;;  %v6855_v47 = vor.u32 %v7385_v40, %v6854_v38  ;;  %3936 = vmatpush.bf16.msrb.mxu2 %v6599_v61  ;;  %3905 = vmatmul.bf16.vlgmr.msra.gmra.mxu3 %v8086_v33 }
 0x1cd   : > { %v7185_v45 = vld [vmem:[%s7547_s19 + $0x9ac] sm:$0xf0] }
 0x1ce   : > { %v6310_v46 = vld [vmem:[%s7547_s19 + $0xb90] sm:$0xf]  ;;  %v6055_v51 = vor.u32 %v7185_v45, %v6054_v44  ;;  %3949 = vmatpush.bf16.msrb.mxu3 %v6855_v47  ;;  %v8259_v45 = vadd.f32 %v3698_v42, %v3686_v41  ;;  %v8296_v42 = vld [vmem:[#allocation1 + $0x36] sm:$0xff] }
 0x1cf   : > { %v7249_v48 = vld [vmem:[%s7547_s19 + $0xbac] sm:$0xf0] }
 0x1d0   : > { %v6566_v21 = vld [vmem:[%s7547_s19 + $0xd90] sm:$0xf]  ;;  %v6311_v23 = vor.u32 %v7249_v48, %v6310_v46  ;;  %3911 = vmatpush.bf16.msrb.mxu0 %v6055_v51  ;;  %v3661_v46 = vpop.f32.mrf.mxu0 }
 0x1d1   : > { %v7313_v49 = vld [vmem:[%s7547_s19 + $0xdac] sm:$0xf0]  ;;  %v8302_v46 = vld [vmem:[#allocation1 + $0x24] sm:$0xff] }
 0x1d2   : > { %v6822_v50 = vld [vmem:[%s7547_s19 + $0xf90] sm:$0xf]  ;;  %v6567_v53 = vor.u32 %v7313_v49, %v6566_v21  ;;  %3924 = vmatpush.bf16.msrb.mxu1 %v6311_v23 }
 0x1d3   : > { %v7377_v22 = vld [vmem:[%s7547_s19 + $0xfac] sm:$0xf0] }
 0x1d4   : > { %v6022_v27 = vld [vmem:[%s7547_s19 + $0x950] sm:$0xf]  ;;  %v6823_v55 = vor.u32 %v7377_v22, %v6822_v50  ;;  %3937 = vmatpush.bf16.msrb.mxu2 %v6567_v53  ;;  %v3674_v22 = vpop.f32.mrf.mxu1 }
 0x1d5   : > { %v7177_v54 = vld [vmem:[%s7547_s19 + $0x96c] sm:$0xf0] }
 0x1d6   : > { %v6278_v52 = vld [vmem:[%s7547_s19 + $0xb50] sm:$0xf]  ;;  %v6023_v62 = vor.u32 %v7177_v54, %v6022_v27  ;;  %3950 = vmatpush.bf16.msrb.mxu3 %v6823_v55 }
 0x1d7   : > { %v7241_v56 = vld [vmem:[%s7547_s19 + $0xb6c] sm:$0xf0] }
 0x1d8   : > { %v6534_v57 = vld [vmem:[%s7547_s19 + $0xd50] sm:$0xf]  ;;  %v6279_v63 = vor.u32 %v7241_v56, %v6278_v52  ;;  %3912 = vmatpush.bf16.msrb.mxu0 %v6023_v62 }
 0x1d9   : > { %v7305_v58 = vld [vmem:[%s7547_s19 + $0xd6c] sm:$0xf0] }
 0x1da   : > { %v6790_v59 = vld [vmem:[%s7547_s19 + $0xf50] sm:$0xf]  ;;  %v6535_v0 = vor.u32 %v7305_v58, %v6534_v57  ;;  %3925 = vmatpush.bf16.msrb.mxu1 %v6279_v63 }
 0x1db   : > { %v7369_v60 = vld [vmem:[%s7547_s19 + $0xf6c] sm:$0xf0] }
 0x1dc   : > { %v5990_v7 = vld [vmem:[%s7547_s19 + $0x910] sm:$0xf]  ;;  %v6791_v9 = vor.u32 %v7369_v60, %v6790_v59  ;;  %3938 = vmatpush.bf16.msrb.mxu2 %v6535_v0  ;;  %v3687_v0 = vpop.f32.mrf.mxu2 }
 0x1dd   : > { %v7169_v1 = vld [vmem:[%s7547_s19 + $0x92c] sm:$0xf0]  ;;  %v6901_v0 = vld [vmem:[%s7547_s19 + $0xd4] sm:$0xf] }
 0x1de   : > { %v6246_v2 = vld [vmem:[%s7547_s19 + $0xb10] sm:$0xf]  ;;  %v5991_v11 = vor.u32 %v7169_v1, %v5990_v7  ;;  %3951 = vmatpush.bf16.msrb.mxu3 %v6791_v9 }
 0x1df   : > { %v7233_v3 = vld [vmem:[%s7547_s19 + $0xb2c] sm:$0xf0] }
 0x1e0   : > { %v6502_v33 = vld [vmem:[%s7547_s19 + $0xd10] sm:$0xf]  ;;  %v6247_v32 = vor.u32 %v7233_v3, %v6246_v2  ;;  %3913 = vmatpush.bf16.msrb.mxu0 %v5991_v11  ;;  %v3700_v3 = vpop.f32.mrf.mxu3  ;;  %v5320_v11 = vld [vmem:[%s7547_s19 + $0x3f0] sm:$0xf0] }
 0x1e1   : > { %v7297_v4 = vld [vmem:[%s7547_s19 + $0xd2c] sm:$0xf0]  ;;  %v5192_v3 = vld [vmem:[%s7547_s19 + $0x2f0] sm:$0xf0] }
 0x1e2   : > { %v6758_v30 = vld [vmem:[%s7547_s19 + $0xf10] sm:$0xf]  ;;  %v6503_v10 = vor.u32 %v7297_v4, %v6502_v33  ;;  %3926 = vmatpush.bf16.msrb.mxu1 %v6247_v32  ;;  %v6933_v33 = vld [vmem:[%s7547_s19 + $0x1d4] sm:$0xf] }
 0x1e3   : > { %v7361_v6 = vld [vmem:[%s7547_s19 + $0xf2c] sm:$0xf0]  ;;  %v5064_v4 = vld [vmem:[%s7547_s19 + $0x1f0] sm:$0xf0] }
 0x1e4   : > { %v5958_v12 = vld [vmem:[%s7547_s19 + $0x8d0] sm:$0xf]  ;;  %v6759_v5 = vor.u32 %v7361_v6, %v6758_v30  ;;  %3939 = vmatpush.bf16.msrb.mxu2 %v6503_v10  ;;  %v6997_v30 = vld [vmem:[%s7547_s19 + $0x3d4] sm:$0xf] }
 0x1e5   : > { %v7161_v16 = vld [vmem:[%s7547_s19 + $0x8ec] sm:$0xf0]  ;;  %v5576_v32 = vld [vmem:[%s7547_s19 + $0x5f0] sm:$0xf0] }
 0x1e6   : > { %v6214_v17 = vld [vmem:[%s7547_s19 + $0xad0] sm:$0xf]  ;;  %v5959_v25 = vor.u32 %v7161_v16, %v5958_v12  ;;  %3952 = vmatpush.bf16.msrb.mxu3 %v6759_v5  ;;  %v7125_v16 = vld [vmem:[%s7547_s19 + $0x7d4] sm:$0xf]  ;;  %v5067_v5 = vor.u32 %v6933_v33, %v5064_v4 }
 0x1e7   : > { %v7225_v14 = vld [vmem:[%s7547_s19 + $0xaec] sm:$0xf0]  ;;  %v7029_v33 = vld [vmem:[%s7547_s19 + $0x4d4] sm:$0xf] }
 0x1e8   : > { %v6470_v15 = vld [vmem:[%s7547_s19 + $0xcd0] sm:$0xf]  ;;  %v6215_v26 = vor.u32 %v7225_v14, %v6214_v17  ;;  %3914 = vmatpush.bf16.msrb.mxu0 %v5959_v25  ;;  %v5832_v17 = vld [vmem:[%s7547_s19 + $0x7f0] sm:$0xf0]  ;;  %v5323_v14 = vor.u32 %v6997_v30, %v5320_v11 }
 0x1e9   : > { %v7289_v18 = vld [vmem:[%s7547_s19 + $0xcec] sm:$0xf0]  ;;  %v5288_v25 = vld [vmem:[%s7547_s19 + $0x3b0] sm:$0xf0] }
 0x1ea   : > { %v6726_v24 = vld [vmem:[%s7547_s19 + $0xed0] sm:$0xf]  ;;  %v6471_v28 = vor.u32 %v7289_v18, %v6470_v15  ;;  %3927 = vmatpush.bf16.msrb.mxu1 %v6215_v26  ;;  %v5579_v15 = vor.u32 %v7061_v8, %v5576_v32  ;;  %v6925_v18 = vld [vmem:[%s7547_s19 + $0x194] sm:$0xf] }
 0x1eb   : > { %v7353_v20 = vld [vmem:[%s7547_s19 + $0xeec] sm:$0xf0]  ;;  %v7053_v26 = vld [vmem:[%s7547_s19 + $0x594] sm:$0xf] }
 0x1ec   : > { %v5926_v29 = vld [vmem:[%s7547_s19 + $0x890] sm:$0xf]  ;;  %v6727_v36 = vor.u32 %v7353_v20, %v6726_v24  ;;  %3940 = vmatpush.bf16.msrb.mxu2 %v6471_v28  ;;  %v6989_v24 = vld [vmem:[%s7547_s19 + $0x394] sm:$0xf]  ;;  %v5835_v20 = vor.u32 %v7125_v16, %v5832_v17  ;;  %v8336_v17 = vpop.f32.mrf.mxu2 }
 0x1ed   : > { %v7153_v31 = vld [vmem:[%s7547_s19 + $0x8ac] sm:$0xf0]  ;;  %v5544_v28 = vld [vmem:[%s7547_s19 + $0x5b0] sm:$0xf0]  ;;  %v5291_v35 = vor.u32 %v6989_v24, %v5288_v25 }
 0x1ee   : > { %v6182_v34 = vld [vmem:[%s7547_s19 + $0xa90] sm:$0xf]  ;;  %v5927_v44 = vor.u32 %v7153_v31, %v5926_v29  ;;  %3953 = vmatpush.bf16.msrb.mxu3 %v6727_v36  ;;  %v7117_v29 = vld [vmem:[%s7547_s19 + $0x794] sm:$0xf]  ;;  %v5547_v36 = vor.u32 %v7053_v26, %v5544_v28 }
 0x1ef   : > { %v7217_v37 = vld [vmem:[%s7547_s19 + $0xaac] sm:$0xf0]  ;;  %v5800_v31 = vld [vmem:[%s7547_s19 + $0x7b0] sm:$0xf0] }
 0x1f0   : > { %v6438_v38 = vld [vmem:[%s7547_s19 + $0xc90] sm:$0xf]  ;;  %v6183_v47 = vor.u32 %v7217_v37, %v6182_v34  ;;  %3915 = vmatpush.bf16.msrb.mxu0 %v5927_v44  ;;  %v5035_v34 = vor.u32 %v6925_v18, %v5032_v19  ;;  %v6917_v37 = vld [vmem:[%s7547_s19 + $0x154] sm:$0xf]  ;;  %v5803_v41 = vor.u32 %v7117_v29, %v5800_v31  ;;  %v8341_v18 = vpop.f32.mrf.mxu3 }
 0x1f1   : > { %v7281_v40 = vld [vmem:[%s7547_s19 + $0xcac] sm:$0xf0]  ;;  %v5512_v44 = vld [vmem:[%s7547_s19 + $0x570] sm:$0xf0] }
 0x1f2   : > { %v6694_v43 = vld [vmem:[%s7547_s19 + $0xe90] sm:$0xf]  ;;  %v6439_v48 = vor.u32 %v7281_v40, %v6438_v38  ;;  %3928 = vmatpush.bf16.msrb.mxu1 %v6183_v47  ;;  %v5000_v38 = vld [vmem:[%s7547_s19 + $0x170] sm:$0xf0]  ;;  %v8305_v47 = vld [vmem:[#allocation1 + $0x3f] sm:$0xff] }
 0x1f3   : > { %v7345_v61 = vld [vmem:[%s7547_s19 + $0xeac] sm:$0xf0]  ;;  %v6981_v40 = vld [vmem:[%s7547_s19 + $0x354] sm:$0xf] }
 0x1f4   : > { %v5894_v21 = vld [vmem:[%s7547_s19 + $0x850] sm:$0xf]  ;;  %v6695_v51 = vor.u32 %v7345_v61, %v6694_v43  ;;  %3941 = vmatpush.bf16.msrb.mxu2 %v6439_v48  ;;  %v5256_v43 = vld [vmem:[%s7547_s19 + $0x370] sm:$0xf0] }
 0x1f5   : > { %v7145_v49 = vld [vmem:[%s7547_s19 + $0x86c] sm:$0xf0]  ;;  %v7045_v61 = vld [vmem:[%s7547_s19 + $0x554] sm:$0xf]  ;;  %v5259_v22 = vor.u32 %v6981_v40, %v5256_v43 }
 0x1f6   : > { %v6150_v50 = vld [vmem:[%s7547_s19 + $0xa50] sm:$0xf]  ;;  %v5895_v55 = vor.u32 %v7145_v49, %v5894_v21  ;;  %3954 = vmatpush.bf16.msrb.mxu3 %v6695_v51  ;;  %v7109_v48 = vld [vmem:[%s7547_s19 + $0x754] sm:$0xf]  ;;  %v5003_v49 = vor.u32 %v6917_v37, %v5000_v38  ;;  %v5515_v51 = vor.u32 %v7045_v61, %v5512_v44 }
 0x1f7   : > { %v7209_v23 = vld [vmem:[%s7547_s19 + $0xa6c] sm:$0xf0]  ;;  %v5768_v21 = vld [vmem:[%s7547_s19 + $0x770] sm:$0xf0] }
 0x1f8   : > { %v6406_v53 = vld [vmem:[%s7547_s19 + $0xc50] sm:$0xf]  ;;  %v6151_v58 = vor.u32 %v7209_v23, %v6150_v50  ;;  %3916 = vmatpush.bf16.msrb.mxu0 %v5895_v55  ;;  %v6909_v23 = vld [vmem:[%s7547_s19 + $0x114] sm:$0xf] }
 0x1f9   : > { %v7273_v27 = vld [vmem:[%s7547_s19 + $0xc6c] sm:$0xf0]  ;;  %v7037_v55 = vld [vmem:[%s7547_s19 + $0x514] sm:$0xf] }
 0x1fa   : > { %v6662_v54 = vld [vmem:[%s7547_s19 + $0xe50] sm:$0xf]  ;;  %v6407_v59 = vor.u32 %v7273_v27, %v6406_v53  ;;  %3929 = vmatpush.bf16.msrb.mxu1 %v6151_v58  ;;  %v4968_v53 = vld [vmem:[%s7547_s19 + $0x130] sm:$0xf0] }
 0x1fb   : > { %v7337_v52 = vld [vmem:[%s7547_s19 + $0xe6c] sm:$0xf0]  ;;  %v6973_v27 = vld [vmem:[%s7547_s19 + $0x314] sm:$0xf] }
 0x1fc   : > { %v5862_v56 = vld [vmem:[%s7547_s19 + $0x810] sm:$0xf]  ;;  %v6663_v7 = vor.u32 %v7337_v52, %v6662_v54  ;;  %3942 = vmatpush.bf16.msrb.mxu2 %v6407_v59  ;;  %v5771_v54 = vor.u32 %v7109_v48, %v5768_v21  ;;  %v5224_v52 = vld [vmem:[%s7547_s19 + $0x330] sm:$0xf0]  ;;  %v4971_v59 = vor.u32 %v6909_v23, %v4968_v53  ;;  %v3739_v53 = vpop.f32.mrf.mxu2 }
 0x1fd   : > { %v7137_v57 = vld [vmem:[%s7547_s19 + $0x82c] sm:$0xf0]  ;;  %v5736_v58 = vld [vmem:[%s7547_s19 + $0x730] sm:$0xf0] }
 0x1fe   : > { %v6118_v60 = vld [vmem:[%s7547_s19 + $0xa10] sm:$0xf]  ;;  %v5863_v6 = vor.u32 %v7137_v57, %v5862_v56  ;;  %3955 = vmatpush.bf16.msrb.mxu3 %v6663_v7  ;;  %v5480_v56 = vld [vmem:[%s7547_s19 + $0x530] sm:$0xf0] }
 0x1ff   : > { %v7201_v62 = vld [vmem:[%s7547_s19 + $0xa2c] sm:$0xf0]  ;;  %v7101_v57 = vld [vmem:[%s7547_s19 + $0x714] sm:$0xf] }
 0x200   : > { %v6374_v63 = vld [vmem:[%s7547_s19 + $0xc10] sm:$0xf]  ;;  %v6119_v10 = vor.u32 %v7201_v62, %v6118_v60  ;;  %3917 = vmatpush.bf16.msrb.mxu0 %v5863_v6  ;;  %v8321_v60 = vpop.f32.mrf.mxu0  ;;  %v5227_v62 = vor.u32 %v6973_v27, %v5224_v52  ;;  %v4936_v7 = vld [vmem:[%s7547_s19 + $0xf0] sm:$0xf0] }
 0x201   : > { %v7265_v1 = vld [vmem:[%s7547_s19 + $0xc2c] sm:$0xf0]  ;;  %v5448_v4 = vld [vmem:[%s7547_s19 + $0x4f0] sm:$0xf0]  ;;  %v4939_v11 = vor.u32 %v6901_v0, %v4936_v7 }
 0x202   : > { %v6630_v2 = vld [vmem:[%s7547_s19 + $0xe10] sm:$0xf]  ;;  %v6375_v12 = vor.u32 %v7265_v1, %v6374_v63  ;;  %3930 = vmatpush.bf16.msrb.mxu1 %v6119_v10  ;;  %v5483_v63 = vor.u32 %v7037_v55, %v5480_v56  ;;  %v6965_v1 = vld [vmem:[%s7547_s19 + $0x2d4] sm:$0xf]  ;;  %v5451_v32 = vor.u32 %v7029_v33, %v5448_v4  ;;  %v3752_v56 = vpop.f32.mrf.mxu3 }
 0x203   : > { %v7329_v9 = vld [vmem:[%s7547_s19 + $0xe2c] sm:$0xf0]  ;;  %3918 = vmatmul.bf16.vlgmr.msrb.gmra.mxu0 %v8302_v46  ;;  %v7093_v30 = vld [vmem:[%s7547_s19 + $0x6d4] sm:$0xf]  ;;  %v5195_v8 = vor.u32 %v6965_v1, %v5192_v3 }
 0x204   : > { %v6631_v13 = vor.u32 %v7329_v9, %v6630_v2  ;;  %3943 = vmatpush.bf16.msrb.mxu2 %v6375_v12  ;;  %3962 = vmatpush.bf16.msra.mxu0 %v5067_v5  ;;  %v8310_v50 = vld [vmem:[#allocation1 + $0x2d] sm:$0xff]  ;;  %v8326_v2 = vpop.f32.mrf.mxu1  ;;  %v5739_v9 = vor.u32 %v7101_v57, %v5736_v58 }
 0x205   : > { %3931 = vmatmul.bf16.vlgmr.msrb.gmra.mxu1 %v8310_v50  ;;  %v5704_v6 = vld [vmem:[%s7547_s19 + $0x6f0] sm:$0xf0] }
 0x206   : > { %3956 = vmatpush.bf16.msrb.mxu3 %v6631_v13  ;;  %3975 = vmatpush.bf16.msra.mxu1 %v5323_v14  ;;  %v6893_v10 = vld [vmem:[%s7547_s19 + $0x94] sm:$0xf]  ;;  %v5707_v13 = vor.u32 %v7093_v30, %v5704_v6 }
 0x207   : > { %3944 = vmatmul.bf16.vlgmr.msrb.gmra.mxu2 %v8296_v42  ;;  %v4904_v12 = vld [vmem:[%s7547_s19 + $0xb0] sm:$0xf0] }
 0x208   : > { %3988 = vmatpush.bf16.msra.mxu2 %v5579_v15  ;;  %3963 = vmatpush.bf16.msra.mxu0 %v5035_v34  ;;  %v6957_v16 = vld [vmem:[%s7547_s19 + $0x294] sm:$0xf]  ;;  %v3713_v25 = vpop.f32.mrf.mxu0 }
 0x209   : > { %3957 = vmatmul.bf16.vlgmr.msrb.gmra.mxu3 %v8305_v47  ;;  %v5160_v5 = vld [vmem:[%s7547_s19 + $0x2b0] sm:$0xf0] }
 0x20a   : > { %4001 = vmatpush.bf16.msra.mxu3 %v5835_v20  ;;  %3976 = vmatpush.bf16.msra.mxu1 %v5291_v35  ;;  %v7021_v14 = vld [vmem:[%s7547_s19 + $0x494] sm:$0xf]  ;;  %v4907_v20 = vor.u32 %v6893_v10, %v4904_v12  ;;  %v5163_v26 = vor.u32 %v6957_v16, %v5160_v5 }
 0x20b   : > { %v5416_v15 = vld [vmem:[%s7547_s19 + $0x4b0] sm:$0xf0] }
 0x20c   : > { %3989 = vmatpush.bf16.msra.mxu2 %v5547_v36  ;;  %3964 = vmatpush.bf16.msra.mxu0 %v5003_v49  ;;  %v7085_v19 = vld [vmem:[%s7547_s19 + $0x694] sm:$0xf]  ;;  %v5419_v28 = vor.u32 %v7021_v14, %v5416_v15  ;;  %v3726_v35 = vpop.f32.mrf.mxu1 }
 0x20d   : > { %v5672_v24 = vld [vmem:[%s7547_s19 + $0x6b0] sm:$0xf0] }
 0x20e   : > { %4002 = vmatpush.bf16.msra.mxu3 %v5803_v41  ;;  %3977 = vmatpush.bf16.msra.mxu1 %v5259_v22  ;;  %v6885_v29 = vld [vmem:[%s7547_s19 + $0x54] sm:$0xf]  ;;  %v5675_v36 = vor.u32 %v7085_v19, %v5672_v24 }
 0x20f   : > { %v4872_v31 = vld [vmem:[%s7547_s19 + $0x70] sm:$0xf0] }
 0x210   : > { %3990 = vmatpush.bf16.msra.mxu2 %v5515_v51  ;;  %3965 = vmatpush.bf16.msra.mxu0 %v4971_v59  ;;  %v6949_v34 = vld [vmem:[%s7547_s19 + $0x254] sm:$0xf]  ;;  %v4875_v61 = vor.u32 %v6885_v29, %v4872_v31  ;;  %v8405_v56 = vpop.f32.mrf.mxu0 }
 0x211   : > { %v5128_v37 = vld [vmem:[%s7547_s19 + $0x270] sm:$0xf0] }
 0x212   : > { %4003 = vmatpush.bf16.msra.mxu3 %v5771_v54  ;;  %3978 = vmatpush.bf16.msra.mxu1 %v5227_v62  ;;  %v7013_v38 = vld [vmem:[%s7547_s19 + $0x454] sm:$0xf]  ;;  %v5131_v21 = vor.u32 %v6949_v34, %v5128_v37 }
 0x213   : > { %v5384_v40 = vld [vmem:[%s7547_s19 + $0x470] sm:$0xf0] }
 0x214   : > { %3991 = vmatpush.bf16.msra.mxu2 %v5483_v63  ;;  %3966 = vmatpush.bf16.msra.mxu0 %v4939_v11  ;;  %v7077_v41 = vld [vmem:[%s7547_s19 + $0x654] sm:$0xf]  ;;  %v5387_v49 = vor.u32 %v7013_v38, %v5384_v40  ;;  %v8388_v40 = vld [vmem:[#allocation1] sm:$0xff] }
 0x215   : > { %v5640_v43 = vld [vmem:[%s7547_s19 + $0x670] sm:$0xf0] }
 0x216   : > { %4004 = vmatpush.bf16.msra.mxu3 %v5739_v9  ;;  %3979 = vmatpush.bf16.msra.mxu1 %v5195_v8  ;;  %v6877_v44 = vld [vmem:[%s7547_s19 + $0x14] sm:$0xf]  ;;  %v5643_v27 = vor.u32 %v7077_v41, %v5640_v43  ;;  %v8391_v41 = vld [vmem:[#allocation1 + $0x1b] sm:$0xff] }
 0x217   : > { %v4840_v48 = vld [vmem:[%s7547_s19 + $0x30] sm:$0xf0] }
 0x218   : > { %3992 = vmatpush.bf16.msra.mxu2 %v5451_v32  ;;  %3967 = vmatpush.bf16.msra.mxu0 %v4907_v20  ;;  %v6941_v22 = vld [vmem:[%s7547_s19 + $0x214] sm:$0xf]  ;;  %v4843_v62 = vor.u32 %v6877_v44, %v4840_v48 }
 0x219   : > { %v5096_v51 = vld [vmem:[%s7547_s19 + $0x230] sm:$0xf0] }
 0x21a   : > { %4005 = vmatpush.bf16.msra.mxu3 %v5707_v13  ;;  %3980 = vmatpush.bf16.msra.mxu1 %v5163_v26  ;;  %v7005_v23 = vld [vmem:[%s7547_s19 + $0x414] sm:$0xf]  ;;  %v5099_v1 = vor.u32 %v6941_v22, %v5096_v51 }
 0x21b   : > { %v5352_v54 = vld [vmem:[%s7547_s19 + $0x430] sm:$0xf0] }
 0x21c   : > { %3993 = vmatpush.bf16.msra.mxu2 %v5419_v28  ;;  %v7069_v52 = vld [vmem:[%s7547_s19 + $0x614] sm:$0xf]  ;;  %3968 = vmatpush.bf16.msra.mxu0 %v4875_v61  ;;  %v5355_v9 = vor.u32 %v7005_v23, %v5352_v54  ;;  %v8394_v61 = vld [vmem:[#allocation1 + $0x9] sm:$0xff] }
 0x21d   : > { %v5608_v55 = vld [vmem:[%s7547_s19 + $0x630] sm:$0xf0] }
 0x21e   : > { %4006 = vmatpush.bf16.msra.mxu3 %v5675_v36  ;;  %v7189_v57 = vld [vmem:[%s7547_s19 + $0x9d4] sm:$0xf]  ;;  %3981 = vmatpush.bf16.msra.mxu1 %v5131_v21  ;;  %v5611_v4 = vor.u32 %v7069_v52, %v5608_v55 }
 0x21f   : > { %v6088_v58 = vld [vmem:[%s7547_s19 + $0x9f0] sm:$0xf0] }
 0x220   : > { %v7253_v59 = vld [vmem:[%s7547_s19 + $0xbd4] sm:$0xf]  ;;  %3994 = vmatpush.bf16.msra.mxu2 %v5387_v49  ;;  %v6091_v30 = vor.u32 %v7189_v57, %v6088_v58  ;;  %3969 = vmatpush.bf16.msra.mxu0 %v4843_v62 }
 0x221   : > { %v6344_v63 = vld [vmem:[%s7547_s19 + $0xbf0] sm:$0xf0] }
 0x222   : > { %v7317_v0 = vld [vmem:[%s7547_s19 + $0xdd4] sm:$0xf]  ;;  %4007 = vmatpush.bf16.msra.mxu3 %v5643_v27  ;;  %v6347_v6 = vor.u32 %v7253_v59, %v6344_v63  ;;  %3982 = vmatpush.bf16.msra.mxu1 %v5099_v1 }
 0x223   : > { %v6600_v7 = vld [vmem:[%s7547_s19 + $0xdf0] sm:$0xf0]  ;;  %3970 = vmatmul.bf16.vlgmr.msra.gmra.mxu0 %v8388_v40 }
 0x224   : > { %v7381_v3 = vld [vmem:[%s7547_s19 + $0xfd4] sm:$0xf]  ;;  %v6603_v11 = vor.u32 %v7317_v0, %v6600_v7  ;;  %3995 = vmatpush.bf16.msra.mxu2 %v5355_v9  ;;  %4014 = vmatpush.bf16.msrb.mxu0 %v6091_v30  ;;  %v8410_v0 = vpop.f32.mrf.mxu1 }
 0x225   : > { %v6856_v33 = vld [vmem:[%s7547_s19 + $0xff0] sm:$0xf0]  ;;  %3983 = vmatmul.bf16.vlgmr.msra.gmra.mxu1 %v8394_v61 }
 0x226   : > { %v7181_v8 = vld [vmem:[%s7547_s19 + $0x994] sm:$0xf]  ;;  %v6859_v12 = vor.u32 %v7381_v3, %v6856_v33  ;;  %4008 = vmatpush.bf16.msra.mxu3 %v5611_v4  ;;  %4027 = vmatpush.bf16.msrb.mxu1 %v6347_v6 }
 0x227   : > { %v6056_v32 = vld [vmem:[%s7547_s19 + $0x9b0] sm:$0xf0] }
 0x228   : > { %v7245_v10 = vld [vmem:[%s7547_s19 + $0xb94] sm:$0xf]  ;;  %v6059_v19 = vor.u32 %v7181_v8, %v6056_v32  ;;  %4040 = vmatpush.bf16.msrb.mxu2 %v6603_v11 }
 0x229   : > { %v6312_v16 = vld [vmem:[%s7547_s19 + $0xbb0] sm:$0xf0]  ;;  %4009 = vmatmul.bf16.vlgmr.msra.gmra.mxu3 %v8391_v41 }
 0x22a   : > { %v7309_v13 = vld [vmem:[%s7547_s19 + $0xd94] sm:$0xf]  ;;  %v6315_v24 = vor.u32 %v7245_v10, %v6312_v16  ;;  %4053 = vmatpush.bf16.msrb.mxu3 %v6859_v12  ;;  %4015 = vmatpush.bf16.msrb.mxu0 %v6059_v19  ;;  %v8420_v12 = vpop.f32.mrf.mxu2 }
 0x22b   : > { %v6568_v5 = vld [vmem:[%s7547_s19 + $0xdb0] sm:$0xf0] }
 0x22c   : > { %v7373_v14 = vld [vmem:[%s7547_s19 + $0xf94] sm:$0xf]  ;;  %v6571_v20 = vor.u32 %v7309_v13, %v6568_v5  ;;  %4028 = vmatpush.bf16.msrb.mxu1 %v6315_v24 }
 0x22d   : > { %v6824_v15 = vld [vmem:[%s7547_s19 + $0xfb0] sm:$0xf0] }
 0x22e   : > { %v7173_v25 = vld [vmem:[%s7547_s19 + $0x954] sm:$0xf]  ;;  %v6827_v29 = vor.u32 %v7373_v14, %v6824_v15  ;;  %4041 = vmatpush.bf16.msrb.mxu2 %v6571_v20  ;;  %v8425_v15 = vpop.f32.mrf.mxu3 }
 0x22f   : > { %v6024_v26 = vld [vmem:[%s7547_s19 + $0x970] sm:$0xf0] }
 0x230   : > { %v7237_v28 = vld [vmem:[%s7547_s19 + $0xb54] sm:$0xf]  ;;  %v6027_v43 = vor.u32 %v7173_v25, %v6024_v26  ;;  %4054 = vmatpush.bf16.msrb.mxu3 %v6827_v29  ;;  %v3765_v25 = vpop.f32.mrf.mxu0 }
 0x231   : > { %v6280_v31 = vld [vmem:[%s7547_s19 + $0xb70] sm:$0xf0] }
 0x232   : > { %v7301_v34 = vld [vmem:[%s7547_s19 + $0xd54] sm:$0xf]  ;;  %v6283_v44 = vor.u32 %v7237_v28, %v6280_v31  ;;  %4016 = vmatpush.bf16.msrb.mxu0 %v6027_v43 }
 0x233   : > { %v6536_v35 = vld [vmem:[%s7547_s19 + $0xd70] sm:$0xf0] }
 0x234   : > { %v8383_v36 = vld [vmem:[#allocation1 + $0x12] sm:$0xff]  ;;  %v6539_v48 = vor.u32 %v7301_v34, %v6536_v35  ;;  %4029 = vmatpush.bf16.msrb.mxu1 %v6283_v44  ;;  %v3778_v35 = vpop.f32.mrf.mxu1 }
 0x235   : > { %3996 = vmatmul.bf16.vlgmr.msra.gmra.mxu2 %v8383_v36  ;;  %v7365_v37 = vld [vmem:[%s7547_s19 + $0xf54] sm:$0xf] }
 0x236   : > { %v6792_v38 = vld [vmem:[%s7547_s19 + $0xf70] sm:$0xf0]  ;;  %4042 = vmatpush.bf16.msrb.mxu2 %v6539_v48 }
 0x237   : > { %v7165_v21 = vld [vmem:[%s7547_s19 + $0x914] sm:$0xf]  ;;  %v6795_v51 = vor.u32 %v7365_v37, %v6792_v38 }
 0x238   : > { %v5992_v49 = vld [vmem:[%s7547_s19 + $0x930] sm:$0xf0] }
 0x239   : > { %v7229_v22 = vld [vmem:[%s7547_s19 + $0xb14] sm:$0xf]  ;;  %v5995_v55 = vor.u32 %v7165_v21, %v5992_v49  ;;  %4055 = vmatpush.bf16.msrb.mxu3 %v6795_v51 }
 0x23a   : > { %v6248_v23 = vld [vmem:[%s7547_s19 + $0xb30] sm:$0xf0] }
 0x23b   : > { %v7293_v53 = vld [vmem:[%s7547_s19 + $0xd14] sm:$0xf]  ;;  %v6251_v57 = vor.u32 %v7229_v22, %v6248_v23  ;;  %4017 = vmatpush.bf16.msrb.mxu0 %v5995_v55  ;;  %v3791_v55 = vpop.f32.mrf.mxu2 }
 0x23c   : > { %v6504_v27 = vld [vmem:[%s7547_s19 + $0xd30] sm:$0xf0]  ;;  %v5486_v55 = vld [vmem:[%s7547_s19 + $0x518] sm:$0xf] }
 0x23d   : > { %v7357_v54 = vld [vmem:[%s7547_s19 + $0xf14] sm:$0xf]  ;;  %v6507_v58 = vor.u32 %v7293_v53, %v6504_v27  ;;  %4030 = vmatpush.bf16.msrb.mxu1 %v6251_v57 }
 0x23e   : > { %v6760_v52 = vld [vmem:[%s7547_s19 + $0xf30] sm:$0xf0] }
 0x23f   : > { %v7157_v59 = vld [vmem:[%s7547_s19 + $0x8d4] sm:$0xf]  ;;  %v6763_v7 = vor.u32 %v7357_v54, %v6760_v52  ;;  %4043 = vmatpush.bf16.msrb.mxu2 %v6507_v58 }
 0x240   : > { %v5960_v62 = vld [vmem:[%s7547_s19 + $0x8f0] sm:$0xf0] }
 0x241   : > { %v7221_v63 = vld [vmem:[%s7547_s19 + $0xad4] sm:$0xf]  ;;  %v5963_v30 = vor.u32 %v7157_v59, %v5960_v62  ;;  %4056 = vmatpush.bf16.msrb.mxu3 %v6763_v7  ;;  %v5070_v7 = vld [vmem:[%s7547_s19 + $0x1d8] sm:$0xf] }
 0x242   : > { %v6216_v1 = vld [vmem:[%s7547_s19 + $0xaf0] sm:$0xf0] }
 0x243   : > { %v7285_v9 = vld [vmem:[%s7547_s19 + $0xcd4] sm:$0xf]  ;;  %v6219_v6 = vor.u32 %v7221_v63, %v6216_v1  ;;  %4018 = vmatpush.bf16.msrb.mxu0 %v5963_v30  ;;  %v3804_v63 = vpop.f32.mrf.mxu3  ;;  %v6938_v1 = vld [vmem:[%s7547_s19 + $0x1f4] sm:$0xf0] }
 0x244   : > { %v6472_v3 = vld [vmem:[%s7547_s19 + $0xcf0] sm:$0xf0]  ;;  %v7066_v30 = vld [vmem:[%s7547_s19 + $0x5f4] sm:$0xf0] }
 0x245   : > { %v7349_v33 = vld [vmem:[%s7547_s19 + $0xed4] sm:$0xf]  ;;  %v6475_v11 = vor.u32 %v7285_v9, %v6472_v3  ;;  %4031 = vmatpush.bf16.msrb.mxu1 %v6219_v6  ;;  %v5326_v9 = vld [vmem:[%s7547_s19 + $0x3d8] sm:$0xf] }
 0x246   : > { %v6728_v4 = vld [vmem:[%s7547_s19 + $0xef0] sm:$0xf0] }
 0x247   : > { %v7149_v8 = vld [vmem:[%s7547_s19 + $0x894] sm:$0xf]  ;;  %v6731_v16 = vor.u32 %v7349_v33, %v6728_v4  ;;  %4044 = vmatpush.bf16.msrb.mxu2 %v6475_v11  ;;  %v7002_v33 = vld [vmem:[%s7547_s19 + $0x3f4] sm:$0xf0] }
 0x248   : > { %v5928_v32 = vld [vmem:[%s7547_s19 + $0x8b0] sm:$0xf0]  ;;  %v5582_v4 = vld [vmem:[%s7547_s19 + $0x5d8] sm:$0xf] }
 0x249   : > { %v7213_v10 = vld [vmem:[%s7547_s19 + $0xa94] sm:$0xf]  ;;  %v5931_v20 = vor.u32 %v7149_v8, %v5928_v32  ;;  %4057 = vmatpush.bf16.msrb.mxu3 %v6731_v16  ;;  %v5838_v8 = vld [vmem:[%s7547_s19 + $0x7d8] sm:$0xf]  ;;  %v5071_v16 = vor.u32 %v6938_v1, %v5070_v7 }
 0x24a   : > { %v6184_v13 = vld [vmem:[%s7547_s19 + $0xab0] sm:$0xf0]  ;;  %v7130_v32 = vld [vmem:[%s7547_s19 + $0x7f4] sm:$0xf0] }
 0x24b   : > { %v7277_v5 = vld [vmem:[%s7547_s19 + $0xc94] sm:$0xf]  ;;  %v6187_v26 = vor.u32 %v7213_v10, %v6184_v13  ;;  %4019 = vmatpush.bf16.msrb.mxu0 %v5931_v20  ;;  %v3777_v13 = vadd.f32 %v8410_v0, %v8405_v56  ;;  %v5294_v20 = vld [vmem:[%s7547_s19 + $0x398] sm:$0xf]  ;;  %v5839_v25 = vor.u32 %v7130_v32, %v5838_v8  ;;  %v3712_v56 = vadd.f32 %v8321_v60, %v8259_v45 }
 0x24c   : > { %v6440_v14 = vld [vmem:[%s7547_s19 + $0xcb0] sm:$0xf0]  ;;  %v6986_v60 = vld [vmem:[%s7547_s19 + $0x374] sm:$0xf0] }
 0x24d   : > { %v7341_v19 = vld [vmem:[%s7547_s19 + $0xe94] sm:$0xf]  ;;  %v6443_v28 = vor.u32 %v7277_v5, %v6440_v14  ;;  %4032 = vmatpush.bf16.msrb.mxu1 %v6187_v26  ;;  %v5327_v5 = vor.u32 %v7002_v33, %v5326_v9  ;;  %v5583_v14 = vor.u32 %v7066_v30, %v5582_v4  ;;  %v6994_v26 = vld [vmem:[%s7547_s19 + $0x3b4] sm:$0xf0]  ;;  %v3790_v35 = vadd.f32 %v8420_v12, %v3777_v13  ;;  %v3828_v9 = vpop.f32.mrf.mxu1 }
 0x24e   : > { %v6696_v24 = vld [vmem:[%s7547_s19 + $0xeb0] sm:$0xf0]  ;;  %v5774_v12 = vld [vmem:[%s7547_s19 + $0x758] sm:$0xf] }
 0x24f   : > { %v7141_v29 = vld [vmem:[%s7547_s19 + $0x854] sm:$0xf]  ;;  %v6699_v37 = vor.u32 %v7341_v19, %v6696_v24  ;;  %4045 = vmatpush.bf16.msrb.mxu2 %v6443_v28  ;;  %v5038_v19 = vld [vmem:[%s7547_s19 + $0x198] sm:$0xf] }
 0x250   : > { %v5896_v31 = vld [vmem:[%s7547_s19 + $0x870] sm:$0xf0]  ;;  %v6930_v24 = vld [vmem:[%s7547_s19 + $0x1b4] sm:$0xf0] }
 0x251   : > { %v7205_v34 = vld [vmem:[%s7547_s19 + $0xa54] sm:$0xf]  ;;  %v5899_v49 = vor.u32 %v7141_v29, %v5896_v31  ;;  %4058 = vmatpush.bf16.msrb.mxu3 %v6699_v37  ;;  %v5550_v28 = vld [vmem:[%s7547_s19 + $0x598] sm:$0xf]  ;;  %v5039_v0 = vor.u32 %v6930_v24, %v5038_v19  ;;  %v5295_v37 = vor.u32 %v6994_v26, %v5294_v20  ;;  %v3841_v19 = vpop.f32.mrf.mxu2 }
 0x252   : > { %v6152_v38 = vld [vmem:[%s7547_s19 + $0xa70] sm:$0xf0]  ;;  %v7058_v29 = vld [vmem:[%s7547_s19 + $0x5b4] sm:$0xf0] }
 0x253   : > { %v7269_v43 = vld [vmem:[%s7547_s19 + $0xc54] sm:$0xf]  ;;  %v6155_v23 = vor.u32 %v7205_v34, %v6152_v38  ;;  %4020 = vmatpush.bf16.msrb.mxu0 %v5899_v49  ;;  %v5806_v31 = vld [vmem:[%s7547_s19 + $0x798] sm:$0xf]  ;;  %v5551_v38 = vor.u32 %v7058_v29, %v5550_v28  ;;  %v3854_v29 = vpop.f32.mrf.mxu3 }
 0x254   : > { %v6408_v44 = vld [vmem:[%s7547_s19 + $0xc70] sm:$0xf0]  ;;  %v7122_v34 = vld [vmem:[%s7547_s19 + $0x7b4] sm:$0xf0] }
 0x255   : > { %v7333_v48 = vld [vmem:[%s7547_s19 + $0xe54] sm:$0xf]  ;;  %v6411_v53 = vor.u32 %v7269_v43, %v6408_v44  ;;  %4033 = vmatpush.bf16.msrb.mxu1 %v6155_v23  ;;  %v5006_v43 = vld [vmem:[%s7547_s19 + $0x158] sm:$0xf]  ;;  %v5807_v45 = vor.u32 %v7122_v34, %v5806_v31  ;;  %v3803_v23 = vadd.f32 %v8425_v15, %v3790_v35 }
 0x256   : > { %v6664_v21 = vld [vmem:[%s7547_s19 + $0xe70] sm:$0xf0]  ;;  %v6922_v44 = vld [vmem:[%s7547_s19 + $0x174] sm:$0xf0] }
 0x257   : > { %v7133_v22 = vld [vmem:[%s7547_s19 + $0x814] sm:$0xf]  ;;  %v6667_v57 = vor.u32 %v7333_v48, %v6664_v21  ;;  %4046 = vmatpush.bf16.msrb.mxu2 %v6411_v53  ;;  %v5262_v48 = vld [vmem:[%s7547_s19 + $0x358] sm:$0xf] }
 0x258   : > { %v5864_v51 = vld [vmem:[%s7547_s19 + $0x830] sm:$0xf0]  ;;  %v5518_v21 = vld [vmem:[%s7547_s19 + $0x558] sm:$0xf] }
 0x259   : > { %v7197_v27 = vld [vmem:[%s7547_s19 + $0xa14] sm:$0xf]  ;;  %v5867_v3 = vor.u32 %v7133_v22, %v5864_v51  ;;  %4059 = vmatpush.bf16.msrb.mxu3 %v6667_v57  ;;  %v7050_v49 = vld [vmem:[%s7547_s19 + $0x574] sm:$0xf0]  ;;  %v3725_v51 = vadd.f32 %v8326_v2, %v3712_v56 }
 0x25a   : > { %v6120_v54 = vld [vmem:[%s7547_s19 + $0xa30] sm:$0xf0]  ;;  %v7114_v22 = vld [vmem:[%s7547_s19 + $0x774] sm:$0xf0]  ;;  %v5519_v53 = vor.u32 %v7050_v49, %v5518_v21 }
 0x25b   : > { %v7261_v52 = vld [vmem:[%s7547_s19 + $0xc14] sm:$0xf]  ;;  %v6123_v6 = vor.u32 %v7197_v27, %v6120_v54  ;;  %4021 = vmatpush.bf16.msrb.mxu0 %v5867_v3  ;;  %v6914_v27 = vld [vmem:[%s7547_s19 + $0x134] sm:$0xf0]  ;;  %v3738_v15 = vadd.f32 %v8336_v17, %v3725_v51 }
 0x25c   : > { %v6376_v58 = vld [vmem:[%s7547_s19 + $0xc30] sm:$0xf0]  ;;  %v5230_v54 = vld [vmem:[%s7547_s19 + $0x318] sm:$0xf] }
 0x25d   : > { %v7325_v59 = vld [vmem:[%s7547_s19 + $0xe14] sm:$0xf]  ;;  %v6379_v11 = vor.u32 %v7261_v52, %v6376_v58  ;;  %4034 = vmatpush.bf16.msrb.mxu1 %v6123_v6  ;;  %v5775_v52 = vor.u32 %v7114_v22, %v5774_v12  ;;  %v6978_v2 = vld [vmem:[%s7547_s19 + $0x334] sm:$0xf0]  ;;  %v3830_v12 = vpop.f32.mrf.mxu1 }
 0x25e   : > { %v6632_v62 = vld [vmem:[%s7547_s19 + $0xe30] sm:$0xf0]  ;;  %4022 = vmatmul.bf16.vlgmr.msrb.gmra.mxu0 %v8302_v46  ;;  %v5263_v46 = vor.u32 %v6986_v60, %v5262_v48  ;;  %v7042_v57 = vld [vmem:[%s7547_s19 + $0x534] sm:$0xf0]  ;;  %v5231_v63 = vor.u32 %v6978_v2, %v5230_v54 }
 0x25f   : > { %v6635_v10 = vor.u32 %v7325_v59, %v6632_v62  ;;  %4047 = vmatpush.bf16.msrb.mxu2 %v6379_v11  ;;  %4066 = vmatpush.bf16.msra.mxu0 %v5071_v16  ;;  %v7106_v58 = vld [vmem:[%s7547_s19 + $0x734] sm:$0xf0]  ;;  %v3815_v62 = vpop.f32.mrf.mxu0  ;;  %v5487_v7 = vor.u32 %v7042_v57, %v5486_v55  ;;  %v3751_v16 = vadd.f32 %v8341_v18, %v3738_v15 }
 0x260   : > { %4035 = vmatmul.bf16.vlgmr.msrb.gmra.mxu1 %v8310_v50  ;;  %v5742_v50 = vld [vmem:[%s7547_s19 + $0x718] sm:$0xf]  ;;  %v3816_v1 = vadd.f32 %v3815_v62, %v3803_v23 }
 0x261   : > { %4060 = vmatpush.bf16.msrb.mxu3 %v6635_v10  ;;  %4079 = vmatpush.bf16.msra.mxu1 %v5327_v5  ;;  %v4942_v3 = vld [vmem:[%s7547_s19 + $0xd8] sm:$0xf]  ;;  %v5743_v30 = vor.u32 %v7106_v58, %v5742_v50  ;;  %v4283_v35 = vrot.slane %v3751_v16, 4 }
 0x262   : > { %4048 = vmatmul.bf16.vlgmr.msrb.gmra.mxu2 %v8296_v42  ;;  %v5007_v42 = vor.u32 %v6922_v44, %v5006_v43  ;;  %v6906_v33 = vld [vmem:[%s7547_s19 + $0xf4] sm:$0xf0]  ;;  %v3829_v8 = vadd.f32 %v3828_v9, %v3816_v1 }
 0x263   : > { %4092 = vmatpush.bf16.msra.mxu2 %v5583_v14  ;;  %4067 = vmatpush.bf16.msra.mxu0 %v5039_v0  ;;  %v5198_v4 = vld [vmem:[%s7547_s19 + $0x2d8] sm:$0xf]  ;;  %v4943_v13 = vor.u32 %v6906_v33, %v4942_v3  ;;  %v3856_v33 = vpop.f32.mrf.mxu3 }
 0x264   : > { %4061 = vmatmul.bf16.vlgmr.msrb.gmra.mxu3 %v8305_v47  ;;  %v4974_v47 = vld [vmem:[%s7547_s19 + $0x118] sm:$0xf]  ;;  %v3842_v28 = vadd.f32 %v3841_v19, %v3829_v8 }
 0x265   : > { %4105 = vmatpush.bf16.msra.mxu3 %v5839_v25  ;;  %4080 = vmatpush.bf16.msra.mxu1 %v5295_v37  ;;  %v4975_v59 = vor.u32 %v6914_v27, %v4974_v47  ;;  %v6970_v17 = vld [vmem:[%s7547_s19 + $0x2f4] sm:$0xf0] }
 0x266   : > { %v5454_v6 = vld [vmem:[%s7547_s19 + $0x4d8] sm:$0xf]  ;;  %v5199_v5 = vor.u32 %v6970_v17, %v5198_v4  ;;  %v3855_v37 = vadd.f32 %v3854_v29, %v3842_v28 }
 0x267   : > { %4093 = vmatpush.bf16.msra.mxu2 %v5551_v38  ;;  %4068 = vmatpush.bf16.msra.mxu0 %v5007_v42  ;;  %v7034_v11 = vld [vmem:[%s7547_s19 + $0x4f4] sm:$0xf0]  ;;  %v3817_v44 = vpop.f32.mrf.mxu0 }
 0x268   : > { %v5710_v32 = vld [vmem:[%s7547_s19 + $0x6d8] sm:$0xf]  ;;  %v5455_v14 = vor.u32 %v7034_v11, %v5454_v6  ;;  %v4284_v22 = vrot.slane %v3855_v37, 2 }
 0x269   : > { %4106 = vmatpush.bf16.msra.mxu3 %v5807_v45  ;;  %4081 = vmatpush.bf16.msra.mxu1 %v5263_v46  ;;  %v7098_v10 = vld [vmem:[%s7547_s19 + $0x6f4] sm:$0xf0]  ;;  %v349_v46 = vld [vmem:[#allocation2] sm:$0xff] }
 0x26a   : > { %v4910_v24 = vld [vmem:[%s7547_s19 + $0x98] sm:$0xf]  ;;  %v5711_v26 = vor.u32 %v7098_v10, %v5710_v32  ;;  %v4291_v27 = vsel %vm4290_vm1, %v4283_v35, %v4284_v22 }
 0x26b   : > { %4094 = vmatpush.bf16.msra.mxu2 %v5519_v53  ;;  %4069 = vmatpush.bf16.msra.mxu0 %v4975_v59  ;;  %v6898_v20 = vld [vmem:[%s7547_s19 + $0xb4] sm:$0xf0]  ;;  %v4293_v57 = vsel %vm4292_vm2, %v8197_v39, %v4291_v27 }
 0x26c   : > { %v5166_v25 = vld [vmem:[%s7547_s19 + $0x298] sm:$0xf]  ;;  %v4911_v38 = vor.u32 %v6898_v20, %v4910_v24 }
 0x26d   : > { %4107 = vmatpush.bf16.msra.mxu3 %v5775_v52  ;;  %4082 = vmatpush.bf16.msra.mxu1 %v5231_v63  ;;  %v6962_v18 = vld [vmem:[%s7547_s19 + $0x2b4] sm:$0xf0]  ;;  %v3843_v63 = vpop.f32.mrf.mxu2 }
 0x26e   : > { %v5422_v31 = vld [vmem:[%s7547_s19 + $0x498] sm:$0xf]  ;;  %v5167_v48 = vor.u32 %v6962_v18, %v5166_v25 }
 0x26f   : > { %4095 = vmatpush.bf16.msra.mxu2 %v5487_v7  ;;  %v7026_v34 = vld [vmem:[%s7547_s19 + $0x4b4] sm:$0xf0]  ;;  %4070 = vmatpush.bf16.msra.mxu0 %v4943_v13  ;;  %v4299_v7 = vadd.f32 %v4293_v57, %v349_v46 }
 0x270   : > { %v5678_v56 = vld [vmem:[%s7547_s19 + $0x698] sm:$0xf]  ;;  %v5423_v45 = vor.u32 %v7026_v34, %v5422_v31 }
 0x271   : > { %4108 = vmatpush.bf16.msra.mxu3 %v5743_v30  ;;  %v7090_v0 = vld [vmem:[%s7547_s19 + $0x6b4] sm:$0xf0]  ;;  %4083 = vmatpush.bf16.msra.mxu1 %v5199_v5  ;;  %4301 = vst [vmem:[#allocation2] sm:$0xff] %v4299_v7 }
 0x272   : > { %v4878_v43 = vld [vmem:[%s7547_s19 + $0x58] sm:$0xf]  ;;  %v5679_v51 = vor.u32 %v7090_v0, %v5678_v56 }
 0x273   : > { %4096 = vmatpush.bf16.msra.mxu2 %v5455_v14  ;;  %v6890_v60 = vld [vmem:[%s7547_s19 + $0x74] sm:$0xf0]  ;;  %4071 = vmatpush.bf16.msra.mxu0 %v4911_v38 }
 0x274   : > { %v5134_v21 = vld [vmem:[%s7547_s19 + $0x258] sm:$0xf]  ;;  %v4879_v54 = vor.u32 %v6890_v60, %v4878_v43 }
 0x275   : > { %v6954_v49 = vld [vmem:[%s7547_s19 + $0x274] sm:$0xf0]  ;;  %4109 = vmatpush.bf16.msra.mxu3 %v5711_v26  ;;  %4084 = vmatpush.bf16.msra.mxu1 %v5167_v48 }
 0x276   : > { %v5390_v42 = vld [vmem:[%s7547_s19 + $0x458] sm:$0xf]  ;;  %v5135_v50 = vor.u32 %v6954_v49, %v5134_v21 }
 0x277   : > { %v7018_v23 = vld [vmem:[%s7547_s19 + $0x474] sm:$0xf0]  ;;  %4097 = vmatpush.bf16.msra.mxu2 %v5423_v45  ;;  %4072 = vmatpush.bf16.msra.mxu0 %v4879_v54 }
 0x278   : > { %v5646_v53 = vld [vmem:[%s7547_s19 + $0x658] sm:$0xf]  ;;  %v5391_v58 = vor.u32 %v7018_v23, %v5390_v42 }
 0x279   : > { %v7082_v47 = vld [vmem:[%s7547_s19 + $0x674] sm:$0xf0]  ;;  %4110 = vmatpush.bf16.msra.mxu3 %v5679_v51  ;;  %4085 = vmatpush.bf16.msra.mxu1 %v5135_v50 }
 0x27a   : > { %v4846_v52 = vld [vmem:[%s7547_s19 + $0x18] sm:$0xf]  ;;  %v5647_v1 = vor.u32 %v7082_v47, %v5646_v53 }
 0x27b   : > { %v6882_v2 = vld [vmem:[%s7547_s19 + $0x34] sm:$0xf0]  ;;  %4098 = vmatpush.bf16.msra.mxu2 %v5391_v58 }
 0x27c   : > { %v5102_v55 = vld [vmem:[%s7547_s19 + $0x218] sm:$0xf]  ;;  %v4847_v6 = vor.u32 %v6882_v2, %v4846_v52  ;;  %v3867_v52 = vpop.f32.mrf.mxu0 }
 0x27d   : > { %v6946_v15 = vld [vmem:[%s7547_s19 + $0x234] sm:$0xf0]  ;;  %4111 = vmatpush.bf16.msra.mxu3 %v5647_v1 }
 0x27e   : > { %v5358_v59 = vld [vmem:[%s7547_s19 + $0x418] sm:$0xf]  ;;  %v5103_v32 = vor.u32 %v6946_v15, %v5102_v55  ;;  %4073 = vmatpush.bf16.msra.mxu0 %v4847_v6  ;;  %v3880_v15 = vpop.f32.mrf.mxu1 }
 0x27f   : > { %v7010_v62 = vld [vmem:[%s7547_s19 + $0x434] sm:$0xf0]  ;;  %v3881_v1 = vadd.f32 %v3880_v15, %v3867_v52  ;;  %v5584_v52 = vld [vmem:[%s7547_s19 + $0x5f8] sm:$0xf0] }
 0x280   : > { %v5614_v9 = vld [vmem:[%s7547_s19 + $0x618] sm:$0xf]  ;;  %v5359_v10 = vor.u32 %v7010_v62, %v5358_v59  ;;  %4086 = vmatpush.bf16.msra.mxu1 %v5103_v32 }
 0x281   : > { %v7074_v3 = vld [vmem:[%s7547_s19 + $0x634] sm:$0xf0]  ;;  %4074 = vmatmul.bf16.vlgmr.msra.gmra.mxu0 %v8388_v40 }
 0x282   : > { %v6094_v39 = vld [vmem:[%s7547_s19 + $0x9d8] sm:$0xf]  ;;  %v5615_v5 = vor.u32 %v7074_v3, %v5614_v9  ;;  %4099 = vmatpush.bf16.msra.mxu2 %v5359_v10 }
 0x283   : > { %v7194_v4 = vld [vmem:[%s7547_s19 + $0x9f4] sm:$0xf0]  ;;  %4087 = vmatmul.bf16.vlgmr.msra.gmra.mxu1 %v8394_v61 }
 0x284   : > { %v6350_v30 = vld [vmem:[%s7547_s19 + $0xbd8] sm:$0xf]  ;;  %v6095_v14 = vor.u32 %v7194_v4, %v6094_v39  ;;  %4112 = vmatpush.bf16.msra.mxu3 %v5615_v5  ;;  %v3906_v5 = vpop.f32.mrf.mxu3 }
 0x285   : > { %v7258_v17 = vld [vmem:[%s7547_s19 + $0xbf4] sm:$0xf0]  ;;  %4100 = vmatmul.bf16.vlgmr.msra.gmra.mxu2 %v8383_v36 }
 0x286   : > { %v6606_v11 = vld [vmem:[%s7547_s19 + $0xdd8] sm:$0xf]  ;;  %v6351_v19 = vor.u32 %v7258_v17, %v6350_v30  ;;  %4118 = vmatpush.bf16.msrb.mxu0 %v6095_v14 }
 0x287   : > { %v7322_v8 = vld [vmem:[%s7547_s19 + $0xdf4] sm:$0xf0]  ;;  %4113 = vmatmul.bf16.vlgmr.msra.gmra.mxu3 %v8391_v41 }
 0x288   : > { %v6862_v16 = vld [vmem:[%s7547_s19 + $0xfd8] sm:$0xf]  ;;  %v6607_v24 = vor.u32 %v7322_v8, %v6606_v11  ;;  %4131 = vmatpush.bf16.msrb.mxu1 %v6351_v19  ;;  %v3893_v11 = vpop.f32.mrf.mxu2 }
 0x289   : > { %v7386_v13 = vld [vmem:[%s7547_s19 + $0xff4] sm:$0xf0] }
 0x28a   : > { %v6062_v20 = vld [vmem:[%s7547_s19 + $0x998] sm:$0xf]  ;;  %v6863_v28 = vor.u32 %v7386_v13, %v6862_v16  ;;  %4144 = vmatpush.bf16.msrb.mxu2 %v6607_v24  ;;  %v3894_v13 = vadd.f32 %v3893_v11, %v3881_v1  ;;  %v6990_v1 = vld [vmem:[%s7547_s19 + $0x39c] sm:$0xf] }
 0x28b   : > { %v7186_v25 = vld [vmem:[%s7547_s19 + $0x9b4] sm:$0xf0] }
 0x28c   : > { %v6318_v26 = vld [vmem:[%s7547_s19 + $0xb98] sm:$0xf]  ;;  %v6063_v0 = vor.u32 %v7186_v25, %v6062_v20  ;;  %4157 = vmatpush.bf16.msrb.mxu3 %v6863_v28  ;;  %v8577_v20 = vadd.f32 %v3906_v5, %v3894_v13  ;;  %v3869_v25 = vpop.f32.mrf.mxu0  ;;  %v5264_v5 = vld [vmem:[%s7547_s19 + $0x378] sm:$0xf0] }
 0x28d   : > { %v7250_v29 = vld [vmem:[%s7547_s19 + $0xbb4] sm:$0xf0]  ;;  %v8623_v25 = vld [vmem:[#allocation1 + $0x3f] sm:$0xff] }
 0x28e   : > { %v6574_v18 = vld [vmem:[%s7547_s19 + $0xd98] sm:$0xf]  ;;  %v6319_v35 = vor.u32 %v7250_v29, %v6318_v26  ;;  %4119 = vmatpush.bf16.msrb.mxu0 %v6063_v0 }
 0x28f   : > { %v7314_v31 = vld [vmem:[%s7547_s19 + $0xdb4] sm:$0xf0] }
 0x290   : > { %v6830_v34 = vld [vmem:[%s7547_s19 + $0xf98] sm:$0xf]  ;;  %v6575_v37 = vor.u32 %v7314_v31, %v6574_v18  ;;  %4132 = vmatpush.bf16.msrb.mxu1 %v6319_v35 }
 0x291   : > { %v7378_v56 = vld [vmem:[%s7547_s19 + $0xfb4] sm:$0xf0] }
 0x292   : > { %v6030_v38 = vld [vmem:[%s7547_s19 + $0x958] sm:$0xf]  ;;  %v6831_v48 = vor.u32 %v7378_v56, %v6830_v34  ;;  %4145 = vmatpush.bf16.msrb.mxu2 %v6575_v37  ;;  %v3882_v34 = vpop.f32.mrf.mxu1 }
 0x293   : > { %v7178_v43 = vld [vmem:[%s7547_s19 + $0x974] sm:$0xf0] }
 0x294   : > { %v6286_v44 = vld [vmem:[%s7547_s19 + $0xb58] sm:$0xf]  ;;  %v6031_v22 = vor.u32 %v7178_v43, %v6030_v38  ;;  %4158 = vmatpush.bf16.msrb.mxu3 %v6831_v48 }
 0x295   : > { %v7242_v45 = vld [vmem:[%s7547_s19 + $0xb74] sm:$0xf0] }
 0x296   : > { %v6542_v60 = vld [vmem:[%s7547_s19 + $0xd58] sm:$0xf]  ;;  %v6287_v51 = vor.u32 %v7242_v45, %v6286_v44  ;;  %4120 = vmatpush.bf16.msrb.mxu0 %v6031_v22 }
 0x297   : > { %v7306_v21 = vld [vmem:[%s7547_s19 + $0xd74] sm:$0xf0] }
 0x298   : > { %v6798_v49 = vld [vmem:[%s7547_s19 + $0xf58] sm:$0xf]  ;;  %v6543_v42 = vor.u32 %v7306_v21, %v6542_v60  ;;  %4133 = vmatpush.bf16.msrb.mxu1 %v6287_v51  ;;  %v3895_v51 = vpop.f32.mrf.mxu2 }
 0x299   : > { %v7370_v12 = vld [vmem:[%s7547_s19 + $0xf74] sm:$0xf0]  ;;  %v4944_v51 = vld [vmem:[%s7547_s19 + $0xf8] sm:$0xf0] }
 0x29a   : > { %v5998_v36 = vld [vmem:[%s7547_s19 + $0x918] sm:$0xf]  ;;  %v6799_v40 = vor.u32 %v7370_v12, %v6798_v49  ;;  %4146 = vmatpush.bf16.msrb.mxu2 %v6543_v42 }
 0x29b   : > { %v7170_v23 = vld [vmem:[%s7547_s19 + $0x934] sm:$0xf0] }
 0x29c   : > { %v6254_v46 = vld [vmem:[%s7547_s19 + $0xb18] sm:$0xf]  ;;  %v5999_v61 = vor.u32 %v7170_v23, %v5998_v36  ;;  %4159 = vmatpush.bf16.msrb.mxu3 %v6799_v40  ;;  %v3908_v40 = vpop.f32.mrf.mxu3 }
 0x29d   : > { %v7234_v53 = vld [vmem:[%s7547_s19 + $0xb34] sm:$0xf0]  ;;  %v5200_v40 = vld [vmem:[%s7547_s19 + $0x2f8] sm:$0xf0] }
 0x29e   : > { %v6510_v41 = vld [vmem:[%s7547_s19 + $0xd18] sm:$0xf]  ;;  %v6255_v2 = vor.u32 %v7234_v53, %v6254_v46  ;;  %4121 = vmatpush.bf16.msrb.mxu0 %v5999_v61  ;;  %v6934_v53 = vld [vmem:[%s7547_s19 + $0x1dc] sm:$0xf] }
 0x29f   : > { %v7298_v47 = vld [vmem:[%s7547_s19 + $0xd34] sm:$0xf0]  ;;  %v7062_v61 = vld [vmem:[%s7547_s19 + $0x5dc] sm:$0xf] }
 0x2a0   : > { %v6766_v27 = vld [vmem:[%s7547_s19 + $0xf18] sm:$0xf]  ;;  %v6511_v55 = vor.u32 %v7298_v47, %v6510_v41  ;;  %4134 = vmatpush.bf16.msrb.mxu1 %v6255_v2  ;;  %v5072_v41 = vld [vmem:[%s7547_s19 + $0x1f8] sm:$0xf0] }
 0x2a1   : > { %v7362_v54 = vld [vmem:[%s7547_s19 + $0xf34] sm:$0xf0]  ;;  %v6998_v47 = vld [vmem:[%s7547_s19 + $0x3dc] sm:$0xf]  ;;  %v5075_v15 = vor.u32 %v6934_v53, %v5072_v41 }
 0x2a2   : > { %v5966_v57 = vld [vmem:[%s7547_s19 + $0x8d8] sm:$0xf]  ;;  %v6767_v59 = vor.u32 %v7362_v54, %v6766_v27  ;;  %4147 = vmatpush.bf16.msrb.mxu2 %v6511_v55  ;;  %v5328_v54 = vld [vmem:[%s7547_s19 + $0x3f8] sm:$0xf0] }
 0x2a3   : > { %v7162_v50 = vld [vmem:[%s7547_s19 + $0x8f4] sm:$0xf0]  ;;  %v7030_v53 = vld [vmem:[%s7547_s19 + $0x4dc] sm:$0xf] }
 0x2a4   : > { %v6222_v58 = vld [vmem:[%s7547_s19 + $0xad8] sm:$0xf]  ;;  %v5967_v39 = vor.u32 %v7162_v50, %v5966_v57  ;;  %4160 = vmatpush.bf16.msrb.mxu3 %v6767_v59  ;;  %v7126_v57 = vld [vmem:[%s7547_s19 + $0x7dc] sm:$0xf]  ;;  %v5331_v59 = vor.u32 %v6998_v47, %v5328_v54 }
 0x2a5   : > { %v7226_v62 = vld [vmem:[%s7547_s19 + $0xaf4] sm:$0xf0]  ;;  %v5840_v50 = vld [vmem:[%s7547_s19 + $0x7f8] sm:$0xf0] }
 0x2a6   : > { %v6478_v63 = vld [vmem:[%s7547_s19 + $0xcd8] sm:$0xf]  ;;  %v6223_v33 = vor.u32 %v7226_v62, %v6222_v58  ;;  %4122 = vmatpush.bf16.msrb.mxu0 %v5967_v39  ;;  %v5587_v62 = vor.u32 %v7062_v61, %v5584_v52  ;;  %v7054_v39 = vld [vmem:[%s7547_s19 + $0x59c] sm:$0xf] }
 0x2a7   : > { %v7290_v7 = vld [vmem:[%s7547_s19 + $0xcf4] sm:$0xf0]  ;;  %v5456_v41 = vld [vmem:[%s7547_s19 + $0x4f8] sm:$0xf0] }
 0x2a8   : > { %v6734_v9 = vld [vmem:[%s7547_s19 + $0xed8] sm:$0xf]  ;;  %v6479_v4 = vor.u32 %v7290_v7, %v6478_v63  ;;  %4135 = vmatpush.bf16.msrb.mxu1 %v6223_v33  ;;  %v6926_v63 = vld [vmem:[%s7547_s19 + $0x19c] sm:$0xf]  ;;  %v5459_v52 = vor.u32 %v7030_v53, %v5456_v41 }
 0x2a9   : > { %v7354_v3 = vld [vmem:[%s7547_s19 + $0xef4] sm:$0xf0]  ;;  %v5040_v7 = vld [vmem:[%s7547_s19 + $0x1b8] sm:$0xf0] }
 0x2aa   : > { %v5934_v30 = vld [vmem:[%s7547_s19 + $0x898] sm:$0xf]  ;;  %v6735_v8 = vor.u32 %v7354_v3, %v6734_v9  ;;  %4148 = vmatpush.bf16.msrb.mxu2 %v6479_v4  ;;  %v5843_v9 = vor.u32 %v7126_v57, %v5840_v50  ;;  %v5296_v3 = vld [vmem:[%s7547_s19 + $0x3b8] sm:$0xf0]  ;;  %v3945_v50 = vpop.f32.mrf.mxu2 }
 0x2ab   : > { %v7154_v17 = vld [vmem:[%s7547_s19 + $0x8b4] sm:$0xf0]  ;;  %v5552_v33 = vld [vmem:[%s7547_s19 + $0x5b8] sm:$0xf0] }
 0x2ac   : > { %v6190_v6 = vld [vmem:[%s7547_s19 + $0xa98] sm:$0xf]  ;;  %v5935_v24 = vor.u32 %v7154_v17, %v5934_v30  ;;  %4161 = vmatpush.bf16.msrb.mxu3 %v6735_v8  ;;  %v7118_v4 = vld [vmem:[%s7547_s19 + $0x79c] sm:$0xf]  ;;  %v5043_v17 = vor.u32 %v6926_v63, %v5040_v7  ;;  %v5555_v11 = vor.u32 %v7054_v39, %v5552_v33  ;;  %v3958_v7 = vpop.f32.mrf.mxu3 }
 0x2ad   : > { %v7218_v32 = vld [vmem:[%s7547_s19 + $0xab4] sm:$0xf0]  ;;  %v5808_v30 = vld [vmem:[%s7547_s19 + $0x7b8] sm:$0xf0] }
 0x2ae   : > { %v6446_v10 = vld [vmem:[%s7547_s19 + $0xc98] sm:$0xf]  ;;  %v6191_v26 = vor.u32 %v7218_v32, %v6190_v6  ;;  %4123 = vmatpush.bf16.msrb.mxu0 %v5935_v24  ;;  %v5299_v6 = vor.u32 %v6990_v1, %v5296_v3  ;;  %v6918_v8 = vld [vmem:[%s7547_s19 + $0x15c] sm:$0xf]  ;;  %v8620_v24 = vld [vmem:[#allocation1 + $0x24] sm:$0xff] }
 0x2af   : > { %v7282_v16 = vld [vmem:[%s7547_s19 + $0xcb4] sm:$0xf0]  ;;  %v5008_v32 = vld [vmem:[%s7547_s19 + $0x178] sm:$0xf0] }
 0x2b0   : > { %v6702_v14 = vld [vmem:[%s7547_s19 + $0xe98] sm:$0xf]  ;;  %v6447_v28 = vor.u32 %v7282_v16, %v6446_v10  ;;  %4136 = vmatpush.bf16.msrb.mxu1 %v6191_v26  ;;  %v6982_v10 = vld [vmem:[%s7547_s19 + $0x35c] sm:$0xf]  ;;  %v5811_v16 = vor.u32 %v7118_v4, %v5808_v30 }
 0x2b1   : > { %v7346_v19 = vld [vmem:[%s7547_s19 + $0xeb4] sm:$0xf0]  ;;  %v7110_v26 = vld [vmem:[%s7547_s19 + $0x75c] sm:$0xf] }
 0x2b2   : > { %v5902_v29 = vld [vmem:[%s7547_s19 + $0x858] sm:$0xf]  ;;  %v6703_v56 = vor.u32 %v7346_v19, %v6702_v14  ;;  %4149 = vmatpush.bf16.msrb.mxu2 %v6447_v28  ;;  %v7046_v14 = vld [vmem:[%s7547_s19 + $0x55c] sm:$0xf] }
 0x2b3   : > { %v7146_v18 = vld [vmem:[%s7547_s19 + $0x874] sm:$0xf0]  ;;  %v5520_v19 = vld [vmem:[%s7547_s19 + $0x578] sm:$0xf0] }
 0x2b4   : > { %v6158_v31 = vld [vmem:[%s7547_s19 + $0xa58] sm:$0xf]  ;;  %v5903_v44 = vor.u32 %v7146_v18, %v5902_v29  ;;  %4162 = vmatpush.bf16.msrb.mxu3 %v6703_v56  ;;  %v5776_v28 = vld [vmem:[%s7547_s19 + $0x778] sm:$0xf0]  ;;  %v5011_v29 = vor.u32 %v6918_v8, %v5008_v32  ;;  %v8628_v18 = vld [vmem:[#allocation1 + $0x2d] sm:$0xff]  ;;  %v5523_v34 = vor.u32 %v7046_v14, %v5520_v19 }
 0x2b5   : > { %v7210_v0 = vld [vmem:[%s7547_s19 + $0xa74] sm:$0xf0]  ;;  %v6910_v56 = vld [vmem:[%s7547_s19 + $0x11c] sm:$0xf] }
 0x2b6   : > { %v6414_v35 = vld [vmem:[%s7547_s19 + $0xc58] sm:$0xf]  ;;  %v6159_v60 = vor.u32 %v7210_v0, %v6158_v31  ;;  %4124 = vmatpush.bf16.msrb.mxu0 %v5903_v44  ;;  %v5267_v31 = vor.u32 %v6982_v10, %v5264_v5  ;;  %v4976_v0 = vld [vmem:[%s7547_s19 + $0x138] sm:$0xf0] }
 0x2b7   : > { %v7274_v37 = vld [vmem:[%s7547_s19 + $0xc74] sm:$0xf0]  ;;  %v5488_v44 = vld [vmem:[%s7547_s19 + $0x538] sm:$0xf0] }
 0x2b8   : > { %v6670_v38 = vld [vmem:[%s7547_s19 + $0xe58] sm:$0xf]  ;;  %v6415_v21 = vor.u32 %v7274_v37, %v6414_v35  ;;  %4137 = vmatpush.bf16.msrb.mxu1 %v6159_v60  ;;  %v6974_v35 = vld [vmem:[%s7547_s19 + $0x31c] sm:$0xf]  ;;  %v5779_v37 = vor.u32 %v7110_v26, %v5776_v28  ;;  %v4979_v60 = vor.u32 %v6910_v56, %v4976_v0 }
 0x2b9   : > { %v7338_v43 = vld [vmem:[%s7547_s19 + $0xe74] sm:$0xf0]  ;;  %v7094_v47 = vld [vmem:[%s7547_s19 + $0x6dc] sm:$0xf] }
 0x2ba   : > { %v5870_v48 = vld [vmem:[%s7547_s19 + $0x818] sm:$0xf]  ;;  %v6671_v42 = vor.u32 %v7338_v43, %v6670_v38  ;;  %4150 = vmatpush.bf16.msrb.mxu2 %v6415_v21  ;;  %v5232_v38 = vld [vmem:[%s7547_s19 + $0x338] sm:$0xf0]  ;;  %v3919_v21 = vpop.f32.mrf.mxu0 }
 0x2bb   : > { %v7138_v45 = vld [vmem:[%s7547_s19 + $0x834] sm:$0xf0]  ;;  %v7038_v43 = vld [vmem:[%s7547_s19 + $0x51c] sm:$0xf] }
 0x2bc   : > { %v6126_v49 = vld [vmem:[%s7547_s19 + $0xa18] sm:$0xf]  ;;  %v5871_v27 = vor.u32 %v7138_v45, %v5870_v48  ;;  %4163 = vmatpush.bf16.msrb.mxu3 %v6671_v42  ;;  %v7102_v48 = vld [vmem:[%s7547_s19 + $0x71c] sm:$0xf] }
 0x2bd   : > { %v7202_v12 = vld [vmem:[%s7547_s19 + $0xa34] sm:$0xf0]  ;;  %v5744_v45 = vld [vmem:[%s7547_s19 + $0x738] sm:$0xf0] }
 0x2be   : > { %v6382_v22 = vld [vmem:[%s7547_s19 + $0xc18] sm:$0xf]  ;;  %v6127_v2 = vor.u32 %v7202_v12, %v6126_v49  ;;  %4125 = vmatpush.bf16.msrb.mxu0 %v5871_v27  ;;  %v5235_v49 = vor.u32 %v6974_v35, %v5232_v38  ;;  %v5491_v12 = vor.u32 %v7038_v43, %v5488_v44  ;;  %v6966_v42 = vld [vmem:[%s7547_s19 + $0x2dc] sm:$0xf] }
 0x2bf   : > { %v7266_v36 = vld [vmem:[%s7547_s19 + $0xc34] sm:$0xf0]  ;;  %v5712_v27 = vld [vmem:[%s7547_s19 + $0x6f8] sm:$0xf0] }
 0x2c0   : > { %v6638_v23 = vld [vmem:[%s7547_s19 + $0xe18] sm:$0xf]  ;;  %v6383_v55 = vor.u32 %v7266_v36, %v6382_v22  ;;  %4138 = vmatpush.bf16.msrb.mxu1 %v6127_v2  ;;  %v6902_v22 = vld [vmem:[%s7547_s19 + $0xdc] sm:$0xf]  ;;  %v3920_v36 = vadd.f32 %v3919_v21, %v8577_v20  ;;  %v5203_v20 = vor.u32 %v6966_v42, %v5200_v40 }
 0x2c1   : > { %v7330_v46 = vld [vmem:[%s7547_s19 + $0xe34] sm:$0xf0]  ;;  %4126 = vmatmul.bf16.vlgmr.msrb.gmra.mxu0 %v8620_v24  ;;  %v4947_v61 = vor.u32 %v6902_v22, %v4944_v51  ;;  %v6894_v2 = vld [vmem:[%s7547_s19 + $0x9c] sm:$0xf] }
 0x2c2   : > { %v6639_v58 = vor.u32 %v7330_v46, %v6638_v23  ;;  %4151 = vmatpush.bf16.msrb.mxu2 %v6383_v55  ;;  %4170 = vmatpush.bf16.msra.mxu0 %v5075_v15  ;;  %v8614_v13 = vld [vmem:[#allocation1 + $0x36] sm:$0xff]  ;;  %v3932_v23 = vpop.f32.mrf.mxu1  ;;  %v5747_v46 = vor.u32 %v7102_v48, %v5744_v45  ;;  %v3921_v33 = vpop.f32.mrf.mxu0 }
 0x2c3   : > { %4139 = vmatmul.bf16.vlgmr.msrb.gmra.mxu1 %v8628_v18  ;;  %v3933_v54 = vadd.f32 %v3932_v23, %v3920_v36  ;;  %v4912_v55 = vld [vmem:[%s7547_s19 + $0xb8] sm:$0xf0]  ;;  %v3960_v45 = vpop.f32.mrf.mxu3 }
 0x2c4   : > { %4164 = vmatpush.bf16.msrb.mxu3 %v6639_v58  ;;  %4183 = vmatpush.bf16.msra.mxu1 %v5331_v59  ;;  %v6958_v57 = vld [vmem:[%s7547_s19 + $0x29c] sm:$0xf]  ;;  %v5715_v58 = vor.u32 %v7094_v47, %v5712_v27  ;;  %v4915_v3 = vor.u32 %v6894_v2, %v4912_v55 }
 0x2c5   : > { %4152 = vmatmul.bf16.vlgmr.msrb.gmra.mxu2 %v8614_v13  ;;  %v5168_v15 = vld [vmem:[%s7547_s19 + $0x2b8] sm:$0xf0]  ;;  %v3946_v63 = vadd.f32 %v3945_v50, %v3933_v54 }
 0x2c6   : > { %4196 = vmatpush.bf16.msra.mxu2 %v5587_v62  ;;  %4171 = vmatpush.bf16.msra.mxu0 %v5043_v17  ;;  %v7022_v59 = vld [vmem:[%s7547_s19 + $0x49c] sm:$0xf]  ;;  %v5171_v4 = vor.u32 %v6958_v57, %v5168_v15 }
 0x2c7   : > { %4165 = vmatmul.bf16.vlgmr.msrb.gmra.mxu3 %v8623_v25  ;;  %v5424_v62 = vld [vmem:[%s7547_s19 + $0x4b8] sm:$0xf0]  ;;  %v8656_v39 = vadd.f32 %v3958_v7, %v3946_v63 }
 0x2c8   : > { %4209 = vmatpush.bf16.msra.mxu3 %v5843_v9  ;;  %4184 = vmatpush.bf16.msra.mxu1 %v5299_v6  ;;  %v7086_v1 = vld [vmem:[%s7547_s19 + $0x69c] sm:$0xf]  ;;  %v5427_v30 = vor.u32 %v7022_v59, %v5424_v62 }
 0x2c9   : > { %v5680_v9 = vld [vmem:[%s7547_s19 + $0x6b8] sm:$0xf0] }
 0x2ca   : > { %4197 = vmatpush.bf16.msra.mxu2 %v5555_v11  ;;  %4172 = vmatpush.bf16.msra.mxu0 %v5011_v29  ;;  %v6886_v17 = vld [vmem:[%s7547_s19 + $0x5c] sm:$0xf]  ;;  %v3934_v8 = vpop.f32.mrf.mxu1  ;;  %v5683_v32 = vor.u32 %v7086_v1, %v5680_v9 }
 0x2cb   : > { %v4880_v6 = vld [vmem:[%s7547_s19 + $0x78] sm:$0xf0] }
 0x2cc   : > { %4210 = vmatpush.bf16.msra.mxu3 %v5811_v16  ;;  %4185 = vmatpush.bf16.msra.mxu1 %v5267_v31  ;;  %v6950_v11 = vld [vmem:[%s7547_s19 + $0x25c] sm:$0xf]  ;;  %v4883_v26 = vor.u32 %v6886_v17, %v4880_v6 }
 0x2cd   : > { %v5136_v10 = vld [vmem:[%s7547_s19 + $0x278] sm:$0xf0] }
 0x2ce   : > { %4198 = vmatpush.bf16.msra.mxu2 %v5523_v34  ;;  %4173 = vmatpush.bf16.msra.mxu0 %v4979_v60  ;;  %v7014_v16 = vld [vmem:[%s7547_s19 + $0x45c] sm:$0xf]  ;;  %v5139_v31 = vor.u32 %v6950_v11, %v5136_v10  ;;  %v7424_v11 = vld [vmem:[#allocation1] sm:$0xff]  ;;  %v7426_v10 = vld [vmem:[#allocation1 + $0x9] sm:$0xff] }
 0x2cf   : > { %v5392_v5 = vld [vmem:[%s7547_s19 + $0x478] sm:$0xf0] }
 0x2d0   : > { %4211 = vmatpush.bf16.msra.mxu3 %v5779_v37  ;;  %4186 = vmatpush.bf16.msra.mxu1 %v5235_v49  ;;  %v7078_v14 = vld [vmem:[%s7547_s19 + $0x65c] sm:$0xf]  ;;  %v5395_v34 = vor.u32 %v7014_v16, %v5392_v5  ;;  %v3947_v37 = vpop.f32.mrf.mxu2 }
 0x2d1   : > { %v5648_v19 = vld [vmem:[%s7547_s19 + $0x678] sm:$0xf0]  ;;  %v3971_v37 = vpop.f32.mrf.mxu0 }
 0x2d2   : > { %4199 = vmatpush.bf16.msra.mxu2 %v5491_v12  ;;  %4174 = vmatpush.bf16.msra.mxu0 %v4947_v61  ;;  %v6878_v28 = vld [vmem:[%s7547_s19 + $0x1c] sm:$0xf]  ;;  %v5651_v38 = vor.u32 %v7078_v14, %v5648_v19 }
 0x2d3   : > { %v4848_v29 = vld [vmem:[%s7547_s19 + $0x38] sm:$0xf0] }
 0x2d4   : > { %4212 = vmatpush.bf16.msra.mxu3 %v5747_v46  ;;  %4187 = vmatpush.bf16.msra.mxu1 %v5203_v20  ;;  %v6942_v56 = vld [vmem:[%s7547_s19 + $0x21c] sm:$0xf]  ;;  %v4851_v12 = vor.u32 %v6878_v28, %v4848_v29 }
 0x2d5   : > { %v5104_v0 = vld [vmem:[%s7547_s19 + $0x238] sm:$0xf0] }
 0x2d6   : > { %4200 = vmatpush.bf16.msra.mxu2 %v5459_v52  ;;  %4175 = vmatpush.bf16.msra.mxu0 %v4915_v3  ;;  %v7006_v35 = vld [vmem:[%s7547_s19 + $0x41c] sm:$0xf]  ;;  %v5107_v36 = vor.u32 %v6942_v56, %v5104_v0  ;;  %v7423_v3 = vld [vmem:[#allocation1 + $0x12] sm:$0xff] }
 0x2d7   : > { %v5360_v43 = vld [vmem:[%s7547_s19 + $0x438] sm:$0xf0] }
 0x2d8   : > { %4213 = vmatpush.bf16.msra.mxu3 %v5715_v58  ;;  %4188 = vmatpush.bf16.msra.mxu1 %v5171_v4  ;;  %v7070_v44 = vld [vmem:[%s7547_s19 + $0x61c] sm:$0xf]  ;;  %v5363_v23 = vor.u32 %v7006_v35, %v5360_v43 }
 0x2d9   : > { %v5616_v48 = vld [vmem:[%s7547_s19 + $0x638] sm:$0xf0] }
 0x2da   : > { %4201 = vmatpush.bf16.msra.mxu2 %v5427_v30  ;;  %v7190_v60 = vld [vmem:[%s7547_s19 + $0x9dc] sm:$0xf]  ;;  %4176 = vmatpush.bf16.msra.mxu0 %v4883_v26  ;;  %v5619_v53 = vor.u32 %v7070_v44, %v5616_v48 }
 0x2db   : > { %v6096_v21 = vld [vmem:[%s7547_s19 + $0x9f8] sm:$0xf0] }
 0x2dc   : > { %4214 = vmatpush.bf16.msra.mxu3 %v5683_v32  ;;  %v7254_v49 = vld [vmem:[%s7547_s19 + $0xbdc] sm:$0xf]  ;;  %4189 = vmatpush.bf16.msra.mxu1 %v5139_v31  ;;  %v6099_v41 = vor.u32 %v7190_v60, %v6096_v21  ;;  %v3984_v60 = vpop.f32.mrf.mxu1 }
 0x2dd   : > { %v6352_v22 = vld [vmem:[%s7547_s19 + $0xbf8] sm:$0xf0] }
 0x2de   : > { %v7318_v51 = vld [vmem:[%s7547_s19 + $0xddc] sm:$0xf]  ;;  %4202 = vmatpush.bf16.msra.mxu2 %v5395_v34  ;;  %v6355_v47 = vor.u32 %v7254_v49, %v6352_v22  ;;  %4177 = vmatpush.bf16.msra.mxu0 %v4851_v12 }
 0x2df   : > { %v6608_v42 = vld [vmem:[%s7547_s19 + $0xdf8] sm:$0xf0] }
 0x2e0   : > { %v7382_v46 = vld [vmem:[%s7547_s19 + $0xfdc] sm:$0xf]  ;;  %4215 = vmatpush.bf16.msra.mxu3 %v5651_v38  ;;  %v6611_v27 = vor.u32 %v7318_v51, %v6608_v42  ;;  %4190 = vmatpush.bf16.msra.mxu1 %v5107_v36  ;;  %v3985_v51 = vadd.f32 %v3984_v60, %v3971_v37 }
 0x2e1   : > { %v6864_v40 = vld [vmem:[%s7547_s19 + $0xff8] sm:$0xf0]  ;;  %4178 = vmatmul.bf16.vlgmr.msra.gmra.mxu0 %v7424_v11 }
 0x2e2   : > { %v7182_v54 = vld [vmem:[%s7547_s19 + $0x99c] sm:$0xf]  ;;  %v6867_v52 = vor.u32 %v7382_v46, %v6864_v40  ;;  %4203 = vmatpush.bf16.msra.mxu2 %v5363_v23  ;;  %4222 = vmatpush.bf16.msrb.mxu0 %v6099_v41 }
 0x2e3   : > { %v6064_v61 = vld [vmem:[%s7547_s19 + $0x9b8] sm:$0xf0]  ;;  %4191 = vmatmul.bf16.vlgmr.msra.gmra.mxu1 %v7426_v10 }
 0x2e4   : > { %v7246_v20 = vld [vmem:[%s7547_s19 + $0xb9c] sm:$0xf]  ;;  %4216 = vmatpush.bf16.msra.mxu3 %v5619_v53  ;;  %v6067_v15 = vor.u32 %v7182_v54, %v6064_v61  ;;  %4235 = vmatpush.bf16.msrb.mxu1 %v6355_v47 }
 0x2e5   : > { %v6320_v2 = vld [vmem:[%s7547_s19 + $0xbb8] sm:$0xf0]  ;;  %4204 = vmatmul.bf16.vlgmr.msra.gmra.mxu2 %v7423_v3  ;;  %v3986_v3 = vpop.f32.mrf.mxu1 }
 0x2e6   : > { %v7310_v55 = vld [vmem:[%s7547_s19 + $0xd9c] sm:$0xf]  ;;  %4248 = vmatpush.bf16.msrb.mxu2 %v6611_v27  ;;  %v6323_v59 = vor.u32 %v7246_v20, %v6320_v2  ;;  %4223 = vmatpush.bf16.msrb.mxu0 %v6067_v15  ;;  %v3997_v27 = vpop.f32.mrf.mxu2 }
 0x2e7   : > { %v6576_v57 = vld [vmem:[%s7547_s19 + $0xdb8] sm:$0xf0]  ;;  %v3998_v2 = vadd.f32 %v3997_v27, %v3985_v51 }
 0x2e8   : > { %v7374_v50 = vld [vmem:[%s7547_s19 + $0xf9c] sm:$0xf]  ;;  %v6579_v62 = vor.u32 %v7310_v55, %v6576_v57  ;;  %4261 = vmatpush.bf16.msrb.mxu3 %v6867_v52  ;;  %4236 = vmatpush.bf16.msrb.mxu1 %v6323_v59  ;;  %v4010_v55 = vpop.f32.mrf.mxu3  ;;  %v3973_v59 = vpop.f32.mrf.mxu0 }
 0x2e9   : > { %v6832_v58 = vld [vmem:[%s7547_s19 + $0xfb8] sm:$0xf0]  ;;  %v4011_v15 = vadd.f32 %v4010_v55, %v3998_v2 }
 0x2ea   : > { %v7174_v63 = vld [vmem:[%s7547_s19 + $0x95c] sm:$0xf]  ;;  %v6835_v9 = vor.u32 %v7374_v50, %v6832_v58  ;;  %4249 = vmatpush.bf16.msrb.mxu2 %v6579_v62 }
 0x2eb   : > { %v6032_v7 = vld [vmem:[%s7547_s19 + $0x978] sm:$0xf0] }
 0x2ec   : > { %v7238_v1 = vld [vmem:[%s7547_s19 + $0xb5c] sm:$0xf]  ;;  %v6035_v32 = vor.u32 %v7174_v63, %v6032_v7  ;;  %4262 = vmatpush.bf16.msrb.mxu3 %v6835_v9 }
 0x2ed   : > { %v6288_v33 = vld [vmem:[%s7547_s19 + $0xb78] sm:$0xf0] }
 0x2ee   : > { %v7302_v4 = vld [vmem:[%s7547_s19 + $0xd5c] sm:$0xf]  ;;  %v6291_v16 = vor.u32 %v7238_v1, %v6288_v33  ;;  %4224 = vmatpush.bf16.msrb.mxu0 %v6035_v32 }
 0x2ef   : > { %v6544_v30 = vld [vmem:[%s7547_s19 + $0xd78] sm:$0xf0] }
 0x2f0   : > { %v7366_v17 = vld [vmem:[%s7547_s19 + $0xf5c] sm:$0xf]  ;;  %v6547_v5 = vor.u32 %v7302_v4, %v6544_v30  ;;  %4237 = vmatpush.bf16.msrb.mxu1 %v6291_v16 }
 0x2f1   : > { %v6800_v6 = vld [vmem:[%s7547_s19 + $0xf78] sm:$0xf0] }
 0x2f2   : > { %v7425_v8 = vld [vmem:[#allocation1 + $0x1b] sm:$0xff]  ;;  %v6803_v28 = vor.u32 %v7366_v17, %v6800_v6  ;;  %4250 = vmatpush.bf16.msrb.mxu2 %v6547_v5 }
 0x2f3   : > { %4217 = vmatmul.bf16.vlgmr.msra.gmra.mxu3 %v7425_v8  ;;  %v7166_v14 = vld [vmem:[%s7547_s19 + $0x91c] sm:$0xf] }
 0x2f4   : > { %v6000_v19 = vld [vmem:[%s7547_s19 + $0x938] sm:$0xf0]  ;;  %4263 = vmatpush.bf16.msrb.mxu3 %v6803_v28 }
 0x2f5   : > { %v7230_v26 = vld [vmem:[%s7547_s19 + $0xb1c] sm:$0xf]  ;;  %v6003_v35 = vor.u32 %v7166_v14, %v6000_v19  ;;  %v3999_v19 = vpop.f32.mrf.mxu2 }
 0x2f6   : > { %v6256_v29 = vld [vmem:[%s7547_s19 + $0xb38] sm:$0xf0] }
 0x2f7   : > { %v7294_v31 = vld [vmem:[%s7547_s19 + $0xd1c] sm:$0xf]  ;;  %v6259_v38 = vor.u32 %v7230_v26, %v6256_v29  ;;  %4225 = vmatpush.bf16.msrb.mxu0 %v6003_v35 }
 0x2f8   : > { %v6512_v34 = vld [vmem:[%s7547_s19 + $0xd38] sm:$0xf0] }
 0x2f9   : > { %v7358_v56 = vld [vmem:[%s7547_s19 + $0xf1c] sm:$0xf]  ;;  %v6515_v43 = vor.u32 %v7294_v31, %v6512_v34  ;;  %4238 = vmatpush.bf16.msrb.mxu1 %v6259_v38  ;;  %v4012_v34 = vpop.f32.mrf.mxu3 }
 0x2fa   : > { %v6768_v0 = vld [vmem:[%s7547_s19 + $0xf38] sm:$0xf0] }
 0x2fb   : > { %v7158_v44 = vld [vmem:[%s7547_s19 + $0x8dc] sm:$0xf]  ;;  %v6771_v21 = vor.u32 %v7358_v56, %v6768_v0  ;;  %4251 = vmatpush.bf16.msrb.mxu2 %v6515_v43 }
 0x2fc   : > { %v5968_v48 = vld [vmem:[%s7547_s19 + $0x8f8] sm:$0xf0] }
 0x2fd   : > { %v7222_v45 = vld [vmem:[%s7547_s19 + $0xadc] sm:$0xf]  ;;  %v5971_v23 = vor.u32 %v7158_v44, %v5968_v48  ;;  %4264 = vmatpush.bf16.msrb.mxu3 %v6771_v21  ;;  %v4023_v44 = vpop.f32.mrf.mxu0  ;;  %v4049_v21 = vpop.f32.mrf.mxu2 }
 0x2fe   : > { %v6224_v49 = vld [vmem:[%s7547_s19 + $0xaf8] sm:$0xf0]  ;;  %v4024_v48 = vadd.f32 %v4023_v44, %v4011_v15 }
 0x2ff   : > { %v7286_v12 = vld [vmem:[%s7547_s19 + $0xcdc] sm:$0xf]  ;;  %v6227_v46 = vor.u32 %v7222_v45, %v6224_v49  ;;  %4226 = vmatpush.bf16.msrb.mxu0 %v5971_v23  ;;  %v4036_v45 = vpop.f32.mrf.mxu1 }
 0x300   : > { %v6480_v22 = vld [vmem:[%s7547_s19 + $0xcf8] sm:$0xf0]  ;;  %v4037_v60 = vadd.f32 %v4036_v45, %v4024_v48 }
 0x301   : > { %v7350_v42 = vld [vmem:[%s7547_s19 + $0xedc] sm:$0xf]  ;;  %v6483_v40 = vor.u32 %v7286_v12, %v6480_v22  ;;  %4239 = vmatpush.bf16.msrb.mxu1 %v6227_v46  ;;  %v4062_v12 = vpop.f32.mrf.mxu3 }
 0x302   : > { %v6736_v36 = vld [vmem:[%s7547_s19 + $0xef8] sm:$0xf0]  ;;  %v4050_v49 = vadd.f32 %v4049_v21, %v4037_v60 }
 0x303   : > { %v7150_v53 = vld [vmem:[%s7547_s19 + $0x89c] sm:$0xf]  ;;  %v6739_v54 = vor.u32 %v7350_v42, %v6736_v36  ;;  %4252 = vmatpush.bf16.msrb.mxu2 %v6483_v40 }
 0x304   : > { %v5936_v41 = vld [vmem:[%s7547_s19 + $0x8b8] sm:$0xf0]  ;;  %v4063_v22 = vadd.f32 %v4062_v12, %v4050_v49 }
 0x305   : > { %v7214_v47 = vld [vmem:[%s7547_s19 + $0xa9c] sm:$0xf]  ;;  %v5939_v58 = vor.u32 %v7150_v53, %v5936_v41  ;;  %4265 = vmatpush.bf16.msrb.mxu3 %v6739_v54  ;;  %v4025_v51 = vpop.f32.mrf.mxu0  ;;  %v4051_v23 = vpop.f32.mrf.mxu2 }
 0x306   : > { %v6192_v61 = vld [vmem:[%s7547_s19 + $0xab8] sm:$0xf0]  ;;  %v4285_v36 = vrot.slane %v4063_v22, 6 }
 0x307   : > { %v7278_v20 = vld [vmem:[%s7547_s19 + $0xc9c] sm:$0xf]  ;;  %v6195_v62 = vor.u32 %v7214_v47, %v6192_v61  ;;  %4227 = vmatpush.bf16.msrb.mxu0 %v5939_v58  ;;  %v4038_v42 = vpop.f32.mrf.mxu1 }
 0x308   : > { %v6448_v52 = vld [vmem:[%s7547_s19 + $0xcb8] sm:$0xf0] }
 0x309   : > { %v7342_v57 = vld [vmem:[%s7547_s19 + $0xe9c] sm:$0xf]  ;;  %v6451_v63 = vor.u32 %v7278_v20, %v6448_v52  ;;  %4240 = vmatpush.bf16.msrb.mxu1 %v6195_v62 }
 0x30a   : > { %v6704_v50 = vld [vmem:[%s7547_s19 + $0xeb8] sm:$0xf0] }
 0x30b   : > { %v7142_v7 = vld [vmem:[%s7547_s19 + $0x85c] sm:$0xf]  ;;  %v6707_v33 = vor.u32 %v7342_v57, %v6704_v50  ;;  %4253 = vmatpush.bf16.msrb.mxu2 %v6451_v63 }
 0x30c   : > { %v5904_v1 = vld [vmem:[%s7547_s19 + $0x878] sm:$0xf0] }
 0x30d   : > { %v7206_v9 = vld [vmem:[%s7547_s19 + $0xa5c] sm:$0xf]  ;;  %v5907_v8 = vor.u32 %v7142_v7, %v5904_v1  ;;  %4266 = vmatpush.bf16.msrb.mxu3 %v6707_v33  ;;  %v4075_v46 = vpop.f32.mrf.mxu0 }
 0x30e   : > { %v6160_v4 = vld [vmem:[%s7547_s19 + $0xa78] sm:$0xf0] }
 0x30f   : > { %v7270_v30 = vld [vmem:[%s7547_s19 + $0xc5c] sm:$0xf]  ;;  %v6163_v32 = vor.u32 %v7206_v9, %v6160_v4  ;;  %4228 = vmatpush.bf16.msrb.mxu0 %v5907_v8 }
 0x310   : > { %v6416_v17 = vld [vmem:[%s7547_s19 + $0xc78] sm:$0xf0] }
 0x311   : > { %v7334_v6 = vld [vmem:[%s7547_s19 + $0xe5c] sm:$0xf]  ;;  %v6419_v10 = vor.u32 %v7270_v30, %v6416_v17  ;;  %4241 = vmatpush.bf16.msrb.mxu1 %v6163_v32 }
 0x312   : > { %v6672_v11 = vld [vmem:[%s7547_s19 + $0xe78] sm:$0xf0] }
 0x313   : > { %v7134_v16 = vld [vmem:[%s7547_s19 + $0x81c] sm:$0xf]  ;;  %v6675_v26 = vor.u32 %v7334_v6, %v6672_v11  ;;  %4254 = vmatpush.bf16.msrb.mxu2 %v6419_v10 }
 0x314   : > { %v5872_v5 = vld [vmem:[%s7547_s19 + $0x838] sm:$0xf0] }
 0x315   : > { %v7198_v14 = vld [vmem:[%s7547_s19 + $0xa1c] sm:$0xf]  ;;  %v5875_v35 = vor.u32 %v7134_v16, %v5872_v5  ;;  %4267 = vmatpush.bf16.msrb.mxu3 %v6675_v26  ;;  %v4077_v27 = vpop.f32.mrf.mxu0 }
 0x316   : > { %v6128_v28 = vld [vmem:[%s7547_s19 + $0xa38] sm:$0xf0] }
 0x317   : > { %v7262_v29 = vld [vmem:[%s7547_s19 + $0xc1c] sm:$0xf]  ;;  %v6131_v37 = vor.u32 %v7198_v14, %v6128_v28  ;;  %4229 = vmatpush.bf16.msrb.mxu0 %v5875_v35  ;;  %v350_v35 = vld [vmem:[#allocation2 + $0x8] sm:$0xff] }
 0x318   : > { %v6384_v31 = vld [vmem:[%s7547_s19 + $0xc38] sm:$0xf0] }
 0x319   : > { %v7326_v56 = vld [vmem:[%s7547_s19 + $0xe1c] sm:$0xf]  ;;  %v6387_v38 = vor.u32 %v7262_v29, %v6384_v31  ;;  %4242 = vmatpush.bf16.msrb.mxu1 %v6131_v37 }
 0x31a   : > { %v6640_v0 = vld [vmem:[%s7547_s19 + $0xe38] sm:$0xf0]  ;;  %4230 = vmatmul.bf16.vlgmr.msrb.gmra.mxu0 %v8620_v24  ;;  %v4294_v24 = vsel %vm4288_vm0, %v8656_v39, %v4285_v36 }
 0x31b   : > { %v6643_v43 = vor.u32 %v7326_v56, %v6640_v0  ;;  %4255 = vmatpush.bf16.msrb.mxu2 %v6387_v38 }
 0x31c   : > { %4243 = vmatmul.bf16.vlgmr.msrb.gmra.mxu1 %v8628_v18  ;;  %v4064_v18 = vpop.f32.mrf.mxu3 }
 0x31d   : > { %4268 = vmatpush.bf16.msrb.mxu3 %v6643_v43 }
 0x31e   : > { %4256 = vmatmul.bf16.vlgmr.msrb.gmra.mxu2 %v8614_v13  ;;  %v4088_v13 = vpop.f32.mrf.mxu1 }
 0x31f   : > { %v4089_v40 = vadd.f32 %v4088_v13, %v4075_v46 }
 0x320   : > { %4269 = vmatmul.bf16.vlgmr.msrb.gmra.mxu3 %v8623_v25  ;;  %v4101_v25 = vpop.f32.mrf.mxu2 }
 0x321   : > { %v4102_v53 = vadd.f32 %v4101_v25, %v4089_v40 }
 0x324   : > { %v4114_v41 = vpop.f32.mrf.mxu3 }
 0x325   : > { %v4115_v47 = vadd.f32 %v4114_v41, %v4102_v53 }
 0x326   : > { %v4090_v54 = vpop.f32.mrf.mxu1 }
 0x328   : > { %v4103_v61 = vpop.f32.mrf.mxu2 }
 0x32c   : > { %v4116_v20 = vpop.f32.mrf.mxu3 }
 0x33e   : > { %v4127_v52 = vpop.f32.mrf.mxu0 }
 0x33f   : > { %v4128_v30 = vadd.f32 %v4127_v52, %v4115_v47 }
 0x340   : > { %v4140_v2 = vpop.f32.mrf.mxu1 }
 0x341   : > { %v4141_v6 = vadd.f32 %v4140_v2, %v4128_v30 }
 0x346   : > { %v4129_v50 = vpop.f32.mrf.mxu0 }
 0x348   : > { %v4153_v55 = vpop.f32.mrf.mxu2  ;;  %v4142_v58 = vpop.f32.mrf.mxu1 }
 0x349   : > { %v4154_v16 = vadd.f32 %v4153_v55, %v4141_v6 }
 0x34a   : > { %v4166_v57 = vpop.f32.mrf.mxu3 }
 0x34b   : > { %v4167_v19 = vadd.f32 %v4166_v57, %v4154_v16 }
 0x34d   : > { %v4286_v56 = vrot.slane %v4167_v19, 4 }
 0x350   : > { %v4155_v39 = vpop.f32.mrf.mxu2 }
 0x352   : > { %v4168_v15 = vpop.f32.mrf.mxu3 }
 0x35e   : > { %v4179_v59 = vpop.f32.mrf.mxu0 }
 0x360   : > { %v4192_v62 = vpop.f32.mrf.mxu1 }
 0x361   : > { %v4193_v4 = vadd.f32 %v4192_v62, %v4179_v59 }
 0x366   : > { %v4181_v1 = vpop.f32.mrf.mxu0 }
 0x368   : > { %v4205_v63 = vpop.f32.mrf.mxu2  ;;  %v4194_v9 = vpop.f32.mrf.mxu1 }
 0x369   : > { %v4206_v17 = vadd.f32 %v4205_v63, %v4193_v4 }
 0x370   : > { %v4207_v3 = vpop.f32.mrf.mxu2 }
 0x376   : > { %v4218_v7 = vpop.f32.mrf.mxu3 }
 0x377   : > { %v4219_v11 = vadd.f32 %v4218_v7, %v4206_v17 }
 0x37e   : > { %v4220_v33 = vpop.f32.mrf.mxu3 }
 0x397   : > { %v4231_v8 = vpop.f32.mrf.mxu0 }
 0x398   : > { %v4232_v10 = vadd.f32 %v4231_v8, %v4219_v11 }
 0x399   : > { %v4244_v32 = vpop.f32.mrf.mxu1 }
 0x39a   : > { %v4245_v5 = vadd.f32 %v4244_v32, %v4232_v10 }
 0x39f   : > { %v4233_v29 = vpop.f32.mrf.mxu0 }
 0x3a1   : > { %v4257_v14 = vpop.f32.mrf.mxu2  ;;  %v4246_v31 = vpop.f32.mrf.mxu1 }
 0x3a2   : > { %v4258_v26 = vadd.f32 %v4257_v14, %v4245_v5 }
 0x3a3   : > { %v4270_v28 = vpop.f32.mrf.mxu3 }
 0x3a4   : > { %v4271_v34 = vadd.f32 %v4270_v28, %v4258_v26 }
 0x3a6   : > { %v4287_v0 = vrot.slane %v4271_v34, 2 }
 0x3a8   : > { %v4295_v37 = vsel %vm4290_vm1, %v4286_v56, %v4287_v0  ;;  %4306 = sbr.rel (%p6868_p6) target bundleno = 1668 (0x684), region = 64 }
 0x3a9   : > { %v4296_v38 = vsel %vm4292_vm2, %v4294_v24, %v4295_v37  ;;  %v4259_v43 = vpop.f32.mrf.mxu2 }
 0x3aa   : > { %v4300_v44 = vadd.f32 %v4296_v38, %v350_v35 }
 0x3ab   : > { %v4272_v48 = vpop.f32.mrf.mxu3 }
 0x3ac   : > { %4302 = vst [vmem:[#allocation2 + $0x8] sm:$0xff] %v4300_v44 }
 0x3ad   : > { %v4384_v45 = vld [vmem:[%s9234_s3 + $0x178] sm:$0xff]  ;;  %v4383_v21 = vld [vmem:[%s9234_s3 + $0x170] sm:$0xff]  ;;  %v4382_v51 = vld [vmem:[%s9234_s3 + $0x168] sm:$0xff]  ;;  %vm4704_vm3 = vcmask 523264   ;;  %vm4728_vm4 = vcmask 17408  }
 0x3ae   : > { %v4352_v60 = vld [vmem:[%s9234_s3 + $0x78] sm:$0xff]  ;;  %4530 = vmatpush.msra.mxu2 %v4384_v45  ;;  %v4351_v12 = vld [vmem:[%s9234_s3 + $0x70] sm:$0xff]  ;;  %v4350_v36 = vld [vmem:[%s9234_s3 + $0x68] sm:$0xff] }
 0x3af   : > { %4490 = vmatpush.msra.mxu0 %v4352_v60  ;;  %v4400_v49 = vld [vmem:[%s9234_s3 + $0x1f8] sm:$0xff]  ;;  %v4399_v42 = vld [vmem:[%s9234_s3 + $0x1f0] sm:$0xff]  ;;  %v4398_v23 = vld [vmem:[%s9234_s3 + $0x1e8] sm:$0xff] }
 0x3b0   : > { %v4368_v22 = vld [vmem:[%s9234_s3 + $0xf8] sm:$0xff]  ;;  %4550 = vmatpush.msra.mxu3 %v4400_v49  ;;  %4531 = vmatpush.msra.mxu2 %v4383_v21  ;;  %v4367_v24 = vld [vmem:[%s9234_s3 + $0xf0] sm:$0xff]  ;;  %v4381_v18 = vld [vmem:[%s9234_s3 + $0x160] sm:$0xff] }
 0x3b1   : > { %4510 = vmatpush.msra.mxu1 %v4368_v22  ;;  %4491 = vmatpush.msra.mxu0 %v4351_v12  ;;  %v4349_v46 = vld [vmem:[%s9234_s3 + $0x60] sm:$0xff]  ;;  %v4366_v13 = vld [vmem:[%s9234_s3 + $0xe8] sm:$0xff]  ;;  %v4380_v53 = vld [vmem:[%s9234_s3 + $0x158] sm:$0xff] }
 0x3b2   : > { %4551 = vmatpush.msra.mxu3 %v4399_v42  ;;  %4532 = vmatpush.msra.mxu2 %v4382_v51  ;;  %v4397_v40 = vld [vmem:[%s9234_s3 + $0x1e0] sm:$0xff]  ;;  %v4348_v41 = vld [vmem:[%s9234_s3 + $0x58] sm:$0xff]  ;;  %v4379_v54 = vld [vmem:[%s9234_s3 + $0x150] sm:$0xff] }
 0x3b3   : > { %4511 = vmatpush.msra.mxu1 %v4367_v24  ;;  %4492 = vmatpush.msra.mxu0 %v4350_v36  ;;  %v4365_v25 = vld [vmem:[%s9234_s3 + $0xe0] sm:$0xff]  ;;  %v4396_v47 = vld [vmem:[%s9234_s3 + $0x1d8] sm:$0xff]  ;;  %v4347_v61 = vld [vmem:[%s9234_s3 + $0x50] sm:$0xff] }
 0x3b4   : > { %4552 = vmatpush.msra.mxu3 %v4398_v23  ;;  %4533 = vmatpush.msra.mxu2 %v4381_v18  ;;  %v4364_v27 = vld [vmem:[%s9234_s3 + $0xd8] sm:$0xff]  ;;  %v4395_v20 = vld [vmem:[%s9234_s3 + $0x1d0] sm:$0xff]  ;;  %v4378_v2 = vld [vmem:[%s9234_s3 + $0x148] sm:$0xff] }
 0x3b5   : > { %4512 = vmatpush.msra.mxu1 %v4366_v13  ;;  %4493 = vmatpush.msra.mxu0 %v4349_v46  ;;  %v4363_v52 = vld [vmem:[%s9234_s3 + $0xd0] sm:$0xff]  ;;  %v4346_v55 = vld [vmem:[%s9234_s3 + $0x48] sm:$0xff]  ;;  %v4377_v58 = vld [vmem:[%s9234_s3 + $0x140] sm:$0xff] }
 0x3b6   : > { %4553 = vmatpush.msra.mxu3 %v4397_v40  ;;  %4534 = vmatpush.msra.mxu2 %v4380_v53  ;;  %v4394_v57 = vld [vmem:[%s9234_s3 + $0x1c8] sm:$0xff]  ;;  %v4345_v39 = vld [vmem:[%s9234_s3 + $0x40] sm:$0xff]  ;;  %v4376_v62 = vld [vmem:[%s9234_s3 + $0x138] sm:$0xff] }
 0x3b7   : > { %4513 = vmatpush.msra.mxu1 %v4365_v25  ;;  %4494 = vmatpush.msra.mxu0 %v4348_v41  ;;  %v4362_v50 = vld [vmem:[%s9234_s3 + $0xc8] sm:$0xff]  ;;  %v4393_v15 = vld [vmem:[%s9234_s3 + $0x1c0] sm:$0xff]  ;;  %v4344_v63 = vld [vmem:[%s9234_s3 + $0x38] sm:$0xff] }
 0x3b8   : > { %4554 = vmatpush.msra.mxu3 %v4396_v47  ;;  %4535 = vmatpush.msra.mxu2 %v4379_v54  ;;  %v4361_v59 = vld [vmem:[%s9234_s3 + $0xc0] sm:$0xff]  ;;  %v4392_v7 = vld [vmem:[%s9234_s3 + $0x1b8] sm:$0xff]  ;;  %v4375_v9 = vld [vmem:[%s9234_s3 + $0x130] sm:$0xff] }
 0x3b9   : > { %4514 = vmatpush.msra.mxu1 %v4364_v27  ;;  %4495 = vmatpush.msra.mxu0 %v4347_v61  ;;  %v4360_v1 = vld [vmem:[%s9234_s3 + $0xb8] sm:$0xff]  ;;  %v4343_v3 = vld [vmem:[%s9234_s3 + $0x30] sm:$0xff]  ;;  %v4374_v30 = vld [vmem:[%s9234_s3 + $0x128] sm:$0xff] }
 0x3ba   : > { %4555 = vmatpush.msra.mxu3 %v4395_v20  ;;  %4536 = vmatpush.msra.mxu2 %v4378_v2  ;;  %v4391_v33 = vld [vmem:[%s9234_s3 + $0x1b0] sm:$0xff]  ;;  %v4342_v17 = vld [vmem:[%s9234_s3 + $0x28] sm:$0xff]  ;;  %v4373_v8 = vld [vmem:[%s9234_s3 + $0x120] sm:$0xff] }
 0x3bb   : > { %4515 = vmatpush.msra.mxu1 %v4363_v52  ;;  %4496 = vmatpush.msra.mxu0 %v4346_v55  ;;  %v4359_v4 = vld [vmem:[%s9234_s3 + $0xb0] sm:$0xff]  ;;  %v4390_v6 = vld [vmem:[%s9234_s3 + $0x1a8] sm:$0xff]  ;;  %v4341_v32 = vld [vmem:[%s9234_s3 + $0x20] sm:$0xff] }
 0x3bc   : > { %4556 = vmatpush.msra.mxu3 %v4394_v57  ;;  %4537 = vmatpush.msra.mxu2 %v4377_v58  ;;  %v4358_v11 = vld [vmem:[%s9234_s3 + $0xa8] sm:$0xff]  ;;  %v4389_v10 = vld [vmem:[%s9234_s3 + $0x1a0] sm:$0xff]  ;;  %v4372_v5 = vld [vmem:[%s9234_s3 + $0x118] sm:$0xff] }
 0x3bd   : > { %4516 = vmatpush.msra.mxu1 %v4362_v50  ;;  %4497 = vmatpush.msra.mxu0 %v4345_v39  ;;  %v4357_v16 = vld [vmem:[%s9234_s3 + $0xa0] sm:$0xff]  ;;  %v4340_v14 = vld [vmem:[%s9234_s3 + $0x18] sm:$0xff]  ;;  %v4371_v28 = vld [vmem:[%s9234_s3 + $0x110] sm:$0xff] }
 0x3be   : > { %4557 = vmatpush.msra.mxu3 %v4393_v15  ;;  %4538 = vmatpush.msra.mxu2 %v4376_v62  ;;  %v4388_v19 = vld [vmem:[%s9234_s3 + $0x198] sm:$0xff]  ;;  %v4339_v29 = vld [vmem:[%s9234_s3 + $0x10] sm:$0xff]  ;;  %v4370_v56 = vld [vmem:[%s9234_s3 + $0x108] sm:$0xff] }
 0x3bf   : > { %4517 = vmatpush.msra.mxu1 %v4361_v59  ;;  %4498 = vmatpush.msra.mxu0 %v4344_v63  ;;  %v4356_v26 = vld [vmem:[%s9234_s3 + $0x98] sm:$0xff]  ;;  %v4387_v31 = vld [vmem:[%s9234_s3 + $0x190] sm:$0xff]  ;;  %v4338_v0 = vld [vmem:[%s9234_s3 + $0x8] sm:$0xff] }
 0x3c0   : > { %4558 = vmatpush.msra.mxu3 %v4392_v7  ;;  %4539 = vmatpush.msra.mxu2 %v4375_v9  ;;  %v4355_v34 = vld [vmem:[%s9234_s3 + $0x90] sm:$0xff]  ;;  %v4386_v35 = vld [vmem:[%s9234_s3 + $0x188] sm:$0xff]  ;;  %v4369_v38 = vld [vmem:[%s9234_s3 + $0x100] sm:$0xff] }
 0x3c1   : > { %4518 = vmatpush.msra.mxu1 %v4360_v1  ;;  %4499 = vmatpush.msra.mxu0 %v4343_v3  ;;  %v4354_v37 = vld [vmem:[%s9234_s3 + $0x88] sm:$0xff]  ;;  %v4337_v43 = vld [vmem:[%s9234_s3] sm:$0xff]  ;;  %v4448_v44 = vld [vmem:[%s9234_s3 + $0x378] sm:$0xff] }
 0x3c2   : > { %4559 = vmatpush.msra.mxu3 %v4391_v33  ;;  %4540 = vmatpush.msra.mxu2 %v4374_v30  ;;  %v4385_v48 = vld [vmem:[%s9234_s3 + $0x180] sm:$0xff]  ;;  %v4416_v45 = vld [vmem:[%s9234_s3 + $0x278] sm:$0xff]  ;;  %v4447_v21 = vld [vmem:[%s9234_s3 + $0x370] sm:$0xff] }
 0x3c3   : > { %4519 = vmatpush.msra.mxu1 %v4359_v4  ;;  %4500 = vmatpush.msra.mxu0 %v4342_v17  ;;  %v4464_v60 = vld [vmem:[%s9234_s3 + $0x3f8] sm:$0xff]  ;;  %v4353_v49 = vld [vmem:[%s9234_s3 + $0x80] sm:$0xff]  ;;  %v4415_v12 = vld [vmem:[%s9234_s3 + $0x270] sm:$0xff] }
 0x3c4   : > { %4560 = vmatpush.msra.mxu3 %v4390_v6  ;;  %4541 = vmatpush.msra.mxu2 %v4373_v8  ;;  %v4432_v22 = vld [vmem:[%s9234_s3 + $0x2f8] sm:$0xff]  ;;  %v4446_v51 = vld [vmem:[%s9234_s3 + $0x368] sm:$0xff]  ;;  %v4463_v42 = vld [vmem:[%s9234_s3 + $0x3f0] sm:$0xff] }
 0x3c5   : > { %4520 = vmatpush.msra.mxu1 %v4358_v11  ;;  %4501 = vmatpush.msra.mxu0 %v4341_v32  ;;  %v4414_v36 = vld [vmem:[%s9234_s3 + $0x268] sm:$0xff]  ;;  %v4431_v24 = vld [vmem:[%s9234_s3 + $0x2f0] sm:$0xff]  ;;  %v4445_v23 = vld [vmem:[%s9234_s3 + $0x360] sm:$0xff] }
 0x3c6   : > { %4561 = vmatpush.msra.mxu3 %v4389_v10  ;;  %4542 = vmatpush.msra.mxu2 %v4372_v5  ;;  %v4462_v18 = vld [vmem:[%s9234_s3 + $0x3e8] sm:$0xff]  ;;  %v4413_v46 = vld [vmem:[%s9234_s3 + $0x260] sm:$0xff]  ;;  %v4444_v25 = vld [vmem:[%s9234_s3 + $0x358] sm:$0xff] }
 0x3c7   : > { %4521 = vmatpush.msra.mxu1 %v4357_v16  ;;  %4502 = vmatpush.msra.mxu0 %v4340_v14  ;;  %v4430_v13 = vld [vmem:[%s9234_s3 + $0x2e8] sm:$0xff]  ;;  %v4309_v40 = vld [vmem:[%s9233_s2] sm:$0xff]  ;;  %v4412_v61 = vld [vmem:[%s9234_s3 + $0x258] sm:$0xff] }
 0x3c8   : > { %4562 = vmatpush.msra.mxu3 %v4388_v19  ;;  %4543 = vmatpush.msra.mxu2 %v4371_v28  ;;  %v4461_v53 = vld [vmem:[%s9234_s3 + $0x3e0] sm:$0xff]  ;;  %v4311_v41 = vperm.slane %v4309_v40, 0  ;;  %v4312_v47 = vperm.slane %v4309_v40, 1  ;;  %v4313_v27 = vperm.slane %v4309_v40, 2  ;;  %v4314_v54 = vperm.slane %v4309_v40, 3  ;;  %v4443_v57 = vld [vmem:[%s9234_s3 + $0x350] sm:$0xff] }
 0x3c9   : > { %4522 = vmatpush.msra.mxu1 %v4356_v26  ;;  %4503 = vmatpush.msra.mxu0 %v4339_v29  ;;  %v4429_v20 = vld [vmem:[%s9234_s3 + $0x2e0] sm:$0xff]  ;;  %v4315_v52 = vperm.slane %v4309_v40, 4  ;;  %v4316_v2 = vperm.slane %v4309_v40, 5  ;;  %v4317_v55 = vperm.slane %v4309_v40, 6  ;;  %v4460_v50 = vld [vmem:[%s9234_s3 + $0x3d8] sm:$0xff]  ;;  %v4411_v59 = vld [vmem:[%s9234_s3 + $0x250] sm:$0xff] }
 0x3ca   : > { %4563 = vmatpush.msra.mxu3 %v4387_v31  ;;  %4544 = vmatpush.msra.mxu2 %v4370_v56  ;;  %v4319_v58 = vrot.slane %v4312_v47, 6  ;;  %v4320_v39 = vrot.slane %v4313_v27, 4  ;;  %v4321_v15 = vrot.slane %v4314_v54, 2  ;;  %v4428_v62 = vld [vmem:[%s9234_s3 + $0x2d8] sm:$0xff]  ;;  %v4307_v63 = vld [vmem:[#allocation2] sm:$0xff]  ;;  %v4318_v7 = vperm.slane %v4309_v40, 7 }
 0x3cb   : > { %4523 = vmatpush.msra.mxu1 %v4355_v34  ;;  %4504 = vmatpush.msra.mxu0 %v4338_v0  ;;  %v4322_v1 = vrot.slane %v4316_v2, 6  ;;  %v4323_v9 = vrot.slane %v4317_v55, 4  ;;  %v4442_v3 = vld [vmem:[%s9234_s3 + $0x348] sm:$0xff]  ;;  %v4459_v33 = vld [vmem:[%s9234_s3 + $0x3d0] sm:$0xff]  ;;  %v4441_v10 = vld [vmem:[%s9234_s3 + $0x340] sm:$0xff] }
 0x3cc   : > { %4564 = vmatpush.msra.mxu3 %v4386_v35  ;;  %4545 = vmatpush.msra.mxu2 %v4369_v38  ;;  %v4325_v4 = vsel %vm4288_vm0, %v4311_v41, %v4319_v58  ;;  %v4326_v30 = vsel %vm4290_vm1, %v4320_v39, %v4321_v15  ;;  %v4410_v17 = vld [vmem:[%s9234_s3 + $0x248] sm:$0xff]  ;;  %v4427_v6 = vld [vmem:[%s9234_s3 + $0x2d0] sm:$0xff]  ;;  %v4324_v8 = vrot.slane %v4318_v7, 2  ;;  %v4409_v19 = vld [vmem:[%s9234_s3 + $0x240] sm:$0xff] }
 0x3cd   : > { %4524 = vmatpush.msra.mxu1 %v4354_v37  ;;  %4505 = vmatpush.msra.mxu0 %v4337_v43  ;;  %v4327_v11 = vsel %vm4292_vm2, %v4325_v4, %v4326_v30  ;;  %v4328_v32 = vsel %vm4288_vm0, %v4315_v52, %v4322_v1  ;;  %v4458_v16 = vld [vmem:[%s9234_s3 + $0x3c8] sm:$0xff]  ;;  %v4308_v14 = vld [vmem:[#allocation2 + $0x8] sm:$0xff]  ;;  %v4440_v29 = vld [vmem:[%s9234_s3 + $0x338] sm:$0xff] }
 0x3ce   : > { %4610 = vmatpush.msrb.mxu2 %v4448_v44  ;;  %4565 = vmatpush.msra.mxu3 %v4385_v48  ;;  %v4333_v5 = vadd.f32 %v4327_v11, %v4307_v63  ;;  %v4426_v26 = vld [vmem:[%s9234_s3 + $0x2c8] sm:$0xff]  ;;  %v4329_v28 = vsel %vm4290_vm1, %v4323_v9, %v4324_v8  ;;  %v4457_v31 = vld [vmem:[%s9234_s3 + $0x3c0] sm:$0xff]  ;;  %v4408_v34 = vld [vmem:[%s9234_s3 + $0x238] sm:$0xff] }
 0x3cf   : > { %4570 = vmatpush.msrb.mxu0 %v4416_v45  ;;  %4525 = vmatpush.msra.mxu1 %v4353_v49  ;;  %v4330_v0 = vsel %vm4292_vm2, %v4328_v32, %v4329_v28  ;;  %v4425_v35 = vld [vmem:[%s9234_s3 + $0x2c0] sm:$0xff]  ;;  %v4439_v38 = vld [vmem:[%s9234_s3 + $0x330] sm:$0xff]  ;;  %v4456_v43 = vld [vmem:[%s9234_s3 + $0x3b8] sm:$0xff] }
 0x3d0   : > { %4630 = vmatpush.msrb.mxu3 %v4464_v60  ;;  %4611 = vmatpush.msrb.mxu2 %v4447_v21  ;;  %v4335_v56 = vmax.f32 %v4333_v5, 0.0  ;;  %v4334_v37 = vadd.f32 %v4330_v0, %v4308_v14  ;;  %v4407_v44 = vld [vmem:[%s9234_s3 + $0x230] sm:$0xff]  ;;  %v4424_v48 = vld [vmem:[%s9234_s3 + $0x2b8] sm:$0xff]  ;;  %v4438_v60 = vld [vmem:[%s9234_s3 + $0x328] sm:$0xff] }
 0x3d1   : > { %4571 = vmatpush.msrb.mxu0 %v4415_v12  ;;  %4590 = vmatpush.msrb.mxu1 %v4432_v22  ;;  %v4455_v21 = vld [vmem:[%s9234_s3 + $0x3b0] sm:$0xff]  ;;  %v4406_v49 = vld [vmem:[%s9234_s3 + $0x228] sm:$0xff]  ;;  %v4437_v22 = vld [vmem:[%s9234_s3 + $0x320] sm:$0xff] }
 0x3d2   : > { %4612 = vmatpush.msrb.mxu2 %v4446_v51  ;;  %4631 = vmatpush.msrb.mxu3 %v4463_v42  ;;  %4471 = vst [vmem:[#allocation1] ss:$4 sm:$0xff] %v4335_v56  ;;  %v4336_v45 = vmax.f32 %v4334_v37, 0.0  ;;  %v4423_v12 = vld [vmem:[%s9234_s3 + $0x2b0] sm:$0xff]  ;;  %v4454_v51 = vld [vmem:[%s9234_s3 + $0x3a8] sm:$0xff]  ;;  %v4405_v42 = vld [vmem:[%s9234_s3 + $0x220] sm:$0xff] }
 0x3d3   : > { %4572 = vmatpush.msrb.mxu0 %v4414_v36  ;;  %4591 = vmatpush.msrb.mxu1 %v4431_v24  ;;  %v4422_v36 = vld [vmem:[%s9234_s3 + $0x2a8] sm:$0xff]  ;;  %v4436_v24 = vld [vmem:[%s9234_s3 + $0x318] sm:$0xff]  ;;  %v4403_v27 = vld [vmem:[%s9234_s3 + $0x210] sm:$0xff] }
 0x3d4   : > { %4613 = vmatpush.msrb.mxu2 %v4445_v23  ;;  %4632 = vmatpush.msrb.mxu3 %v4462_v18  ;;  %4473 = vst [vmem:[#allocation1 + $0x20] ss:$4 sm:$0xff] %v4336_v45  ;;  %v4453_v23 = vld [vmem:[%s9234_s3 + $0x3a0] sm:$0xff]  ;;  %v4404_v40 = vld [vmem:[%s9234_s3 + $0x218] sm:$0xff]  ;;  %v4402_v52 = vld [vmem:[%s9234_s3 + $0x208] sm:$0xff] }
 0x3d5   : > { %4573 = vmatpush.msrb.mxu0 %v4413_v46  ;;  %4592 = vmatpush.msrb.mxu1 %v4430_v13  ;;  %v4452_v41 = vld [vmem:[%s9234_s3 + $0x398] sm:$0xff]  ;;  %v4419_v2 = vld [vmem:[%s9234_s3 + $0x290] sm:$0xff]  ;;  %v4433_v55 = vld [vmem:[%s9234_s3 + $0x300] sm:$0xff] }
 0x3d6   : > { %4614 = vmatpush.msrb.mxu2 %v4444_v25  ;;  %4633 = vmatpush.msrb.mxu3 %v4461_v53  ;;  %v4421_v25 = vld [vmem:[%s9234_s3 + $0x2a0] sm:$0xff]  ;;  %v4435_v53 = vld [vmem:[%s9234_s3 + $0x310] sm:$0xff]  ;;  %v4420_v54 = vld [vmem:[%s9234_s3 + $0x298] sm:$0xff] }
 0x3d7   : > { %4574 = vmatpush.msrb.mxu0 %v4412_v61  ;;  %4593 = vmatpush.msrb.mxu1 %v4429_v20  ;;  %v4434_v61 = vld [vmem:[%s9234_s3 + $0x308] sm:$0xff]  ;;  %v4451_v20 = vld [vmem:[%s9234_s3 + $0x390] sm:$0xff]  ;;  %v4401_v58 = vld [vmem:[%s9234_s3 + $0x200] sm:$0xff] }
 0x3d8   : > { %4615 = vmatpush.msrb.mxu2 %v4443_v57  ;;  %4634 = vmatpush.msrb.mxu3 %v4460_v50  ;;  %v4450_v57 = vld [vmem:[%s9234_s3 + $0x388] sm:$0xff]  ;;  %v4449_v15 = vld [vmem:[%s9234_s3 + $0x380] sm:$0xff]  ;;  %v4666_v7 = vld [vmem:[%s9236_s5 + $0x78] sm:$0xff] }
 0x3d9   : > { %4575 = vmatpush.msrb.mxu0 %v4411_v59  ;;  %4594 = vmatpush.msrb.mxu1 %v4428_v62  ;;  %v4476_v18 = vld.sshfl [vmem:[#allocation1 + $0x10] sm:$0xff pattern:$0x73625140]  ;;  %v4474_v46 = vld.sshfl [vmem:[#allocation1] sm:$0xff pattern:$0x73625140] }
 0x3da   : > { %4616 = vmatpush.msrb.mxu2 %v4442_v3  ;;  %4635 = vmatpush.msrb.mxu3 %v4459_v33  ;;  %v4477_v13 = vld.sshfl [vmem:[#allocation1 + $0x18] sm:$0xff pattern:$0x73625140]  ;;  %v4475_v47 = vld.sshfl [vmem:[#allocation1 + $0x8] sm:$0xff pattern:$0x73625140] }
 0x3db   : > { %4576 = vmatpush.msrb.mxu0 %v4410_v17  ;;  %4595 = vmatpush.msrb.mxu1 %v4427_v6  ;;  %v4480_v50 = vld.sshfl [vmem:[#allocation1 + $0x30] sm:$0xff pattern:$0x73625140]  ;;  %v4418_v39 = vld [vmem:[%s9234_s3 + $0x288] sm:$0xff]  ;;  %v4417_v63 = vld [vmem:[%s9234_s3 + $0x280] sm:$0xff] }
 0x3dc   : > { %4617 = vmatpush.msrb.mxu2 %v4441_v10  ;;  %4636 = vmatpush.msrb.mxu3 %v4458_v16  ;;  %v4478_v59 = vld.sshfl [vmem:[#allocation1 + $0x20] sm:$0xff pattern:$0x73625140]  ;;  %v4481_v62 = vld.sshfl [vmem:[#allocation1 + $0x38] sm:$0xff pattern:$0x73625140] }
 0x3dd   : > { %4577 = vmatpush.msrb.mxu0 %v4409_v19  ;;  %4596 = vmatpush.msrb.mxu1 %v4426_v26  ;;  %v4479_v1 = vld.sshfl [vmem:[#allocation1 + $0x28] sm:$0xff pattern:$0x73625140]  ;;  %v4665_v9 = vld [vmem:[%s9236_s5 + $0x70] sm:$0xff]  ;;  %v4663_v33 = vld [vmem:[%s9236_s5 + $0x60] sm:$0xff] }
 0x3de   : > { %4618 = vmatpush.msrb.mxu2 %v4440_v29  ;;  %4637 = vmatpush.msrb.mxu3 %v4457_v31  ;;  %v4664_v3 = vld [vmem:[%s9236_s5 + $0x68] sm:$0xff]  ;;  %v4662_v4 = vld [vmem:[%s9236_s5 + $0x58] sm:$0xff]  ;;  %v4661_v30 = vld [vmem:[%s9236_s5 + $0x50] sm:$0xff] }
 0x3df   : > { %4578 = vmatpush.msrb.mxu0 %v4408_v34  ;;  %4597 = vmatpush.msrb.mxu1 %v4425_v35  ;;  %v4660_v17 = vld [vmem:[%s9236_s5 + $0x48] sm:$0xff]  ;;  %v4659_v6 = vld [vmem:[%s9236_s5 + $0x40] sm:$0xff]  ;;  %v4658_v11 = vld [vmem:[%s9236_s5 + $0x38] sm:$0xff] }
 0x3e0   : > { %4619 = vmatpush.msrb.mxu2 %v4439_v38  ;;  %4638 = vmatpush.msrb.mxu3 %v4456_v43  ;;  %v4657_v8 = vld [vmem:[%s9236_s5 + $0x30] sm:$0xff]  ;;  %v4656_v32 = vld [vmem:[%s9236_s5 + $0x28] sm:$0xff]  ;;  %v4655_v10 = vld [vmem:[%s9236_s5 + $0x20] sm:$0xff] }
 0x3e1   : > { %4579 = vmatpush.msrb.mxu0 %v4407_v44  ;;  %4598 = vmatpush.msrb.mxu1 %v4424_v48  ;;  %v4654_v16 = vld [vmem:[%s9236_s5 + $0x18] sm:$0xff]  ;;  %v4653_v5 = vld [vmem:[%s9236_s5 + $0x10] sm:$0xff]  ;;  %v4652_v14 = vld [vmem:[%s9236_s5 + $0x8] sm:$0xff] }
 0x3e2   : > { %4620 = vmatpush.msrb.mxu2 %v4438_v60  ;;  %4639 = vmatpush.msrb.mxu3 %v4455_v21  ;;  %v4651_v19 = vld [vmem:[%s9236_s5] sm:$0xff]  ;;  %v4699_v26 = vld [vmem:[%s9238_s7 + $0x38] sm:$0xff]  ;;  %v4698_v28 = vld [vmem:[%s9238_s7 + $0x30] sm:$0xff] }
 0x3e3   : > { %4580 = vmatpush.msrb.mxu0 %v4406_v49  ;;  %4599 = vmatpush.msrb.mxu1 %v4423_v12  ;;  %v4697_v29 = vld [vmem:[%s9238_s7 + $0x28] sm:$0xff]  ;;  %v4696_v31 = vld [vmem:[%s9238_s7 + $0x20] sm:$0xff]  ;;  %v4695_v34 = vld [vmem:[%s9238_s7 + $0x18] sm:$0xff] }
 0x3e4   : > { %4621 = vmatpush.msrb.mxu2 %v4437_v22  ;;  %4640 = vmatpush.msrb.mxu3 %v4454_v51  ;;  %v7427_v56 = vld [vmem:[%s9235_s4] ss:$0 sm:$0xff] }
 0x3e5   : > { %4546 = vmatmul.f32.vlgmr.msra.gmra.mxu2 %v4476_v18  ;;  %4581 = vmatpush.msrb.mxu0 %v4405_v42  ;;  %v4693_v18 = vld [vmem:[%s9238_s7 + $0x8] sm:$0xff] }
 0x3e6   : > { %4600 = vmatpush.msrb.mxu1 %v4422_v36  ;;  %4622 = vmatpush.msrb.mxu2 %v4436_v24 }
 0x3e7   : > { %4641 = vmatpush.msrb.mxu3 %v4453_v23  ;;  %4506 = vmatmul.f32.vlgmr.msra.gmra.mxu0 %v4474_v46  ;;  %v4694_v23 = vld [vmem:[%s9238_s7 + $0x10] sm:$0xff]  ;;  %v4692_v46 = vld [vmem:[%s9238_s7] sm:$0xff] }
 0x3e8   : > { %4566 = vmatmul.f32.vlgmr.msra.gmra.mxu3 %v4477_v13  ;;  %4582 = vmatpush.msrb.mxu0 %v4404_v40  ;;  %v7428_v13 = vld [vmem:[%s9237_s6] ss:$0 sm:$0xff] }
 0x3e9   : > { %4601 = vmatpush.msrb.mxu1 %v4421_v25  ;;  %4623 = vmatpush.msrb.mxu2 %v4435_v53 }
 0x3ea   : > { %4642 = vmatpush.msrb.mxu3 %v4452_v41  ;;  %4526 = vmatmul.f32.vlgmr.msra.gmra.mxu1 %v4475_v47  ;;  %v7429_v41 = vld [vmem:[%s9239_s8] ss:$0 sm:$0xff] }
 0x3eb   : > { %4583 = vmatpush.msrb.mxu0 %v4403_v27  ;;  %4602 = vmatpush.msrb.mxu1 %v4420_v54 }
 0x3ec   : > { %4624 = vmatpush.msrb.mxu2 %v4434_v61  ;;  %4643 = vmatpush.msrb.mxu3 %v4451_v20 }
 0x3ed   : > { %4584 = vmatpush.msrb.mxu0 %v4402_v52  ;;  %4603 = vmatpush.msrb.mxu1 %v4419_v2 }
 0x3ee   : > { %4625 = vmatpush.msrb.mxu2 %v4433_v55  ;;  %4644 = vmatpush.msrb.mxu3 %v4450_v57 }
 0x3ef   : > { %4626 = vmatmul.f32.vlgmr.msrb.gmra.mxu2 %v4480_v50  ;;  %4585 = vmatpush.msrb.mxu0 %v4401_v58 }
 0x3f0   : > { %4604 = vmatpush.msrb.mxu1 %v4418_v39  ;;  %4645 = vmatpush.msrb.mxu3 %v4449_v15 }
 0x3f1   : > { %4586 = vmatmul.f32.vlgmr.msrb.gmra.mxu0 %v4478_v59  ;;  %4646 = vmatmul.f32.vlgmr.msrb.gmra.mxu3 %v4481_v62 }
 0x3f2   : > { %4605 = vmatpush.msrb.mxu1 %v4417_v63  ;;  %4671 = vmatpush.msra.mxu0 %v4666_v7 }
 0x3f3   : > { %4606 = vmatmul.f32.vlgmr.msrb.gmra.mxu1 %v4479_v1 }
 0x3f4   : > { %4672 = vmatpush.msra.mxu0 %v4665_v9  ;;  %4716 = vmatpush.msra.mxu1 %v4699_v26 }
 0x3f6   : > { %4673 = vmatpush.msra.mxu0 %v4664_v3  ;;  %4717 = vmatpush.msra.mxu1 %v4698_v28 }
 0x3f8   : > { %4674 = vmatpush.msra.mxu0 %v4663_v33  ;;  %4718 = vmatpush.msra.mxu1 %v4697_v29 }
 0x3fa   : > { %4675 = vmatpush.msra.mxu0 %v4662_v4  ;;  %4719 = vmatpush.msra.mxu1 %v4696_v31 }
 0x3fc   : > { %4676 = vmatpush.msra.mxu0 %v4661_v30  ;;  %4720 = vmatpush.msra.mxu1 %v4695_v34 }
 0x3fe   : > { %4677 = vmatpush.msra.mxu0 %v4660_v17  ;;  %4721 = vmatpush.msra.mxu1 %v4694_v23 }
 0x400   : > { %4678 = vmatpush.msra.mxu0 %v4659_v6  ;;  %4722 = vmatpush.msra.mxu1 %v4693_v18 }
 0x402   : > { %4679 = vmatpush.msra.mxu0 %v4658_v11  ;;  %4723 = vmatpush.msra.mxu1 %v4692_v46 }
 0x404   : > { %4680 = vmatpush.msra.mxu0 %v4657_v8 }
 0x406   : > { %4681 = vmatpush.msra.mxu0 %v4656_v32 }
 0x408   : > { %4682 = vmatpush.msra.mxu0 %v4655_v10 }
 0x40a   : > { %4683 = vmatpush.msra.mxu0 %v4654_v16 }
 0x40c   : > { %4684 = vmatpush.msra.mxu0 %v4653_v5 }
 0x40e   : > { %4685 = vmatpush.msra.mxu0 %v4652_v14 }
 0x410   : > { %4686 = vmatpush.msra.mxu0 %v4651_v19 }
 0x464   : > { %v4507_v0 = vpop.f32.mrf.mxu0 }
 0x465   : > { %v4508_v35 = vadd.f32 %v7427_v56, %v4507_v0 }
 0x467   : > { %v4527_v37 = vpop.f32.mrf.mxu1 }
 0x468   : > { %v4528_v38 = vadd.f32 %v4527_v37, %v4508_v35  ;;  %v4547_v43 = vpop.f32.mrf.mxu2 }
 0x46a   : > { %v4548_v44 = vadd.f32 %v4547_v43, %v4528_v38 }
 0x46b   : > { %v4567_v48 = vpop.f32.mrf.mxu3 }
 0x46c   : > { %v4568_v45 = vadd.f32 %v4567_v48, %v4548_v44 }
 0x46e   : > { %v4587_v60 = vpop.f32.mrf.mxu0 }
 0x46f   : > { %v4588_v21 = vadd.f32 %v4587_v60, %v4568_v45 }
 0x470   : > { %v4607_v49 = vpop.f32.mrf.mxu1 }
 0x471   : > { %v4608_v12 = vadd.f32 %v4607_v49, %v4588_v21 }
 0x472   : > { %v4627_v22 = vpop.f32.mrf.mxu2 }
 0x473   : > { %v4628_v51 = vadd.f32 %v4627_v22, %v4608_v12 }
 0x474   : > { %v4647_v42 = vpop.f32.mrf.mxu3 }
 0x475   : > { %v4648_v36 = vadd.f32 %v4647_v42, %v4628_v51 }
 0x477   : > { %v4650_v24 = vmax.f32 %v4648_v36, 0.0 }
 0x479   : > { %4687 = vmatmul.f32.vlgmr.msra.gmra.mxu0 %v4650_v24 }
 0x4f6   : > { %v4688_v40 = vpop.f32.mrf.mxu0 }
 0x4f7   : > { %v4689_v25 = vadd.f32 %v7428_v13, %v4688_v40 }
 0x4f9   : > { %v4691_v53 = vmax.f32 %v4689_v25, 0.0 }
 0x4fb   : > { %6869 = vmatmul.msk.f32.vlgmr.msra.gmra.mxu1 %vm4704_vm3, %v4691_v53 }
 0x578   : > { %v4725_v47 = vpop.f32.mrf.mxu1 }
 0x579   : > { %v4726_v27 = vadd.f32 %v7429_v41, %v4725_v47 }
 0x57b   : > { %v4729_v54 = vsel %vm4728_vm4, %v4726_v27, -inf }
 0x57c   : > { %4730 = vmax.xlane.f32.xlu0 %v4729_v54 }
 0x5ef   : > { %v4731_v61 = vpop.xlane.xlu0 %4730 }
 0x5f0   : > { %v4732_v20 = vsub.f32 %v4726_v27, %v4731_v61 }
 0x5f2   : > { %v4733_v52 = vmul.f32 1.442695, %v4732_v20 }
 0x5f4   : > { %7430 = vpow2.f32 %v4733_v52 }
 0x5fa   : > { %v7431_v2 = vpop.eup %7430 }
 0x5fb   : > { %v4735_v55 = vsel %vm4728_vm4, %v7431_v2, 0.0 }
 0x5fc   : > { %4736 = vadd.xlane.f32.xlu0 %v4735_v55 }
 0x66f   : > { %v4737_v57 = vpop.xlane.xlu0 %4736 }
 0x670   : > { %7432 = vrcp.f32 %v4737_v57  ;;  %v4749_v15 = vand.u32 2147483648, %v4737_v57  ;;  %v4747_v62 = vand.u32 2147483647, %v4737_v57  ;;  %vm4743_vm6 = vweird.f32 %v4737_v57 }
 0x672   : > { %v4750_v7 = vor.u32 1.1754944e-38, %v4749_v15  ;;  %vm4748_vm8 = vcmp.eq.f32.partialorder %v4747_v62, 8.507059e+37 }
 0x676   : > { %v7433_v50 = vpop.eup %7432 }
 0x677   : > { %v4739_v58 = vmul.f32 %v7433_v50, %v4737_v57  ;;  %vm4744_vm5 = vweird.f32 %v7433_v50 }
 0x678   : > { %vm4745_vm7 = vmor %vm4743_vm6, %vm4744_vm5 }
 0x679   : > { %v4740_v39 = vsub.f32 1.0, %v4739_v58 }
 0x67b   : > { %v4741_v59 = vmul.f32 %v7433_v50, %v4740_v39 }
 0x67d   : > { %v4742_v63 = vadd.f32 %v7433_v50, %v4741_v59 }
 0x67f   : > { %v4746_v1 = vsel %vm4745_vm7, %v7433_v50, %v4742_v63 }
 0x680   : > { %v4751_v9 = vsel %vm4748_vm8, %v4750_v7, %v4746_v1 }
 0x681   : > { %v4752_v3 = vmul.f32 %v7431_v2, %v4751_v9 }
 0x683   : > { %4753 = vst.msk [vmem:[#allocation3] sm:$0x3] %vm4728_vm4, %v4752_v3 }
 0x684 PF: > { %p7391_p7 = scmp.eq.s32.totalorder %s7532_s10, 7  ;;  %s7475_s11 = smov [#allocation3]  }
 0x685   : > { %s4760_s12 = sshll.u32 %s7475_s11, 4  ;;  %s4762_s15 = sshll.u32 %s9240_s9, 4  ;;  %s4761_s12 = int_to_ptr.vmem [resolvable:$true] %s4760_s12  ;;  %s4763_s15 = int_to_ptr.hbm [resolvable:$true] %s4762_s15 }
 0x686   : > { %7388 = dma.vmem_to_hbm [thread:$0]  (%p7391_p7), %s4761_s12, 32, %s4763_s15, [#allocation4]  }
 0x687   : > { %7467 = dma.done.wait (%p7391_p7), [#allocation4], 32  }
 0x688   : > { %7469 = vsyncadd (%p7391_p7), [#allocation4], 4294967264 }
 0x689 PF: > { %s20_s30 = sadd.s32 1, %s7472_s30  }
 0x68a   : > { %p17_p8 = scmp.ge.s32.totalorder %s20_s30, 10  }
 0x68c   :  { %19 = sbr.rel (!%p17_p8) target bundleno = 1 (0x1), region = 95 }
 0x691   :  { %4776 = vsyncpa [#allocation4], 1 }
 0x692   :  { %4778 = vsyncpa [#allocation4 + $0x1], 1 }

</bundles_post_ra>
